<compile_context>
chip_gen: v7x
topology: tpu7x:2x2x1
jax: 0.10.0
libtpu: 0.0.40
codegen_flags: <defaults>
</compile_context>

<pallas_src>
import functools

import numpy as np
import jax
import jax.numpy as jnp
from jax import lax
from jax.experimental import pallas as pl
from jax.experimental.pallas import tpu as pltpu

_NB = 6  # number of AdaptiveBottleneckBlocks inside AHM


# ---------------------------------------------------------------------------
# wrapper-side helpers (folding / tiny constant tables)
# ---------------------------------------------------------------------------
def _bn_fold(bn, eps=1e-5):
    s = bn["gamma"] / jnp.sqrt(bn["var"] + eps)
    return s, bn["beta"] - bn["mean"] * s


def _make_shift(H, W):
    """(9, HW, HW) tap-shift matrices for 3x3 / pad-1 convolution on an HxW grid.

    (S[t] @ a)[p] == a[p shifted by tap-offset t] (zero where the neighbour is out of
    bounds), so a stride-1 conv is  sum_t (S[t] @ a) @ W[t],  and row 0 of (S[t] @ a) is
    exactly the tap input of the stride-3 / pad-1 conv's single (0,0) output pixel.
    """
    HW = H * W
    S = np.zeros((9, HW, HW), np.float32)
    for k in range(3):
        for l in range(3):
            dr, dc = k - 1, l - 1
            for i in range(H):
                for j in range(W):
                    r, c = i + dr, j + dc
                    if 0 <= r < H and 0 <= c < W:
                        S[3 * k + l, i * W + j, r * W + c] = 1.0
    return jnp.asarray(S)


def _make_pool(H, W):
    """(1, HW) row vector computing nn.AvgPool2d(2) for an HxW -> 1x1 pooling."""
    v = np.zeros((1, H * W), np.float32)
    for r in range(2):
        for c in range(2):
            v[0, r * W + c] = 0.25
    return jnp.asarray(v)


def _pack_params(p, C):
    """Fold BN / Scale modules and stack the 6 blocks' weights into resident arrays."""
    P = C // 2
    blocks = [p["encoder"], p["decoder_low1"], p["decoder_low2"], p["decoder_low3"],
              p["decoder_high"], p["alise"]]
    prolog, w1, b1, w2, b2, w3, b3 = [], [], [], [], [], [], []
    alise_w, layer4_w, ca_w1, ca_b1, ca_w2, ca_b2, scal = [], [], [], [], [], [], []
    for bp in blocks:
        pro_u, w1_u, b1_u, w2_u, b2_u, w3_u, b3_u = [], [], [], [], [], [], []
        for up in (bp["layer1"], bp["layer2"]):
            s1, t1 = _bn_fold(up["bn1"])
            s2, t2 = _bn_fold(up["bn2"])
            s3, t3 = _bn_fold(up["bn3"])
            pro_u.append(jnp.stack([s1, t1]))                              # bn1 prologue
            w1_u.append(up["conv1_w"] * s2[None, :])                       # conv1 (+bn2)
            b1_u.append(up["conv1_b"] * s2 + t2)
            w2_u.append(up["conv2_w"].reshape(9, P, P) * s3[None, None, :])  # conv2 (+bn3)
            b2_u.append(up["conv2_b"] * s3 + t3)
            w3_u.append(up["conv3_w"] * up["w1"])                          # conv3 (x weight1)
            b3_u.append(up["conv3_b"] * up["w1"])
        prolog.append(jnp.stack(pro_u))
        w1.append(jnp.stack(w1_u)); b1.append(jnp.stack(b1_u))
        w2.append(jnp.stack(w2_u)); b2.append(jnp.stack(b2_u))
        w3.append(jnp.stack(w3_u)); b3.append(jnp.stack(b3_u))
        # Scale weight2 / weight3 (on the concat inputs) folded into alise rows (linear).
        alise_w.append(jnp.concatenate([bp["alise_w"][:C] * bp["w2"],
                                        bp["alise_w"][C:] * bp["w3"]], axis=0))
        layer4_w.append(bp["layer4_w"].reshape(9, C, C))
        ca_w1.append(bp["atten"]["w1"]); ca_b1.append(bp["atten"]["b1"])
        ca_w2.append(bp["atten"]["w2"]); ca_b2.append(bp["atten"]["b2"])
        # residual scalars (cannot be folded past a ReLU / onto the raw residual)
        scal.extend([bp["layer1"]["w2"], bp["layer2"]["w2"], bp["w4"], bp["w5"]])
    Cr = p["att"]["w1"].shape[1]
    return dict(
        u_prolog=jnp.stack(prolog),                        # (6, 2, 2, C)
        u_w1=jnp.stack(w1), u_b1=jnp.stack(b1),            # (6, 2, C, P) / (6, 2, P)
        u_w2=jnp.stack(w2).reshape(_NB, 18, P, P),         # (6, 18, P, P)  [2 units x 9 taps]
        u_b2=jnp.stack(b2),                                # (6, 2, P)
        u_w3=jnp.stack(w3), u_b3=jnp.stack(b3),            # (6, 2, P, C) / (6, 2, C)
        alise_w=jnp.stack(alise_w),                        # (6, 2C, C)
        layer4_w=jnp.stack(layer4_w),                      # (6, 9, C, C)
        ca_w1=jnp.stack(ca_w1), ca_b1=jnp.stack(ca_b1),    # (6, C, Cr) / (6, Cr)
        ca_w2=jnp.stack(ca_w2), ca_b2=jnp.stack(ca_b2),    # (6, Cr, C) / (6, C)
        alise2_w=p["alise2_w"],                            # (2C, C)
        att_w1=p["att"]["w1"], att_b1=p["att"]["b1"].reshape(1, Cr),
        att_w2=p["att"]["w2"], att_b2=p["att"]["b2"].reshape(1, C),
        scal=jnp.stack(scal).astype(jnp.float32),          # (24,) SMEM scalars
    )


# ---------------------------------------------------------------------------
# THE fused AHM kernel (one grid step == one batch element)
# ---------------------------------------------------------------------------
def _ahm_kernel(x_ref, pool_ref, shift_ref,
                u_prolog_ref, u_w1_ref, u_b1_ref, u_w2_ref, u_b2_ref, u_w3_ref, u_b3_ref,
                alise_w_ref, layer4_w_ref, ca_w1_ref, ca_b1_ref, ca_w2_ref, ca_b2_ref,
                alise2_w_ref, att_w1_ref, att_b1_ref, att_w2_ref, att_b2_ref,
                scal_ref, o_ref, *, H, W):
    C = o_ref.shape[-1]

    def dot(a, b):
        return jnp.dot(a, b, preferred_element_type=jnp.float32)

    def unit(x, blk, u, h, w):
        # relu(bn1(x)) -> conv1(1x1)+bn2 -> relu     (bn2 folded into conv1)
        z = jnp.maximum(x * u_prolog_ref[blk, u, 0] + u_prolog_ref[blk, u, 1], 0.0)
        y = jnp.maximum(dot(z, u_w1_ref[blk, u]) + u_b1_ref[blk, u], 0.0)      # (hw, P)
        # conv2: 3x3, stride 3, pad 1 -> single (0,0) output pixel (bn3 folded in).
        if h * w == 1:
            acc = dot(y, u_w2_ref[blk, u * 9 + 4])                             # centre tap
        else:
            acc = None
            for t in range(9):
                sel = shift_ref[t][0:1, :]                                     # (1, hw)
                c_t = dot(dot(sel, y), u_w2_ref[blk, u * 9 + t])
                acc = c_t if acc is None else acc + c_t
        y2 = jnp.maximum(acc + u_b2_ref[blk, u], 0.0)                          # (1, P)
        # conv3 (1x1) with weight1 folded in; + weight2 * residual (broadcast over hw).
        out = dot(y2, u_w3_ref[blk, u]) + u_b3_ref[blk, u]                     # (1, C)
        return out + scal_ref[4 * blk + u] * x

    def ca(a, w1, b1, w2, b2, hw):
        m = jnp.sum(a, axis=0, keepdims=True) * (1.0 / hw)                     # GAP (1, C)
        hdn = jnp.maximum(dot(m, w1) + b1, 0.0)
        g = jax.nn.sigmoid(dot(hdn, w2) + b2)
        return a * g

    def block(x, blk, h, w):
        x1 = unit(x, blk, 0, h, w)
        x2 = unit(x1, blk, 1, h, w)
        # alise: 1x1 conv on cat([w2*x2, w3*x1]) -> split matmul (Scales folded into rows)
        wa = alise_w_ref[blk]
        a = jnp.maximum(dot(x2, wa[:C]) + dot(x1, wa[C:]), 0.0)
        a = ca(a, ca_w1_ref[blk], ca_b1_ref[blk], ca_w2_ref[blk], ca_b2_ref[blk], h * w)
        # layer4: 3x3 stride-1 pad-1 conv as accumulated tap matmuls, then ReLU.
        if h * w == 1:
            y4 = dot(a, layer4_w_ref[blk, 4])
        else:
            y4 = None
            for t in range(9):
                c_t = dot(dot(shift_ref[t], a), layer4_w_ref[blk, t])
                y4 = c_t if y4 is None else y4 + c_t
        y4 = jnp.maximum(y4, 0.0)
        # weight4 * x + weight5 * y4   (weight5 kept scalar: it sits after the ReLU)
        return scal_ref[4 * blk + 2] * x + scal_ref[4 * blk + 3] * y4

    x = x_ref[0]                                   # (HW, C), one batch element
    x1 = block(x, 0, H, W)                         # encoder
    pooled = dot(pool_ref[...], x1)                # AvgPool2d(2) -> (1, C)
    high = x1 - pooled                             # x1 - bilinear_up(pooled) == broadcast
    low = block(pooled, 1, 1, 1)                   # decoder_low1 @ 1x1 spatial
    low = block(low, 2, 1, 1)                      # decoder_low2
    low = block(low, 3, 1, 1)                      # decoder_low3
    high1 = block(high, 4, H, W)                   # decoder_high
    # alise2: 1x1 conv on cat([up(low), high1]); up of a 1x1 map is a pure broadcast.
    wa2 = alise2_w_ref[...]
    z = jnp.maximum(dot(low, wa2[:C]) + dot(high1, wa2[C:]), 0.0)
    z = ca(z, att_w1_ref[...], att_b1_ref[...], att_w2_ref[...], att_b2_ref[...], H * W)
    z = block(z, 5, H, W)                          # alise block
    o_ref[0] = (z + x).astype(o_ref.dtype)


def _resident(a):
    """Full-array VMEM block with a constant index map (stays resident across the grid)."""
    return pl.BlockSpec(a.shape, lambda b, nd=a.ndim: (0,) * nd)


@jax.jit
def ahm_forward(x_nchw, params):
    """AHM.forward.  Accepts NCHW (PyTorch layout); one fused Pallas call, NHWC inside."""
    x = jnp.transpose(x_nchw, (0, 2, 3, 1)).astype(jnp.float32)
    B, H, W, C = x.shape
    # The PyTorch module only runs for spatial sizes 2..3 (stride-3 conv2 must yield 1x1
    # for the residual broadcast, AvgPool2d(2) must yield a 1x1 low branch).
    assert 2 <= H <= 3 and 2 <= W <= 3, "AHM only supports spatial sizes 2 or 3"
    assert C % 2 == 0 and C >= 16
    HW = H * W
    P = C // 2
    Cr = params["att"]["w1"].shape[1]

    pk = _pack_params(params, C)
    shift = _make_shift(H, W)
    pool = _make_pool(H, W)

    ops = [x.reshape(B, HW, C), pool, shift,
           pk["u_prolog"], pk["u_w1"], pk["u_b1"], pk["u_w2"], pk["u_b2"],
           pk["u_w3"], pk["u_b3"], pk["alise_w"], pk["layer4_w"],
           pk["ca_w1"], pk["ca_b1"], pk["ca_w2"], pk["ca_b2"],
           pk["alise2_w"], pk["att_w1"], pk["att_b1"], pk["att_w2"], pk["att_b2"]]
    in_specs = ([pl.BlockSpec((1, HW, C), lambda b: (b, 0, 0))]
                + [_resident(a) for a in ops[1:]]
                + [pl.BlockSpec(memory_space=pltpu.MemorySpace.SMEM)])
    ops.append(pk["scal"])

    # Rough advisory cost estimate for the XLA scheduler.
    def blk_flops(hw):
        unit = 2 * (hw * C * P + 9 * P * P + P * C)
        return (2 * unit + 2 * hw * 2 * C * C + 2 * (C * Cr + Cr * C)
                + 18 * (hw * hw * C + hw * C * C))
    flops = B * (3 * blk_flops(HW) + 3 * blk_flops(1)
                 + 2 * HW * 2 * C * C + 2 * (C * Cr + Cr * C))
    wbytes = sum(int(np.prod(a.shape)) * 4 for a in ops)
    cost = pl.CostEstimate(flops=int(flops), transcendentals=int(B * 7 * C),
                           bytes_accessed=int(wbytes + B * HW * C * 4))

    out = pl.pallas_call(
        functools.partial(_ahm_kernel, H=H, W=W),
        out_shape=jax.ShapeDtypeStruct((B, HW, C), jnp.float32),
        grid=(B,),
        in_specs=in_specs,
        out_specs=pl.BlockSpec((1, HW, C), lambda b: (b, 0, 0)),
        compiler_params=pltpu.CompilerParams(dimension_semantics=("parallel",)),
        cost_estimate=cost,
    )(*ops)
    return jnp.transpose(out.reshape(B, H, W, C), (0, 3, 1, 2))


# ---------------------------------------------------------------------------
# Pure-JAX reference (mirrors the PyTorch forward) -- used only for verification
# ---------------------------------------------------------------------------
def avg_pool_2x2(x):
    B, H, W, C = x.shape
    Ho, Wo = H // 2, W // 2
    xc = x[:, :Ho * 2, :Wo * 2, :]
    return xc.reshape(B, Ho, 2, Wo, 2, C).mean(axis=(2, 4))


def upsample_bilinear_align_corners(x, H, W):
    B, h, w, C = x.shape
    if (h, w) == (H, W):
        return x
    if h == 1 and w == 1:
        return jnp.broadcast_to(x, (B, H, W, C))
    def src(out_n, in_n):
        if out_n == 1 or in_n == 1:
            return jnp.zeros((out_n,), jnp.float32)
        return jnp.arange(out_n, dtype=jnp.float32) * ((in_n - 1) / (out_n - 1))
    ys, xs = src(H, h), src(W, w)
    y0 = jnp.clip(jnp.floor(ys).astype(jnp.int32), 0, h - 1)
    x0 = jnp.clip(jnp.floor(xs).astype(jnp.int32), 0, w - 1)
    y1 = jnp.minimum(y0 + 1, h - 1)
    x1 = jnp.minimum(x0 + 1, w - 1)
    wy = (ys - y0.astype(jnp.float32))[None, :, None, None]
    wx = (xs - x0.astype(jnp.float32))[None, None, :, None]
    g00 = x[:, y0][:, :, x0]
    g01 = x[:, y0][:, :, x1]
    g10 = x[:, y1][:, :, x0]
    g11 = x[:, y1][:, :, x1]
    top = g00 * (1 - wx) + g01 * wx
    bot = g10 * (1 - wx) + g11 * wx
    return top * (1 - wy) + bot * wy


def _ref_bn_relu(x, bn, eps=1e-5):
    s = bn["gamma"] / jnp.sqrt(bn["var"] + eps)
    return jax.nn.relu((x - bn["mean"]) * s + bn["beta"])


def _ref_conv1x1(x, w, b=None):
    y = jnp.einsum("bhwc,cd->bhwd", x, w, precision=lax.Precision.HIGHEST)
    return y if b is None else y + b


def _ref_conv3x3(x, w, b=None, stride=1):
    y = lax.conv_general_dilated(x, w, (stride, stride), ((1, 1), (1, 1)),
                                 dimension_numbers=("NHWC", "HWIO", "NHWC"),
                                 precision=lax.Precision.HIGHEST)
    return y if b is None else y + b


def _ref_abu(x, p):
    t = _ref_conv1x1(_ref_bn_relu(x, p["bn1"]), p["conv1_w"], p["conv1_b"])
    t = _ref_conv3x3(_ref_bn_relu(t, p["bn2"]), p["conv2_w"], p["conv2_b"], stride=3)
    t = _ref_conv1x1(_ref_bn_relu(t, p["bn3"]), p["conv3_w"], p["conv3_b"])
    return p["w1"] * t + p["w2"] * x


def _ref_ca(x, p):
    m = jnp.mean(x, axis=(1, 2), keepdims=True)
    h = jax.nn.relu(jnp.einsum("bhwc,cd->bhwd", m, p["w1"],
                               precision=lax.Precision.HIGHEST) + p["b1"])
    g = jax.nn.sigmoid(jnp.einsum("bhwc,cd->bhwd", h, p["w2"],
                                  precision=lax.Precision.HIGHEST) + p["b2"])
    return x * g


def _ref_abb(x, p):
    x1 = _ref_abu(x, p["layer1"])
    x2 = _ref_abu(x1, p["layer2"])
    cat = jnp.concatenate([p["w2"] * x2, p["w3"] * x1], axis=-1)
    a = jax.nn.relu(_ref_conv1x1(cat, p["alise_w"]))
    a = _ref_ca(a, p["atten"])
    x4 = jax.nn.relu(_ref_conv3x3(a, p["layer4_w"], stride=1))
    return p["w4"] * x + p["w5"] * x4


def reference_ahm(x_nchw, p):
    x = jnp.transpose(x_nchw, (0, 2, 3, 1)).astype(jnp.float32)
    B, H, W, C = x.shape
    x1 = _ref_abb(x, p["encoder"])
    x2 = avg_pool_2x2(x1)
    high = x1 - upsample_bilinear_align_corners(x2, H, W)
    x2 = _ref_abb(x2, p["decoder_low1"])
    x2 = _ref_abb(x2, p["decoder_low2"])
    x2 = _ref_abb(x2, p["decoder_low3"])
    high1 = _ref_abb(high, p["decoder_high"])
    x4 = upsample_bilinear_align_corners(x2, H, W)
    cat = jnp.concatenate([x4, high1], axis=-1)
    z = jax.nn.relu(_ref_conv1x1(cat, p["alise2_w"]))
    z = _ref_ca(z, p["att"])
    z = _ref_abb(z, p["alise"])
    return jnp.transpose(z + x, (0, 3, 1, 2))


# ---------------------------------------------------------------------------
# deterministic parameter construction
# ---------------------------------------------------------------------------
class _KeyGen:
    def __init__(self, key):
        self._key = key

    def __call__(self):
        self._key, sub = jax.random.split(self._key)
        return sub


def _w(kg, shape, scale=0.1):
    return scale * jax.random.normal(kg(), shape, dtype=jnp.float32)


def _make_bn(kg, c):
    return {"gamma": 1.0 + 0.1 * jax.random.normal(kg(), (c,), jnp.float32),
            "beta": 0.1 * jax.random.normal(kg(), (c,), jnp.float32),
            "mean": 0.1 * jax.random.normal(kg(), (c,), jnp.float32),
            "var": jax.random.uniform(kg(), (c,), jnp.float32, 0.5, 1.5)}


def _make_abu(kg, c):
    p = c // 2
    return {"bn1": _make_bn(kg, c),
            "conv1_w": _w(kg, (c, p)), "conv1_b": _w(kg, (p,)),
            "bn2": _make_bn(kg, p),
            "conv2_w": _w(kg, (3, 3, p, p)), "conv2_b": _w(kg, (p,)),
            "bn3": _make_bn(kg, p),
            "conv3_w": _w(kg, (p, c)), "conv3_b": _w(kg, (c,)),
            "w1": 1.0 + _w(kg, ()), "w2": 1.0 + _w(kg, ())}


def _make_ca(kg, c, reduction=16):
    cr = max(c // reduction, 1)
    return {"w1": _w(kg, (c, cr)), "b1": _w(kg, (cr,)),
            "w2": _w(kg, (cr, c)), "b2": _w(kg, (c,))}


def _make_abb(kg, c):
    return {"layer1": _make_abu(kg, c), "layer2": _make_abu(kg, c),
            "layer4_w": _w(kg, (3, 3, c, c)),
            "alise_w": _w(kg, (2 * c, c)),
            "atten": _make_ca(kg, c),
            "w2": 1.0 + _w(kg, ()), "w3": 1.0 + _w(kg, ()),
            "w4": 1.0 + _w(kg, ()), "w5": 1.0 + _w(kg, ())}


def make_ahm_params(key, c):
    kg = _KeyGen(key)
    return {"encoder": _make_abb(kg, c),
            "decoder_low1": _make_abb(kg, c),
            "decoder_low2": _make_abb(kg, c),
            "decoder_low3": _make_abb(kg, c),
            "decoder_high": _make_abb(kg, c),
            "alise": _make_abb(kg, c),
            "alise2_w": _w(kg, (2 * c, c)),
            "att": _make_ca(kg, c)}


# ---------------------------------------------------------------------------
if __name__ == "__main__":
    # n_feats >= 16 (CALayer reduction) and spatial size 3 (the only regime, besides 2,
    # where the PyTorch forward runs, see NOTE at the top).
    batch, n_feats, spatial = 2, 32, 3
    root = jax.random.PRNGKey(0)
    k_x, k_p = jax.random.split(root)
    x = jax.random.normal(k_x, (batch, n_feats, spatial, spatial), dtype=jnp.float32)
    params = make_ahm_params(k_p, n_feats)

    out = jax.block_until_ready(ahm_forward(x, params))
    ref = jax.block_until_ready(jax.jit(reference_ahm)(x, params))

    assert out.shape == x.shape
    assert bool(jnp.all(jnp.isfinite(out)))
    max_err = float(jnp.max(jnp.abs(out - ref)))
    assert max_err < 2e-2, f"mismatch vs reference, max err {max_err}"
    print("KERNEL_OK")
</pallas_src>

<mosaic_0001>
module attributes {stable_mosaic.version = 11 : i64} {
  func.func @_ahm_kernel(%arg0: i32, %arg1: memref<1x9x32xf32, #tpu.memory_space<vmem>>, %arg2: memref<1x9xf32, #tpu.memory_space<vmem>>, %arg3: memref<9x9x9xf32, #tpu.memory_space<vmem>>, %arg4: memref<6x2x2x32xf32, #tpu.memory_space<vmem>>, %arg5: memref<6x2x32x16xf32, #tpu.memory_space<vmem>>, %arg6: memref<6x2x16xf32, #tpu.memory_space<vmem>>, %arg7: memref<6x18x16x16xf32, #tpu.memory_space<vmem>>, %arg8: memref<6x2x16xf32, #tpu.memory_space<vmem>>, %arg9: memref<6x2x16x32xf32, #tpu.memory_space<vmem>>, %arg10: memref<6x2x32xf32, #tpu.memory_space<vmem>>, %arg11: memref<6x64x32xf32, #tpu.memory_space<vmem>>, %arg12: memref<6x9x32x32xf32, #tpu.memory_space<vmem>>, %arg13: memref<6x32x2xf32, #tpu.memory_space<vmem>>, %arg14: memref<6x2xf32, #tpu.memory_space<vmem>>, %arg15: memref<6x2x32xf32, #tpu.memory_space<vmem>>, %arg16: memref<6x32xf32, #tpu.memory_space<vmem>>, %arg17: memref<64x32xf32, #tpu.memory_space<vmem>>, %arg18: memref<32x2xf32, #tpu.memory_space<vmem>>, %arg19: memref<1x2xf32, #tpu.memory_space<vmem>>, %arg20: memref<2x32xf32, #tpu.memory_space<vmem>>, %arg21: memref<1x32xf32, #tpu.memory_space<vmem>>, %arg22: memref<24xf32, #tpu.memory_space<smem>>, %arg23: memref<1x9x32xf32, #tpu.memory_space<vmem>>) attributes {dimension_semantics = [#tpu.dimension_semantics<parallel>], iteration_bounds = array<i64: 2>, scalar_prefetch = 0 : i64, scratch_operands = 0 : i64, tpu.core_type = #tpu.core_type<tc>, window_params = [{transform_indices = @transform_0, window_bounds = array<i64: 1, 9, 32>}, {pipeline_mode = #tpu.pipeline_mode<synchronous>, transform_indices = @transform_1, window_bounds = array<i64: 1, 9>}, {pipeline_mode = #tpu.pipeline_mode<synchronous>, transform_indices = @transform_2, window_bounds = array<i64: 9, 9, 9>}, {pipeline_mode = #tpu.pipeline_mode<synchronous>, transform_indices = @transform_3, window_bounds = array<i64: 6, 2, 2, 32>}, {pipeline_mode = #tpu.pipeline_mode<synchronous>, transform_indices = @transform_4, window_bounds = array<i64: 6, 2, 32, 16>}, {pipeline_mode = #tpu.pipeline_mode<synchronous>, transform_indices = @transform_5, window_bounds = array<i64: 6, 2, 16>}, {pipeline_mode = #tpu.pipeline_mode<synchronous>, transform_indices = @transform_6, window_bounds = array<i64: 6, 18, 16, 16>}, {pipeline_mode = #tpu.pipeline_mode<synchronous>, transform_indices = @transform_7, window_bounds = array<i64: 6, 2, 16>}, {pipeline_mode = #tpu.pipeline_mode<synchronous>, transform_indices = @transform_8, window_bounds = array<i64: 6, 2, 16, 32>}, {pipeline_mode = #tpu.pipeline_mode<synchronous>, transform_indices = @transform_9, window_bounds = array<i64: 6, 2, 32>}, {pipeline_mode = #tpu.pipeline_mode<synchronous>, transform_indices = @transform_10, window_bounds = array<i64: 6, 64, 32>}, {pipeline_mode = #tpu.pipeline_mode<synchronous>, transform_indices = @transform_11, window_bounds = array<i64: 6, 9, 32, 32>}, {pipeline_mode = #tpu.pipeline_mode<synchronous>, transform_indices = @transform_12, window_bounds = array<i64: 6, 32, 2>}, {pipeline_mode = #tpu.pipeline_mode<synchronous>, transform_indices = @transform_13, window_bounds = array<i64: 6, 2>}, {pipeline_mode = #tpu.pipeline_mode<synchronous>, transform_indices = @transform_14, window_bounds = array<i64: 6, 2, 32>}, {pipeline_mode = #tpu.pipeline_mode<synchronous>, transform_indices = @transform_15, window_bounds = array<i64: 6, 32>}, {pipeline_mode = #tpu.pipeline_mode<synchronous>, transform_indices = @transform_16, window_bounds = array<i64: 64, 32>}, {pipeline_mode = #tpu.pipeline_mode<synchronous>, transform_indices = @transform_17, window_bounds = array<i64: 32, 2>}, {pipeline_mode = #tpu.pipeline_mode<synchronous>, transform_indices = @transform_18, window_bounds = array<i64: 1, 2>}, {pipeline_mode = #tpu.pipeline_mode<synchronous>, transform_indices = @transform_19, window_bounds = array<i64: 2, 32>}, {pipeline_mode = #tpu.pipeline_mode<synchronous>, transform_indices = @transform_20, window_bounds = array<i64: 1, 32>}, {transform_indices = @transform_21, window_bounds = array<i64: 24>}, {transform_indices = @transform_22, window_bounds = array<i64: 1, 9, 32>}]} {
    %c0 = arith.constant 0 : index
    %c0_0 = arith.constant 0 : index
    %c0_1 = arith.constant 0 : index
    %0 = vector.load %arg1[%c0, %c0_0, %c0_1] : memref<1x9x32xf32, #tpu.memory_space<vmem>>, vector<1x9x32xf32>
    %1 = vector.shape_cast %0 : vector<1x9x32xf32> to vector<9x32xf32>
    %c0_2 = arith.constant 0 : index
    %c0_3 = arith.constant 0 : index
    %c0_4 = arith.constant 0 : index
    %c0_5 = arith.constant 0 : index
    %2 = vector.load %arg4[%c0_2, %c0_3, %c0_4, %c0_5] : memref<6x2x2x32xf32, #tpu.memory_space<vmem>>, vector<1x1x1x32xf32>
    %3 = vector.shape_cast %2 : vector<1x1x1x32xf32> to vector<32xf32>
    %4 = vector.shape_cast %3 : vector<32xf32> to vector<1x32xf32>
    %5 = vector.broadcast %4 : vector<1x32xf32> to vector<9x32xf32>
    %6 = arith.mulf %1, %5 : vector<9x32xf32>
    %c0_6 = arith.constant 0 : index
    %c0_7 = arith.constant 0 : index
    %c1 = arith.constant 1 : index
    %c0_8 = arith.constant 0 : index
    %7 = vector.load %arg4[%c0_6, %c0_7, %c1, %c0_8] : memref<6x2x2x32xf32, #tpu.memory_space<vmem>>, vector<1x1x1x32xf32>
    %8 = vector.shape_cast %7 : vector<1x1x1x32xf32> to vector<32xf32>
    %9 = vector.shape_cast %8 : vector<32xf32> to vector<1x32xf32>
    %10 = vector.broadcast %9 : vector<1x32xf32> to vector<9x32xf32>
    %11 = arith.addf %6, %10 : vector<9x32xf32>
    %cst = arith.constant 0.000000e+00 : f32
    %12 = vector.broadcast %cst : f32 to vector<9x32xf32>
    %13 = arith.maximumf %11, %12 : vector<9x32xf32>
    %c0_9 = arith.constant 0 : index
    %c0_10 = arith.constant 0 : index
    %c0_11 = arith.constant 0 : index
    %c0_12 = arith.constant 0 : index
    %14 = vector.load %arg5[%c0_9, %c0_10, %c0_11, %c0_12] : memref<6x2x32x16xf32, #tpu.memory_space<vmem>>, vector<1x1x32x16xf32>
    %15 = vector.shape_cast %14 : vector<1x1x32x16xf32> to vector<32x16xf32>
    %cst_13 = arith.constant dense<0.000000e+00> : vector<9x16xf32>
    %16 = tpu.matmul %13, %15, %cst_13 {dimension_numbers = #tpu.dot_dimension_numbers<[1], [0], [0], [1], [0, 0, 1, 1], [], []>} : vector<9x32xf32>, vector<32x16xf32>, vector<9x16xf32> -> vector<9x16xf32>
    %c0_14 = arith.constant 0 : index
    %c0_15 = arith.constant 0 : index
    %c0_16 = arith.constant 0 : index
    %17 = vector.load %arg6[%c0_14, %c0_15, %c0_16] : memref<6x2x16xf32, #tpu.memory_space<vmem>>, vector<1x1x16xf32>
    %18 = vector.shape_cast %17 : vector<1x1x16xf32> to vector<16xf32>
    %19 = vector.shape_cast %18 : vector<16xf32> to vector<1x16xf32>
    %20 = vector.broadcast %19 : vector<1x16xf32> to vector<9x16xf32>
    %21 = arith.addf %16, %20 : vector<9x16xf32>
    %cst_17 = arith.constant 0.000000e+00 : f32
    %22 = vector.broadcast %cst_17 : f32 to vector<9x16xf32>
    %23 = arith.maximumf %21, %22 : vector<9x16xf32>
    %c0_18 = arith.constant 0 : index
    %c0_19 = arith.constant 0 : index
    %c0_20 = arith.constant 0 : index
    %24 = vector.load %arg3[%c0_18, %c0_19, %c0_20] : memref<9x9x9xf32, #tpu.memory_space<vmem>>, vector<1x9x9xf32>
    %25 = vector.shape_cast %24 : vector<1x9x9xf32> to vector<9x9xf32>
    %26 = vector.extract_strided_slice %25 {offsets = [0, 0], sizes = [1, 9], strides = [1, 1]} : vector<9x9xf32> to vector<1x9xf32>
    %cst_21 = arith.constant dense<0.000000e+00> : vector<1x16xf32>
    %27 = tpu.matmul %26, %23, %cst_21 {dimension_numbers = #tpu.dot_dimension_numbers<[1], [0], [0], [1], [0, 0, 1, 1], [], []>} : vector<1x9xf32>, vector<9x16xf32>, vector<1x16xf32> -> vector<1x16xf32>
    %c0_22 = arith.constant 0 : index
    %c0_23 = arith.constant 0 : index
    %c0_24 = arith.constant 0 : index
    %c0_25 = arith.constant 0 : index
    %28 = vector.load %arg7[%c0_22, %c0_23, %c0_24, %c0_25] : memref<6x18x16x16xf32, #tpu.memory_space<vmem>>, vector<1x1x16x16xf32>
    %29 = vector.shape_cast %28 : vector<1x1x16x16xf32> to vector<16x16xf32>
    %cst_26 = arith.constant dense<0.000000e+00> : vector<1x16xf32>
    %30 = tpu.matmul %27, %29, %cst_26 {dimension_numbers = #tpu.dot_dimension_numbers<[1], [0], [0], [1], [0, 0, 1, 1], [], []>} : vector<1x16xf32>, vector<16x16xf32>, vector<1x16xf32> -> vector<1x16xf32>
    %c1_27 = arith.constant 1 : index
    %c0_28 = arith.constant 0 : index
    %c0_29 = arith.constant 0 : index
    %31 = vector.load %arg3[%c1_27, %c0_28, %c0_29] : memref<9x9x9xf32, #tpu.memory_space<vmem>>, vector<1x9x9xf32>
    %32 = vector.shape_cast %31 : vector<1x9x9xf32> to vector<9x9xf32>
    %33 = vector.extract_strided_slice %32 {offsets = [0, 0], sizes = [1, 9], strides = [1, 1]} : vector<9x9xf32> to vector<1x9xf32>
    %cst_30 = arith.constant dense<0.000000e+00> : vector<1x16xf32>
    %34 = tpu.matmul %33, %23, %cst_30 {dimension_numbers = #tpu.dot_dimension_numbers<[1], [0], [0], [1], [0, 0, 1, 1], [], []>} : vector<1x9xf32>, vector<9x16xf32>, vector<1x16xf32> -> vector<1x16xf32>
    %c0_31 = arith.constant 0 : index
    %c1_32 = arith.constant 1 : index
    %c0_33 = arith.constant 0 : index
    %c0_34 = arith.constant 0 : index
    %35 = vector.load %arg7[%c0_31, %c1_32, %c0_33, %c0_34] : memref<6x18x16x16xf32, #tpu.memory_space<vmem>>, vector<1x1x16x16xf32>
    %36 = vector.shape_cast %35 : vector<1x1x16x16xf32> to vector<16x16xf32>
    %cst_35 = arith.constant dense<0.000000e+00> : vector<1x16xf32>
    %37 = tpu.matmul %34, %36, %cst_35 {dimension_numbers = #tpu.dot_dimension_numbers<[1], [0], [0], [1], [0, 0, 1, 1], [], []>} : vector<1x16xf32>, vector<16x16xf32>, vector<1x16xf32> -> vector<1x16xf32>
    %38 = arith.addf %30, %37 : vector<1x16xf32>
    %c2 = arith.constant 2 : index
    %c0_36 = arith.constant 0 : index
    %c0_37 = arith.constant 0 : index
    %39 = vector.load %arg3[%c2, %c0_36, %c0_37] : memref<9x9x9xf32, #tpu.memory_space<vmem>>, vector<1x9x9xf32>
    %40 = vector.shape_cast %39 : vector<1x9x9xf32> to vector<9x9xf32>
    %41 = vector.extract_strided_slice %40 {offsets = [0, 0], sizes = [1, 9], strides = [1, 1]} : vector<9x9xf32> to vector<1x9xf32>
    %cst_38 = arith.constant dense<0.000000e+00> : vector<1x16xf32>
    %42 = tpu.matmul %41, %23, %cst_38 {dimension_numbers = #tpu.dot_dimension_numbers<[1], [0], [0], [1], [0, 0, 1, 1], [], []>} : vector<1x9xf32>, vector<9x16xf32>, vector<1x16xf32> -> vector<1x16xf32>
    %c0_39 = arith.constant 0 : index
    %c2_40 = arith.constant 2 : index
    %c0_41 = arith.constant 0 : index
    %c0_42 = arith.constant 0 : index
    %43 = vector.load %arg7[%c0_39, %c2_40, %c0_41, %c0_42] : memref<6x18x16x16xf32, #tpu.memory_space<vmem>>, vector<1x1x16x16xf32>
    %44 = vector.shape_cast %43 : vector<1x1x16x16xf32> to vector<16x16xf32>
    %cst_43 = arith.constant dense<0.000000e+00> : vector<1x16xf32>
    %45 = tpu.matmul %42, %44, %cst_43 {dimension_numbers = #tpu.dot_dimension_numbers<[1], [0], [0], [1], [0, 0, 1, 1], [], []>} : vector<1x16xf32>, vector<16x16xf32>, vector<1x16xf32> -> vector<1x16xf32>
    %46 = arith.addf %38, %45 : vector<1x16xf32>
    %c3 = arith.constant 3 : index
    %c0_44 = arith.constant 0 : index
    %c0_45 = arith.constant 0 : index
    %47 = vector.load %arg3[%c3, %c0_44, %c0_45] : memref<9x9x9xf32, #tpu.memory_space<vmem>>, vector<1x9x9xf32>
    %48 = vector.shape_cast %47 : vector<1x9x9xf32> to vector<9x9xf32>
    %49 = vector.extract_strided_slice %48 {offsets = [0, 0], sizes = [1, 9], strides = [1, 1]} : vector<9x9xf32> to vector<1x9xf32>
    %cst_46 = arith.constant dense<0.000000e+00> : vector<1x16xf32>
    %50 = tpu.matmul %49, %23, %cst_46 {dimension_numbers = #tpu.dot_dimension_numbers<[1], [0], [0], [1], [0, 0, 1, 1], [], []>} : vector<1x9xf32>, vector<9x16xf32>, vector<1x16xf32> -> vector<1x16xf32>
    %c0_47 = arith.constant 0 : index
    %c3_48 = arith.constant 3 : index
    %c0_49 = arith.constant 0 : index
    %c0_50 = arith.constant 0 : index
    %51 = vector.load %arg7[%c0_47, %c3_48, %c0_49, %c0_50] : memref<6x18x16x16xf32, #tpu.memory_space<vmem>>, vector<1x1x16x16xf32>
    %52 = vector.shape_cast %51 : vector<1x1x16x16xf32> to vector<16x16xf32>
    %cst_51 = arith.constant dense<0.000000e+00> : vector<1x16xf32>
    %53 = tpu.matmul %50, %52, %cst_51 {dimension_numbers = #tpu.dot_dimension_numbers<[1], [0], [0], [1], [0, 0, 1, 1], [], []>} : vector<1x16xf32>, vector<16x16xf32>, vector<1x16xf32> -> vector<1x16xf32>
    %54 = arith.addf %46, %53 : vector<1x16xf32>
    %c4 = arith.constant 4 : index
    %c0_52 = arith.constant 0 : index
    %c0_53 = arith.constant 0 : index
    %55 = vector.load %arg3[%c4, %c0_52, %c0_53] : memref<9x9x9xf32, #tpu.memory_space<vmem>>, vector<1x9x9xf32>
    %56 = vector.shape_cast %55 : vector<1x9x9xf32> to vector<9x9xf32>
    %57 = vector.extract_strided_slice %56 {offsets = [0, 0], sizes = [1, 9], strides = [1, 1]} : vector<9x9xf32> to vector<1x9xf32>
    %cst_54 = arith.constant dense<0.000000e+00> : vector<1x16xf32>
    %58 = tpu.matmul %57, %23, %cst_54 {dimension_numbers = #tpu.dot_dimension_numbers<[1], [0], [0], [1], [0, 0, 1, 1], [], []>} : vector<1x9xf32>, vector<9x16xf32>, vector<1x16xf32> -> vector<1x16xf32>
    %c0_55 = arith.constant 0 : index
    %c4_56 = arith.constant 4 : index
    %c0_57 = arith.constant 0 : index
    %c0_58 = arith.constant 0 : index
    %59 = vector.load %arg7[%c0_55, %c4_56, %c0_57, %c0_58] : memref<6x18x16x16xf32, #tpu.memory_space<vmem>>, vector<1x1x16x16xf32>
    %60 = vector.shape_cast %59 : vector<1x1x16x16xf32> to vector<16x16xf32>
    %cst_59 = arith.constant dense<0.000000e+00> : vector<1x16xf32>
    %61 = tpu.matmul %58, %60, %cst_59 {dimension_numbers = #tpu.dot_dimension_numbers<[1], [0], [0], [1], [0, 0, 1, 1], [], []>} : vector<1x16xf32>, vector<16x16xf32>, vector<1x16xf32> -> vector<1x16xf32>
    %62 = arith.addf %54, %61 : vector<1x16xf32>
    %c5 = arith.constant 5 : index
    %c0_60 = arith.constant 0 : index
    %c0_61 = arith.constant 0 : index
    %63 = vector.load %arg3[%c5, %c0_60, %c0_61] : memref<9x9x9xf32, #tpu.memory_space<vmem>>, vector<1x9x9xf32>
    %64 = vector.shape_cast %63 : vector<1x9x9xf32> to vector<9x9xf32>
    %65 = vector.extract_strided_slice %64 {offsets = [0, 0], sizes = [1, 9], strides = [1, 1]} : vector<9x9xf32> to vector<1x9xf32>
    %cst_62 = arith.constant dense<0.000000e+00> : vector<1x16xf32>
    %66 = tpu.matmul %65, %23, %cst_62 {dimension_numbers = #tpu.dot_dimension_numbers<[1], [0], [0], [1], [0, 0, 1, 1], [], []>} : vector<1x9xf32>, vector<9x16xf32>, vector<1x16xf32> -> vector<1x16xf32>
    %c0_63 = arith.constant 0 : index
    %c5_64 = arith.constant 5 : index
    %c0_65 = arith.constant 0 : index
    %c0_66 = arith.constant 0 : index
    %67 = vector.load %arg7[%c0_63, %c5_64, %c0_65, %c0_66] : memref<6x18x16x16xf32, #tpu.memory_space<vmem>>, vector<1x1x16x16xf32>
    %68 = vector.shape_cast %67 : vector<1x1x16x16xf32> to vector<16x16xf32>
    %cst_67 = arith.constant dense<0.000000e+00> : vector<1x16xf32>
    %69 = tpu.matmul %66, %68, %cst_67 {dimension_numbers = #tpu.dot_dimension_numbers<[1], [0], [0], [1], [0, 0, 1, 1], [], []>} : vector<1x16xf32>, vector<16x16xf32>, vector<1x16xf32> -> vector<1x16xf32>
    %70 = arith.addf %62, %69 : vector<1x16xf32>
    %c6 = arith.constant 6 : index
    %c0_68 = arith.constant 0 : index
    %c0_69 = arith.constant 0 : index
    %71 = vector.load %arg3[%c6, %c0_68, %c0_69] : memref<9x9x9xf32, #tpu.memory_space<vmem>>, vector<1x9x9xf32>
    %72 = vector.shape_cast %71 : vector<1x9x9xf32> to vector<9x9xf32>
    %73 = vector.extract_strided_slice %72 {offsets = [0, 0], sizes = [1, 9], strides = [1, 1]} : vector<9x9xf32> to vector<1x9xf32>
    %cst_70 = arith.constant dense<0.000000e+00> : vector<1x16xf32>
    %74 = tpu.matmul %73, %23, %cst_70 {dimension_numbers = #tpu.dot_dimension_numbers<[1], [0], [0], [1], [0, 0, 1, 1], [], []>} : vector<1x9xf32>, vector<9x16xf32>, vector<1x16xf32> -> vector<1x16xf32>
    %c0_71 = arith.constant 0 : index
    %c6_72 = arith.constant 6 : index
    %c0_73 = arith.constant 0 : index
    %c0_74 = arith.constant 0 : index
    %75 = vector.load %arg7[%c0_71, %c6_72, %c0_73, %c0_74] : memref<6x18x16x16xf32, #tpu.memory_space<vmem>>, vector<1x1x16x16xf32>
    %76 = vector.shape_cast %75 : vector<1x1x16x16xf32> to vector<16x16xf32>
    %cst_75 = arith.constant dense<0.000000e+00> : vector<1x16xf32>
    %77 = tpu.matmul %74, %76, %cst_75 {dimension_numbers = #tpu.dot_dimension_numbers<[1], [0], [0], [1], [0, 0, 1, 1], [], []>} : vector<1x16xf32>, vector<16x16xf32>, vector<1x16xf32> -> vector<1x16xf32>
    %78 = arith.addf %70, %77 : vector<1x16xf32>
    %c7 = arith.constant 7 : index
    %c0_76 = arith.constant 0 : index
    %c0_77 = arith.constant 0 : index
    %79 = vector.load %arg3[%c7, %c0_76, %c0_77] : memref<9x9x9xf32, #tpu.memory_space<vmem>>, vector<1x9x9xf32>
    %80 = vector.shape_cast %79 : vector<1x9x9xf32> to vector<9x9xf32>
    %81 = vector.extract_strided_slice %80 {offsets = [0, 0], sizes = [1, 9], strides = [1, 1]} : vector<9x9xf32> to vector<1x9xf32>
    %cst_78 = arith.constant dense<0.000000e+00> : vector<1x16xf32>
    %82 = tpu.matmul %81, %23, %cst_78 {dimension_numbers = #tpu.dot_dimension_numbers<[1], [0], [0], [1], [0, 0, 1, 1], [], []>} : vector<1x9xf32>, vector<9x16xf32>, vector<1x16xf32> -> vector<1x16xf32>
    %c0_79 = arith.constant 0 : index
    %c7_80 = arith.constant 7 : index
    %c0_81 = arith.constant 0 : index
    %c0_82 = arith.constant 0 : index
    %83 = vector.load %arg7[%c0_79, %c7_80, %c0_81, %c0_82] : memref<6x18x16x16xf32, #tpu.memory_space<vmem>>, vector<1x1x16x16xf32>
    %84 = vector.shape_cast %83 : vector<1x1x16x16xf32> to vector<16x16xf32>
    %cst_83 = arith.constant dense<0.000000e+00> : vector<1x16xf32>
    %85 = tpu.matmul %82, %84, %cst_83 {dimension_numbers = #tpu.dot_dimension_numbers<[1], [0], [0], [1], [0, 0, 1, 1], [], []>} : vector<1x16xf32>, vector<16x16xf32>, vector<1x16xf32> -> vector<1x16xf32>
    %86 = arith.addf %78, %85 : vector<1x16xf32>
    %c8 = arith.constant 8 : index
    %c0_84 = arith.constant 0 : index
    %c0_85 = arith.constant 0 : index
    %87 = vector.load %arg3[%c8, %c0_84, %c0_85] : memref<9x9x9xf32, #tpu.memory_space<vmem>>, vector<1x9x9xf32>
    %88 = vector.shape_cast %87 : vector<1x9x9xf32> to vector<9x9xf32>
    %89 = vector.extract_strided_slice %88 {offsets = [0, 0], sizes = [1, 9], strides = [1, 1]} : vector<9x9xf32> to vector<1x9xf32>
    %cst_86 = arith.constant dense<0.000000e+00> : vector<1x16xf32>
    %90 = tpu.matmul %89, %23, %cst_86 {dimension_numbers = #tpu.dot_dimension_numbers<[1], [0], [0], [1], [0, 0, 1, 1], [], []>} : vector<1x9xf32>, vector<9x16xf32>, vector<1x16xf32> -> vector<1x16xf32>
    %c0_87 = arith.constant 0 : index
    %c8_88 = arith.constant 8 : index
    %c0_89 = arith.constant 0 : index
    %c0_90 = arith.constant 0 : index
    %91 = vector.load %arg7[%c0_87, %c8_88, %c0_89, %c0_90] : memref<6x18x16x16xf32, #tpu.memory_space<vmem>>, vector<1x1x16x16xf32>
    %92 = vector.shape_cast %91 : vector<1x1x16x16xf32> to vector<16x16xf32>
    %cst_91 = arith.constant dense<0.000000e+00> : vector<1x16xf32>
    %93 = tpu.matmul %90, %92, %cst_91 {dimension_numbers = #tpu.dot_dimension_numbers<[1], [0], [0], [1], [0, 0, 1, 1], [], []>} : vector<1x16xf32>, vector<16x16xf32>, vector<1x16xf32> -> vector<1x16xf32>
    %94 = arith.addf %86, %93 : vector<1x16xf32>
    %c0_92 = arith.constant 0 : index
    %c0_93 = arith.constant 0 : index
    %c0_94 = arith.constant 0 : index
    %95 = vector.load %arg8[%c0_92, %c0_93, %c0_94] : memref<6x2x16xf32, #tpu.memory_space<vmem>>, vector<1x1x16xf32>
    %96 = vector.shape_cast %95 : vector<1x1x16xf32> to vector<16xf32>
    %97 = vector.shape_cast %96 : vector<16xf32> to vector<1x16xf32>
    %98 = arith.addf %94, %97 : vector<1x16xf32>
    %cst_95 = arith.constant 0.000000e+00 : f32
    %99 = vector.broadcast %cst_95 : f32 to vector<1x16xf32>
    %100 = arith.maximumf %98, %99 : vector<1x16xf32>
    %c0_96 = arith.constant 0 : index
    %c0_97 = arith.constant 0 : index
    %c0_98 = arith.constant 0 : index
    %c0_99 = arith.constant 0 : index
    %101 = vector.load %arg9[%c0_96, %c0_97, %c0_98, %c0_99] : memref<6x2x16x32xf32, #tpu.memory_space<vmem>>, vector<1x1x16x32xf32>
    %102 = vector.shape_cast %101 : vector<1x1x16x32xf32> to vector<16x32xf32>
    %cst_100 = arith.constant dense<0.000000e+00> : vector<1x32xf32>
    %103 = tpu.matmul %100, %102, %cst_100 {dimension_numbers = #tpu.dot_dimension_numbers<[1], [0], [0], [1], [0, 0, 1, 1], [], []>} : vector<1x16xf32>, vector<16x32xf32>, vector<1x32xf32> -> vector<1x32xf32>
    %c0_101 = arith.constant 0 : index
    %c0_102 = arith.constant 0 : index
    %c0_103 = arith.constant 0 : index
    %104 = vector.load %arg10[%c0_101, %c0_102, %c0_103] : memref<6x2x32xf32, #tpu.memory_space<vmem>>, vector<1x1x32xf32>
    %105 = vector.shape_cast %104 : vector<1x1x32xf32> to vector<32xf32>
    %106 = vector.shape_cast %105 : vector<32xf32> to vector<1x32xf32>
    %107 = arith.addf %103, %106 : vector<1x32xf32>
    %c0_104 = arith.constant 0 : index
    %108 = memref.load %arg22[%c0_104] : memref<24xf32, #tpu.memory_space<smem>>
    %109 = vector.broadcast %108 : f32 to vector<9x32xf32>
    %110 = arith.mulf %109, %1 : vector<9x32xf32>
    %111 = vector.broadcast %107 : vector<1x32xf32> to vector<9x32xf32>
    %112 = arith.addf %111, %110 : vector<9x32xf32>
    %c0_105 = arith.constant 0 : index
    %c1_106 = arith.constant 1 : index
    %c0_107 = arith.constant 0 : index
    %c0_108 = arith.constant 0 : index
    %113 = vector.load %arg4[%c0_105, %c1_106, %c0_107, %c0_108] : memref<6x2x2x32xf32, #tpu.memory_space<vmem>>, vector<1x1x1x32xf32>
    %114 = vector.shape_cast %113 : vector<1x1x1x32xf32> to vector<32xf32>
    %115 = vector.shape_cast %114 : vector<32xf32> to vector<1x32xf32>
    %116 = vector.broadcast %115 : vector<1x32xf32> to vector<9x32xf32>
    %117 = arith.mulf %112, %116 : vector<9x32xf32>
    %c0_109 = arith.constant 0 : index
    %c1_110 = arith.constant 1 : index
    %c1_111 = arith.constant 1 : index
    %c0_112 = arith.constant 0 : index
    %118 = vector.load %arg4[%c0_109, %c1_110, %c1_111, %c0_112] : memref<6x2x2x32xf32, #tpu.memory_space<vmem>>, vector<1x1x1x32xf32>
    %119 = vector.shape_cast %118 : vector<1x1x1x32xf32> to vector<32xf32>
    %120 = vector.shape_cast %119 : vector<32xf32> to vector<1x32xf32>
    %121 = vector.broadcast %120 : vector<1x32xf32> to vector<9x32xf32>
    %122 = arith.addf %117, %121 : vector<9x32xf32>
    %cst_113 = arith.constant 0.000000e+00 : f32
    %123 = vector.broadcast %cst_113 : f32 to vector<9x32xf32>
    %124 = arith.maximumf %122, %123 : vector<9x32xf32>
    %c0_114 = arith.constant 0 : index
    %c1_115 = arith.constant 1 : index
    %c0_116 = arith.constant 0 : index
    %c0_117 = arith.constant 0 : index
    %125 = vector.load %arg5[%c0_114, %c1_115, %c0_116, %c0_117] : memref<6x2x32x16xf32, #tpu.memory_space<vmem>>, vector<1x1x32x16xf32>
    %126 = vector.shape_cast %125 : vector<1x1x32x16xf32> to vector<32x16xf32>
    %cst_118 = arith.constant dense<0.000000e+00> : vector<9x16xf32>
    %127 = tpu.matmul %124, %126, %cst_118 {dimension_numbers = #tpu.dot_dimension_numbers<[1], [0], [0], [1], [0, 0, 1, 1], [], []>} : vector<9x32xf32>, vector<32x16xf32>, vector<9x16xf32> -> vector<9x16xf32>
    %c0_119 = arith.constant 0 : index
    %c1_120 = arith.constant 1 : index
    %c0_121 = arith.constant 0 : index
    %128 = vector.load %arg6[%c0_119, %c1_120, %c0_121] : memref<6x2x16xf32, #tpu.memory_space<vmem>>, vector<1x1x16xf32>
    %129 = vector.shape_cast %128 : vector<1x1x16xf32> to vector<16xf32>
    %130 = vector.shape_cast %129 : vector<16xf32> to vector<1x16xf32>
    %131 = vector.broadcast %130 : vector<1x16xf32> to vector<9x16xf32>
    %132 = arith.addf %127, %131 : vector<9x16xf32>
    %cst_122 = arith.constant 0.000000e+00 : f32
    %133 = vector.broadcast %cst_122 : f32 to vector<9x16xf32>
    %134 = arith.maximumf %132, %133 : vector<9x16xf32>
    %c0_123 = arith.constant 0 : index
    %c0_124 = arith.constant 0 : index
    %c0_125 = arith.constant 0 : index
    %135 = vector.load %arg3[%c0_123, %c0_124, %c0_125] : memref<9x9x9xf32, #tpu.memory_space<vmem>>, vector<1x9x9xf32>
    %136 = vector.shape_cast %135 : vector<1x9x9xf32> to vector<9x9xf32>
    %137 = vector.extract_strided_slice %136 {offsets = [0, 0], sizes = [1, 9], strides = [1, 1]} : vector<9x9xf32> to vector<1x9xf32>
    %cst_126 = arith.constant dense<0.000000e+00> : vector<1x16xf32>
    %138 = tpu.matmul %137, %134, %cst_126 {dimension_numbers = #tpu.dot_dimension_numbers<[1], [0], [0], [1], [0, 0, 1, 1], [], []>} : vector<1x9xf32>, vector<9x16xf32>, vector<1x16xf32> -> vector<1x16xf32>
    %c0_127 = arith.constant 0 : index
    %c9 = arith.constant 9 : index
    %c0_128 = arith.constant 0 : index
    %c0_129 = arith.constant 0 : index
    %139 = vector.load %arg7[%c0_127, %c9, %c0_128, %c0_129] : memref<6x18x16x16xf32, #tpu.memory_space<vmem>>, vector<1x1x16x16xf32>
    %140 = vector.shape_cast %139 : vector<1x1x16x16xf32> to vector<16x16xf32>
    %cst_130 = arith.constant dense<0.000000e+00> : vector<1x16xf32>
    %141 = tpu.matmul %138, %140, %cst_130 {dimension_numbers = #tpu.dot_dimension_numbers<[1], [0], [0], [1], [0, 0, 1, 1], [], []>} : vector<1x16xf32>, vector<16x16xf32>, vector<1x16xf32> -> vector<1x16xf32>
    %c1_131 = arith.constant 1 : index
    %c0_132 = arith.constant 0 : index
    %c0_133 = arith.constant 0 : index
    %142 = vector.load %arg3[%c1_131, %c0_132, %c0_133] : memref<9x9x9xf32, #tpu.memory_space<vmem>>, vector<1x9x9xf32>
    %143 = vector.shape_cast %142 : vector<1x9x9xf32> to vector<9x9xf32>
    %144 = vector.extract_strided_slice %143 {offsets = [0, 0], sizes = [1, 9], strides = [1, 1]} : vector<9x9xf32> to vector<1x9xf32>
    %cst_134 = arith.constant dense<0.000000e+00> : vector<1x16xf32>
    %145 = tpu.matmul %144, %134, %cst_134 {dimension_numbers = #tpu.dot_dimension_numbers<[1], [0], [0], [1], [0, 0, 1, 1], [], []>} : vector<1x9xf32>, vector<9x16xf32>, vector<1x16xf32> -> vector<1x16xf32>
    %c0_135 = arith.constant 0 : index
    %c10 = arith.constant 10 : index
    %c0_136 = arith.constant 0 : index
    %c0_137 = arith.constant 0 : index
    %146 = vector.load %arg7[%c0_135, %c10, %c0_136, %c0_137] : memref<6x18x16x16xf32, #tpu.memory_space<vmem>>, vector<1x1x16x16xf32>
    %147 = vector.shape_cast %146 : vector<1x1x16x16xf32> to vector<16x16xf32>
    %cst_138 = arith.constant dense<0.000000e+00> : vector<1x16xf32>
    %148 = tpu.matmul %145, %147, %cst_138 {dimension_numbers = #tpu.dot_dimension_numbers<[1], [0], [0], [1], [0, 0, 1, 1], [], []>} : vector<1x16xf32>, vector<16x16xf32>, vector<1x16xf32> -> vector<1x16xf32>
    %149 = arith.addf %141, %148 : vector<1x16xf32>
    %c2_139 = arith.constant 2 : index
    %c0_140 = arith.constant 0 : index
    %c0_141 = arith.constant 0 : index
    %150 = vector.load %arg3[%c2_139, %c0_140, %c0_141] : memref<9x9x9xf32, #tpu.memory_space<vmem>>, vector<1x9x9xf32>
    %151 = vector.shape_cast %150 : vector<1x9x9xf32> to vector<9x9xf32>
    %152 = vector.extract_strided_slice %151 {offsets = [0, 0], sizes = [1, 9], strides = [1, 1]} : vector<9x9xf32> to vector<1x9xf32>
    %cst_142 = arith.constant dense<0.000000e+00> : vector<1x16xf32>
    %153 = tpu.matmul %152, %134, %cst_142 {dimension_numbers = #tpu.dot_dimension_numbers<[1], [0], [0], [1], [0, 0, 1, 1], [], []>} : vector<1x9xf32>, vector<9x16xf32>, vector<1x16xf32> -> vector<1x16xf32>
    %c0_143 = arith.constant 0 : index
    %c11 = arith.constant 11 : index
    %c0_144 = arith.constant 0 : index
    %c0_145 = arith.constant 0 : index
    %154 = vector.load %arg7[%c0_143, %c11, %c0_144, %c0_145] : memref<6x18x16x16xf32, #tpu.memory_space<vmem>>, vector<1x1x16x16xf32>
    %155 = vector.shape_cast %154 : vector<1x1x16x16xf32> to vector<16x16xf32>
    %cst_146 = arith.constant dense<0.000000e+00> : vector<1x16xf32>
    %156 = tpu.matmul %153, %155, %cst_146 {dimension_numbers = #tpu.dot_dimension_numbers<[1], [0], [0], [1], [0, 0, 1, 1], [], []>} : vector<1x16xf32>, vector<16x16xf32>, vector<1x16xf32> -> vector<1x16xf32>
    %157 = arith.addf %149, %156 : vector<1x16xf32>
    %c3_147 = arith.constant 3 : index
    %c0_148 = arith.constant 0 : index
    %c0_149 = arith.constant 0 : index
    %158 = vector.load %arg3[%c3_147, %c0_148, %c0_149] : memref<9x9x9xf32, #tpu.memory_space<vmem>>, vector<1x9x9xf32>
    %159 = vector.shape_cast %158 : vector<1x9x9xf32> to vector<9x9xf32>
    %160 = vector.extract_strided_slice %159 {offsets = [0, 0], sizes = [1, 9], strides = [1, 1]} : vector<9x9xf32> to vector<1x9xf32>
    %cst_150 = arith.constant dense<0.000000e+00> : vector<1x16xf32>
    %161 = tpu.matmul %160, %134, %cst_150 {dimension_numbers = #tpu.dot_dimension_numbers<[1], [0], [0], [1], [0, 0, 1, 1], [], []>} : vector<1x9xf32>, vector<9x16xf32>, vector<1x16xf32> -> vector<1x16xf32>
    %c0_151 = arith.constant 0 : index
    %c12 = arith.constant 12 : index
    %c0_152 = arith.constant 0 : index
    %c0_153 = arith.constant 0 : index
    %162 = vector.load %arg7[%c0_151, %c12, %c0_152, %c0_153] : memref<6x18x16x16xf32, #tpu.memory_space<vmem>>, vector<1x1x16x16xf32>
    %163 = vector.shape_cast %162 : vector<1x1x16x16xf32> to vector<16x16xf32>
    %cst_154 = arith.constant dense<0.000000e+00> : vector<1x16xf32>
    %164 = tpu.matmul %161, %163, %cst_154 {dimension_numbers = #tpu.dot_dimension_numbers<[1], [0], [0], [1], [0, 0, 1, 1], [], []>} : vector<1x16xf32>, vector<16x16xf32>, vector<1x16xf32> -> vector<1x16xf32>
    %165 = arith.addf %157, %164 : vector<1x16xf32>
    %c4_155 = arith.constant 4 : index
    %c0_156 = arith.constant 0 : index
    %c0_157 = arith.constant 0 : index
    %166 = vector.load %arg3[%c4_155, %c0_156, %c0_157] : memref<9x9x9xf32, #tpu.memory_space<vmem>>, vector<1x9x9xf32>
    %167 = vector.shape_cast %166 : vector<1x9x9xf32> to vector<9x9xf32>
    %168 = vector.extract_strided_slice %167 {offsets = [0, 0], sizes = [1, 9], strides = [1, 1]} : vector<9x9xf32> to vector<1x9xf32>
    %cst_158 = arith.constant dense<0.000000e+00> : vector<1x16xf32>
    %169 = tpu.matmul %168, %134, %cst_158 {dimension_numbers = #tpu.dot_dimension_numbers<[1], [0], [0], [1], [0, 0, 1, 1], [], []>} : vector<1x9xf32>, vector<9x16xf32>, vector<1x16xf32> -> vector<1x16xf32>
    %c0_159 = arith.constant 0 : index
    %c13 = arith.constant 13 : index
    %c0_160 = arith.constant 0 : index
    %c0_161 = arith.constant 0 : index
    %170 = vector.load %arg7[%c0_159, %c13, %c0_160, %c0_161] : memref<6x18x16x16xf32, #tpu.memory_space<vmem>>, vector<1x1x16x16xf32>
    %171 = vector.shape_cast %170 : vector<1x1x16x16xf32> to vector<16x16xf32>
    %cst_162 = arith.constant dense<0.000000e+00> : vector<1x16xf32>
    %172 = tpu.matmul %169, %171, %cst_162 {dimension_numbers = #tpu.dot_dimension_numbers<[1], [0], [0], [1], [0, 0, 1, 1], [], []>} : vector<1x16xf32>, vector<16x16xf32>, vector<1x16xf32> -> vector<1x16xf32>
    %173 = arith.addf %165, %172 : vector<1x16xf32>
    %c5_163 = arith.constant 5 : index
    %c0_164 = arith.constant 0 : index
    %c0_165 = arith.constant 0 : index
    %174 = vector.load %arg3[%c5_163, %c0_164, %c0_165] : memref<9x9x9xf32, #tpu.memory_space<vmem>>, vector<1x9x9xf32>
    %175 = vector.shape_cast %174 : vector<1x9x9xf32> to vector<9x9xf32>
    %176 = vector.extract_strided_slice %175 {offsets = [0, 0], sizes = [1, 9], strides = [1, 1]} : vector<9x9xf32> to vector<1x9xf32>
    %cst_166 = arith.constant dense<0.000000e+00> : vector<1x16xf32>
    %177 = tpu.matmul %176, %134, %cst_166 {dimension_numbers = #tpu.dot_dimension_numbers<[1], [0], [0], [1], [0, 0, 1, 1], [], []>} : vector<1x9xf32>, vector<9x16xf32>, vector<1x16xf32> -> vector<1x16xf32>
    %c0_167 = arith.constant 0 : index
    %c14 = arith.constant 14 : index
    %c0_168 = arith.constant 0 : index
    %c0_169 = arith.constant 0 : index
    %178 = vector.load %arg7[%c0_167, %c14, %c0_168, %c0_169] : memref<6x18x16x16xf32, #tpu.memory_space<vmem>>, vector<1x1x16x16xf32>
    %179 = vector.shape_cast %178 : vector<1x1x16x16xf32> to vector<16x16xf32>
    %cst_170 = arith.constant dense<0.000000e+00> : vector<1x16xf32>
    %180 = tpu.matmul %177, %179, %cst_170 {dimension_numbers = #tpu.dot_dimension_numbers<[1], [0], [0], [1], [0, 0, 1, 1], [], []>} : vector<1x16xf32>, vector<16x16xf32>, vector<1x16xf32> -> vector<1x16xf32>
    %181 = arith.addf %173, %180 : vector<1x16xf32>
    %c6_171 = arith.constant 6 : index
    %c0_172 = arith.constant 0 : index
    %c0_173 = arith.constant 0 : index
    %182 = vector.load %arg3[%c6_171, %c0_172, %c0_173] : memref<9x9x9xf32, #tpu.memory_space<vmem>>, vector<1x9x9xf32>
    %183 = vector.shape_cast %182 : vector<1x9x9xf32> to vector<9x9xf32>
    %184 = vector.extract_strided_slice %183 {offsets = [0, 0], sizes = [1, 9], strides = [1, 1]} : vector<9x9xf32> to vector<1x9xf32>
    %cst_174 = arith.constant dense<0.000000e+00> : vector<1x16xf32>
    %185 = tpu.matmul %184, %134, %cst_174 {dimension_numbers = #tpu.dot_dimension_numbers<[1], [0], [0], [1], [0, 0, 1, 1], [], []>} : vector<1x9xf32>, vector<9x16xf32>, vector<1x16xf32> -> vector<1x16xf32>
    %c0_175 = arith.constant 0 : index
    %c15 = arith.constant 15 : index
    %c0_176 = arith.constant 0 : index
    %c0_177 = arith.constant 0 : index
    %186 = vector.load %arg7[%c0_175, %c15, %c0_176, %c0_177] : memref<6x18x16x16xf32, #tpu.memory_space<vmem>>, vector<1x1x16x16xf32>
    %187 = vector.shape_cast %186 : vector<1x1x16x16xf32> to vector<16x16xf32>
    %cst_178 = arith.constant dense<0.000000e+00> : vector<1x16xf32>
    %188 = tpu.matmul %185, %187, %cst_178 {dimension_numbers = #tpu.dot_dimension_numbers<[1], [0], [0], [1], [0, 0, 1, 1], [], []>} : vector<1x16xf32>, vector<16x16xf32>, vector<1x16xf32> -> vector<1x16xf32>
    %189 = arith.addf %181, %188 : vector<1x16xf32>
    %c7_179 = arith.constant 7 : index
    %c0_180 = arith.constant 0 : index
    %c0_181 = arith.constant 0 : index
    %190 = vector.load %arg3[%c7_179, %c0_180, %c0_181] : memref<9x9x9xf32, #tpu.memory_space<vmem>>, vector<1x9x9xf32>
    %191 = vector.shape_cast %190 : vector<1x9x9xf32> to vector<9x9xf32>
    %192 = vector.extract_strided_slice %191 {offsets = [0, 0], sizes = [1, 9], strides = [1, 1]} : vector<9x9xf32> to vector<1x9xf32>
    %cst_182 = arith.constant dense<0.000000e+00> : vector<1x16xf32>
    %193 = tpu.matmul %192, %134, %cst_182 {dimension_numbers = #tpu.dot_dimension_numbers<[1], [0], [0], [1], [0, 0, 1, 1], [], []>} : vector<1x9xf32>, vector<9x16xf32>, vector<1x16xf32> -> vector<1x16xf32>
    %c0_183 = arith.constant 0 : index
    %c16 = arith.constant 16 : index
    %c0_184 = arith.constant 0 : index
    %c0_185 = arith.constant 0 : index
    %194 = vector.load %arg7[%c0_183, %c16, %c0_184, %c0_185] : memref<6x18x16x16xf32, #tpu.memory_space<vmem>>, vector<1x1x16x16xf32>
    %195 = vector.shape_cast %194 : vector<1x1x16x16xf32> to vector<16x16xf32>
    %cst_186 = arith.constant dense<0.000000e+00> : vector<1x16xf32>
    %196 = tpu.matmul %193, %195, %cst_186 {dimension_numbers = #tpu.dot_dimension_numbers<[1], [0], [0], [1], [0, 0, 1, 1], [], []>} : vector<1x16xf32>, vector<16x16xf32>, vector<1x16xf32> -> vector<1x16xf32>
    %197 = arith.addf %189, %196 : vector<1x16xf32>
    %c8_187 = arith.constant 8 : index
    %c0_188 = arith.constant 0 : index
    %c0_189 = arith.constant 0 : index
    %198 = vector.load %arg3[%c8_187, %c0_188, %c0_189] : memref<9x9x9xf32, #tpu.memory_space<vmem>>, vector<1x9x9xf32>
    %199 = vector.shape_cast %198 : vector<1x9x9xf32> to vector<9x9xf32>
    %200 = vector.extract_strided_slice %199 {offsets = [0, 0], sizes = [1, 9], strides = [1, 1]} : vector<9x9xf32> to vector<1x9xf32>
    %cst_190 = arith.constant dense<0.000000e+00> : vector<1x16xf32>
    %201 = tpu.matmul %200, %134, %cst_190 {dimension_numbers = #tpu.dot_dimension_numbers<[1], [0], [0], [1], [0, 0, 1, 1], [], []>} : vector<1x9xf32>, vector<9x16xf32>, vector<1x16xf32> -> vector<1x16xf32>
    %c0_191 = arith.constant 0 : index
    %c17 = arith.constant 17 : index
    %c0_192 = arith.constant 0 : index
    %c0_193 = arith.constant 0 : index
    %202 = vector.load %arg7[%c0_191, %c17, %c0_192, %c0_193] : memref<6x18x16x16xf32, #tpu.memory_space<vmem>>, vector<1x1x16x16xf32>
    %203 = vector.shape_cast %202 : vector<1x1x16x16xf32> to vector<16x16xf32>
    %cst_194 = arith.constant dense<0.000000e+00> : vector<1x16xf32>
    %204 = tpu.matmul %201, %203, %cst_194 {dimension_numbers = #tpu.dot_dimension_numbers<[1], [0], [0], [1], [0, 0, 1, 1], [], []>} : vector<1x16xf32>, vector<16x16xf32>, vector<1x16xf32> -> vector<1x16xf32>
    %205 = arith.addf %197, %204 : vector<1x16xf32>
    %c0_195 = arith.constant 0 : index
    %c1_196 = arith.constant 1 : index
    %c0_197 = arith.constant 0 : index
    %206 = vector.load %arg8[%c0_195, %c1_196, %c0_197] : memref<6x2x16xf32, #tpu.memory_space<vmem>>, vector<1x1x16xf32>
    %207 = vector.shape_cast %206 : vector<1x1x16xf32> to vector<16xf32>
    %208 = vector.shape_cast %207 : vector<16xf32> to vector<1x16xf32>
    %209 = arith.addf %205, %208 : vector<1x16xf32>
    %cst_198 = arith.constant 0.000000e+00 : f32
    %210 = vector.broadcast %cst_198 : f32 to vector<1x16xf32>
    %211 = arith.maximumf %209, %210 : vector<1x16xf32>
    %c0_199 = arith.constant 0 : index
    %c1_200 = arith.constant 1 : index
    %c0_201 = arith.constant 0 : index
    %c0_202 = arith.constant 0 : index
    %212 = vector.load %arg9[%c0_199, %c1_200, %c0_201, %c0_202] : memref<6x2x16x32xf32, #tpu.memory_space<vmem>>, vector<1x1x16x32xf32>
    %213 = vector.shape_cast %212 : vector<1x1x16x32xf32> to vector<16x32xf32>
    %cst_203 = arith.constant dense<0.000000e+00> : vector<1x32xf32>
    %214 = tpu.matmul %211, %213, %cst_203 {dimension_numbers = #tpu.dot_dimension_numbers<[1], [0], [0], [1], [0, 0, 1, 1], [], []>} : vector<1x16xf32>, vector<16x32xf32>, vector<1x32xf32> -> vector<1x32xf32>
    %c0_204 = arith.constant 0 : index
    %c1_205 = arith.constant 1 : index
    %c0_206 = arith.constant 0 : index
    %215 = vector.load %arg10[%c0_204, %c1_205, %c0_206] : memref<6x2x32xf32, #tpu.memory_space<vmem>>, vector<1x1x32xf32>
    %216 = vector.shape_cast %215 : vector<1x1x32xf32> to vector<32xf32>
    %217 = vector.shape_cast %216 : vector<32xf32> to vector<1x32xf32>
    %218 = arith.addf %214, %217 : vector<1x32xf32>
    %c1_207 = arith.constant 1 : index
    %219 = memref.load %arg22[%c1_207] : memref<24xf32, #tpu.memory_space<smem>>
    %220 = vector.broadcast %219 : f32 to vector<9x32xf32>
    %221 = arith.mulf %220, %112 : vector<9x32xf32>
    %222 = vector.broadcast %218 : vector<1x32xf32> to vector<9x32xf32>
    %223 = arith.addf %222, %221 : vector<9x32xf32>
    %c0_208 = arith.constant 0 : index
    %c0_209 = arith.constant 0 : index
    %c0_210 = arith.constant 0 : index
    %224 = vector.load %arg11[%c0_208, %c0_209, %c0_210] : memref<6x64x32xf32, #tpu.memory_space<vmem>>, vector<1x64x32xf32>
    %225 = vector.shape_cast %224 : vector<1x64x32xf32> to vector<64x32xf32>
    %226 = vector.extract_strided_slice %225 {offsets = [0, 0], sizes = [32, 32], strides = [1, 1]} : vector<64x32xf32> to vector<32x32xf32>
    %cst_211 = arith.constant dense<0.000000e+00> : vector<9x32xf32>
    %227 = tpu.matmul %223, %226, %cst_211 {dimension_numbers = #tpu.dot_dimension_numbers<[1], [0], [0], [1], [0, 0, 1, 1], [], []>} : vector<9x32xf32>, vector<32x32xf32>, vector<9x32xf32> -> vector<9x32xf32>
    %228 = vector.extract_strided_slice %225 {offsets = [32, 0], sizes = [32, 32], strides = [1, 1]} : vector<64x32xf32> to vector<32x32xf32>
    %cst_212 = arith.constant dense<0.000000e+00> : vector<9x32xf32>
    %229 = tpu.matmul %112, %228, %cst_212 {dimension_numbers = #tpu.dot_dimension_numbers<[1], [0], [0], [1], [0, 0, 1, 1], [], []>} : vector<9x32xf32>, vector<32x32xf32>, vector<9x32xf32> -> vector<9x32xf32>
    %230 = arith.addf %227, %229 : vector<9x32xf32>
    %cst_213 = arith.constant 0.000000e+00 : f32
    %231 = vector.broadcast %cst_213 : f32 to vector<9x32xf32>
    %232 = arith.maximumf %230, %231 : vector<9x32xf32>
    %c0_214 = arith.constant 0 : index
    %c0_215 = arith.constant 0 : index
    %c0_216 = arith.constant 0 : index
    %233 = vector.load %arg13[%c0_214, %c0_215, %c0_216] : memref<6x32x2xf32, #tpu.memory_space<vmem>>, vector<1x32x2xf32>
    %234 = vector.shape_cast %233 : vector<1x32x2xf32> to vector<32x2xf32>
    %c0_217 = arith.constant 0 : index
    %c0_218 = arith.constant 0 : index
    %235 = vector.load %arg14[%c0_217, %c0_218] : memref<6x2xf32, #tpu.memory_space<vmem>>, vector<1x2xf32>
    %236 = vector.shape_cast %235 : vector<1x2xf32> to vector<2xf32>
    %c0_219 = arith.constant 0 : index
    %c0_220 = arith.constant 0 : index
    %c0_221 = arith.constant 0 : index
    %237 = vector.load %arg15[%c0_219, %c0_220, %c0_221] : memref<6x2x32xf32, #tpu.memory_space<vmem>>, vector<1x2x32xf32>
    %238 = vector.shape_cast %237 : vector<1x2x32xf32> to vector<2x32xf32>
    %c0_222 = arith.constant 0 : index
    %c0_223 = arith.constant 0 : index
    %239 = vector.load %arg16[%c0_222, %c0_223] : memref<6x32xf32, #tpu.memory_space<vmem>>, vector<1x32xf32>
    %240 = vector.shape_cast %239 : vector<1x32xf32> to vector<32xf32>
    %cst_224 = arith.constant dense<0.000000e+00> : vector<32xf32>
    %241 = vector.multi_reduction <add>, %232, %cst_224 [0] : vector<9x32xf32> to vector<32xf32>
    %242 = vector.shape_cast %241 : vector<32xf32> to vector<1x32xf32>
    %cst_225 = arith.constant 0.111111112 : f32
    %243 = vector.broadcast %cst_225 : f32 to vector<1x32xf32>
    %244 = arith.mulf %242, %243 : vector<1x32xf32>
    %cst_226 = arith.constant dense<0.000000e+00> : vector<1x2xf32>
    %245 = tpu.matmul %244, %234, %cst_226 {dimension_numbers = #tpu.dot_dimension_numbers<[1], [0], [0], [1], [0, 0, 1, 1], [], []>} : vector<1x32xf32>, vector<32x2xf32>, vector<1x2xf32> -> vector<1x2xf32>
    %246 = vector.shape_cast %236 : vector<2xf32> to vector<1x2xf32>
    %247 = arith.addf %245, %246 : vector<1x2xf32>
    %cst_227 = arith.constant 0.000000e+00 : f32
    %248 = vector.broadcast %cst_227 : f32 to vector<1x2xf32>
    %249 = arith.maximumf %247, %248 : vector<1x2xf32>
    %cst_228 = arith.constant dense<0.000000e+00> : vector<1x32xf32>
    %250 = tpu.matmul %249, %238, %cst_228 {dimension_numbers = #tpu.dot_dimension_numbers<[1], [0], [0], [1], [0, 0, 1, 1], [], []>} : vector<1x2xf32>, vector<2x32xf32>, vector<1x32xf32> -> vector<1x32xf32>
    %251 = vector.shape_cast %240 : vector<32xf32> to vector<1x32xf32>
    %252 = arith.addf %250, %251 : vector<1x32xf32>
    %253 = arith.negf %252 : vector<1x32xf32>
    %254 = math.exp %253 : vector<1x32xf32>
    %cst_229 = arith.constant 1.000000e+00 : f32
    %255 = vector.broadcast %cst_229 : f32 to vector<1x32xf32>
    %256 = arith.addf %255, %254 : vector<1x32xf32>
    %257 = arith.divf %255, %256 : vector<1x32xf32>
    %258 = vector.broadcast %257 : vector<1x32xf32> to vector<9x32xf32>
    %259 = arith.mulf %232, %258 : vector<9x32xf32>
    %c0_230 = arith.constant 0 : index
    %c0_231 = arith.constant 0 : index
    %c0_232 = arith.constant 0 : index
    %260 = vector.load %arg3[%c0_230, %c0_231, %c0_232] : memref<9x9x9xf32, #tpu.memory_space<vmem>>, vector<1x9x9xf32>
    %261 = vector.shape_cast %260 : vector<1x9x9xf32> to vector<9x9xf32>
    %cst_233 = arith.constant dense<0.000000e+00> : vector<9x32xf32>
    %262 = tpu.matmul %261, %259, %cst_233 {dimension_numbers = #tpu.dot_dimension_numbers<[1], [0], [0], [1], [0, 0, 1, 1], [], []>} : vector<9x9xf32>, vector<9x32xf32>, vector<9x32xf32> -> vector<9x32xf32>
    %c0_234 = arith.constant 0 : index
    %c0_235 = arith.constant 0 : index
    %c0_236 = arith.constant 0 : index
    %c0_237 = arith.constant 0 : index
    %263 = vector.load %arg12[%c0_234, %c0_235, %c0_236, %c0_237] : memref<6x9x32x32xf32, #tpu.memory_space<vmem>>, vector<1x1x32x32xf32>
    %264 = vector.shape_cast %263 : vector<1x1x32x32xf32> to vector<32x32xf32>
    %cst_238 = arith.constant dense<0.000000e+00> : vector<9x32xf32>
    %265 = tpu.matmul %262, %264, %cst_238 {dimension_numbers = #tpu.dot_dimension_numbers<[1], [0], [0], [1], [0, 0, 1, 1], [], []>} : vector<9x32xf32>, vector<32x32xf32>, vector<9x32xf32> -> vector<9x32xf32>
    %c1_239 = arith.constant 1 : index
    %c0_240 = arith.constant 0 : index
    %c0_241 = arith.constant 0 : index
    %266 = vector.load %arg3[%c1_239, %c0_240, %c0_241] : memref<9x9x9xf32, #tpu.memory_space<vmem>>, vector<1x9x9xf32>
    %267 = vector.shape_cast %266 : vector<1x9x9xf32> to vector<9x9xf32>
    %cst_242 = arith.constant dense<0.000000e+00> : vector<9x32xf32>
    %268 = tpu.matmul %267, %259, %cst_242 {dimension_numbers = #tpu.dot_dimension_numbers<[1], [0], [0], [1], [0, 0, 1, 1], [], []>} : vector<9x9xf32>, vector<9x32xf32>, vector<9x32xf32> -> vector<9x32xf32>
    %c0_243 = arith.constant 0 : index
    %c1_244 = arith.constant 1 : index
    %c0_245 = arith.constant 0 : index
    %c0_246 = arith.constant 0 : index
    %269 = vector.load %arg12[%c0_243, %c1_244, %c0_245, %c0_246] : memref<6x9x32x32xf32, #tpu.memory_space<vmem>>, vector<1x1x32x32xf32>
    %270 = vector.shape_cast %269 : vector<1x1x32x32xf32> to vector<32x32xf32>
    %cst_247 = arith.constant dense<0.000000e+00> : vector<9x32xf32>
    %271 = tpu.matmul %268, %270, %cst_247 {dimension_numbers = #tpu.dot_dimension_numbers<[1], [0], [0], [1], [0, 0, 1, 1], [], []>} : vector<9x32xf32>, vector<32x32xf32>, vector<9x32xf32> -> vector<9x32xf32>
    %272 = arith.addf %265, %271 : vector<9x32xf32>
    %c2_248 = arith.constant 2 : index
    %c0_249 = arith.constant 0 : index
    %c0_250 = arith.constant 0 : index
    %273 = vector.load %arg3[%c2_248, %c0_249, %c0_250] : memref<9x9x9xf32, #tpu.memory_space<vmem>>, vector<1x9x9xf32>
    %274 = vector.shape_cast %273 : vector<1x9x9xf32> to vector<9x9xf32>
    %cst_251 = arith.constant dense<0.000000e+00> : vector<9x32xf32>
    %275 = tpu.matmul %274, %259, %cst_251 {dimension_numbers = #tpu.dot_dimension_numbers<[1], [0], [0], [1], [0, 0, 1, 1], [], []>} : vector<9x9xf32>, vector<9x32xf32>, vector<9x32xf32> -> vector<9x32xf32>
    %c0_252 = arith.constant 0 : index
    %c2_253 = arith.constant 2 : index
    %c0_254 = arith.constant 0 : index
    %c0_255 = arith.constant 0 : index
    %276 = vector.load %arg12[%c0_252, %c2_253, %c0_254, %c0_255] : memref<6x9x32x32xf32, #tpu.memory_space<vmem>>, vector<1x1x32x32xf32>
    %277 = vector.shape_cast %276 : vector<1x1x32x32xf32> to vector<32x32xf32>
    %cst_256 = arith.constant dense<0.000000e+00> : vector<9x32xf32>
    %278 = tpu.matmul %275, %277, %cst_256 {dimension_numbers = #tpu.dot_dimension_numbers<[1], [0], [0], [1], [0, 0, 1, 1], [], []>} : vector<9x32xf32>, vector<32x32xf32>, vector<9x32xf32> -> vector<9x32xf32>
    %279 = arith.addf %272, %278 : vector<9x32xf32>
    %c3_257 = arith.constant 3 : index
    %c0_258 = arith.constant 0 : index
    %c0_259 = arith.constant 0 : index
    %280 = vector.load %arg3[%c3_257, %c0_258, %c0_259] : memref<9x9x9xf32, #tpu.memory_space<vmem>>, vector<1x9x9xf32>
    %281 = vector.shape_cast %280 : vector<1x9x9xf32> to vector<9x9xf32>
    %cst_260 = arith.constant dense<0.000000e+00> : vector<9x32xf32>
    %282 = tpu.matmul %281, %259, %cst_260 {dimension_numbers = #tpu.dot_dimension_numbers<[1], [0], [0], [1], [0, 0, 1, 1], [], []>} : vector<9x9xf32>, vector<9x32xf32>, vector<9x32xf32> -> vector<9x32xf32>
    %c0_261 = arith.constant 0 : index
    %c3_262 = arith.constant 3 : index
    %c0_263 = arith.constant 0 : index
    %c0_264 = arith.constant 0 : index
    %283 = vector.load %arg12[%c0_261, %c3_262, %c0_263, %c0_264] : memref<6x9x32x32xf32, #tpu.memory_space<vmem>>, vector<1x1x32x32xf32>
    %284 = vector.shape_cast %283 : vector<1x1x32x32xf32> to vector<32x32xf32>
    %cst_265 = arith.constant dense<0.000000e+00> : vector<9x32xf32>
    %285 = tpu.matmul %282, %284, %cst_265 {dimension_numbers = #tpu.dot_dimension_numbers<[1], [0], [0], [1], [0, 0, 1, 1], [], []>} : vector<9x32xf32>, vector<32x32xf32>, vector<9x32xf32> -> vector<9x32xf32>
    %286 = arith.addf %279, %285 : vector<9x32xf32>
    %c4_266 = arith.constant 4 : index
    %c0_267 = arith.constant 0 : index
    %c0_268 = arith.constant 0 : index
    %287 = vector.load %arg3[%c4_266, %c0_267, %c0_268] : memref<9x9x9xf32, #tpu.memory_space<vmem>>, vector<1x9x9xf32>
    %288 = vector.shape_cast %287 : vector<1x9x9xf32> to vector<9x9xf32>
    %cst_269 = arith.constant dense<0.000000e+00> : vector<9x32xf32>
    %289 = tpu.matmul %288, %259, %cst_269 {dimension_numbers = #tpu.dot_dimension_numbers<[1], [0], [0], [1], [0, 0, 1, 1], [], []>} : vector<9x9xf32>, vector<9x32xf32>, vector<9x32xf32> -> vector<9x32xf32>
    %c0_270 = arith.constant 0 : index
    %c4_271 = arith.constant 4 : index
    %c0_272 = arith.constant 0 : index
    %c0_273 = arith.constant 0 : index
    %290 = vector.load %arg12[%c0_270, %c4_271, %c0_272, %c0_273] : memref<6x9x32x32xf32, #tpu.memory_space<vmem>>, vector<1x1x32x32xf32>
    %291 = vector.shape_cast %290 : vector<1x1x32x32xf32> to vector<32x32xf32>
    %cst_274 = arith.constant dense<0.000000e+00> : vector<9x32xf32>
    %292 = tpu.matmul %289, %291, %cst_274 {dimension_numbers = #tpu.dot_dimension_numbers<[1], [0], [0], [1], [0, 0, 1, 1], [], []>} : vector<9x32xf32>, vector<32x32xf32>, vector<9x32xf32> -> vector<9x32xf32>
    %293 = arith.addf %286, %292 : vector<9x32xf32>
    %c5_275 = arith.constant 5 : index
    %c0_276 = arith.constant 0 : index
    %c0_277 = arith.constant 0 : index
    %294 = vector.load %arg3[%c5_275, %c0_276, %c0_277] : memref<9x9x9xf32, #tpu.memory_space<vmem>>, vector<1x9x9xf32>
    %295 = vector.shape_cast %294 : vector<1x9x9xf32> to vector<9x9xf32>
    %cst_278 = arith.constant dense<0.000000e+00> : vector<9x32xf32>
    %296 = tpu.matmul %295, %259, %cst_278 {dimension_numbers = #tpu.dot_dimension_numbers<[1], [0], [0], [1], [0, 0, 1, 1], [], []>} : vector<9x9xf32>, vector<9x32xf32>, vector<9x32xf32> -> vector<9x32xf32>
    %c0_279 = arith.constant 0 : index
    %c5_280 = arith.constant 5 : index
    %c0_281 = arith.constant 0 : index
    %c0_282 = arith.constant 0 : index
    %297 = vector.load %arg12[%c0_279, %c5_280, %c0_281, %c0_282] : memref<6x9x32x32xf32, #tpu.memory_space<vmem>>, vector<1x1x32x32xf32>
    %298 = vector.shape_cast %297 : vector<1x1x32x32xf32> to vector<32x32xf32>
    %cst_283 = arith.constant dense<0.000000e+00> : vector<9x32xf32>
    %299 = tpu.matmul %296, %298, %cst_283 {dimension_numbers = #tpu.dot_dimension_numbers<[1], [0], [0], [1], [0, 0, 1, 1], [], []>} : vector<9x32xf32>, vector<32x32xf32>, vector<9x32xf32> -> vector<9x32xf32>
    %300 = arith.addf %293, %299 : vector<9x32xf32>
    %c6_284 = arith.constant 6 : index
    %c0_285 = arith.constant 0 : index
    %c0_286 = arith.constant 0 : index
    %301 = vector.load %arg3[%c6_284, %c0_285, %c0_286] : memref<9x9x9xf32, #tpu.memory_space<vmem>>, vector<1x9x9xf32>
    %302 = vector.shape_cast %301 : vector<1x9x9xf32> to vector<9x9xf32>
    %cst_287 = arith.constant dense<0.000000e+00> : vector<9x32xf32>
    %303 = tpu.matmul %302, %259, %cst_287 {dimension_numbers = #tpu.dot_dimension_numbers<[1], [0], [0], [1], [0, 0, 1, 1], [], []>} : vector<9x9xf32>, vector<9x32xf32>, vector<9x32xf32> -> vector<9x32xf32>
    %c0_288 = arith.constant 0 : index
    %c6_289 = arith.constant 6 : index
    %c0_290 = arith.constant 0 : index
    %c0_291 = arith.constant 0 : index
    %304 = vector.load %arg12[%c0_288, %c6_289, %c0_290, %c0_291] : memref<6x9x32x32xf32, #tpu.memory_space<vmem>>, vector<1x1x32x32xf32>
    %305 = vector.shape_cast %304 : vector<1x1x32x32xf32> to vector<32x32xf32>
    %cst_292 = arith.constant dense<0.000000e+00> : vector<9x32xf32>
    %306 = tpu.matmul %303, %305, %cst_292 {dimension_numbers = #tpu.dot_dimension_numbers<[1], [0], [0], [1], [0, 0, 1, 1], [], []>} : vector<9x32xf32>, vector<32x32xf32>, vector<9x32xf32> -> vector<9x32xf32>
    %307 = arith.addf %300, %306 : vector<9x32xf32>
    %c7_293 = arith.constant 7 : index
    %c0_294 = arith.constant 0 : index
    %c0_295 = arith.constant 0 : index
    %308 = vector.load %arg3[%c7_293, %c0_294, %c0_295] : memref<9x9x9xf32, #tpu.memory_space<vmem>>, vector<1x9x9xf32>
    %309 = vector.shape_cast %308 : vector<1x9x9xf32> to vector<9x9xf32>
    %cst_296 = arith.constant dense<0.000000e+00> : vector<9x32xf32>
    %310 = tpu.matmul %309, %259, %cst_296 {dimension_numbers = #tpu.dot_dimension_numbers<[1], [0], [0], [1], [0, 0, 1, 1], [], []>} : vector<9x9xf32>, vector<9x32xf32>, vector<9x32xf32> -> vector<9x32xf32>
    %c0_297 = arith.constant 0 : index
    %c7_298 = arith.constant 7 : index
    %c0_299 = arith.constant 0 : index
    %c0_300 = arith.constant 0 : index
    %311 = vector.load %arg12[%c0_297, %c7_298, %c0_299, %c0_300] : memref<6x9x32x32xf32, #tpu.memory_space<vmem>>, vector<1x1x32x32xf32>
    %312 = vector.shape_cast %311 : vector<1x1x32x32xf32> to vector<32x32xf32>
    %cst_301 = arith.constant dense<0.000000e+00> : vector<9x32xf32>
    %313 = tpu.matmul %310, %312, %cst_301 {dimension_numbers = #tpu.dot_dimension_numbers<[1], [0], [0], [1], [0, 0, 1, 1], [], []>} : vector<9x32xf32>, vector<32x32xf32>, vector<9x32xf32> -> vector<9x32xf32>
    %314 = arith.addf %307, %313 : vector<9x32xf32>
    %c8_302 = arith.constant 8 : index
    %c0_303 = arith.constant 0 : index
    %c0_304 = arith.constant 0 : index
    %315 = vector.load %arg3[%c8_302, %c0_303, %c0_304] : memref<9x9x9xf32, #tpu.memory_space<vmem>>, vector<1x9x9xf32>
    %316 = vector.shape_cast %315 : vector<1x9x9xf32> to vector<9x9xf32>
    %cst_305 = arith.constant dense<0.000000e+00> : vector<9x32xf32>
    %317 = tpu.matmul %316, %259, %cst_305 {dimension_numbers = #tpu.dot_dimension_numbers<[1], [0], [0], [1], [0, 0, 1, 1], [], []>} : vector<9x9xf32>, vector<9x32xf32>, vector<9x32xf32> -> vector<9x32xf32>
    %c0_306 = arith.constant 0 : index
    %c8_307 = arith.constant 8 : index
    %c0_308 = arith.constant 0 : index
    %c0_309 = arith.constant 0 : index
    %318 = vector.load %arg12[%c0_306, %c8_307, %c0_308, %c0_309] : memref<6x9x32x32xf32, #tpu.memory_space<vmem>>, vector<1x1x32x32xf32>
    %319 = vector.shape_cast %318 : vector<1x1x32x32xf32> to vector<32x32xf32>
    %cst_310 = arith.constant dense<0.000000e+00> : vector<9x32xf32>
    %320 = tpu.matmul %317, %319, %cst_310 {dimension_numbers = #tpu.dot_dimension_numbers<[1], [0], [0], [1], [0, 0, 1, 1], [], []>} : vector<9x32xf32>, vector<32x32xf32>, vector<9x32xf32> -> vector<9x32xf32>
    %321 = arith.addf %314, %320 : vector<9x32xf32>
    %cst_311 = arith.constant 0.000000e+00 : f32
    %322 = vector.broadcast %cst_311 : f32 to vector<9x32xf32>
    %323 = arith.maximumf %321, %322 : vector<9x32xf32>
    %c2_312 = arith.constant 2 : index
    %324 = memref.load %arg22[%c2_312] : memref<24xf32, #tpu.memory_space<smem>>
    %325 = vector.broadcast %324 : f32 to vector<9x32xf32>
    %326 = arith.mulf %325, %1 : vector<9x32xf32>
    %c3_313 = arith.constant 3 : index
    %327 = memref.load %arg22[%c3_313] : memref<24xf32, #tpu.memory_space<smem>>
    %328 = vector.broadcast %327 : f32 to vector<9x32xf32>
    %329 = arith.mulf %328, %323 : vector<9x32xf32>
    %330 = arith.addf %326, %329 : vector<9x32xf32>
    %c0_314 = arith.constant 0 : index
    %c0_315 = arith.constant 0 : index
    %331 = vector.load %arg2[%c0_314, %c0_315] : memref<1x9xf32, #tpu.memory_space<vmem>>, vector<1x9xf32>
    %cst_316 = arith.constant dense<0.000000e+00> : vector<1x32xf32>
    %332 = tpu.matmul %331, %330, %cst_316 {dimension_numbers = #tpu.dot_dimension_numbers<[1], [0], [0], [1], [0, 0, 1, 1], [], []>} : vector<1x9xf32>, vector<9x32xf32>, vector<1x32xf32> -> vector<1x32xf32>
    %333 = vector.broadcast %332 : vector<1x32xf32> to vector<9x32xf32>
    %334 = arith.subf %330, %333 : vector<9x32xf32>
    %c1_317 = arith.constant 1 : index
    %c0_318 = arith.constant 0 : index
    %c0_319 = arith.constant 0 : index
    %c0_320 = arith.constant 0 : index
    %335 = vector.load %arg4[%c1_317, %c0_318, %c0_319, %c0_320] : memref<6x2x2x32xf32, #tpu.memory_space<vmem>>, vector<1x1x1x32xf32>
    %336 = vector.shape_cast %335 : vector<1x1x1x32xf32> to vector<32xf32>
    %337 = vector.shape_cast %336 : vector<32xf32> to vector<1x32xf32>
    %338 = arith.mulf %332, %337 : vector<1x32xf32>
    %c1_321 = arith.constant 1 : index
    %c0_322 = arith.constant 0 : index
    %c1_323 = arith.constant 1 : index
    %c0_324 = arith.constant 0 : index
    %339 = vector.load %arg4[%c1_321, %c0_322, %c1_323, %c0_324] : memref<6x2x2x32xf32, #tpu.memory_space<vmem>>, vector<1x1x1x32xf32>
    %340 = vector.shape_cast %339 : vector<1x1x1x32xf32> to vector<32xf32>
    %341 = vector.shape_cast %340 : vector<32xf32> to vector<1x32xf32>
    %342 = arith.addf %338, %341 : vector<1x32xf32>
    %cst_325 = arith.constant 0.000000e+00 : f32
    %343 = vector.broadcast %cst_325 : f32 to vector<1x32xf32>
    %344 = arith.maximumf %342, %343 : vector<1x32xf32>
    %c1_326 = arith.constant 1 : index
    %c0_327 = arith.constant 0 : index
    %c0_328 = arith.constant 0 : index
    %c0_329 = arith.constant 0 : index
    %345 = vector.load %arg5[%c1_326, %c0_327, %c0_328, %c0_329] : memref<6x2x32x16xf32, #tpu.memory_space<vmem>>, vector<1x1x32x16xf32>
    %346 = vector.shape_cast %345 : vector<1x1x32x16xf32> to vector<32x16xf32>
    %cst_330 = arith.constant dense<0.000000e+00> : vector<1x16xf32>
    %347 = tpu.matmul %344, %346, %cst_330 {dimension_numbers = #tpu.dot_dimension_numbers<[1], [0], [0], [1], [0, 0, 1, 1], [], []>} : vector<1x32xf32>, vector<32x16xf32>, vector<1x16xf32> -> vector<1x16xf32>
    %c1_331 = arith.constant 1 : index
    %c0_332 = arith.constant 0 : index
    %c0_333 = arith.constant 0 : index
    %348 = vector.load %arg6[%c1_331, %c0_332, %c0_333] : memref<6x2x16xf32, #tpu.memory_space<vmem>>, vector<1x1x16xf32>
    %349 = vector.shape_cast %348 : vector<1x1x16xf32> to vector<16xf32>
    %350 = vector.shape_cast %349 : vector<16xf32> to vector<1x16xf32>
    %351 = arith.addf %347, %350 : vector<1x16xf32>
    %cst_334 = arith.constant 0.000000e+00 : f32
    %352 = vector.broadcast %cst_334 : f32 to vector<1x16xf32>
    %353 = arith.maximumf %351, %352 : vector<1x16xf32>
    %c1_335 = arith.constant 1 : index
    %c4_336 = arith.constant 4 : index
    %c0_337 = arith.constant 0 : index
    %c0_338 = arith.constant 0 : index
    %354 = vector.load %arg7[%c1_335, %c4_336, %c0_337, %c0_338] : memref<6x18x16x16xf32, #tpu.memory_space<vmem>>, vector<1x1x16x16xf32>
    %355 = vector.shape_cast %354 : vector<1x1x16x16xf32> to vector<16x16xf32>
    %cst_339 = arith.constant dense<0.000000e+00> : vector<1x16xf32>
    %356 = tpu.matmul %353, %355, %cst_339 {dimension_numbers = #tpu.dot_dimension_numbers<[1], [0], [0], [1], [0, 0, 1, 1], [], []>} : vector<1x16xf32>, vector<16x16xf32>, vector<1x16xf32> -> vector<1x16xf32>
    %c1_340 = arith.constant 1 : index
    %c0_341 = arith.constant 0 : index
    %c0_342 = arith.constant 0 : index
    %357 = vector.load %arg8[%c1_340, %c0_341, %c0_342] : memref<6x2x16xf32, #tpu.memory_space<vmem>>, vector<1x1x16xf32>
    %358 = vector.shape_cast %357 : vector<1x1x16xf32> to vector<16xf32>
    %359 = vector.shape_cast %358 : vector<16xf32> to vector<1x16xf32>
    %360 = arith.addf %356, %359 : vector<1x16xf32>
    %cst_343 = arith.constant 0.000000e+00 : f32
    %361 = vector.broadcast %cst_343 : f32 to vector<1x16xf32>
    %362 = arith.maximumf %360, %361 : vector<1x16xf32>
    %c1_344 = arith.constant 1 : index
    %c0_345 = arith.constant 0 : index
    %c0_346 = arith.constant 0 : index
    %c0_347 = arith.constant 0 : index
    %363 = vector.load %arg9[%c1_344, %c0_345, %c0_346, %c0_347] : memref<6x2x16x32xf32, #tpu.memory_space<vmem>>, vector<1x1x16x32xf32>
    %364 = vector.shape_cast %363 : vector<1x1x16x32xf32> to vector<16x32xf32>
    %cst_348 = arith.constant dense<0.000000e+00> : vector<1x32xf32>
    %365 = tpu.matmul %362, %364, %cst_348 {dimension_numbers = #tpu.dot_dimension_numbers<[1], [0], [0], [1], [0, 0, 1, 1], [], []>} : vector<1x16xf32>, vector<16x32xf32>, vector<1x32xf32> -> vector<1x32xf32>
    %c1_349 = arith.constant 1 : index
    %c0_350 = arith.constant 0 : index
    %c0_351 = arith.constant 0 : index
    %366 = vector.load %arg10[%c1_349, %c0_350, %c0_351] : memref<6x2x32xf32, #tpu.memory_space<vmem>>, vector<1x1x32xf32>
    %367 = vector.shape_cast %366 : vector<1x1x32xf32> to vector<32xf32>
    %368 = vector.shape_cast %367 : vector<32xf32> to vector<1x32xf32>
    %369 = arith.addf %365, %368 : vector<1x32xf32>
    %c4_352 = arith.constant 4 : index
    %370 = memref.load %arg22[%c4_352] : memref<24xf32, #tpu.memory_space<smem>>
    %371 = vector.broadcast %370 : f32 to vector<1x32xf32>
    %372 = arith.mulf %371, %332 : vector<1x32xf32>
    %373 = arith.addf %369, %372 : vector<1x32xf32>
    %c1_353 = arith.constant 1 : index
    %c1_354 = arith.constant 1 : index
    %c0_355 = arith.constant 0 : index
    %c0_356 = arith.constant 0 : index
    %374 = vector.load %arg4[%c1_353, %c1_354, %c0_355, %c0_356] : memref<6x2x2x32xf32, #tpu.memory_space<vmem>>, vector<1x1x1x32xf32>
    %375 = vector.shape_cast %374 : vector<1x1x1x32xf32> to vector<32xf32>
    %376 = vector.shape_cast %375 : vector<32xf32> to vector<1x32xf32>
    %377 = arith.mulf %373, %376 : vector<1x32xf32>
    %c1_357 = arith.constant 1 : index
    %c1_358 = arith.constant 1 : index
    %c1_359 = arith.constant 1 : index
    %c0_360 = arith.constant 0 : index
    %378 = vector.load %arg4[%c1_357, %c1_358, %c1_359, %c0_360] : memref<6x2x2x32xf32, #tpu.memory_space<vmem>>, vector<1x1x1x32xf32>
    %379 = vector.shape_cast %378 : vector<1x1x1x32xf32> to vector<32xf32>
    %380 = vector.shape_cast %379 : vector<32xf32> to vector<1x32xf32>
    %381 = arith.addf %377, %380 : vector<1x32xf32>
    %cst_361 = arith.constant 0.000000e+00 : f32
    %382 = vector.broadcast %cst_361 : f32 to vector<1x32xf32>
    %383 = arith.maximumf %381, %382 : vector<1x32xf32>
    %c1_362 = arith.constant 1 : index
    %c1_363 = arith.constant 1 : index
    %c0_364 = arith.constant 0 : index
    %c0_365 = arith.constant 0 : index
    %384 = vector.load %arg5[%c1_362, %c1_363, %c0_364, %c0_365] : memref<6x2x32x16xf32, #tpu.memory_space<vmem>>, vector<1x1x32x16xf32>
    %385 = vector.shape_cast %384 : vector<1x1x32x16xf32> to vector<32x16xf32>
    %cst_366 = arith.constant dense<0.000000e+00> : vector<1x16xf32>
    %386 = tpu.matmul %383, %385, %cst_366 {dimension_numbers = #tpu.dot_dimension_numbers<[1], [0], [0], [1], [0, 0, 1, 1], [], []>} : vector<1x32xf32>, vector<32x16xf32>, vector<1x16xf32> -> vector<1x16xf32>
    %c1_367 = arith.constant 1 : index
    %c1_368 = arith.constant 1 : index
    %c0_369 = arith.constant 0 : index
    %387 = vector.load %arg6[%c1_367, %c1_368, %c0_369] : memref<6x2x16xf32, #tpu.memory_space<vmem>>, vector<1x1x16xf32>
    %388 = vector.shape_cast %387 : vector<1x1x16xf32> to vector<16xf32>
    %389 = vector.shape_cast %388 : vector<16xf32> to vector<1x16xf32>
    %390 = arith.addf %386, %389 : vector<1x16xf32>
    %cst_370 = arith.constant 0.000000e+00 : f32
    %391 = vector.broadcast %cst_370 : f32 to vector<1x16xf32>
    %392 = arith.maximumf %390, %391 : vector<1x16xf32>
    %c1_371 = arith.constant 1 : index
    %c13_372 = arith.constant 13 : index
    %c0_373 = arith.constant 0 : index
    %c0_374 = arith.constant 0 : index
    %393 = vector.load %arg7[%c1_371, %c13_372, %c0_373, %c0_374] : memref<6x18x16x16xf32, #tpu.memory_space<vmem>>, vector<1x1x16x16xf32>
    %394 = vector.shape_cast %393 : vector<1x1x16x16xf32> to vector<16x16xf32>
    %cst_375 = arith.constant dense<0.000000e+00> : vector<1x16xf32>
    %395 = tpu.matmul %392, %394, %cst_375 {dimension_numbers = #tpu.dot_dimension_numbers<[1], [0], [0], [1], [0, 0, 1, 1], [], []>} : vector<1x16xf32>, vector<16x16xf32>, vector<1x16xf32> -> vector<1x16xf32>
    %c1_376 = arith.constant 1 : index
    %c1_377 = arith.constant 1 : index
    %c0_378 = arith.constant 0 : index
    %396 = vector.load %arg8[%c1_376, %c1_377, %c0_378] : memref<6x2x16xf32, #tpu.memory_space<vmem>>, vector<1x1x16xf32>
    %397 = vector.shape_cast %396 : vector<1x1x16xf32> to vector<16xf32>
    %398 = vector.shape_cast %397 : vector<16xf32> to vector<1x16xf32>
    %399 = arith.addf %395, %398 : vector<1x16xf32>
    %cst_379 = arith.constant 0.000000e+00 : f32
    %400 = vector.broadcast %cst_379 : f32 to vector<1x16xf32>
    %401 = arith.maximumf %399, %400 : vector<1x16xf32>
    %c1_380 = arith.constant 1 : index
    %c1_381 = arith.constant 1 : index
    %c0_382 = arith.constant 0 : index
    %c0_383 = arith.constant 0 : index
    %402 = vector.load %arg9[%c1_380, %c1_381, %c0_382, %c0_383] : memref<6x2x16x32xf32, #tpu.memory_space<vmem>>, vector<1x1x16x32xf32>
    %403 = vector.shape_cast %402 : vector<1x1x16x32xf32> to vector<16x32xf32>
    %cst_384 = arith.constant dense<0.000000e+00> : vector<1x32xf32>
    %404 = tpu.matmul %401, %403, %cst_384 {dimension_numbers = #tpu.dot_dimension_numbers<[1], [0], [0], [1], [0, 0, 1, 1], [], []>} : vector<1x16xf32>, vector<16x32xf32>, vector<1x32xf32> -> vector<1x32xf32>
    %c1_385 = arith.constant 1 : index
    %c1_386 = arith.constant 1 : index
    %c0_387 = arith.constant 0 : index
    %405 = vector.load %arg10[%c1_385, %c1_386, %c0_387] : memref<6x2x32xf32, #tpu.memory_space<vmem>>, vector<1x1x32xf32>
    %406 = vector.shape_cast %405 : vector<1x1x32xf32> to vector<32xf32>
    %407 = vector.shape_cast %406 : vector<32xf32> to vector<1x32xf32>
    %408 = arith.addf %404, %407 : vector<1x32xf32>
    %c5_388 = arith.constant 5 : index
    %409 = memref.load %arg22[%c5_388] : memref<24xf32, #tpu.memory_space<smem>>
    %410 = vector.broadcast %409 : f32 to vector<1x32xf32>
    %411 = arith.mulf %410, %373 : vector<1x32xf32>
    %412 = arith.addf %408, %411 : vector<1x32xf32>
    %c1_389 = arith.constant 1 : index
    %c0_390 = arith.constant 0 : index
    %c0_391 = arith.constant 0 : index
    %413 = vector.load %arg11[%c1_389, %c0_390, %c0_391] : memref<6x64x32xf32, #tpu.memory_space<vmem>>, vector<1x64x32xf32>
    %414 = vector.shape_cast %413 : vector<1x64x32xf32> to vector<64x32xf32>
    %415 = vector.extract_strided_slice %414 {offsets = [0, 0], sizes = [32, 32], strides = [1, 1]} : vector<64x32xf32> to vector<32x32xf32>
    %cst_392 = arith.constant dense<0.000000e+00> : vector<1x32xf32>
    %416 = tpu.matmul %412, %415, %cst_392 {dimension_numbers = #tpu.dot_dimension_numbers<[1], [0], [0], [1], [0, 0, 1, 1], [], []>} : vector<1x32xf32>, vector<32x32xf32>, vector<1x32xf32> -> vector<1x32xf32>
    %417 = vector.extract_strided_slice %414 {offsets = [32, 0], sizes = [32, 32], strides = [1, 1]} : vector<64x32xf32> to vector<32x32xf32>
    %cst_393 = arith.constant dense<0.000000e+00> : vector<1x32xf32>
    %418 = tpu.matmul %373, %417, %cst_393 {dimension_numbers = #tpu.dot_dimension_numbers<[1], [0], [0], [1], [0, 0, 1, 1], [], []>} : vector<1x32xf32>, vector<32x32xf32>, vector<1x32xf32> -> vector<1x32xf32>
    %419 = arith.addf %416, %418 : vector<1x32xf32>
    %cst_394 = arith.constant 0.000000e+00 : f32
    %420 = vector.broadcast %cst_394 : f32 to vector<1x32xf32>
    %421 = arith.maximumf %419, %420 : vector<1x32xf32>
    %c1_395 = arith.constant 1 : index
    %c0_396 = arith.constant 0 : index
    %c0_397 = arith.constant 0 : index
    %422 = vector.load %arg13[%c1_395, %c0_396, %c0_397] : memref<6x32x2xf32, #tpu.memory_space<vmem>>, vector<1x32x2xf32>
    %423 = vector.shape_cast %422 : vector<1x32x2xf32> to vector<32x2xf32>
    %c1_398 = arith.constant 1 : index
    %c0_399 = arith.constant 0 : index
    %424 = vector.load %arg14[%c1_398, %c0_399] : memref<6x2xf32, #tpu.memory_space<vmem>>, vector<1x2xf32>
    %425 = vector.shape_cast %424 : vector<1x2xf32> to vector<2xf32>
    %c1_400 = arith.constant 1 : index
    %c0_401 = arith.constant 0 : index
    %c0_402 = arith.constant 0 : index
    %426 = vector.load %arg15[%c1_400, %c0_401, %c0_402] : memref<6x2x32xf32, #tpu.memory_space<vmem>>, vector<1x2x32xf32>
    %427 = vector.shape_cast %426 : vector<1x2x32xf32> to vector<2x32xf32>
    %c1_403 = arith.constant 1 : index
    %c0_404 = arith.constant 0 : index
    %428 = vector.load %arg16[%c1_403, %c0_404] : memref<6x32xf32, #tpu.memory_space<vmem>>, vector<1x32xf32>
    %429 = vector.shape_cast %428 : vector<1x32xf32> to vector<32xf32>
    %cst_405 = arith.constant dense<0.000000e+00> : vector<32xf32>
    %430 = vector.multi_reduction <add>, %421, %cst_405 [0] : vector<1x32xf32> to vector<32xf32>
    %431 = vector.shape_cast %430 : vector<32xf32> to vector<1x32xf32>
    %cst_406 = arith.constant 1.000000e+00 : f32
    %432 = vector.broadcast %cst_406 : f32 to vector<1x32xf32>
    %433 = arith.mulf %431, %432 : vector<1x32xf32>
    %cst_407 = arith.constant dense<0.000000e+00> : vector<1x2xf32>
    %434 = tpu.matmul %433, %423, %cst_407 {dimension_numbers = #tpu.dot_dimension_numbers<[1], [0], [0], [1], [0, 0, 1, 1], [], []>} : vector<1x32xf32>, vector<32x2xf32>, vector<1x2xf32> -> vector<1x2xf32>
    %435 = vector.shape_cast %425 : vector<2xf32> to vector<1x2xf32>
    %436 = arith.addf %434, %435 : vector<1x2xf32>
    %cst_408 = arith.constant 0.000000e+00 : f32
    %437 = vector.broadcast %cst_408 : f32 to vector<1x2xf32>
    %438 = arith.maximumf %436, %437 : vector<1x2xf32>
    %cst_409 = arith.constant dense<0.000000e+00> : vector<1x32xf32>
    %439 = tpu.matmul %438, %427, %cst_409 {dimension_numbers = #tpu.dot_dimension_numbers<[1], [0], [0], [1], [0, 0, 1, 1], [], []>} : vector<1x2xf32>, vector<2x32xf32>, vector<1x32xf32> -> vector<1x32xf32>
    %440 = vector.shape_cast %429 : vector<32xf32> to vector<1x32xf32>
    %441 = arith.addf %439, %440 : vector<1x32xf32>
    %442 = arith.negf %441 : vector<1x32xf32>
    %443 = math.exp %442 : vector<1x32xf32>
    %cst_410 = arith.constant 1.000000e+00 : f32
    %444 = vector.broadcast %cst_410 : f32 to vector<1x32xf32>
    %445 = arith.addf %444, %443 : vector<1x32xf32>
    %446 = arith.divf %444, %445 : vector<1x32xf32>
    %447 = arith.mulf %421, %446 : vector<1x32xf32>
    %c1_411 = arith.constant 1 : index
    %c4_412 = arith.constant 4 : index
    %c0_413 = arith.constant 0 : index
    %c0_414 = arith.constant 0 : index
    %448 = vector.load %arg12[%c1_411, %c4_412, %c0_413, %c0_414] : memref<6x9x32x32xf32, #tpu.memory_space<vmem>>, vector<1x1x32x32xf32>
    %449 = vector.shape_cast %448 : vector<1x1x32x32xf32> to vector<32x32xf32>
    %cst_415 = arith.constant dense<0.000000e+00> : vector<1x32xf32>
    %450 = tpu.matmul %447, %449, %cst_415 {dimension_numbers = #tpu.dot_dimension_numbers<[1], [0], [0], [1], [0, 0, 1, 1], [], []>} : vector<1x32xf32>, vector<32x32xf32>, vector<1x32xf32> -> vector<1x32xf32>
    %cst_416 = arith.constant 0.000000e+00 : f32
    %451 = vector.broadcast %cst_416 : f32 to vector<1x32xf32>
    %452 = arith.maximumf %450, %451 : vector<1x32xf32>
    %c6_417 = arith.constant 6 : index
    %453 = memref.load %arg22[%c6_417] : memref<24xf32, #tpu.memory_space<smem>>
    %454 = vector.broadcast %453 : f32 to vector<1x32xf32>
    %455 = arith.mulf %454, %332 : vector<1x32xf32>
    %c7_418 = arith.constant 7 : index
    %456 = memref.load %arg22[%c7_418] : memref<24xf32, #tpu.memory_space<smem>>
    %457 = vector.broadcast %456 : f32 to vector<1x32xf32>
    %458 = arith.mulf %457, %452 : vector<1x32xf32>
    %459 = arith.addf %455, %458 : vector<1x32xf32>
    %c2_419 = arith.constant 2 : index
    %c0_420 = arith.constant 0 : index
    %c0_421 = arith.constant 0 : index
    %c0_422 = arith.constant 0 : index
    %460 = vector.load %arg4[%c2_419, %c0_420, %c0_421, %c0_422] : memref<6x2x2x32xf32, #tpu.memory_space<vmem>>, vector<1x1x1x32xf32>
    %461 = vector.shape_cast %460 : vector<1x1x1x32xf32> to vector<32xf32>
    %462 = vector.shape_cast %461 : vector<32xf32> to vector<1x32xf32>
    %463 = arith.mulf %459, %462 : vector<1x32xf32>
    %c2_423 = arith.constant 2 : index
    %c0_424 = arith.constant 0 : index
    %c1_425 = arith.constant 1 : index
    %c0_426 = arith.constant 0 : index
    %464 = vector.load %arg4[%c2_423, %c0_424, %c1_425, %c0_426] : memref<6x2x2x32xf32, #tpu.memory_space<vmem>>, vector<1x1x1x32xf32>
    %465 = vector.shape_cast %464 : vector<1x1x1x32xf32> to vector<32xf32>
    %466 = vector.shape_cast %465 : vector<32xf32> to vector<1x32xf32>
    %467 = arith.addf %463, %466 : vector<1x32xf32>
    %cst_427 = arith.constant 0.000000e+00 : f32
    %468 = vector.broadcast %cst_427 : f32 to vector<1x32xf32>
    %469 = arith.maximumf %467, %468 : vector<1x32xf32>
    %c2_428 = arith.constant 2 : index
    %c0_429 = arith.constant 0 : index
    %c0_430 = arith.constant 0 : index
    %c0_431 = arith.constant 0 : index
    %470 = vector.load %arg5[%c2_428, %c0_429, %c0_430, %c0_431] : memref<6x2x32x16xf32, #tpu.memory_space<vmem>>, vector<1x1x32x16xf32>
    %471 = vector.shape_cast %470 : vector<1x1x32x16xf32> to vector<32x16xf32>
    %cst_432 = arith.constant dense<0.000000e+00> : vector<1x16xf32>
    %472 = tpu.matmul %469, %471, %cst_432 {dimension_numbers = #tpu.dot_dimension_numbers<[1], [0], [0], [1], [0, 0, 1, 1], [], []>} : vector<1x32xf32>, vector<32x16xf32>, vector<1x16xf32> -> vector<1x16xf32>
    %c2_433 = arith.constant 2 : index
    %c0_434 = arith.constant 0 : index
    %c0_435 = arith.constant 0 : index
    %473 = vector.load %arg6[%c2_433, %c0_434, %c0_435] : memref<6x2x16xf32, #tpu.memory_space<vmem>>, vector<1x1x16xf32>
    %474 = vector.shape_cast %473 : vector<1x1x16xf32> to vector<16xf32>
    %475 = vector.shape_cast %474 : vector<16xf32> to vector<1x16xf32>
    %476 = arith.addf %472, %475 : vector<1x16xf32>
    %cst_436 = arith.constant 0.000000e+00 : f32
    %477 = vector.broadcast %cst_436 : f32 to vector<1x16xf32>
    %478 = arith.maximumf %476, %477 : vector<1x16xf32>
    %c2_437 = arith.constant 2 : index
    %c4_438 = arith.constant 4 : index
    %c0_439 = arith.constant 0 : index
    %c0_440 = arith.constant 0 : index
    %479 = vector.load %arg7[%c2_437, %c4_438, %c0_439, %c0_440] : memref<6x18x16x16xf32, #tpu.memory_space<vmem>>, vector<1x1x16x16xf32>
    %480 = vector.shape_cast %479 : vector<1x1x16x16xf32> to vector<16x16xf32>
    %cst_441 = arith.constant dense<0.000000e+00> : vector<1x16xf32>
    %481 = tpu.matmul %478, %480, %cst_441 {dimension_numbers = #tpu.dot_dimension_numbers<[1], [0], [0], [1], [0, 0, 1, 1], [], []>} : vector<1x16xf32>, vector<16x16xf32>, vector<1x16xf32> -> vector<1x16xf32>
    %c2_442 = arith.constant 2 : index
    %c0_443 = arith.constant 0 : index
    %c0_444 = arith.constant 0 : index
    %482 = vector.load %arg8[%c2_442, %c0_443, %c0_444] : memref<6x2x16xf32, #tpu.memory_space<vmem>>, vector<1x1x16xf32>
    %483 = vector.shape_cast %482 : vector<1x1x16xf32> to vector<16xf32>
    %484 = vector.shape_cast %483 : vector<16xf32> to vector<1x16xf32>
    %485 = arith.addf %481, %484 : vector<1x16xf32>
    %cst_445 = arith.constant 0.000000e+00 : f32
    %486 = vector.broadcast %cst_445 : f32 to vector<1x16xf32>
    %487 = arith.maximumf %485, %486 : vector<1x16xf32>
    %c2_446 = arith.constant 2 : index
    %c0_447 = arith.constant 0 : index
    %c0_448 = arith.constant 0 : index
    %c0_449 = arith.constant 0 : index
    %488 = vector.load %arg9[%c2_446, %c0_447, %c0_448, %c0_449] : memref<6x2x16x32xf32, #tpu.memory_space<vmem>>, vector<1x1x16x32xf32>
    %489 = vector.shape_cast %488 : vector<1x1x16x32xf32> to vector<16x32xf32>
    %cst_450 = arith.constant dense<0.000000e+00> : vector<1x32xf32>
    %490 = tpu.matmul %487, %489, %cst_450 {dimension_numbers = #tpu.dot_dimension_numbers<[1], [0], [0], [1], [0, 0, 1, 1], [], []>} : vector<1x16xf32>, vector<16x32xf32>, vector<1x32xf32> -> vector<1x32xf32>
    %c2_451 = arith.constant 2 : index
    %c0_452 = arith.constant 0 : index
    %c0_453 = arith.constant 0 : index
    %491 = vector.load %arg10[%c2_451, %c0_452, %c0_453] : memref<6x2x32xf32, #tpu.memory_space<vmem>>, vector<1x1x32xf32>
    %492 = vector.shape_cast %491 : vector<1x1x32xf32> to vector<32xf32>
    %493 = vector.shape_cast %492 : vector<32xf32> to vector<1x32xf32>
    %494 = arith.addf %490, %493 : vector<1x32xf32>
    %c8_454 = arith.constant 8 : index
    %495 = memref.load %arg22[%c8_454] : memref<24xf32, #tpu.memory_space<smem>>
    %496 = vector.broadcast %495 : f32 to vector<1x32xf32>
    %497 = arith.mulf %496, %459 : vector<1x32xf32>
    %498 = arith.addf %494, %497 : vector<1x32xf32>
    %c2_455 = arith.constant 2 : index
    %c1_456 = arith.constant 1 : index
    %c0_457 = arith.constant 0 : index
    %c0_458 = arith.constant 0 : index
    %499 = vector.load %arg4[%c2_455, %c1_456, %c0_457, %c0_458] : memref<6x2x2x32xf32, #tpu.memory_space<vmem>>, vector<1x1x1x32xf32>
    %500 = vector.shape_cast %499 : vector<1x1x1x32xf32> to vector<32xf32>
    %501 = vector.shape_cast %500 : vector<32xf32> to vector<1x32xf32>
    %502 = arith.mulf %498, %501 : vector<1x32xf32>
    %c2_459 = arith.constant 2 : index
    %c1_460 = arith.constant 1 : index
    %c1_461 = arith.constant 1 : index
    %c0_462 = arith.constant 0 : index
    %503 = vector.load %arg4[%c2_459, %c1_460, %c1_461, %c0_462] : memref<6x2x2x32xf32, #tpu.memory_space<vmem>>, vector<1x1x1x32xf32>
    %504 = vector.shape_cast %503 : vector<1x1x1x32xf32> to vector<32xf32>
    %505 = vector.shape_cast %504 : vector<32xf32> to vector<1x32xf32>
    %506 = arith.addf %502, %505 : vector<1x32xf32>
    %cst_463 = arith.constant 0.000000e+00 : f32
    %507 = vector.broadcast %cst_463 : f32 to vector<1x32xf32>
    %508 = arith.maximumf %506, %507 : vector<1x32xf32>
    %c2_464 = arith.constant 2 : index
    %c1_465 = arith.constant 1 : index
    %c0_466 = arith.constant 0 : index
    %c0_467 = arith.constant 0 : index
    %509 = vector.load %arg5[%c2_464, %c1_465, %c0_466, %c0_467] : memref<6x2x32x16xf32, #tpu.memory_space<vmem>>, vector<1x1x32x16xf32>
    %510 = vector.shape_cast %509 : vector<1x1x32x16xf32> to vector<32x16xf32>
    %cst_468 = arith.constant dense<0.000000e+00> : vector<1x16xf32>
    %511 = tpu.matmul %508, %510, %cst_468 {dimension_numbers = #tpu.dot_dimension_numbers<[1], [0], [0], [1], [0, 0, 1, 1], [], []>} : vector<1x32xf32>, vector<32x16xf32>, vector<1x16xf32> -> vector<1x16xf32>
    %c2_469 = arith.constant 2 : index
    %c1_470 = arith.constant 1 : index
    %c0_471 = arith.constant 0 : index
    %512 = vector.load %arg6[%c2_469, %c1_470, %c0_471] : memref<6x2x16xf32, #tpu.memory_space<vmem>>, vector<1x1x16xf32>
    %513 = vector.shape_cast %512 : vector<1x1x16xf32> to vector<16xf32>
    %514 = vector.shape_cast %513 : vector<16xf32> to vector<1x16xf32>
    %515 = arith.addf %511, %514 : vector<1x16xf32>
    %cst_472 = arith.constant 0.000000e+00 : f32
    %516 = vector.broadcast %cst_472 : f32 to vector<1x16xf32>
    %517 = arith.maximumf %515, %516 : vector<1x16xf32>
    %c2_473 = arith.constant 2 : index
    %c13_474 = arith.constant 13 : index
    %c0_475 = arith.constant 0 : index
    %c0_476 = arith.constant 0 : index
    %518 = vector.load %arg7[%c2_473, %c13_474, %c0_475, %c0_476] : memref<6x18x16x16xf32, #tpu.memory_space<vmem>>, vector<1x1x16x16xf32>
    %519 = vector.shape_cast %518 : vector<1x1x16x16xf32> to vector<16x16xf32>
    %cst_477 = arith.constant dense<0.000000e+00> : vector<1x16xf32>
    %520 = tpu.matmul %517, %519, %cst_477 {dimension_numbers = #tpu.dot_dimension_numbers<[1], [0], [0], [1], [0, 0, 1, 1], [], []>} : vector<1x16xf32>, vector<16x16xf32>, vector<1x16xf32> -> vector<1x16xf32>
    %c2_478 = arith.constant 2 : index
    %c1_479 = arith.constant 1 : index
    %c0_480 = arith.constant 0 : index
    %521 = vector.load %arg8[%c2_478, %c1_479, %c0_480] : memref<6x2x16xf32, #tpu.memory_space<vmem>>, vector<1x1x16xf32>
    %522 = vector.shape_cast %521 : vector<1x1x16xf32> to vector<16xf32>
    %523 = vector.shape_cast %522 : vector<16xf32> to vector<1x16xf32>
    %524 = arith.addf %520, %523 : vector<1x16xf32>
    %cst_481 = arith.constant 0.000000e+00 : f32
    %525 = vector.broadcast %cst_481 : f32 to vector<1x16xf32>
    %526 = arith.maximumf %524, %525 : vector<1x16xf32>
    %c2_482 = arith.constant 2 : index
    %c1_483 = arith.constant 1 : index
    %c0_484 = arith.constant 0 : index
    %c0_485 = arith.constant 0 : index
    %527 = vector.load %arg9[%c2_482, %c1_483, %c0_484, %c0_485] : memref<6x2x16x32xf32, #tpu.memory_space<vmem>>, vector<1x1x16x32xf32>
    %528 = vector.shape_cast %527 : vector<1x1x16x32xf32> to vector<16x32xf32>
    %cst_486 = arith.constant dense<0.000000e+00> : vector<1x32xf32>
    %529 = tpu.matmul %526, %528, %cst_486 {dimension_numbers = #tpu.dot_dimension_numbers<[1], [0], [0], [1], [0, 0, 1, 1], [], []>} : vector<1x16xf32>, vector<16x32xf32>, vector<1x32xf32> -> vector<1x32xf32>
    %c2_487 = arith.constant 2 : index
    %c1_488 = arith.constant 1 : index
    %c0_489 = arith.constant 0 : index
    %530 = vector.load %arg10[%c2_487, %c1_488, %c0_489] : memref<6x2x32xf32, #tpu.memory_space<vmem>>, vector<1x1x32xf32>
    %531 = vector.shape_cast %530 : vector<1x1x32xf32> to vector<32xf32>
    %532 = vector.shape_cast %531 : vector<32xf32> to vector<1x32xf32>
    %533 = arith.addf %529, %532 : vector<1x32xf32>
    %c9_490 = arith.constant 9 : index
    %534 = memref.load %arg22[%c9_490] : memref<24xf32, #tpu.memory_space<smem>>
    %535 = vector.broadcast %534 : f32 to vector<1x32xf32>
    %536 = arith.mulf %535, %498 : vector<1x32xf32>
    %537 = arith.addf %533, %536 : vector<1x32xf32>
    %c2_491 = arith.constant 2 : index
    %c0_492 = arith.constant 0 : index
    %c0_493 = arith.constant 0 : index
    %538 = vector.load %arg11[%c2_491, %c0_492, %c0_493] : memref<6x64x32xf32, #tpu.memory_space<vmem>>, vector<1x64x32xf32>
    %539 = vector.shape_cast %538 : vector<1x64x32xf32> to vector<64x32xf32>
    %540 = vector.extract_strided_slice %539 {offsets = [0, 0], sizes = [32, 32], strides = [1, 1]} : vector<64x32xf32> to vector<32x32xf32>
    %cst_494 = arith.constant dense<0.000000e+00> : vector<1x32xf32>
    %541 = tpu.matmul %537, %540, %cst_494 {dimension_numbers = #tpu.dot_dimension_numbers<[1], [0], [0], [1], [0, 0, 1, 1], [], []>} : vector<1x32xf32>, vector<32x32xf32>, vector<1x32xf32> -> vector<1x32xf32>
    %542 = vector.extract_strided_slice %539 {offsets = [32, 0], sizes = [32, 32], strides = [1, 1]} : vector<64x32xf32> to vector<32x32xf32>
    %cst_495 = arith.constant dense<0.000000e+00> : vector<1x32xf32>
    %543 = tpu.matmul %498, %542, %cst_495 {dimension_numbers = #tpu.dot_dimension_numbers<[1], [0], [0], [1], [0, 0, 1, 1], [], []>} : vector<1x32xf32>, vector<32x32xf32>, vector<1x32xf32> -> vector<1x32xf32>
    %544 = arith.addf %541, %543 : vector<1x32xf32>
    %cst_496 = arith.constant 0.000000e+00 : f32
    %545 = vector.broadcast %cst_496 : f32 to vector<1x32xf32>
    %546 = arith.maximumf %544, %545 : vector<1x32xf32>
    %c2_497 = arith.constant 2 : index
    %c0_498 = arith.constant 0 : index
    %c0_499 = arith.constant 0 : index
    %547 = vector.load %arg13[%c2_497, %c0_498, %c0_499] : memref<6x32x2xf32, #tpu.memory_space<vmem>>, vector<1x32x2xf32>
    %548 = vector.shape_cast %547 : vector<1x32x2xf32> to vector<32x2xf32>
    %c2_500 = arith.constant 2 : index
    %c0_501 = arith.constant 0 : index
    %549 = vector.load %arg14[%c2_500, %c0_501] : memref<6x2xf32, #tpu.memory_space<vmem>>, vector<1x2xf32>
    %550 = vector.shape_cast %549 : vector<1x2xf32> to vector<2xf32>
    %c2_502 = arith.constant 2 : index
    %c0_503 = arith.constant 0 : index
    %c0_504 = arith.constant 0 : index
    %551 = vector.load %arg15[%c2_502, %c0_503, %c0_504] : memref<6x2x32xf32, #tpu.memory_space<vmem>>, vector<1x2x32xf32>
    %552 = vector.shape_cast %551 : vector<1x2x32xf32> to vector<2x32xf32>
    %c2_505 = arith.constant 2 : index
    %c0_506 = arith.constant 0 : index
    %553 = vector.load %arg16[%c2_505, %c0_506] : memref<6x32xf32, #tpu.memory_space<vmem>>, vector<1x32xf32>
    %554 = vector.shape_cast %553 : vector<1x32xf32> to vector<32xf32>
    %cst_507 = arith.constant dense<0.000000e+00> : vector<32xf32>
    %555 = vector.multi_reduction <add>, %546, %cst_507 [0] : vector<1x32xf32> to vector<32xf32>
    %556 = vector.shape_cast %555 : vector<32xf32> to vector<1x32xf32>
    %cst_508 = arith.constant 1.000000e+00 : f32
    %557 = vector.broadcast %cst_508 : f32 to vector<1x32xf32>
    %558 = arith.mulf %556, %557 : vector<1x32xf32>
    %cst_509 = arith.constant dense<0.000000e+00> : vector<1x2xf32>
    %559 = tpu.matmul %558, %548, %cst_509 {dimension_numbers = #tpu.dot_dimension_numbers<[1], [0], [0], [1], [0, 0, 1, 1], [], []>} : vector<1x32xf32>, vector<32x2xf32>, vector<1x2xf32> -> vector<1x2xf32>
    %560 = vector.shape_cast %550 : vector<2xf32> to vector<1x2xf32>
    %561 = arith.addf %559, %560 : vector<1x2xf32>
    %cst_510 = arith.constant 0.000000e+00 : f32
    %562 = vector.broadcast %cst_510 : f32 to vector<1x2xf32>
    %563 = arith.maximumf %561, %562 : vector<1x2xf32>
    %cst_511 = arith.constant dense<0.000000e+00> : vector<1x32xf32>
    %564 = tpu.matmul %563, %552, %cst_511 {dimension_numbers = #tpu.dot_dimension_numbers<[1], [0], [0], [1], [0, 0, 1, 1], [], []>} : vector<1x2xf32>, vector<2x32xf32>, vector<1x32xf32> -> vector<1x32xf32>
    %565 = vector.shape_cast %554 : vector<32xf32> to vector<1x32xf32>
    %566 = arith.addf %564, %565 : vector<1x32xf32>
    %567 = arith.negf %566 : vector<1x32xf32>
    %568 = math.exp %567 : vector<1x32xf32>
    %cst_512 = arith.constant 1.000000e+00 : f32
    %569 = vector.broadcast %cst_512 : f32 to vector<1x32xf32>
    %570 = arith.addf %569, %568 : vector<1x32xf32>
    %571 = arith.divf %569, %570 : vector<1x32xf32>
    %572 = arith.mulf %546, %571 : vector<1x32xf32>
    %c2_513 = arith.constant 2 : index
    %c4_514 = arith.constant 4 : index
    %c0_515 = arith.constant 0 : index
    %c0_516 = arith.constant 0 : index
    %573 = vector.load %arg12[%c2_513, %c4_514, %c0_515, %c0_516] : memref<6x9x32x32xf32, #tpu.memory_space<vmem>>, vector<1x1x32x32xf32>
    %574 = vector.shape_cast %573 : vector<1x1x32x32xf32> to vector<32x32xf32>
    %cst_517 = arith.constant dense<0.000000e+00> : vector<1x32xf32>
    %575 = tpu.matmul %572, %574, %cst_517 {dimension_numbers = #tpu.dot_dimension_numbers<[1], [0], [0], [1], [0, 0, 1, 1], [], []>} : vector<1x32xf32>, vector<32x32xf32>, vector<1x32xf32> -> vector<1x32xf32>
    %cst_518 = arith.constant 0.000000e+00 : f32
    %576 = vector.broadcast %cst_518 : f32 to vector<1x32xf32>
    %577 = arith.maximumf %575, %576 : vector<1x32xf32>
    %c10_519 = arith.constant 10 : index
    %578 = memref.load %arg22[%c10_519] : memref<24xf32, #tpu.memory_space<smem>>
    %579 = vector.broadcast %578 : f32 to vector<1x32xf32>
    %580 = arith.mulf %579, %459 : vector<1x32xf32>
    %c11_520 = arith.constant 11 : index
    %581 = memref.load %arg22[%c11_520] : memref<24xf32, #tpu.memory_space<smem>>
    %582 = vector.broadcast %581 : f32 to vector<1x32xf32>
    %583 = arith.mulf %582, %577 : vector<1x32xf32>
    %584 = arith.addf %580, %583 : vector<1x32xf32>
    %c3_521 = arith.constant 3 : index
    %c0_522 = arith.constant 0 : index
    %c0_523 = arith.constant 0 : index
    %c0_524 = arith.constant 0 : index
    %585 = vector.load %arg4[%c3_521, %c0_522, %c0_523, %c0_524] : memref<6x2x2x32xf32, #tpu.memory_space<vmem>>, vector<1x1x1x32xf32>
    %586 = vector.shape_cast %585 : vector<1x1x1x32xf32> to vector<32xf32>
    %587 = vector.shape_cast %586 : vector<32xf32> to vector<1x32xf32>
    %588 = arith.mulf %584, %587 : vector<1x32xf32>
    %c3_525 = arith.constant 3 : index
    %c0_526 = arith.constant 0 : index
    %c1_527 = arith.constant 1 : index
    %c0_528 = arith.constant 0 : index
    %589 = vector.load %arg4[%c3_525, %c0_526, %c1_527, %c0_528] : memref<6x2x2x32xf32, #tpu.memory_space<vmem>>, vector<1x1x1x32xf32>
    %590 = vector.shape_cast %589 : vector<1x1x1x32xf32> to vector<32xf32>
    %591 = vector.shape_cast %590 : vector<32xf32> to vector<1x32xf32>
    %592 = arith.addf %588, %591 : vector<1x32xf32>
    %cst_529 = arith.constant 0.000000e+00 : f32
    %593 = vector.broadcast %cst_529 : f32 to vector<1x32xf32>
    %594 = arith.maximumf %592, %593 : vector<1x32xf32>
    %c3_530 = arith.constant 3 : index
    %c0_531 = arith.constant 0 : index
    %c0_532 = arith.constant 0 : index
    %c0_533 = arith.constant 0 : index
    %595 = vector.load %arg5[%c3_530, %c0_531, %c0_532, %c0_533] : memref<6x2x32x16xf32, #tpu.memory_space<vmem>>, vector<1x1x32x16xf32>
    %596 = vector.shape_cast %595 : vector<1x1x32x16xf32> to vector<32x16xf32>
    %cst_534 = arith.constant dense<0.000000e+00> : vector<1x16xf32>
    %597 = tpu.matmul %594, %596, %cst_534 {dimension_numbers = #tpu.dot_dimension_numbers<[1], [0], [0], [1], [0, 0, 1, 1], [], []>} : vector<1x32xf32>, vector<32x16xf32>, vector<1x16xf32> -> vector<1x16xf32>
    %c3_535 = arith.constant 3 : index
    %c0_536 = arith.constant 0 : index
    %c0_537 = arith.constant 0 : index
    %598 = vector.load %arg6[%c3_535, %c0_536, %c0_537] : memref<6x2x16xf32, #tpu.memory_space<vmem>>, vector<1x1x16xf32>
    %599 = vector.shape_cast %598 : vector<1x1x16xf32> to vector<16xf32>
    %600 = vector.shape_cast %599 : vector<16xf32> to vector<1x16xf32>
    %601 = arith.addf %597, %600 : vector<1x16xf32>
    %cst_538 = arith.constant 0.000000e+00 : f32
    %602 = vector.broadcast %cst_538 : f32 to vector<1x16xf32>
    %603 = arith.maximumf %601, %602 : vector<1x16xf32>
    %c3_539 = arith.constant 3 : index
    %c4_540 = arith.constant 4 : index
    %c0_541 = arith.constant 0 : index
    %c0_542 = arith.constant 0 : index
    %604 = vector.load %arg7[%c3_539, %c4_540, %c0_541, %c0_542] : memref<6x18x16x16xf32, #tpu.memory_space<vmem>>, vector<1x1x16x16xf32>
    %605 = vector.shape_cast %604 : vector<1x1x16x16xf32> to vector<16x16xf32>
    %cst_543 = arith.constant dense<0.000000e+00> : vector<1x16xf32>
    %606 = tpu.matmul %603, %605, %cst_543 {dimension_numbers = #tpu.dot_dimension_numbers<[1], [0], [0], [1], [0, 0, 1, 1], [], []>} : vector<1x16xf32>, vector<16x16xf32>, vector<1x16xf32> -> vector<1x16xf32>
    %c3_544 = arith.constant 3 : index
    %c0_545 = arith.constant 0 : index
    %c0_546 = arith.constant 0 : index
    %607 = vector.load %arg8[%c3_544, %c0_545, %c0_546] : memref<6x2x16xf32, #tpu.memory_space<vmem>>, vector<1x1x16xf32>
    %608 = vector.shape_cast %607 : vector<1x1x16xf32> to vector<16xf32>
    %609 = vector.shape_cast %608 : vector<16xf32> to vector<1x16xf32>
    %610 = arith.addf %606, %609 : vector<1x16xf32>
    %cst_547 = arith.constant 0.000000e+00 : f32
    %611 = vector.broadcast %cst_547 : f32 to vector<1x16xf32>
    %612 = arith.maximumf %610, %611 : vector<1x16xf32>
    %c3_548 = arith.constant 3 : index
    %c0_549 = arith.constant 0 : index
    %c0_550 = arith.constant 0 : index
    %c0_551 = arith.constant 0 : index
    %613 = vector.load %arg9[%c3_548, %c0_549, %c0_550, %c0_551] : memref<6x2x16x32xf32, #tpu.memory_space<vmem>>, vector<1x1x16x32xf32>
    %614 = vector.shape_cast %613 : vector<1x1x16x32xf32> to vector<16x32xf32>
    %cst_552 = arith.constant dense<0.000000e+00> : vector<1x32xf32>
    %615 = tpu.matmul %612, %614, %cst_552 {dimension_numbers = #tpu.dot_dimension_numbers<[1], [0], [0], [1], [0, 0, 1, 1], [], []>} : vector<1x16xf32>, vector<16x32xf32>, vector<1x32xf32> -> vector<1x32xf32>
    %c3_553 = arith.constant 3 : index
    %c0_554 = arith.constant 0 : index
    %c0_555 = arith.constant 0 : index
    %616 = vector.load %arg10[%c3_553, %c0_554, %c0_555] : memref<6x2x32xf32, #tpu.memory_space<vmem>>, vector<1x1x32xf32>
    %617 = vector.shape_cast %616 : vector<1x1x32xf32> to vector<32xf32>
    %618 = vector.shape_cast %617 : vector<32xf32> to vector<1x32xf32>
    %619 = arith.addf %615, %618 : vector<1x32xf32>
    %c12_556 = arith.constant 12 : index
    %620 = memref.load %arg22[%c12_556] : memref<24xf32, #tpu.memory_space<smem>>
    %621 = vector.broadcast %620 : f32 to vector<1x32xf32>
    %622 = arith.mulf %621, %584 : vector<1x32xf32>
    %623 = arith.addf %619, %622 : vector<1x32xf32>
    %c3_557 = arith.constant 3 : index
    %c1_558 = arith.constant 1 : index
    %c0_559 = arith.constant 0 : index
    %c0_560 = arith.constant 0 : index
    %624 = vector.load %arg4[%c3_557, %c1_558, %c0_559, %c0_560] : memref<6x2x2x32xf32, #tpu.memory_space<vmem>>, vector<1x1x1x32xf32>
    %625 = vector.shape_cast %624 : vector<1x1x1x32xf32> to vector<32xf32>
    %626 = vector.shape_cast %625 : vector<32xf32> to vector<1x32xf32>
    %627 = arith.mulf %623, %626 : vector<1x32xf32>
    %c3_561 = arith.constant 3 : index
    %c1_562 = arith.constant 1 : index
    %c1_563 = arith.constant 1 : index
    %c0_564 = arith.constant 0 : index
    %628 = vector.load %arg4[%c3_561, %c1_562, %c1_563, %c0_564] : memref<6x2x2x32xf32, #tpu.memory_space<vmem>>, vector<1x1x1x32xf32>
    %629 = vector.shape_cast %628 : vector<1x1x1x32xf32> to vector<32xf32>
    %630 = vector.shape_cast %629 : vector<32xf32> to vector<1x32xf32>
    %631 = arith.addf %627, %630 : vector<1x32xf32>
    %cst_565 = arith.constant 0.000000e+00 : f32
    %632 = vector.broadcast %cst_565 : f32 to vector<1x32xf32>
    %633 = arith.maximumf %631, %632 : vector<1x32xf32>
    %c3_566 = arith.constant 3 : index
    %c1_567 = arith.constant 1 : index
    %c0_568 = arith.constant 0 : index
    %c0_569 = arith.constant 0 : index
    %634 = vector.load %arg5[%c3_566, %c1_567, %c0_568, %c0_569] : memref<6x2x32x16xf32, #tpu.memory_space<vmem>>, vector<1x1x32x16xf32>
    %635 = vector.shape_cast %634 : vector<1x1x32x16xf32> to vector<32x16xf32>
    %cst_570 = arith.constant dense<0.000000e+00> : vector<1x16xf32>
    %636 = tpu.matmul %633, %635, %cst_570 {dimension_numbers = #tpu.dot_dimension_numbers<[1], [0], [0], [1], [0, 0, 1, 1], [], []>} : vector<1x32xf32>, vector<32x16xf32>, vector<1x16xf32> -> vector<1x16xf32>
    %c3_571 = arith.constant 3 : index
    %c1_572 = arith.constant 1 : index
    %c0_573 = arith.constant 0 : index
    %637 = vector.load %arg6[%c3_571, %c1_572, %c0_573] : memref<6x2x16xf32, #tpu.memory_space<vmem>>, vector<1x1x16xf32>
    %638 = vector.shape_cast %637 : vector<1x1x16xf32> to vector<16xf32>
    %639 = vector.shape_cast %638 : vector<16xf32> to vector<1x16xf32>
    %640 = arith.addf %636, %639 : vector<1x16xf32>
    %cst_574 = arith.constant 0.000000e+00 : f32
    %641 = vector.broadcast %cst_574 : f32 to vector<1x16xf32>
    %642 = arith.maximumf %640, %641 : vector<1x16xf32>
    %c3_575 = arith.constant 3 : index
    %c13_576 = arith.constant 13 : index
    %c0_577 = arith.constant 0 : index
    %c0_578 = arith.constant 0 : index
    %643 = vector.load %arg7[%c3_575, %c13_576, %c0_577, %c0_578] : memref<6x18x16x16xf32, #tpu.memory_space<vmem>>, vector<1x1x16x16xf32>
    %644 = vector.shape_cast %643 : vector<1x1x16x16xf32> to vector<16x16xf32>
    %cst_579 = arith.constant dense<0.000000e+00> : vector<1x16xf32>
    %645 = tpu.matmul %642, %644, %cst_579 {dimension_numbers = #tpu.dot_dimension_numbers<[1], [0], [0], [1], [0, 0, 1, 1], [], []>} : vector<1x16xf32>, vector<16x16xf32>, vector<1x16xf32> -> vector<1x16xf32>
    %c3_580 = arith.constant 3 : index
    %c1_581 = arith.constant 1 : index
    %c0_582 = arith.constant 0 : index
    %646 = vector.load %arg8[%c3_580, %c1_581, %c0_582] : memref<6x2x16xf32, #tpu.memory_space<vmem>>, vector<1x1x16xf32>
    %647 = vector.shape_cast %646 : vector<1x1x16xf32> to vector<16xf32>
    %648 = vector.shape_cast %647 : vector<16xf32> to vector<1x16xf32>
    %649 = arith.addf %645, %648 : vector<1x16xf32>
    %cst_583 = arith.constant 0.000000e+00 : f32
    %650 = vector.broadcast %cst_583 : f32 to vector<1x16xf32>
    %651 = arith.maximumf %649, %650 : vector<1x16xf32>
    %c3_584 = arith.constant 3 : index
    %c1_585 = arith.constant 1 : index
    %c0_586 = arith.constant 0 : index
    %c0_587 = arith.constant 0 : index
    %652 = vector.load %arg9[%c3_584, %c1_585, %c0_586, %c0_587] : memref<6x2x16x32xf32, #tpu.memory_space<vmem>>, vector<1x1x16x32xf32>
    %653 = vector.shape_cast %652 : vector<1x1x16x32xf32> to vector<16x32xf32>
    %cst_588 = arith.constant dense<0.000000e+00> : vector<1x32xf32>
    %654 = tpu.matmul %651, %653, %cst_588 {dimension_numbers = #tpu.dot_dimension_numbers<[1], [0], [0], [1], [0, 0, 1, 1], [], []>} : vector<1x16xf32>, vector<16x32xf32>, vector<1x32xf32> -> vector<1x32xf32>
    %c3_589 = arith.constant 3 : index
    %c1_590 = arith.constant 1 : index
    %c0_591 = arith.constant 0 : index
    %655 = vector.load %arg10[%c3_589, %c1_590, %c0_591] : memref<6x2x32xf32, #tpu.memory_space<vmem>>, vector<1x1x32xf32>
    %656 = vector.shape_cast %655 : vector<1x1x32xf32> to vector<32xf32>
    %657 = vector.shape_cast %656 : vector<32xf32> to vector<1x32xf32>
    %658 = arith.addf %654, %657 : vector<1x32xf32>
    %c13_592 = arith.constant 13 : index
    %659 = memref.load %arg22[%c13_592] : memref<24xf32, #tpu.memory_space<smem>>
    %660 = vector.broadcast %659 : f32 to vector<1x32xf32>
    %661 = arith.mulf %660, %623 : vector<1x32xf32>
    %662 = arith.addf %658, %661 : vector<1x32xf32>
    %c3_593 = arith.constant 3 : index
    %c0_594 = arith.constant 0 : index
    %c0_595 = arith.constant 0 : index
    %663 = vector.load %arg11[%c3_593, %c0_594, %c0_595] : memref<6x64x32xf32, #tpu.memory_space<vmem>>, vector<1x64x32xf32>
    %664 = vector.shape_cast %663 : vector<1x64x32xf32> to vector<64x32xf32>
    %665 = vector.extract_strided_slice %664 {offsets = [0, 0], sizes = [32, 32], strides = [1, 1]} : vector<64x32xf32> to vector<32x32xf32>
    %cst_596 = arith.constant dense<0.000000e+00> : vector<1x32xf32>
    %666 = tpu.matmul %662, %665, %cst_596 {dimension_numbers = #tpu.dot_dimension_numbers<[1], [0], [0], [1], [0, 0, 1, 1], [], []>} : vector<1x32xf32>, vector<32x32xf32>, vector<1x32xf32> -> vector<1x32xf32>
    %667 = vector.extract_strided_slice %664 {offsets = [32, 0], sizes = [32, 32], strides = [1, 1]} : vector<64x32xf32> to vector<32x32xf32>
    %cst_597 = arith.constant dense<0.000000e+00> : vector<1x32xf32>
    %668 = tpu.matmul %623, %667, %cst_597 {dimension_numbers = #tpu.dot_dimension_numbers<[1], [0], [0], [1], [0, 0, 1, 1], [], []>} : vector<1x32xf32>, vector<32x32xf32>, vector<1x32xf32> -> vector<1x32xf32>
    %669 = arith.addf %666, %668 : vector<1x32xf32>
    %cst_598 = arith.constant 0.000000e+00 : f32
    %670 = vector.broadcast %cst_598 : f32 to vector<1x32xf32>
    %671 = arith.maximumf %669, %670 : vector<1x32xf32>
    %c3_599 = arith.constant 3 : index
    %c0_600 = arith.constant 0 : index
    %c0_601 = arith.constant 0 : index
    %672 = vector.load %arg13[%c3_599, %c0_600, %c0_601] : memref<6x32x2xf32, #tpu.memory_space<vmem>>, vector<1x32x2xf32>
    %673 = vector.shape_cast %672 : vector<1x32x2xf32> to vector<32x2xf32>
    %c3_602 = arith.constant 3 : index
    %c0_603 = arith.constant 0 : index
    %674 = vector.load %arg14[%c3_602, %c0_603] : memref<6x2xf32, #tpu.memory_space<vmem>>, vector<1x2xf32>
    %675 = vector.shape_cast %674 : vector<1x2xf32> to vector<2xf32>
    %c3_604 = arith.constant 3 : index
    %c0_605 = arith.constant 0 : index
    %c0_606 = arith.constant 0 : index
    %676 = vector.load %arg15[%c3_604, %c0_605, %c0_606] : memref<6x2x32xf32, #tpu.memory_space<vmem>>, vector<1x2x32xf32>
    %677 = vector.shape_cast %676 : vector<1x2x32xf32> to vector<2x32xf32>
    %c3_607 = arith.constant 3 : index
    %c0_608 = arith.constant 0 : index
    %678 = vector.load %arg16[%c3_607, %c0_608] : memref<6x32xf32, #tpu.memory_space<vmem>>, vector<1x32xf32>
    %679 = vector.shape_cast %678 : vector<1x32xf32> to vector<32xf32>
    %cst_609 = arith.constant dense<0.000000e+00> : vector<32xf32>
    %680 = vector.multi_reduction <add>, %671, %cst_609 [0] : vector<1x32xf32> to vector<32xf32>
    %681 = vector.shape_cast %680 : vector<32xf32> to vector<1x32xf32>
    %cst_610 = arith.constant 1.000000e+00 : f32
    %682 = vector.broadcast %cst_610 : f32 to vector<1x32xf32>
    %683 = arith.mulf %681, %682 : vector<1x32xf32>
    %cst_611 = arith.constant dense<0.000000e+00> : vector<1x2xf32>
    %684 = tpu.matmul %683, %673, %cst_611 {dimension_numbers = #tpu.dot_dimension_numbers<[1], [0], [0], [1], [0, 0, 1, 1], [], []>} : vector<1x32xf32>, vector<32x2xf32>, vector<1x2xf32> -> vector<1x2xf32>
    %685 = vector.shape_cast %675 : vector<2xf32> to vector<1x2xf32>
    %686 = arith.addf %684, %685 : vector<1x2xf32>
    %cst_612 = arith.constant 0.000000e+00 : f32
    %687 = vector.broadcast %cst_612 : f32 to vector<1x2xf32>
    %688 = arith.maximumf %686, %687 : vector<1x2xf32>
    %cst_613 = arith.constant dense<0.000000e+00> : vector<1x32xf32>
    %689 = tpu.matmul %688, %677, %cst_613 {dimension_numbers = #tpu.dot_dimension_numbers<[1], [0], [0], [1], [0, 0, 1, 1], [], []>} : vector<1x2xf32>, vector<2x32xf32>, vector<1x32xf32> -> vector<1x32xf32>
    %690 = vector.shape_cast %679 : vector<32xf32> to vector<1x32xf32>
    %691 = arith.addf %689, %690 : vector<1x32xf32>
    %692 = arith.negf %691 : vector<1x32xf32>
    %693 = math.exp %692 : vector<1x32xf32>
    %cst_614 = arith.constant 1.000000e+00 : f32
    %694 = vector.broadcast %cst_614 : f32 to vector<1x32xf32>
    %695 = arith.addf %694, %693 : vector<1x32xf32>
    %696 = arith.divf %694, %695 : vector<1x32xf32>
    %697 = arith.mulf %671, %696 : vector<1x32xf32>
    %c3_615 = arith.constant 3 : index
    %c4_616 = arith.constant 4 : index
    %c0_617 = arith.constant 0 : index
    %c0_618 = arith.constant 0 : index
    %698 = vector.load %arg12[%c3_615, %c4_616, %c0_617, %c0_618] : memref<6x9x32x32xf32, #tpu.memory_space<vmem>>, vector<1x1x32x32xf32>
    %699 = vector.shape_cast %698 : vector<1x1x32x32xf32> to vector<32x32xf32>
    %cst_619 = arith.constant dense<0.000000e+00> : vector<1x32xf32>
    %700 = tpu.matmul %697, %699, %cst_619 {dimension_numbers = #tpu.dot_dimension_numbers<[1], [0], [0], [1], [0, 0, 1, 1], [], []>} : vector<1x32xf32>, vector<32x32xf32>, vector<1x32xf32> -> vector<1x32xf32>
    %cst_620 = arith.constant 0.000000e+00 : f32
    %701 = vector.broadcast %cst_620 : f32 to vector<1x32xf32>
    %702 = arith.maximumf %700, %701 : vector<1x32xf32>
    %c14_621 = arith.constant 14 : index
    %703 = memref.load %arg22[%c14_621] : memref<24xf32, #tpu.memory_space<smem>>
    %704 = vector.broadcast %703 : f32 to vector<1x32xf32>
    %705 = arith.mulf %704, %584 : vector<1x32xf32>
    %c15_622 = arith.constant 15 : index
    %706 = memref.load %arg22[%c15_622] : memref<24xf32, #tpu.memory_space<smem>>
    %707 = vector.broadcast %706 : f32 to vector<1x32xf32>
    %708 = arith.mulf %707, %702 : vector<1x32xf32>
    %709 = arith.addf %705, %708 : vector<1x32xf32>
    %c4_623 = arith.constant 4 : index
    %c0_624 = arith.constant 0 : index
    %c0_625 = arith.constant 0 : index
    %c0_626 = arith.constant 0 : index
    %710 = vector.load %arg4[%c4_623, %c0_624, %c0_625, %c0_626] : memref<6x2x2x32xf32, #tpu.memory_space<vmem>>, vector<1x1x1x32xf32>
    %711 = vector.shape_cast %710 : vector<1x1x1x32xf32> to vector<32xf32>
    %712 = vector.shape_cast %711 : vector<32xf32> to vector<1x32xf32>
    %713 = vector.broadcast %712 : vector<1x32xf32> to vector<9x32xf32>
    %714 = arith.mulf %334, %713 : vector<9x32xf32>
    %c4_627 = arith.constant 4 : index
    %c0_628 = arith.constant 0 : index
    %c1_629 = arith.constant 1 : index
    %c0_630 = arith.constant 0 : index
    %715 = vector.load %arg4[%c4_627, %c0_628, %c1_629, %c0_630] : memref<6x2x2x32xf32, #tpu.memory_space<vmem>>, vector<1x1x1x32xf32>
    %716 = vector.shape_cast %715 : vector<1x1x1x32xf32> to vector<32xf32>
    %717 = vector.shape_cast %716 : vector<32xf32> to vector<1x32xf32>
    %718 = vector.broadcast %717 : vector<1x32xf32> to vector<9x32xf32>
    %719 = arith.addf %714, %718 : vector<9x32xf32>
    %cst_631 = arith.constant 0.000000e+00 : f32
    %720 = vector.broadcast %cst_631 : f32 to vector<9x32xf32>
    %721 = arith.maximumf %719, %720 : vector<9x32xf32>
    %c4_632 = arith.constant 4 : index
    %c0_633 = arith.constant 0 : index
    %c0_634 = arith.constant 0 : index
    %c0_635 = arith.constant 0 : index
    %722 = vector.load %arg5[%c4_632, %c0_633, %c0_634, %c0_635] : memref<6x2x32x16xf32, #tpu.memory_space<vmem>>, vector<1x1x32x16xf32>
    %723 = vector.shape_cast %722 : vector<1x1x32x16xf32> to vector<32x16xf32>
    %cst_636 = arith.constant dense<0.000000e+00> : vector<9x16xf32>
    %724 = tpu.matmul %721, %723, %cst_636 {dimension_numbers = #tpu.dot_dimension_numbers<[1], [0], [0], [1], [0, 0, 1, 1], [], []>} : vector<9x32xf32>, vector<32x16xf32>, vector<9x16xf32> -> vector<9x16xf32>
    %c4_637 = arith.constant 4 : index
    %c0_638 = arith.constant 0 : index
    %c0_639 = arith.constant 0 : index
    %725 = vector.load %arg6[%c4_637, %c0_638, %c0_639] : memref<6x2x16xf32, #tpu.memory_space<vmem>>, vector<1x1x16xf32>
    %726 = vector.shape_cast %725 : vector<1x1x16xf32> to vector<16xf32>
    %727 = vector.shape_cast %726 : vector<16xf32> to vector<1x16xf32>
    %728 = vector.broadcast %727 : vector<1x16xf32> to vector<9x16xf32>
    %729 = arith.addf %724, %728 : vector<9x16xf32>
    %cst_640 = arith.constant 0.000000e+00 : f32
    %730 = vector.broadcast %cst_640 : f32 to vector<9x16xf32>
    %731 = arith.maximumf %729, %730 : vector<9x16xf32>
    %c0_641 = arith.constant 0 : index
    %c0_642 = arith.constant 0 : index
    %c0_643 = arith.constant 0 : index
    %732 = vector.load %arg3[%c0_641, %c0_642, %c0_643] : memref<9x9x9xf32, #tpu.memory_space<vmem>>, vector<1x9x9xf32>
    %733 = vector.shape_cast %732 : vector<1x9x9xf32> to vector<9x9xf32>
    %734 = vector.extract_strided_slice %733 {offsets = [0, 0], sizes = [1, 9], strides = [1, 1]} : vector<9x9xf32> to vector<1x9xf32>
    %cst_644 = arith.constant dense<0.000000e+00> : vector<1x16xf32>
    %735 = tpu.matmul %734, %731, %cst_644 {dimension_numbers = #tpu.dot_dimension_numbers<[1], [0], [0], [1], [0, 0, 1, 1], [], []>} : vector<1x9xf32>, vector<9x16xf32>, vector<1x16xf32> -> vector<1x16xf32>
    %c4_645 = arith.constant 4 : index
    %c0_646 = arith.constant 0 : index
    %c0_647 = arith.constant 0 : index
    %c0_648 = arith.constant 0 : index
    %736 = vector.load %arg7[%c4_645, %c0_646, %c0_647, %c0_648] : memref<6x18x16x16xf32, #tpu.memory_space<vmem>>, vector<1x1x16x16xf32>
    %737 = vector.shape_cast %736 : vector<1x1x16x16xf32> to vector<16x16xf32>
    %cst_649 = arith.constant dense<0.000000e+00> : vector<1x16xf32>
    %738 = tpu.matmul %735, %737, %cst_649 {dimension_numbers = #tpu.dot_dimension_numbers<[1], [0], [0], [1], [0, 0, 1, 1], [], []>} : vector<1x16xf32>, vector<16x16xf32>, vector<1x16xf32> -> vector<1x16xf32>
    %c1_650 = arith.constant 1 : index
    %c0_651 = arith.constant 0 : index
    %c0_652 = arith.constant 0 : index
    %739 = vector.load %arg3[%c1_650, %c0_651, %c0_652] : memref<9x9x9xf32, #tpu.memory_space<vmem>>, vector<1x9x9xf32>
    %740 = vector.shape_cast %739 : vector<1x9x9xf32> to vector<9x9xf32>
    %741 = vector.extract_strided_slice %740 {offsets = [0, 0], sizes = [1, 9], strides = [1, 1]} : vector<9x9xf32> to vector<1x9xf32>
    %cst_653 = arith.constant dense<0.000000e+00> : vector<1x16xf32>
    %742 = tpu.matmul %741, %731, %cst_653 {dimension_numbers = #tpu.dot_dimension_numbers<[1], [0], [0], [1], [0, 0, 1, 1], [], []>} : vector<1x9xf32>, vector<9x16xf32>, vector<1x16xf32> -> vector<1x16xf32>
    %c4_654 = arith.constant 4 : index
    %c1_655 = arith.constant 1 : index
    %c0_656 = arith.constant 0 : index
    %c0_657 = arith.constant 0 : index
    %743 = vector.load %arg7[%c4_654, %c1_655, %c0_656, %c0_657] : memref<6x18x16x16xf32, #tpu.memory_space<vmem>>, vector<1x1x16x16xf32>
    %744 = vector.shape_cast %743 : vector<1x1x16x16xf32> to vector<16x16xf32>
    %cst_658 = arith.constant dense<0.000000e+00> : vector<1x16xf32>
    %745 = tpu.matmul %742, %744, %cst_658 {dimension_numbers = #tpu.dot_dimension_numbers<[1], [0], [0], [1], [0, 0, 1, 1], [], []>} : vector<1x16xf32>, vector<16x16xf32>, vector<1x16xf32> -> vector<1x16xf32>
    %746 = arith.addf %738, %745 : vector<1x16xf32>
    %c2_659 = arith.constant 2 : index
    %c0_660 = arith.constant 0 : index
    %c0_661 = arith.constant 0 : index
    %747 = vector.load %arg3[%c2_659, %c0_660, %c0_661] : memref<9x9x9xf32, #tpu.memory_space<vmem>>, vector<1x9x9xf32>
    %748 = vector.shape_cast %747 : vector<1x9x9xf32> to vector<9x9xf32>
    %749 = vector.extract_strided_slice %748 {offsets = [0, 0], sizes = [1, 9], strides = [1, 1]} : vector<9x9xf32> to vector<1x9xf32>
    %cst_662 = arith.constant dense<0.000000e+00> : vector<1x16xf32>
    %750 = tpu.matmul %749, %731, %cst_662 {dimension_numbers = #tpu.dot_dimension_numbers<[1], [0], [0], [1], [0, 0, 1, 1], [], []>} : vector<1x9xf32>, vector<9x16xf32>, vector<1x16xf32> -> vector<1x16xf32>
    %c4_663 = arith.constant 4 : index
    %c2_664 = arith.constant 2 : index
    %c0_665 = arith.constant 0 : index
    %c0_666 = arith.constant 0 : index
    %751 = vector.load %arg7[%c4_663, %c2_664, %c0_665, %c0_666] : memref<6x18x16x16xf32, #tpu.memory_space<vmem>>, vector<1x1x16x16xf32>
    %752 = vector.shape_cast %751 : vector<1x1x16x16xf32> to vector<16x16xf32>
    %cst_667 = arith.constant dense<0.000000e+00> : vector<1x16xf32>
    %753 = tpu.matmul %750, %752, %cst_667 {dimension_numbers = #tpu.dot_dimension_numbers<[1], [0], [0], [1], [0, 0, 1, 1], [], []>} : vector<1x16xf32>, vector<16x16xf32>, vector<1x16xf32> -> vector<1x16xf32>
    %754 = arith.addf %746, %753 : vector<1x16xf32>
    %c3_668 = arith.constant 3 : index
    %c0_669 = arith.constant 0 : index
    %c0_670 = arith.constant 0 : index
    %755 = vector.load %arg3[%c3_668, %c0_669, %c0_670] : memref<9x9x9xf32, #tpu.memory_space<vmem>>, vector<1x9x9xf32>
    %756 = vector.shape_cast %755 : vector<1x9x9xf32> to vector<9x9xf32>
    %757 = vector.extract_strided_slice %756 {offsets = [0, 0], sizes = [1, 9], strides = [1, 1]} : vector<9x9xf32> to vector<1x9xf32>
    %cst_671 = arith.constant dense<0.000000e+00> : vector<1x16xf32>
    %758 = tpu.matmul %757, %731, %cst_671 {dimension_numbers = #tpu.dot_dimension_numbers<[1], [0], [0], [1], [0, 0, 1, 1], [], []>} : vector<1x9xf32>, vector<9x16xf32>, vector<1x16xf32> -> vector<1x16xf32>
    %c4_672 = arith.constant 4 : index
    %c3_673 = arith.constant 3 : index
    %c0_674 = arith.constant 0 : index
    %c0_675 = arith.constant 0 : index
    %759 = vector.load %arg7[%c4_672, %c3_673, %c0_674, %c0_675] : memref<6x18x16x16xf32, #tpu.memory_space<vmem>>, vector<1x1x16x16xf32>
    %760 = vector.shape_cast %759 : vector<1x1x16x16xf32> to vector<16x16xf32>
    %cst_676 = arith.constant dense<0.000000e+00> : vector<1x16xf32>
    %761 = tpu.matmul %758, %760, %cst_676 {dimension_numbers = #tpu.dot_dimension_numbers<[1], [0], [0], [1], [0, 0, 1, 1], [], []>} : vector<1x16xf32>, vector<16x16xf32>, vector<1x16xf32> -> vector<1x16xf32>
    %762 = arith.addf %754, %761 : vector<1x16xf32>
    %c4_677 = arith.constant 4 : index
    %c0_678 = arith.constant 0 : index
    %c0_679 = arith.constant 0 : index
    %763 = vector.load %arg3[%c4_677, %c0_678, %c0_679] : memref<9x9x9xf32, #tpu.memory_space<vmem>>, vector<1x9x9xf32>
    %764 = vector.shape_cast %763 : vector<1x9x9xf32> to vector<9x9xf32>
    %765 = vector.extract_strided_slice %764 {offsets = [0, 0], sizes = [1, 9], strides = [1, 1]} : vector<9x9xf32> to vector<1x9xf32>
    %cst_680 = arith.constant dense<0.000000e+00> : vector<1x16xf32>
    %766 = tpu.matmul %765, %731, %cst_680 {dimension_numbers = #tpu.dot_dimension_numbers<[1], [0], [0], [1], [0, 0, 1, 1], [], []>} : vector<1x9xf32>, vector<9x16xf32>, vector<1x16xf32> -> vector<1x16xf32>
    %c4_681 = arith.constant 4 : index
    %c4_682 = arith.constant 4 : index
    %c0_683 = arith.constant 0 : index
    %c0_684 = arith.constant 0 : index
    %767 = vector.load %arg7[%c4_681, %c4_682, %c0_683, %c0_684] : memref<6x18x16x16xf32, #tpu.memory_space<vmem>>, vector<1x1x16x16xf32>
    %768 = vector.shape_cast %767 : vector<1x1x16x16xf32> to vector<16x16xf32>
    %cst_685 = arith.constant dense<0.000000e+00> : vector<1x16xf32>
    %769 = tpu.matmul %766, %768, %cst_685 {dimension_numbers = #tpu.dot_dimension_numbers<[1], [0], [0], [1], [0, 0, 1, 1], [], []>} : vector<1x16xf32>, vector<16x16xf32>, vector<1x16xf32> -> vector<1x16xf32>
    %770 = arith.addf %762, %769 : vector<1x16xf32>
    %c5_686 = arith.constant 5 : index
    %c0_687 = arith.constant 0 : index
    %c0_688 = arith.constant 0 : index
    %771 = vector.load %arg3[%c5_686, %c0_687, %c0_688] : memref<9x9x9xf32, #tpu.memory_space<vmem>>, vector<1x9x9xf32>
    %772 = vector.shape_cast %771 : vector<1x9x9xf32> to vector<9x9xf32>
    %773 = vector.extract_strided_slice %772 {offsets = [0, 0], sizes = [1, 9], strides = [1, 1]} : vector<9x9xf32> to vector<1x9xf32>
    %cst_689 = arith.constant dense<0.000000e+00> : vector<1x16xf32>
    %774 = tpu.matmul %773, %731, %cst_689 {dimension_numbers = #tpu.dot_dimension_numbers<[1], [0], [0], [1], [0, 0, 1, 1], [], []>} : vector<1x9xf32>, vector<9x16xf32>, vector<1x16xf32> -> vector<1x16xf32>
    %c4_690 = arith.constant 4 : index
    %c5_691 = arith.constant 5 : index
    %c0_692 = arith.constant 0 : index
    %c0_693 = arith.constant 0 : index
    %775 = vector.load %arg7[%c4_690, %c5_691, %c0_692, %c0_693] : memref<6x18x16x16xf32, #tpu.memory_space<vmem>>, vector<1x1x16x16xf32>
    %776 = vector.shape_cast %775 : vector<1x1x16x16xf32> to vector<16x16xf32>
    %cst_694 = arith.constant dense<0.000000e+00> : vector<1x16xf32>
    %777 = tpu.matmul %774, %776, %cst_694 {dimension_numbers = #tpu.dot_dimension_numbers<[1], [0], [0], [1], [0, 0, 1, 1], [], []>} : vector<1x16xf32>, vector<16x16xf32>, vector<1x16xf32> -> vector<1x16xf32>
    %778 = arith.addf %770, %777 : vector<1x16xf32>
    %c6_695 = arith.constant 6 : index
    %c0_696 = arith.constant 0 : index
    %c0_697 = arith.constant 0 : index
    %779 = vector.load %arg3[%c6_695, %c0_696, %c0_697] : memref<9x9x9xf32, #tpu.memory_space<vmem>>, vector<1x9x9xf32>
    %780 = vector.shape_cast %779 : vector<1x9x9xf32> to vector<9x9xf32>
    %781 = vector.extract_strided_slice %780 {offsets = [0, 0], sizes = [1, 9], strides = [1, 1]} : vector<9x9xf32> to vector<1x9xf32>
    %cst_698 = arith.constant dense<0.000000e+00> : vector<1x16xf32>
    %782 = tpu.matmul %781, %731, %cst_698 {dimension_numbers = #tpu.dot_dimension_numbers<[1], [0], [0], [1], [0, 0, 1, 1], [], []>} : vector<1x9xf32>, vector<9x16xf32>, vector<1x16xf32> -> vector<1x16xf32>
    %c4_699 = arith.constant 4 : index
    %c6_700 = arith.constant 6 : index
    %c0_701 = arith.constant 0 : index
    %c0_702 = arith.constant 0 : index
    %783 = vector.load %arg7[%c4_699, %c6_700, %c0_701, %c0_702] : memref<6x18x16x16xf32, #tpu.memory_space<vmem>>, vector<1x1x16x16xf32>
    %784 = vector.shape_cast %783 : vector<1x1x16x16xf32> to vector<16x16xf32>
    %cst_703 = arith.constant dense<0.000000e+00> : vector<1x16xf32>
    %785 = tpu.matmul %782, %784, %cst_703 {dimension_numbers = #tpu.dot_dimension_numbers<[1], [0], [0], [1], [0, 0, 1, 1], [], []>} : vector<1x16xf32>, vector<16x16xf32>, vector<1x16xf32> -> vector<1x16xf32>
    %786 = arith.addf %778, %785 : vector<1x16xf32>
    %c7_704 = arith.constant 7 : index
    %c0_705 = arith.constant 0 : index
    %c0_706 = arith.constant 0 : index
    %787 = vector.load %arg3[%c7_704, %c0_705, %c0_706] : memref<9x9x9xf32, #tpu.memory_space<vmem>>, vector<1x9x9xf32>
    %788 = vector.shape_cast %787 : vector<1x9x9xf32> to vector<9x9xf32>
    %789 = vector.extract_strided_slice %788 {offsets = [0, 0], sizes = [1, 9], strides = [1, 1]} : vector<9x9xf32> to vector<1x9xf32>
    %cst_707 = arith.constant dense<0.000000e+00> : vector<1x16xf32>
    %790 = tpu.matmul %789, %731, %cst_707 {dimension_numbers = #tpu.dot_dimension_numbers<[1], [0], [0], [1], [0, 0, 1, 1], [], []>} : vector<1x9xf32>, vector<9x16xf32>, vector<1x16xf32> -> vector<1x16xf32>
    %c4_708 = arith.constant 4 : index
    %c7_709 = arith.constant 7 : index
    %c0_710 = arith.constant 0 : index
    %c0_711 = arith.constant 0 : index
    %791 = vector.load %arg7[%c4_708, %c7_709, %c0_710, %c0_711] : memref<6x18x16x16xf32, #tpu.memory_space<vmem>>, vector<1x1x16x16xf32>
    %792 = vector.shape_cast %791 : vector<1x1x16x16xf32> to vector<16x16xf32>
    %cst_712 = arith.constant dense<0.000000e+00> : vector<1x16xf32>
    %793 = tpu.matmul %790, %792, %cst_712 {dimension_numbers = #tpu.dot_dimension_numbers<[1], [0], [0], [1], [0, 0, 1, 1], [], []>} : vector<1x16xf32>, vector<16x16xf32>, vector<1x16xf32> -> vector<1x16xf32>
    %794 = arith.addf %786, %793 : vector<1x16xf32>
    %c8_713 = arith.constant 8 : index
    %c0_714 = arith.constant 0 : index
    %c0_715 = arith.constant 0 : index
    %795 = vector.load %arg3[%c8_713, %c0_714, %c0_715] : memref<9x9x9xf32, #tpu.memory_space<vmem>>, vector<1x9x9xf32>
    %796 = vector.shape_cast %795 : vector<1x9x9xf32> to vector<9x9xf32>
    %797 = vector.extract_strided_slice %796 {offsets = [0, 0], sizes = [1, 9], strides = [1, 1]} : vector<9x9xf32> to vector<1x9xf32>
    %cst_716 = arith.constant dense<0.000000e+00> : vector<1x16xf32>
    %798 = tpu.matmul %797, %731, %cst_716 {dimension_numbers = #tpu.dot_dimension_numbers<[1], [0], [0], [1], [0, 0, 1, 1], [], []>} : vector<1x9xf32>, vector<9x16xf32>, vector<1x16xf32> -> vector<1x16xf32>
    %c4_717 = arith.constant 4 : index
    %c8_718 = arith.constant 8 : index
    %c0_719 = arith.constant 0 : index
    %c0_720 = arith.constant 0 : index
    %799 = vector.load %arg7[%c4_717, %c8_718, %c0_719, %c0_720] : memref<6x18x16x16xf32, #tpu.memory_space<vmem>>, vector<1x1x16x16xf32>
    %800 = vector.shape_cast %799 : vector<1x1x16x16xf32> to vector<16x16xf32>
    %cst_721 = arith.constant dense<0.000000e+00> : vector<1x16xf32>
    %801 = tpu.matmul %798, %800, %cst_721 {dimension_numbers = #tpu.dot_dimension_numbers<[1], [0], [0], [1], [0, 0, 1, 1], [], []>} : vector<1x16xf32>, vector<16x16xf32>, vector<1x16xf32> -> vector<1x16xf32>
    %802 = arith.addf %794, %801 : vector<1x16xf32>
    %c4_722 = arith.constant 4 : index
    %c0_723 = arith.constant 0 : index
    %c0_724 = arith.constant 0 : index
    %803 = vector.load %arg8[%c4_722, %c0_723, %c0_724] : memref<6x2x16xf32, #tpu.memory_space<vmem>>, vector<1x1x16xf32>
    %804 = vector.shape_cast %803 : vector<1x1x16xf32> to vector<16xf32>
    %805 = vector.shape_cast %804 : vector<16xf32> to vector<1x16xf32>
    %806 = arith.addf %802, %805 : vector<1x16xf32>
    %cst_725 = arith.constant 0.000000e+00 : f32
    %807 = vector.broadcast %cst_725 : f32 to vector<1x16xf32>
    %808 = arith.maximumf %806, %807 : vector<1x16xf32>
    %c4_726 = arith.constant 4 : index
    %c0_727 = arith.constant 0 : index
    %c0_728 = arith.constant 0 : index
    %c0_729 = arith.constant 0 : index
    %809 = vector.load %arg9[%c4_726, %c0_727, %c0_728, %c0_729] : memref<6x2x16x32xf32, #tpu.memory_space<vmem>>, vector<1x1x16x32xf32>
    %810 = vector.shape_cast %809 : vector<1x1x16x32xf32> to vector<16x32xf32>
    %cst_730 = arith.constant dense<0.000000e+00> : vector<1x32xf32>
    %811 = tpu.matmul %808, %810, %cst_730 {dimension_numbers = #tpu.dot_dimension_numbers<[1], [0], [0], [1], [0, 0, 1, 1], [], []>} : vector<1x16xf32>, vector<16x32xf32>, vector<1x32xf32> -> vector<1x32xf32>
    %c4_731 = arith.constant 4 : index
    %c0_732 = arith.constant 0 : index
    %c0_733 = arith.constant 0 : index
    %812 = vector.load %arg10[%c4_731, %c0_732, %c0_733] : memref<6x2x32xf32, #tpu.memory_space<vmem>>, vector<1x1x32xf32>
    %813 = vector.shape_cast %812 : vector<1x1x32xf32> to vector<32xf32>
    %814 = vector.shape_cast %813 : vector<32xf32> to vector<1x32xf32>
    %815 = arith.addf %811, %814 : vector<1x32xf32>
    %c16_734 = arith.constant 16 : index
    %816 = memref.load %arg22[%c16_734] : memref<24xf32, #tpu.memory_space<smem>>
    %817 = vector.broadcast %816 : f32 to vector<9x32xf32>
    %818 = arith.mulf %817, %334 : vector<9x32xf32>
    %819 = vector.broadcast %815 : vector<1x32xf32> to vector<9x32xf32>
    %820 = arith.addf %819, %818 : vector<9x32xf32>
    %c4_735 = arith.constant 4 : index
    %c1_736 = arith.constant 1 : index
    %c0_737 = arith.constant 0 : index
    %c0_738 = arith.constant 0 : index
    %821 = vector.load %arg4[%c4_735, %c1_736, %c0_737, %c0_738] : memref<6x2x2x32xf32, #tpu.memory_space<vmem>>, vector<1x1x1x32xf32>
    %822 = vector.shape_cast %821 : vector<1x1x1x32xf32> to vector<32xf32>
    %823 = vector.shape_cast %822 : vector<32xf32> to vector<1x32xf32>
    %824 = vector.broadcast %823 : vector<1x32xf32> to vector<9x32xf32>
    %825 = arith.mulf %820, %824 : vector<9x32xf32>
    %c4_739 = arith.constant 4 : index
    %c1_740 = arith.constant 1 : index
    %c1_741 = arith.constant 1 : index
    %c0_742 = arith.constant 0 : index
    %826 = vector.load %arg4[%c4_739, %c1_740, %c1_741, %c0_742] : memref<6x2x2x32xf32, #tpu.memory_space<vmem>>, vector<1x1x1x32xf32>
    %827 = vector.shape_cast %826 : vector<1x1x1x32xf32> to vector<32xf32>
    %828 = vector.shape_cast %827 : vector<32xf32> to vector<1x32xf32>
    %829 = vector.broadcast %828 : vector<1x32xf32> to vector<9x32xf32>
    %830 = arith.addf %825, %829 : vector<9x32xf32>
    %cst_743 = arith.constant 0.000000e+00 : f32
    %831 = vector.broadcast %cst_743 : f32 to vector<9x32xf32>
    %832 = arith.maximumf %830, %831 : vector<9x32xf32>
    %c4_744 = arith.constant 4 : index
    %c1_745 = arith.constant 1 : index
    %c0_746 = arith.constant 0 : index
    %c0_747 = arith.constant 0 : index
    %833 = vector.load %arg5[%c4_744, %c1_745, %c0_746, %c0_747] : memref<6x2x32x16xf32, #tpu.memory_space<vmem>>, vector<1x1x32x16xf32>
    %834 = vector.shape_cast %833 : vector<1x1x32x16xf32> to vector<32x16xf32>
    %cst_748 = arith.constant dense<0.000000e+00> : vector<9x16xf32>
    %835 = tpu.matmul %832, %834, %cst_748 {dimension_numbers = #tpu.dot_dimension_numbers<[1], [0], [0], [1], [0, 0, 1, 1], [], []>} : vector<9x32xf32>, vector<32x16xf32>, vector<9x16xf32> -> vector<9x16xf32>
    %c4_749 = arith.constant 4 : index
    %c1_750 = arith.constant 1 : index
    %c0_751 = arith.constant 0 : index
    %836 = vector.load %arg6[%c4_749, %c1_750, %c0_751] : memref<6x2x16xf32, #tpu.memory_space<vmem>>, vector<1x1x16xf32>
    %837 = vector.shape_cast %836 : vector<1x1x16xf32> to vector<16xf32>
    %838 = vector.shape_cast %837 : vector<16xf32> to vector<1x16xf32>
    %839 = vector.broadcast %838 : vector<1x16xf32> to vector<9x16xf32>
    %840 = arith.addf %835, %839 : vector<9x16xf32>
    %cst_752 = arith.constant 0.000000e+00 : f32
    %841 = vector.broadcast %cst_752 : f32 to vector<9x16xf32>
    %842 = arith.maximumf %840, %841 : vector<9x16xf32>
    %c0_753 = arith.constant 0 : index
    %c0_754 = arith.constant 0 : index
    %c0_755 = arith.constant 0 : index
    %843 = vector.load %arg3[%c0_753, %c0_754, %c0_755] : memref<9x9x9xf32, #tpu.memory_space<vmem>>, vector<1x9x9xf32>
    %844 = vector.shape_cast %843 : vector<1x9x9xf32> to vector<9x9xf32>
    %845 = vector.extract_strided_slice %844 {offsets = [0, 0], sizes = [1, 9], strides = [1, 1]} : vector<9x9xf32> to vector<1x9xf32>
    %cst_756 = arith.constant dense<0.000000e+00> : vector<1x16xf32>
    %846 = tpu.matmul %845, %842, %cst_756 {dimension_numbers = #tpu.dot_dimension_numbers<[1], [0], [0], [1], [0, 0, 1, 1], [], []>} : vector<1x9xf32>, vector<9x16xf32>, vector<1x16xf32> -> vector<1x16xf32>
    %c4_757 = arith.constant 4 : index
    %c9_758 = arith.constant 9 : index
    %c0_759 = arith.constant 0 : index
    %c0_760 = arith.constant 0 : index
    %847 = vector.load %arg7[%c4_757, %c9_758, %c0_759, %c0_760] : memref<6x18x16x16xf32, #tpu.memory_space<vmem>>, vector<1x1x16x16xf32>
    %848 = vector.shape_cast %847 : vector<1x1x16x16xf32> to vector<16x16xf32>
    %cst_761 = arith.constant dense<0.000000e+00> : vector<1x16xf32>
    %849 = tpu.matmul %846, %848, %cst_761 {dimension_numbers = #tpu.dot_dimension_numbers<[1], [0], [0], [1], [0, 0, 1, 1], [], []>} : vector<1x16xf32>, vector<16x16xf32>, vector<1x16xf32> -> vector<1x16xf32>
    %c1_762 = arith.constant 1 : index
    %c0_763 = arith.constant 0 : index
    %c0_764 = arith.constant 0 : index
    %850 = vector.load %arg3[%c1_762, %c0_763, %c0_764] : memref<9x9x9xf32, #tpu.memory_space<vmem>>, vector<1x9x9xf32>
    %851 = vector.shape_cast %850 : vector<1x9x9xf32> to vector<9x9xf32>
    %852 = vector.extract_strided_slice %851 {offsets = [0, 0], sizes = [1, 9], strides = [1, 1]} : vector<9x9xf32> to vector<1x9xf32>
    %cst_765 = arith.constant dense<0.000000e+00> : vector<1x16xf32>
    %853 = tpu.matmul %852, %842, %cst_765 {dimension_numbers = #tpu.dot_dimension_numbers<[1], [0], [0], [1], [0, 0, 1, 1], [], []>} : vector<1x9xf32>, vector<9x16xf32>, vector<1x16xf32> -> vector<1x16xf32>
    %c4_766 = arith.constant 4 : index
    %c10_767 = arith.constant 10 : index
    %c0_768 = arith.constant 0 : index
    %c0_769 = arith.constant 0 : index
    %854 = vector.load %arg7[%c4_766, %c10_767, %c0_768, %c0_769] : memref<6x18x16x16xf32, #tpu.memory_space<vmem>>, vector<1x1x16x16xf32>
    %855 = vector.shape_cast %854 : vector<1x1x16x16xf32> to vector<16x16xf32>
    %cst_770 = arith.constant dense<0.000000e+00> : vector<1x16xf32>
    %856 = tpu.matmul %853, %855, %cst_770 {dimension_numbers = #tpu.dot_dimension_numbers<[1], [0], [0], [1], [0, 0, 1, 1], [], []>} : vector<1x16xf32>, vector<16x16xf32>, vector<1x16xf32> -> vector<1x16xf32>
    %857 = arith.addf %849, %856 : vector<1x16xf32>
    %c2_771 = arith.constant 2 : index
    %c0_772 = arith.constant 0 : index
    %c0_773 = arith.constant 0 : index
    %858 = vector.load %arg3[%c2_771, %c0_772, %c0_773] : memref<9x9x9xf32, #tpu.memory_space<vmem>>, vector<1x9x9xf32>
    %859 = vector.shape_cast %858 : vector<1x9x9xf32> to vector<9x9xf32>
    %860 = vector.extract_strided_slice %859 {offsets = [0, 0], sizes = [1, 9], strides = [1, 1]} : vector<9x9xf32> to vector<1x9xf32>
    %cst_774 = arith.constant dense<0.000000e+00> : vector<1x16xf32>
    %861 = tpu.matmul %860, %842, %cst_774 {dimension_numbers = #tpu.dot_dimension_numbers<[1], [0], [0], [1], [0, 0, 1, 1], [], []>} : vector<1x9xf32>, vector<9x16xf32>, vector<1x16xf32> -> vector<1x16xf32>
    %c4_775 = arith.constant 4 : index
    %c11_776 = arith.constant 11 : index
    %c0_777 = arith.constant 0 : index
    %c0_778 = arith.constant 0 : index
    %862 = vector.load %arg7[%c4_775, %c11_776, %c0_777, %c0_778] : memref<6x18x16x16xf32, #tpu.memory_space<vmem>>, vector<1x1x16x16xf32>
    %863 = vector.shape_cast %862 : vector<1x1x16x16xf32> to vector<16x16xf32>
    %cst_779 = arith.constant dense<0.000000e+00> : vector<1x16xf32>
    %864 = tpu.matmul %861, %863, %cst_779 {dimension_numbers = #tpu.dot_dimension_numbers<[1], [0], [0], [1], [0, 0, 1, 1], [], []>} : vector<1x16xf32>, vector<16x16xf32>, vector<1x16xf32> -> vector<1x16xf32>
    %865 = arith.addf %857, %864 : vector<1x16xf32>
    %c3_780 = arith.constant 3 : index
    %c0_781 = arith.constant 0 : index
    %c0_782 = arith.constant 0 : index
    %866 = vector.load %arg3[%c3_780, %c0_781, %c0_782] : memref<9x9x9xf32, #tpu.memory_space<vmem>>, vector<1x9x9xf32>
    %867 = vector.shape_cast %866 : vector<1x9x9xf32> to vector<9x9xf32>
    %868 = vector.extract_strided_slice %867 {offsets = [0, 0], sizes = [1, 9], strides = [1, 1]} : vector<9x9xf32> to vector<1x9xf32>
    %cst_783 = arith.constant dense<0.000000e+00> : vector<1x16xf32>
    %869 = tpu.matmul %868, %842, %cst_783 {dimension_numbers = #tpu.dot_dimension_numbers<[1], [0], [0], [1], [0, 0, 1, 1], [], []>} : vector<1x9xf32>, vector<9x16xf32>, vector<1x16xf32> -> vector<1x16xf32>
    %c4_784 = arith.constant 4 : index
    %c12_785 = arith.constant 12 : index
    %c0_786 = arith.constant 0 : index
    %c0_787 = arith.constant 0 : index
    %870 = vector.load %arg7[%c4_784, %c12_785, %c0_786, %c0_787] : memref<6x18x16x16xf32, #tpu.memory_space<vmem>>, vector<1x1x16x16xf32>
    %871 = vector.shape_cast %870 : vector<1x1x16x16xf32> to vector<16x16xf32>
    %cst_788 = arith.constant dense<0.000000e+00> : vector<1x16xf32>
    %872 = tpu.matmul %869, %871, %cst_788 {dimension_numbers = #tpu.dot_dimension_numbers<[1], [0], [0], [1], [0, 0, 1, 1], [], []>} : vector<1x16xf32>, vector<16x16xf32>, vector<1x16xf32> -> vector<1x16xf32>
    %873 = arith.addf %865, %872 : vector<1x16xf32>
    %c4_789 = arith.constant 4 : index
    %c0_790 = arith.constant 0 : index
    %c0_791 = arith.constant 0 : index
    %874 = vector.load %arg3[%c4_789, %c0_790, %c0_791] : memref<9x9x9xf32, #tpu.memory_space<vmem>>, vector<1x9x9xf32>
    %875 = vector.shape_cast %874 : vector<1x9x9xf32> to vector<9x9xf32>
    %876 = vector.extract_strided_slice %875 {offsets = [0, 0], sizes = [1, 9], strides = [1, 1]} : vector<9x9xf32> to vector<1x9xf32>
    %cst_792 = arith.constant dense<0.000000e+00> : vector<1x16xf32>
    %877 = tpu.matmul %876, %842, %cst_792 {dimension_numbers = #tpu.dot_dimension_numbers<[1], [0], [0], [1], [0, 0, 1, 1], [], []>} : vector<1x9xf32>, vector<9x16xf32>, vector<1x16xf32> -> vector<1x16xf32>
    %c4_793 = arith.constant 4 : index
    %c13_794 = arith.constant 13 : index
    %c0_795 = arith.constant 0 : index
    %c0_796 = arith.constant 0 : index
    %878 = vector.load %arg7[%c4_793, %c13_794, %c0_795, %c0_796] : memref<6x18x16x16xf32, #tpu.memory_space<vmem>>, vector<1x1x16x16xf32>
    %879 = vector.shape_cast %878 : vector<1x1x16x16xf32> to vector<16x16xf32>
    %cst_797 = arith.constant dense<0.000000e+00> : vector<1x16xf32>
    %880 = tpu.matmul %877, %879, %cst_797 {dimension_numbers = #tpu.dot_dimension_numbers<[1], [0], [0], [1], [0, 0, 1, 1], [], []>} : vector<1x16xf32>, vector<16x16xf32>, vector<1x16xf32> -> vector<1x16xf32>
    %881 = arith.addf %873, %880 : vector<1x16xf32>
    %c5_798 = arith.constant 5 : index
    %c0_799 = arith.constant 0 : index
    %c0_800 = arith.constant 0 : index
    %882 = vector.load %arg3[%c5_798, %c0_799, %c0_800] : memref<9x9x9xf32, #tpu.memory_space<vmem>>, vector<1x9x9xf32>
    %883 = vector.shape_cast %882 : vector<1x9x9xf32> to vector<9x9xf32>
    %884 = vector.extract_strided_slice %883 {offsets = [0, 0], sizes = [1, 9], strides = [1, 1]} : vector<9x9xf32> to vector<1x9xf32>
    %cst_801 = arith.constant dense<0.000000e+00> : vector<1x16xf32>
    %885 = tpu.matmul %884, %842, %cst_801 {dimension_numbers = #tpu.dot_dimension_numbers<[1], [0], [0], [1], [0, 0, 1, 1], [], []>} : vector<1x9xf32>, vector<9x16xf32>, vector<1x16xf32> -> vector<1x16xf32>
    %c4_802 = arith.constant 4 : index
    %c14_803 = arith.constant 14 : index
    %c0_804 = arith.constant 0 : index
    %c0_805 = arith.constant 0 : index
    %886 = vector.load %arg7[%c4_802, %c14_803, %c0_804, %c0_805] : memref<6x18x16x16xf32, #tpu.memory_space<vmem>>, vector<1x1x16x16xf32>
    %887 = vector.shape_cast %886 : vector<1x1x16x16xf32> to vector<16x16xf32>
    %cst_806 = arith.constant dense<0.000000e+00> : vector<1x16xf32>
    %888 = tpu.matmul %885, %887, %cst_806 {dimension_numbers = #tpu.dot_dimension_numbers<[1], [0], [0], [1], [0, 0, 1, 1], [], []>} : vector<1x16xf32>, vector<16x16xf32>, vector<1x16xf32> -> vector<1x16xf32>
    %889 = arith.addf %881, %888 : vector<1x16xf32>
    %c6_807 = arith.constant 6 : index
    %c0_808 = arith.constant 0 : index
    %c0_809 = arith.constant 0 : index
    %890 = vector.load %arg3[%c6_807, %c0_808, %c0_809] : memref<9x9x9xf32, #tpu.memory_space<vmem>>, vector<1x9x9xf32>
    %891 = vector.shape_cast %890 : vector<1x9x9xf32> to vector<9x9xf32>
    %892 = vector.extract_strided_slice %891 {offsets = [0, 0], sizes = [1, 9], strides = [1, 1]} : vector<9x9xf32> to vector<1x9xf32>
    %cst_810 = arith.constant dense<0.000000e+00> : vector<1x16xf32>
    %893 = tpu.matmul %892, %842, %cst_810 {dimension_numbers = #tpu.dot_dimension_numbers<[1], [0], [0], [1], [0, 0, 1, 1], [], []>} : vector<1x9xf32>, vector<9x16xf32>, vector<1x16xf32> -> vector<1x16xf32>
    %c4_811 = arith.constant 4 : index
    %c15_812 = arith.constant 15 : index
    %c0_813 = arith.constant 0 : index
    %c0_814 = arith.constant 0 : index
    %894 = vector.load %arg7[%c4_811, %c15_812, %c0_813, %c0_814] : memref<6x18x16x16xf32, #tpu.memory_space<vmem>>, vector<1x1x16x16xf32>
    %895 = vector.shape_cast %894 : vector<1x1x16x16xf32> to vector<16x16xf32>
    %cst_815 = arith.constant dense<0.000000e+00> : vector<1x16xf32>
    %896 = tpu.matmul %893, %895, %cst_815 {dimension_numbers = #tpu.dot_dimension_numbers<[1], [0], [0], [1], [0, 0, 1, 1], [], []>} : vector<1x16xf32>, vector<16x16xf32>, vector<1x16xf32> -> vector<1x16xf32>
    %897 = arith.addf %889, %896 : vector<1x16xf32>
    %c7_816 = arith.constant 7 : index
    %c0_817 = arith.constant 0 : index
    %c0_818 = arith.constant 0 : index
    %898 = vector.load %arg3[%c7_816, %c0_817, %c0_818] : memref<9x9x9xf32, #tpu.memory_space<vmem>>, vector<1x9x9xf32>
    %899 = vector.shape_cast %898 : vector<1x9x9xf32> to vector<9x9xf32>
    %900 = vector.extract_strided_slice %899 {offsets = [0, 0], sizes = [1, 9], strides = [1, 1]} : vector<9x9xf32> to vector<1x9xf32>
    %cst_819 = arith.constant dense<0.000000e+00> : vector<1x16xf32>
    %901 = tpu.matmul %900, %842, %cst_819 {dimension_numbers = #tpu.dot_dimension_numbers<[1], [0], [0], [1], [0, 0, 1, 1], [], []>} : vector<1x9xf32>, vector<9x16xf32>, vector<1x16xf32> -> vector<1x16xf32>
    %c4_820 = arith.constant 4 : index
    %c16_821 = arith.constant 16 : index
    %c0_822 = arith.constant 0 : index
    %c0_823 = arith.constant 0 : index
    %902 = vector.load %arg7[%c4_820, %c16_821, %c0_822, %c0_823] : memref<6x18x16x16xf32, #tpu.memory_space<vmem>>, vector<1x1x16x16xf32>
    %903 = vector.shape_cast %902 : vector<1x1x16x16xf32> to vector<16x16xf32>
    %cst_824 = arith.constant dense<0.000000e+00> : vector<1x16xf32>
    %904 = tpu.matmul %901, %903, %cst_824 {dimension_numbers = #tpu.dot_dimension_numbers<[1], [0], [0], [1], [0, 0, 1, 1], [], []>} : vector<1x16xf32>, vector<16x16xf32>, vector<1x16xf32> -> vector<1x16xf32>
    %905 = arith.addf %897, %904 : vector<1x16xf32>
    %c8_825 = arith.constant 8 : index
    %c0_826 = arith.constant 0 : index
    %c0_827 = arith.constant 0 : index
    %906 = vector.load %arg3[%c8_825, %c0_826, %c0_827] : memref<9x9x9xf32, #tpu.memory_space<vmem>>, vector<1x9x9xf32>
    %907 = vector.shape_cast %906 : vector<1x9x9xf32> to vector<9x9xf32>
    %908 = vector.extract_strided_slice %907 {offsets = [0, 0], sizes = [1, 9], strides = [1, 1]} : vector<9x9xf32> to vector<1x9xf32>
    %cst_828 = arith.constant dense<0.000000e+00> : vector<1x16xf32>
    %909 = tpu.matmul %908, %842, %cst_828 {dimension_numbers = #tpu.dot_dimension_numbers<[1], [0], [0], [1], [0, 0, 1, 1], [], []>} : vector<1x9xf32>, vector<9x16xf32>, vector<1x16xf32> -> vector<1x16xf32>
    %c4_829 = arith.constant 4 : index
    %c17_830 = arith.constant 17 : index
    %c0_831 = arith.constant 0 : index
    %c0_832 = arith.constant 0 : index
    %910 = vector.load %arg7[%c4_829, %c17_830, %c0_831, %c0_832] : memref<6x18x16x16xf32, #tpu.memory_space<vmem>>, vector<1x1x16x16xf32>
    %911 = vector.shape_cast %910 : vector<1x1x16x16xf32> to vector<16x16xf32>
    %cst_833 = arith.constant dense<0.000000e+00> : vector<1x16xf32>
    %912 = tpu.matmul %909, %911, %cst_833 {dimension_numbers = #tpu.dot_dimension_numbers<[1], [0], [0], [1], [0, 0, 1, 1], [], []>} : vector<1x16xf32>, vector<16x16xf32>, vector<1x16xf32> -> vector<1x16xf32>
    %913 = arith.addf %905, %912 : vector<1x16xf32>
    %c4_834 = arith.constant 4 : index
    %c1_835 = arith.constant 1 : index
    %c0_836 = arith.constant 0 : index
    %914 = vector.load %arg8[%c4_834, %c1_835, %c0_836] : memref<6x2x16xf32, #tpu.memory_space<vmem>>, vector<1x1x16xf32>
    %915 = vector.shape_cast %914 : vector<1x1x16xf32> to vector<16xf32>
    %916 = vector.shape_cast %915 : vector<16xf32> to vector<1x16xf32>
    %917 = arith.addf %913, %916 : vector<1x16xf32>
    %cst_837 = arith.constant 0.000000e+00 : f32
    %918 = vector.broadcast %cst_837 : f32 to vector<1x16xf32>
    %919 = arith.maximumf %917, %918 : vector<1x16xf32>
    %c4_838 = arith.constant 4 : index
    %c1_839 = arith.constant 1 : index
    %c0_840 = arith.constant 0 : index
    %c0_841 = arith.constant 0 : index
    %920 = vector.load %arg9[%c4_838, %c1_839, %c0_840, %c0_841] : memref<6x2x16x32xf32, #tpu.memory_space<vmem>>, vector<1x1x16x32xf32>
    %921 = vector.shape_cast %920 : vector<1x1x16x32xf32> to vector<16x32xf32>
    %cst_842 = arith.constant dense<0.000000e+00> : vector<1x32xf32>
    %922 = tpu.matmul %919, %921, %cst_842 {dimension_numbers = #tpu.dot_dimension_numbers<[1], [0], [0], [1], [0, 0, 1, 1], [], []>} : vector<1x16xf32>, vector<16x32xf32>, vector<1x32xf32> -> vector<1x32xf32>
    %c4_843 = arith.constant 4 : index
    %c1_844 = arith.constant 1 : index
    %c0_845 = arith.constant 0 : index
    %923 = vector.load %arg10[%c4_843, %c1_844, %c0_845] : memref<6x2x32xf32, #tpu.memory_space<vmem>>, vector<1x1x32xf32>
    %924 = vector.shape_cast %923 : vector<1x1x32xf32> to vector<32xf32>
    %925 = vector.shape_cast %924 : vector<32xf32> to vector<1x32xf32>
    %926 = arith.addf %922, %925 : vector<1x32xf32>
    %c17_846 = arith.constant 17 : index
    %927 = memref.load %arg22[%c17_846] : memref<24xf32, #tpu.memory_space<smem>>
    %928 = vector.broadcast %927 : f32 to vector<9x32xf32>
    %929 = arith.mulf %928, %820 : vector<9x32xf32>
    %930 = vector.broadcast %926 : vector<1x32xf32> to vector<9x32xf32>
    %931 = arith.addf %930, %929 : vector<9x32xf32>
    %c4_847 = arith.constant 4 : index
    %c0_848 = arith.constant 0 : index
    %c0_849 = arith.constant 0 : index
    %932 = vector.load %arg11[%c4_847, %c0_848, %c0_849] : memref<6x64x32xf32, #tpu.memory_space<vmem>>, vector<1x64x32xf32>
    %933 = vector.shape_cast %932 : vector<1x64x32xf32> to vector<64x32xf32>
    %934 = vector.extract_strided_slice %933 {offsets = [0, 0], sizes = [32, 32], strides = [1, 1]} : vector<64x32xf32> to vector<32x32xf32>
    %cst_850 = arith.constant dense<0.000000e+00> : vector<9x32xf32>
    %935 = tpu.matmul %931, %934, %cst_850 {dimension_numbers = #tpu.dot_dimension_numbers<[1], [0], [0], [1], [0, 0, 1, 1], [], []>} : vector<9x32xf32>, vector<32x32xf32>, vector<9x32xf32> -> vector<9x32xf32>
    %936 = vector.extract_strided_slice %933 {offsets = [32, 0], sizes = [32, 32], strides = [1, 1]} : vector<64x32xf32> to vector<32x32xf32>
    %cst_851 = arith.constant dense<0.000000e+00> : vector<9x32xf32>
    %937 = tpu.matmul %820, %936, %cst_851 {dimension_numbers = #tpu.dot_dimension_numbers<[1], [0], [0], [1], [0, 0, 1, 1], [], []>} : vector<9x32xf32>, vector<32x32xf32>, vector<9x32xf32> -> vector<9x32xf32>
    %938 = arith.addf %935, %937 : vector<9x32xf32>
    %cst_852 = arith.constant 0.000000e+00 : f32
    %939 = vector.broadcast %cst_852 : f32 to vector<9x32xf32>
    %940 = arith.maximumf %938, %939 : vector<9x32xf32>
    %c4_853 = arith.constant 4 : index
    %c0_854 = arith.constant 0 : index
    %c0_855 = arith.constant 0 : index
    %941 = vector.load %arg13[%c4_853, %c0_854, %c0_855] : memref<6x32x2xf32, #tpu.memory_space<vmem>>, vector<1x32x2xf32>
    %942 = vector.shape_cast %941 : vector<1x32x2xf32> to vector<32x2xf32>
    %c4_856 = arith.constant 4 : index
    %c0_857 = arith.constant 0 : index
    %943 = vector.load %arg14[%c4_856, %c0_857] : memref<6x2xf32, #tpu.memory_space<vmem>>, vector<1x2xf32>
    %944 = vector.shape_cast %943 : vector<1x2xf32> to vector<2xf32>
    %c4_858 = arith.constant 4 : index
    %c0_859 = arith.constant 0 : index
    %c0_860 = arith.constant 0 : index
    %945 = vector.load %arg15[%c4_858, %c0_859, %c0_860] : memref<6x2x32xf32, #tpu.memory_space<vmem>>, vector<1x2x32xf32>
    %946 = vector.shape_cast %945 : vector<1x2x32xf32> to vector<2x32xf32>
    %c4_861 = arith.constant 4 : index
    %c0_862 = arith.constant 0 : index
    %947 = vector.load %arg16[%c4_861, %c0_862] : memref<6x32xf32, #tpu.memory_space<vmem>>, vector<1x32xf32>
    %948 = vector.shape_cast %947 : vector<1x32xf32> to vector<32xf32>
    %cst_863 = arith.constant dense<0.000000e+00> : vector<32xf32>
    %949 = vector.multi_reduction <add>, %940, %cst_863 [0] : vector<9x32xf32> to vector<32xf32>
    %950 = vector.shape_cast %949 : vector<32xf32> to vector<1x32xf32>
    %cst_864 = arith.constant 0.111111112 : f32
    %951 = vector.broadcast %cst_864 : f32 to vector<1x32xf32>
    %952 = arith.mulf %950, %951 : vector<1x32xf32>
    %cst_865 = arith.constant dense<0.000000e+00> : vector<1x2xf32>
    %953 = tpu.matmul %952, %942, %cst_865 {dimension_numbers = #tpu.dot_dimension_numbers<[1], [0], [0], [1], [0, 0, 1, 1], [], []>} : vector<1x32xf32>, vector<32x2xf32>, vector<1x2xf32> -> vector<1x2xf32>
    %954 = vector.shape_cast %944 : vector<2xf32> to vector<1x2xf32>
    %955 = arith.addf %953, %954 : vector<1x2xf32>
    %cst_866 = arith.constant 0.000000e+00 : f32
    %956 = vector.broadcast %cst_866 : f32 to vector<1x2xf32>
    %957 = arith.maximumf %955, %956 : vector<1x2xf32>
    %cst_867 = arith.constant dense<0.000000e+00> : vector<1x32xf32>
    %958 = tpu.matmul %957, %946, %cst_867 {dimension_numbers = #tpu.dot_dimension_numbers<[1], [0], [0], [1], [0, 0, 1, 1], [], []>} : vector<1x2xf32>, vector<2x32xf32>, vector<1x32xf32> -> vector<1x32xf32>
    %959 = vector.shape_cast %948 : vector<32xf32> to vector<1x32xf32>
    %960 = arith.addf %958, %959 : vector<1x32xf32>
    %961 = arith.negf %960 : vector<1x32xf32>
    %962 = math.exp %961 : vector<1x32xf32>
    %cst_868 = arith.constant 1.000000e+00 : f32
    %963 = vector.broadcast %cst_868 : f32 to vector<1x32xf32>
    %964 = arith.addf %963, %962 : vector<1x32xf32>
    %965 = arith.divf %963, %964 : vector<1x32xf32>
    %966 = vector.broadcast %965 : vector<1x32xf32> to vector<9x32xf32>
    %967 = arith.mulf %940, %966 : vector<9x32xf32>
    %c0_869 = arith.constant 0 : index
    %c0_870 = arith.constant 0 : index
    %c0_871 = arith.constant 0 : index
    %968 = vector.load %arg3[%c0_869, %c0_870, %c0_871] : memref<9x9x9xf32, #tpu.memory_space<vmem>>, vector<1x9x9xf32>
    %969 = vector.shape_cast %968 : vector<1x9x9xf32> to vector<9x9xf32>
    %cst_872 = arith.constant dense<0.000000e+00> : vector<9x32xf32>
    %970 = tpu.matmul %969, %967, %cst_872 {dimension_numbers = #tpu.dot_dimension_numbers<[1], [0], [0], [1], [0, 0, 1, 1], [], []>} : vector<9x9xf32>, vector<9x32xf32>, vector<9x32xf32> -> vector<9x32xf32>
    %c4_873 = arith.constant 4 : index
    %c0_874 = arith.constant 0 : index
    %c0_875 = arith.constant 0 : index
    %c0_876 = arith.constant 0 : index
    %971 = vector.load %arg12[%c4_873, %c0_874, %c0_875, %c0_876] : memref<6x9x32x32xf32, #tpu.memory_space<vmem>>, vector<1x1x32x32xf32>
    %972 = vector.shape_cast %971 : vector<1x1x32x32xf32> to vector<32x32xf32>
    %cst_877 = arith.constant dense<0.000000e+00> : vector<9x32xf32>
    %973 = tpu.matmul %970, %972, %cst_877 {dimension_numbers = #tpu.dot_dimension_numbers<[1], [0], [0], [1], [0, 0, 1, 1], [], []>} : vector<9x32xf32>, vector<32x32xf32>, vector<9x32xf32> -> vector<9x32xf32>
    %c1_878 = arith.constant 1 : index
    %c0_879 = arith.constant 0 : index
    %c0_880 = arith.constant 0 : index
    %974 = vector.load %arg3[%c1_878, %c0_879, %c0_880] : memref<9x9x9xf32, #tpu.memory_space<vmem>>, vector<1x9x9xf32>
    %975 = vector.shape_cast %974 : vector<1x9x9xf32> to vector<9x9xf32>
    %cst_881 = arith.constant dense<0.000000e+00> : vector<9x32xf32>
    %976 = tpu.matmul %975, %967, %cst_881 {dimension_numbers = #tpu.dot_dimension_numbers<[1], [0], [0], [1], [0, 0, 1, 1], [], []>} : vector<9x9xf32>, vector<9x32xf32>, vector<9x32xf32> -> vector<9x32xf32>
    %c4_882 = arith.constant 4 : index
    %c1_883 = arith.constant 1 : index
    %c0_884 = arith.constant 0 : index
    %c0_885 = arith.constant 0 : index
    %977 = vector.load %arg12[%c4_882, %c1_883, %c0_884, %c0_885] : memref<6x9x32x32xf32, #tpu.memory_space<vmem>>, vector<1x1x32x32xf32>
    %978 = vector.shape_cast %977 : vector<1x1x32x32xf32> to vector<32x32xf32>
    %cst_886 = arith.constant dense<0.000000e+00> : vector<9x32xf32>
    %979 = tpu.matmul %976, %978, %cst_886 {dimension_numbers = #tpu.dot_dimension_numbers<[1], [0], [0], [1], [0, 0, 1, 1], [], []>} : vector<9x32xf32>, vector<32x32xf32>, vector<9x32xf32> -> vector<9x32xf32>
    %980 = arith.addf %973, %979 : vector<9x32xf32>
    %c2_887 = arith.constant 2 : index
    %c0_888 = arith.constant 0 : index
    %c0_889 = arith.constant 0 : index
    %981 = vector.load %arg3[%c2_887, %c0_888, %c0_889] : memref<9x9x9xf32, #tpu.memory_space<vmem>>, vector<1x9x9xf32>
    %982 = vector.shape_cast %981 : vector<1x9x9xf32> to vector<9x9xf32>
    %cst_890 = arith.constant dense<0.000000e+00> : vector<9x32xf32>
    %983 = tpu.matmul %982, %967, %cst_890 {dimension_numbers = #tpu.dot_dimension_numbers<[1], [0], [0], [1], [0, 0, 1, 1], [], []>} : vector<9x9xf32>, vector<9x32xf32>, vector<9x32xf32> -> vector<9x32xf32>
    %c4_891 = arith.constant 4 : index
    %c2_892 = arith.constant 2 : index
    %c0_893 = arith.constant 0 : index
    %c0_894 = arith.constant 0 : index
    %984 = vector.load %arg12[%c4_891, %c2_892, %c0_893, %c0_894] : memref<6x9x32x32xf32, #tpu.memory_space<vmem>>, vector<1x1x32x32xf32>
    %985 = vector.shape_cast %984 : vector<1x1x32x32xf32> to vector<32x32xf32>
    %cst_895 = arith.constant dense<0.000000e+00> : vector<9x32xf32>
    %986 = tpu.matmul %983, %985, %cst_895 {dimension_numbers = #tpu.dot_dimension_numbers<[1], [0], [0], [1], [0, 0, 1, 1], [], []>} : vector<9x32xf32>, vector<32x32xf32>, vector<9x32xf32> -> vector<9x32xf32>
    %987 = arith.addf %980, %986 : vector<9x32xf32>
    %c3_896 = arith.constant 3 : index
    %c0_897 = arith.constant 0 : index
    %c0_898 = arith.constant 0 : index
    %988 = vector.load %arg3[%c3_896, %c0_897, %c0_898] : memref<9x9x9xf32, #tpu.memory_space<vmem>>, vector<1x9x9xf32>
    %989 = vector.shape_cast %988 : vector<1x9x9xf32> to vector<9x9xf32>
    %cst_899 = arith.constant dense<0.000000e+00> : vector<9x32xf32>
    %990 = tpu.matmul %989, %967, %cst_899 {dimension_numbers = #tpu.dot_dimension_numbers<[1], [0], [0], [1], [0, 0, 1, 1], [], []>} : vector<9x9xf32>, vector<9x32xf32>, vector<9x32xf32> -> vector<9x32xf32>
    %c4_900 = arith.constant 4 : index
    %c3_901 = arith.constant 3 : index
    %c0_902 = arith.constant 0 : index
    %c0_903 = arith.constant 0 : index
    %991 = vector.load %arg12[%c4_900, %c3_901, %c0_902, %c0_903] : memref<6x9x32x32xf32, #tpu.memory_space<vmem>>, vector<1x1x32x32xf32>
    %992 = vector.shape_cast %991 : vector<1x1x32x32xf32> to vector<32x32xf32>
    %cst_904 = arith.constant dense<0.000000e+00> : vector<9x32xf32>
    %993 = tpu.matmul %990, %992, %cst_904 {dimension_numbers = #tpu.dot_dimension_numbers<[1], [0], [0], [1], [0, 0, 1, 1], [], []>} : vector<9x32xf32>, vector<32x32xf32>, vector<9x32xf32> -> vector<9x32xf32>
    %994 = arith.addf %987, %993 : vector<9x32xf32>
    %c4_905 = arith.constant 4 : index
    %c0_906 = arith.constant 0 : index
    %c0_907 = arith.constant 0 : index
    %995 = vector.load %arg3[%c4_905, %c0_906, %c0_907] : memref<9x9x9xf32, #tpu.memory_space<vmem>>, vector<1x9x9xf32>
    %996 = vector.shape_cast %995 : vector<1x9x9xf32> to vector<9x9xf32>
    %cst_908 = arith.constant dense<0.000000e+00> : vector<9x32xf32>
    %997 = tpu.matmul %996, %967, %cst_908 {dimension_numbers = #tpu.dot_dimension_numbers<[1], [0], [0], [1], [0, 0, 1, 1], [], []>} : vector<9x9xf32>, vector<9x32xf32>, vector<9x32xf32> -> vector<9x32xf32>
    %c4_909 = arith.constant 4 : index
    %c4_910 = arith.constant 4 : index
    %c0_911 = arith.constant 0 : index
    %c0_912 = arith.constant 0 : index
    %998 = vector.load %arg12[%c4_909, %c4_910, %c0_911, %c0_912] : memref<6x9x32x32xf32, #tpu.memory_space<vmem>>, vector<1x1x32x32xf32>
    %999 = vector.shape_cast %998 : vector<1x1x32x32xf32> to vector<32x32xf32>
    %cst_913 = arith.constant dense<0.000000e+00> : vector<9x32xf32>
    %1000 = tpu.matmul %997, %999, %cst_913 {dimension_numbers = #tpu.dot_dimension_numbers<[1], [0], [0], [1], [0, 0, 1, 1], [], []>} : vector<9x32xf32>, vector<32x32xf32>, vector<9x32xf32> -> vector<9x32xf32>
    %1001 = arith.addf %994, %1000 : vector<9x32xf32>
    %c5_914 = arith.constant 5 : index
    %c0_915 = arith.constant 0 : index
    %c0_916 = arith.constant 0 : index
    %1002 = vector.load %arg3[%c5_914, %c0_915, %c0_916] : memref<9x9x9xf32, #tpu.memory_space<vmem>>, vector<1x9x9xf32>
    %1003 = vector.shape_cast %1002 : vector<1x9x9xf32> to vector<9x9xf32>
    %cst_917 = arith.constant dense<0.000000e+00> : vector<9x32xf32>
    %1004 = tpu.matmul %1003, %967, %cst_917 {dimension_numbers = #tpu.dot_dimension_numbers<[1], [0], [0], [1], [0, 0, 1, 1], [], []>} : vector<9x9xf32>, vector<9x32xf32>, vector<9x32xf32> -> vector<9x32xf32>
    %c4_918 = arith.constant 4 : index
    %c5_919 = arith.constant 5 : index
    %c0_920 = arith.constant 0 : index
    %c0_921 = arith.constant 0 : index
    %1005 = vector.load %arg12[%c4_918, %c5_919, %c0_920, %c0_921] : memref<6x9x32x32xf32, #tpu.memory_space<vmem>>, vector<1x1x32x32xf32>
    %1006 = vector.shape_cast %1005 : vector<1x1x32x32xf32> to vector<32x32xf32>
    %cst_922 = arith.constant dense<0.000000e+00> : vector<9x32xf32>
    %1007 = tpu.matmul %1004, %1006, %cst_922 {dimension_numbers = #tpu.dot_dimension_numbers<[1], [0], [0], [1], [0, 0, 1, 1], [], []>} : vector<9x32xf32>, vector<32x32xf32>, vector<9x32xf32> -> vector<9x32xf32>
    %1008 = arith.addf %1001, %1007 : vector<9x32xf32>
    %c6_923 = arith.constant 6 : index
    %c0_924 = arith.constant 0 : index
    %c0_925 = arith.constant 0 : index
    %1009 = vector.load %arg3[%c6_923, %c0_924, %c0_925] : memref<9x9x9xf32, #tpu.memory_space<vmem>>, vector<1x9x9xf32>
    %1010 = vector.shape_cast %1009 : vector<1x9x9xf32> to vector<9x9xf32>
    %cst_926 = arith.constant dense<0.000000e+00> : vector<9x32xf32>
    %1011 = tpu.matmul %1010, %967, %cst_926 {dimension_numbers = #tpu.dot_dimension_numbers<[1], [0], [0], [1], [0, 0, 1, 1], [], []>} : vector<9x9xf32>, vector<9x32xf32>, vector<9x32xf32> -> vector<9x32xf32>
    %c4_927 = arith.constant 4 : index
    %c6_928 = arith.constant 6 : index
    %c0_929 = arith.constant 0 : index
    %c0_930 = arith.constant 0 : index
    %1012 = vector.load %arg12[%c4_927, %c6_928, %c0_929, %c0_930] : memref<6x9x32x32xf32, #tpu.memory_space<vmem>>, vector<1x1x32x32xf32>
    %1013 = vector.shape_cast %1012 : vector<1x1x32x32xf32> to vector<32x32xf32>
    %cst_931 = arith.constant dense<0.000000e+00> : vector<9x32xf32>
    %1014 = tpu.matmul %1011, %1013, %cst_931 {dimension_numbers = #tpu.dot_dimension_numbers<[1], [0], [0], [1], [0, 0, 1, 1], [], []>} : vector<9x32xf32>, vector<32x32xf32>, vector<9x32xf32> -> vector<9x32xf32>
    %1015 = arith.addf %1008, %1014 : vector<9x32xf32>
    %c7_932 = arith.constant 7 : index
    %c0_933 = arith.constant 0 : index
    %c0_934 = arith.constant 0 : index
    %1016 = vector.load %arg3[%c7_932, %c0_933, %c0_934] : memref<9x9x9xf32, #tpu.memory_space<vmem>>, vector<1x9x9xf32>
    %1017 = vector.shape_cast %1016 : vector<1x9x9xf32> to vector<9x9xf32>
    %cst_935 = arith.constant dense<0.000000e+00> : vector<9x32xf32>
    %1018 = tpu.matmul %1017, %967, %cst_935 {dimension_numbers = #tpu.dot_dimension_numbers<[1], [0], [0], [1], [0, 0, 1, 1], [], []>} : vector<9x9xf32>, vector<9x32xf32>, vector<9x32xf32> -> vector<9x32xf32>
    %c4_936 = arith.constant 4 : index
    %c7_937 = arith.constant 7 : index
    %c0_938 = arith.constant 0 : index
    %c0_939 = arith.constant 0 : index
    %1019 = vector.load %arg12[%c4_936, %c7_937, %c0_938, %c0_939] : memref<6x9x32x32xf32, #tpu.memory_space<vmem>>, vector<1x1x32x32xf32>
    %1020 = vector.shape_cast %1019 : vector<1x1x32x32xf32> to vector<32x32xf32>
    %cst_940 = arith.constant dense<0.000000e+00> : vector<9x32xf32>
    %1021 = tpu.matmul %1018, %1020, %cst_940 {dimension_numbers = #tpu.dot_dimension_numbers<[1], [0], [0], [1], [0, 0, 1, 1], [], []>} : vector<9x32xf32>, vector<32x32xf32>, vector<9x32xf32> -> vector<9x32xf32>
    %1022 = arith.addf %1015, %1021 : vector<9x32xf32>
    %c8_941 = arith.constant 8 : index
    %c0_942 = arith.constant 0 : index
    %c0_943 = arith.constant 0 : index
    %1023 = vector.load %arg3[%c8_941, %c0_942, %c0_943] : memref<9x9x9xf32, #tpu.memory_space<vmem>>, vector<1x9x9xf32>
    %1024 = vector.shape_cast %1023 : vector<1x9x9xf32> to vector<9x9xf32>
    %cst_944 = arith.constant dense<0.000000e+00> : vector<9x32xf32>
    %1025 = tpu.matmul %1024, %967, %cst_944 {dimension_numbers = #tpu.dot_dimension_numbers<[1], [0], [0], [1], [0, 0, 1, 1], [], []>} : vector<9x9xf32>, vector<9x32xf32>, vector<9x32xf32> -> vector<9x32xf32>
    %c4_945 = arith.constant 4 : index
    %c8_946 = arith.constant 8 : index
    %c0_947 = arith.constant 0 : index
    %c0_948 = arith.constant 0 : index
    %1026 = vector.load %arg12[%c4_945, %c8_946, %c0_947, %c0_948] : memref<6x9x32x32xf32, #tpu.memory_space<vmem>>, vector<1x1x32x32xf32>
    %1027 = vector.shape_cast %1026 : vector<1x1x32x32xf32> to vector<32x32xf32>
    %cst_949 = arith.constant dense<0.000000e+00> : vector<9x32xf32>
    %1028 = tpu.matmul %1025, %1027, %cst_949 {dimension_numbers = #tpu.dot_dimension_numbers<[1], [0], [0], [1], [0, 0, 1, 1], [], []>} : vector<9x32xf32>, vector<32x32xf32>, vector<9x32xf32> -> vector<9x32xf32>
    %1029 = arith.addf %1022, %1028 : vector<9x32xf32>
    %cst_950 = arith.constant 0.000000e+00 : f32
    %1030 = vector.broadcast %cst_950 : f32 to vector<9x32xf32>
    %1031 = arith.maximumf %1029, %1030 : vector<9x32xf32>
    %c18 = arith.constant 18 : index
    %1032 = memref.load %arg22[%c18] : memref<24xf32, #tpu.memory_space<smem>>
    %1033 = vector.broadcast %1032 : f32 to vector<9x32xf32>
    %1034 = arith.mulf %1033, %334 : vector<9x32xf32>
    %c19 = arith.constant 19 : index
    %1035 = memref.load %arg22[%c19] : memref<24xf32, #tpu.memory_space<smem>>
    %1036 = vector.broadcast %1035 : f32 to vector<9x32xf32>
    %1037 = arith.mulf %1036, %1031 : vector<9x32xf32>
    %1038 = arith.addf %1034, %1037 : vector<9x32xf32>
    %c0_951 = arith.constant 0 : index
    %c0_952 = arith.constant 0 : index
    %1039 = vector.load %arg17[%c0_951, %c0_952] : memref<64x32xf32, #tpu.memory_space<vmem>>, vector<64x32xf32>
    %1040 = vector.extract_strided_slice %1039 {offsets = [0, 0], sizes = [32, 32], strides = [1, 1]} : vector<64x32xf32> to vector<32x32xf32>
    %cst_953 = arith.constant dense<0.000000e+00> : vector<1x32xf32>
    %1041 = tpu.matmul %709, %1040, %cst_953 {dimension_numbers = #tpu.dot_dimension_numbers<[1], [0], [0], [1], [0, 0, 1, 1], [], []>} : vector<1x32xf32>, vector<32x32xf32>, vector<1x32xf32> -> vector<1x32xf32>
    %1042 = vector.extract_strided_slice %1039 {offsets = [32, 0], sizes = [32, 32], strides = [1, 1]} : vector<64x32xf32> to vector<32x32xf32>
    %cst_954 = arith.constant dense<0.000000e+00> : vector<9x32xf32>
    %1043 = tpu.matmul %1038, %1042, %cst_954 {dimension_numbers = #tpu.dot_dimension_numbers<[1], [0], [0], [1], [0, 0, 1, 1], [], []>} : vector<9x32xf32>, vector<32x32xf32>, vector<9x32xf32> -> vector<9x32xf32>
    %1044 = vector.broadcast %1041 : vector<1x32xf32> to vector<9x32xf32>
    %1045 = arith.addf %1044, %1043 : vector<9x32xf32>
    %cst_955 = arith.constant 0.000000e+00 : f32
    %1046 = vector.broadcast %cst_955 : f32 to vector<9x32xf32>
    %1047 = arith.maximumf %1045, %1046 : vector<9x32xf32>
    %c0_956 = arith.constant 0 : index
    %c0_957 = arith.constant 0 : index
    %1048 = vector.load %arg18[%c0_956, %c0_957] : memref<32x2xf32, #tpu.memory_space<vmem>>, vector<32x2xf32>
    %c0_958 = arith.constant 0 : index
    %c0_959 = arith.constant 0 : index
    %1049 = vector.load %arg19[%c0_958, %c0_959] : memref<1x2xf32, #tpu.memory_space<vmem>>, vector<1x2xf32>
    %c0_960 = arith.constant 0 : index
    %c0_961 = arith.constant 0 : index
    %1050 = vector.load %arg20[%c0_960, %c0_961] : memref<2x32xf32, #tpu.memory_space<vmem>>, vector<2x32xf32>
    %c0_962 = arith.constant 0 : index
    %c0_963 = arith.constant 0 : index
    %1051 = vector.load %arg21[%c0_962, %c0_963] : memref<1x32xf32, #tpu.memory_space<vmem>>, vector<1x32xf32>
    %cst_964 = arith.constant dense<0.000000e+00> : vector<32xf32>
    %1052 = vector.multi_reduction <add>, %1047, %cst_964 [0] : vector<9x32xf32> to vector<32xf32>
    %1053 = vector.shape_cast %1052 : vector<32xf32> to vector<1x32xf32>
    %cst_965 = arith.constant 0.111111112 : f32
    %1054 = vector.broadcast %cst_965 : f32 to vector<1x32xf32>
    %1055 = arith.mulf %1053, %1054 : vector<1x32xf32>
    %cst_966 = arith.constant dense<0.000000e+00> : vector<1x2xf32>
    %1056 = tpu.matmul %1055, %1048, %cst_966 {dimension_numbers = #tpu.dot_dimension_numbers<[1], [0], [0], [1], [0, 0, 1, 1], [], []>} : vector<1x32xf32>, vector<32x2xf32>, vector<1x2xf32> -> vector<1x2xf32>
    %1057 = arith.addf %1056, %1049 : vector<1x2xf32>
    %cst_967 = arith.constant 0.000000e+00 : f32
    %1058 = vector.broadcast %cst_967 : f32 to vector<1x2xf32>
    %1059 = arith.maximumf %1057, %1058 : vector<1x2xf32>
    %cst_968 = arith.constant dense<0.000000e+00> : vector<1x32xf32>
    %1060 = tpu.matmul %1059, %1050, %cst_968 {dimension_numbers = #tpu.dot_dimension_numbers<[1], [0], [0], [1], [0, 0, 1, 1], [], []>} : vector<1x2xf32>, vector<2x32xf32>, vector<1x32xf32> -> vector<1x32xf32>
    %1061 = arith.addf %1060, %1051 : vector<1x32xf32>
    %1062 = arith.negf %1061 : vector<1x32xf32>
    %1063 = math.exp %1062 : vector<1x32xf32>
    %cst_969 = arith.constant 1.000000e+00 : f32
    %1064 = vector.broadcast %cst_969 : f32 to vector<1x32xf32>
    %1065 = arith.addf %1064, %1063 : vector<1x32xf32>
    %1066 = arith.divf %1064, %1065 : vector<1x32xf32>
    %1067 = vector.broadcast %1066 : vector<1x32xf32> to vector<9x32xf32>
    %1068 = arith.mulf %1047, %1067 : vector<9x32xf32>
    %c5_970 = arith.constant 5 : index
    %c0_971 = arith.constant 0 : index
    %c0_972 = arith.constant 0 : index
    %c0_973 = arith.constant 0 : index
    %1069 = vector.load %arg4[%c5_970, %c0_971, %c0_972, %c0_973] : memref<6x2x2x32xf32, #tpu.memory_space<vmem>>, vector<1x1x1x32xf32>
    %1070 = vector.shape_cast %1069 : vector<1x1x1x32xf32> to vector<32xf32>
    %1071 = vector.shape_cast %1070 : vector<32xf32> to vector<1x32xf32>
    %1072 = vector.broadcast %1071 : vector<1x32xf32> to vector<9x32xf32>
    %1073 = arith.mulf %1068, %1072 : vector<9x32xf32>
    %c5_974 = arith.constant 5 : index
    %c0_975 = arith.constant 0 : index
    %c1_976 = arith.constant 1 : index
    %c0_977 = arith.constant 0 : index
    %1074 = vector.load %arg4[%c5_974, %c0_975, %c1_976, %c0_977] : memref<6x2x2x32xf32, #tpu.memory_space<vmem>>, vector<1x1x1x32xf32>
    %1075 = vector.shape_cast %1074 : vector<1x1x1x32xf32> to vector<32xf32>
    %1076 = vector.shape_cast %1075 : vector<32xf32> to vector<1x32xf32>
    %1077 = vector.broadcast %1076 : vector<1x32xf32> to vector<9x32xf32>
    %1078 = arith.addf %1073, %1077 : vector<9x32xf32>
    %cst_978 = arith.constant 0.000000e+00 : f32
    %1079 = vector.broadcast %cst_978 : f32 to vector<9x32xf32>
    %1080 = arith.maximumf %1078, %1079 : vector<9x32xf32>
    %c5_979 = arith.constant 5 : index
    %c0_980 = arith.constant 0 : index
    %c0_981 = arith.constant 0 : index
    %c0_982 = arith.constant 0 : index
    %1081 = vector.load %arg5[%c5_979, %c0_980, %c0_981, %c0_982] : memref<6x2x32x16xf32, #tpu.memory_space<vmem>>, vector<1x1x32x16xf32>
    %1082 = vector.shape_cast %1081 : vector<1x1x32x16xf32> to vector<32x16xf32>
    %cst_983 = arith.constant dense<0.000000e+00> : vector<9x16xf32>
    %1083 = tpu.matmul %1080, %1082, %cst_983 {dimension_numbers = #tpu.dot_dimension_numbers<[1], [0], [0], [1], [0, 0, 1, 1], [], []>} : vector<9x32xf32>, vector<32x16xf32>, vector<9x16xf32> -> vector<9x16xf32>
    %c5_984 = arith.constant 5 : index
    %c0_985 = arith.constant 0 : index
    %c0_986 = arith.constant 0 : index
    %1084 = vector.load %arg6[%c5_984, %c0_985, %c0_986] : memref<6x2x16xf32, #tpu.memory_space<vmem>>, vector<1x1x16xf32>
    %1085 = vector.shape_cast %1084 : vector<1x1x16xf32> to vector<16xf32>
    %1086 = vector.shape_cast %1085 : vector<16xf32> to vector<1x16xf32>
    %1087 = vector.broadcast %1086 : vector<1x16xf32> to vector<9x16xf32>
    %1088 = arith.addf %1083, %1087 : vector<9x16xf32>
    %cst_987 = arith.constant 0.000000e+00 : f32
    %1089 = vector.broadcast %cst_987 : f32 to vector<9x16xf32>
    %1090 = arith.maximumf %1088, %1089 : vector<9x16xf32>
    %c0_988 = arith.constant 0 : index
    %c0_989 = arith.constant 0 : index
    %c0_990 = arith.constant 0 : index
    %1091 = vector.load %arg3[%c0_988, %c0_989, %c0_990] : memref<9x9x9xf32, #tpu.memory_space<vmem>>, vector<1x9x9xf32>
    %1092 = vector.shape_cast %1091 : vector<1x9x9xf32> to vector<9x9xf32>
    %1093 = vector.extract_strided_slice %1092 {offsets = [0, 0], sizes = [1, 9], strides = [1, 1]} : vector<9x9xf32> to vector<1x9xf32>
    %cst_991 = arith.constant dense<0.000000e+00> : vector<1x16xf32>
    %1094 = tpu.matmul %1093, %1090, %cst_991 {dimension_numbers = #tpu.dot_dimension_numbers<[1], [0], [0], [1], [0, 0, 1, 1], [], []>} : vector<1x9xf32>, vector<9x16xf32>, vector<1x16xf32> -> vector<1x16xf32>
    %c5_992 = arith.constant 5 : index
    %c0_993 = arith.constant 0 : index
    %c0_994 = arith.constant 0 : index
    %c0_995 = arith.constant 0 : index
    %1095 = vector.load %arg7[%c5_992, %c0_993, %c0_994, %c0_995] : memref<6x18x16x16xf32, #tpu.memory_space<vmem>>, vector<1x1x16x16xf32>
    %1096 = vector.shape_cast %1095 : vector<1x1x16x16xf32> to vector<16x16xf32>
    %cst_996 = arith.constant dense<0.000000e+00> : vector<1x16xf32>
    %1097 = tpu.matmul %1094, %1096, %cst_996 {dimension_numbers = #tpu.dot_dimension_numbers<[1], [0], [0], [1], [0, 0, 1, 1], [], []>} : vector<1x16xf32>, vector<16x16xf32>, vector<1x16xf32> -> vector<1x16xf32>
    %c1_997 = arith.constant 1 : index
    %c0_998 = arith.constant 0 : index
    %c0_999 = arith.constant 0 : index
    %1098 = vector.load %arg3[%c1_997, %c0_998, %c0_999] : memref<9x9x9xf32, #tpu.memory_space<vmem>>, vector<1x9x9xf32>
    %1099 = vector.shape_cast %1098 : vector<1x9x9xf32> to vector<9x9xf32>
    %1100 = vector.extract_strided_slice %1099 {offsets = [0, 0], sizes = [1, 9], strides = [1, 1]} : vector<9x9xf32> to vector<1x9xf32>
    %cst_1000 = arith.constant dense<0.000000e+00> : vector<1x16xf32>
    %1101 = tpu.matmul %1100, %1090, %cst_1000 {dimension_numbers = #tpu.dot_dimension_numbers<[1], [0], [0], [1], [0, 0, 1, 1], [], []>} : vector<1x9xf32>, vector<9x16xf32>, vector<1x16xf32> -> vector<1x16xf32>
    %c5_1001 = arith.constant 5 : index
    %c1_1002 = arith.constant 1 : index
    %c0_1003 = arith.constant 0 : index
    %c0_1004 = arith.constant 0 : index
    %1102 = vector.load %arg7[%c5_1001, %c1_1002, %c0_1003, %c0_1004] : memref<6x18x16x16xf32, #tpu.memory_space<vmem>>, vector<1x1x16x16xf32>
    %1103 = vector.shape_cast %1102 : vector<1x1x16x16xf32> to vector<16x16xf32>
    %cst_1005 = arith.constant dense<0.000000e+00> : vector<1x16xf32>
    %1104 = tpu.matmul %1101, %1103, %cst_1005 {dimension_numbers = #tpu.dot_dimension_numbers<[1], [0], [0], [1], [0, 0, 1, 1], [], []>} : vector<1x16xf32>, vector<16x16xf32>, vector<1x16xf32> -> vector<1x16xf32>
    %1105 = arith.addf %1097, %1104 : vector<1x16xf32>
    %c2_1006 = arith.constant 2 : index
    %c0_1007 = arith.constant 0 : index
    %c0_1008 = arith.constant 0 : index
    %1106 = vector.load %arg3[%c2_1006, %c0_1007, %c0_1008] : memref<9x9x9xf32, #tpu.memory_space<vmem>>, vector<1x9x9xf32>
    %1107 = vector.shape_cast %1106 : vector<1x9x9xf32> to vector<9x9xf32>
    %1108 = vector.extract_strided_slice %1107 {offsets = [0, 0], sizes = [1, 9], strides = [1, 1]} : vector<9x9xf32> to vector<1x9xf32>
    %cst_1009 = arith.constant dense<0.000000e+00> : vector<1x16xf32>
    %1109 = tpu.matmul %1108, %1090, %cst_1009 {dimension_numbers = #tpu.dot_dimension_numbers<[1], [0], [0], [1], [0, 0, 1, 1], [], []>} : vector<1x9xf32>, vector<9x16xf32>, vector<1x16xf32> -> vector<1x16xf32>
    %c5_1010 = arith.constant 5 : index
    %c2_1011 = arith.constant 2 : index
    %c0_1012 = arith.constant 0 : index
    %c0_1013 = arith.constant 0 : index
    %1110 = vector.load %arg7[%c5_1010, %c2_1011, %c0_1012, %c0_1013] : memref<6x18x16x16xf32, #tpu.memory_space<vmem>>, vector<1x1x16x16xf32>
    %1111 = vector.shape_cast %1110 : vector<1x1x16x16xf32> to vector<16x16xf32>
    %cst_1014 = arith.constant dense<0.000000e+00> : vector<1x16xf32>
    %1112 = tpu.matmul %1109, %1111, %cst_1014 {dimension_numbers = #tpu.dot_dimension_numbers<[1], [0], [0], [1], [0, 0, 1, 1], [], []>} : vector<1x16xf32>, vector<16x16xf32>, vector<1x16xf32> -> vector<1x16xf32>
    %1113 = arith.addf %1105, %1112 : vector<1x16xf32>
    %c3_1015 = arith.constant 3 : index
    %c0_1016 = arith.constant 0 : index
    %c0_1017 = arith.constant 0 : index
    %1114 = vector.load %arg3[%c3_1015, %c0_1016, %c0_1017] : memref<9x9x9xf32, #tpu.memory_space<vmem>>, vector<1x9x9xf32>
    %1115 = vector.shape_cast %1114 : vector<1x9x9xf32> to vector<9x9xf32>
    %1116 = vector.extract_strided_slice %1115 {offsets = [0, 0], sizes = [1, 9], strides = [1, 1]} : vector<9x9xf32> to vector<1x9xf32>
    %cst_1018 = arith.constant dense<0.000000e+00> : vector<1x16xf32>
    %1117 = tpu.matmul %1116, %1090, %cst_1018 {dimension_numbers = #tpu.dot_dimension_numbers<[1], [0], [0], [1], [0, 0, 1, 1], [], []>} : vector<1x9xf32>, vector<9x16xf32>, vector<1x16xf32> -> vector<1x16xf32>
    %c5_1019 = arith.constant 5 : index
    %c3_1020 = arith.constant 3 : index
    %c0_1021 = arith.constant 0 : index
    %c0_1022 = arith.constant 0 : index
    %1118 = vector.load %arg7[%c5_1019, %c3_1020, %c0_1021, %c0_1022] : memref<6x18x16x16xf32, #tpu.memory_space<vmem>>, vector<1x1x16x16xf32>
    %1119 = vector.shape_cast %1118 : vector<1x1x16x16xf32> to vector<16x16xf32>
    %cst_1023 = arith.constant dense<0.000000e+00> : vector<1x16xf32>
    %1120 = tpu.matmul %1117, %1119, %cst_1023 {dimension_numbers = #tpu.dot_dimension_numbers<[1], [0], [0], [1], [0, 0, 1, 1], [], []>} : vector<1x16xf32>, vector<16x16xf32>, vector<1x16xf32> -> vector<1x16xf32>
    %1121 = arith.addf %1113, %1120 : vector<1x16xf32>
    %c4_1024 = arith.constant 4 : index
    %c0_1025 = arith.constant 0 : index
    %c0_1026 = arith.constant 0 : index
    %1122 = vector.load %arg3[%c4_1024, %c0_1025, %c0_1026] : memref<9x9x9xf32, #tpu.memory_space<vmem>>, vector<1x9x9xf32>
    %1123 = vector.shape_cast %1122 : vector<1x9x9xf32> to vector<9x9xf32>
    %1124 = vector.extract_strided_slice %1123 {offsets = [0, 0], sizes = [1, 9], strides = [1, 1]} : vector<9x9xf32> to vector<1x9xf32>
    %cst_1027 = arith.constant dense<0.000000e+00> : vector<1x16xf32>
    %1125 = tpu.matmul %1124, %1090, %cst_1027 {dimension_numbers = #tpu.dot_dimension_numbers<[1], [0], [0], [1], [0, 0, 1, 1], [], []>} : vector<1x9xf32>, vector<9x16xf32>, vector<1x16xf32> -> vector<1x16xf32>
    %c5_1028 = arith.constant 5 : index
    %c4_1029 = arith.constant 4 : index
    %c0_1030 = arith.constant 0 : index
    %c0_1031 = arith.constant 0 : index
    %1126 = vector.load %arg7[%c5_1028, %c4_1029, %c0_1030, %c0_1031] : memref<6x18x16x16xf32, #tpu.memory_space<vmem>>, vector<1x1x16x16xf32>
    %1127 = vector.shape_cast %1126 : vector<1x1x16x16xf32> to vector<16x16xf32>
    %cst_1032 = arith.constant dense<0.000000e+00> : vector<1x16xf32>
    %1128 = tpu.matmul %1125, %1127, %cst_1032 {dimension_numbers = #tpu.dot_dimension_numbers<[1], [0], [0], [1], [0, 0, 1, 1], [], []>} : vector<1x16xf32>, vector<16x16xf32>, vector<1x16xf32> -> vector<1x16xf32>
    %1129 = arith.addf %1121, %1128 : vector<1x16xf32>
    %c5_1033 = arith.constant 5 : index
    %c0_1034 = arith.constant 0 : index
    %c0_1035 = arith.constant 0 : index
    %1130 = vector.load %arg3[%c5_1033, %c0_1034, %c0_1035] : memref<9x9x9xf32, #tpu.memory_space<vmem>>, vector<1x9x9xf32>
    %1131 = vector.shape_cast %1130 : vector<1x9x9xf32> to vector<9x9xf32>
    %1132 = vector.extract_strided_slice %1131 {offsets = [0, 0], sizes = [1, 9], strides = [1, 1]} : vector<9x9xf32> to vector<1x9xf32>
    %cst_1036 = arith.constant dense<0.000000e+00> : vector<1x16xf32>
    %1133 = tpu.matmul %1132, %1090, %cst_1036 {dimension_numbers = #tpu.dot_dimension_numbers<[1], [0], [0], [1], [0, 0, 1, 1], [], []>} : vector<1x9xf32>, vector<9x16xf32>, vector<1x16xf32> -> vector<1x16xf32>
    %c5_1037 = arith.constant 5 : index
    %c5_1038 = arith.constant 5 : index
    %c0_1039 = arith.constant 0 : index
    %c0_1040 = arith.constant 0 : index
    %1134 = vector.load %arg7[%c5_1037, %c5_1038, %c0_1039, %c0_1040] : memref<6x18x16x16xf32, #tpu.memory_space<vmem>>, vector<1x1x16x16xf32>
    %1135 = vector.shape_cast %1134 : vector<1x1x16x16xf32> to vector<16x16xf32>
    %cst_1041 = arith.constant dense<0.000000e+00> : vector<1x16xf32>
    %1136 = tpu.matmul %1133, %1135, %cst_1041 {dimension_numbers = #tpu.dot_dimension_numbers<[1], [0], [0], [1], [0, 0, 1, 1], [], []>} : vector<1x16xf32>, vector<16x16xf32>, vector<1x16xf32> -> vector<1x16xf32>
    %1137 = arith.addf %1129, %1136 : vector<1x16xf32>
    %c6_1042 = arith.constant 6 : index
    %c0_1043 = arith.constant 0 : index
    %c0_1044 = arith.constant 0 : index
    %1138 = vector.load %arg3[%c6_1042, %c0_1043, %c0_1044] : memref<9x9x9xf32, #tpu.memory_space<vmem>>, vector<1x9x9xf32>
    %1139 = vector.shape_cast %1138 : vector<1x9x9xf32> to vector<9x9xf32>
    %1140 = vector.extract_strided_slice %1139 {offsets = [0, 0], sizes = [1, 9], strides = [1, 1]} : vector<9x9xf32> to vector<1x9xf32>
    %cst_1045 = arith.constant dense<0.000000e+00> : vector<1x16xf32>
    %1141 = tpu.matmul %1140, %1090, %cst_1045 {dimension_numbers = #tpu.dot_dimension_numbers<[1], [0], [0], [1], [0, 0, 1, 1], [], []>} : vector<1x9xf32>, vector<9x16xf32>, vector<1x16xf32> -> vector<1x16xf32>
    %c5_1046 = arith.constant 5 : index
    %c6_1047 = arith.constant 6 : index
    %c0_1048 = arith.constant 0 : index
    %c0_1049 = arith.constant 0 : index
    %1142 = vector.load %arg7[%c5_1046, %c6_1047, %c0_1048, %c0_1049] : memref<6x18x16x16xf32, #tpu.memory_space<vmem>>, vector<1x1x16x16xf32>
    %1143 = vector.shape_cast %1142 : vector<1x1x16x16xf32> to vector<16x16xf32>
    %cst_1050 = arith.constant dense<0.000000e+00> : vector<1x16xf32>
    %1144 = tpu.matmul %1141, %1143, %cst_1050 {dimension_numbers = #tpu.dot_dimension_numbers<[1], [0], [0], [1], [0, 0, 1, 1], [], []>} : vector<1x16xf32>, vector<16x16xf32>, vector<1x16xf32> -> vector<1x16xf32>
    %1145 = arith.addf %1137, %1144 : vector<1x16xf32>
    %c7_1051 = arith.constant 7 : index
    %c0_1052 = arith.constant 0 : index
    %c0_1053 = arith.constant 0 : index
    %1146 = vector.load %arg3[%c7_1051, %c0_1052, %c0_1053] : memref<9x9x9xf32, #tpu.memory_space<vmem>>, vector<1x9x9xf32>
    %1147 = vector.shape_cast %1146 : vector<1x9x9xf32> to vector<9x9xf32>
    %1148 = vector.extract_strided_slice %1147 {offsets = [0, 0], sizes = [1, 9], strides = [1, 1]} : vector<9x9xf32> to vector<1x9xf32>
    %cst_1054 = arith.constant dense<0.000000e+00> : vector<1x16xf32>
    %1149 = tpu.matmul %1148, %1090, %cst_1054 {dimension_numbers = #tpu.dot_dimension_numbers<[1], [0], [0], [1], [0, 0, 1, 1], [], []>} : vector<1x9xf32>, vector<9x16xf32>, vector<1x16xf32> -> vector<1x16xf32>
    %c5_1055 = arith.constant 5 : index
    %c7_1056 = arith.constant 7 : index
    %c0_1057 = arith.constant 0 : index
    %c0_1058 = arith.constant 0 : index
    %1150 = vector.load %arg7[%c5_1055, %c7_1056, %c0_1057, %c0_1058] : memref<6x18x16x16xf32, #tpu.memory_space<vmem>>, vector<1x1x16x16xf32>
    %1151 = vector.shape_cast %1150 : vector<1x1x16x16xf32> to vector<16x16xf32>
    %cst_1059 = arith.constant dense<0.000000e+00> : vector<1x16xf32>
    %1152 = tpu.matmul %1149, %1151, %cst_1059 {dimension_numbers = #tpu.dot_dimension_numbers<[1], [0], [0], [1], [0, 0, 1, 1], [], []>} : vector<1x16xf32>, vector<16x16xf32>, vector<1x16xf32> -> vector<1x16xf32>
    %1153 = arith.addf %1145, %1152 : vector<1x16xf32>
    %c8_1060 = arith.constant 8 : index
    %c0_1061 = arith.constant 0 : index
    %c0_1062 = arith.constant 0 : index
    %1154 = vector.load %arg3[%c8_1060, %c0_1061, %c0_1062] : memref<9x9x9xf32, #tpu.memory_space<vmem>>, vector<1x9x9xf32>
    %1155 = vector.shape_cast %1154 : vector<1x9x9xf32> to vector<9x9xf32>
    %1156 = vector.extract_strided_slice %1155 {offsets = [0, 0], sizes = [1, 9], strides = [1, 1]} : vector<9x9xf32> to vector<1x9xf32>
    %cst_1063 = arith.constant dense<0.000000e+00> : vector<1x16xf32>
    %1157 = tpu.matmul %1156, %1090, %cst_1063 {dimension_numbers = #tpu.dot_dimension_numbers<[1], [0], [0], [1], [0, 0, 1, 1], [], []>} : vector<1x9xf32>, vector<9x16xf32>, vector<1x16xf32> -> vector<1x16xf32>
    %c5_1064 = arith.constant 5 : index
    %c8_1065 = arith.constant 8 : index
    %c0_1066 = arith.constant 0 : index
    %c0_1067 = arith.constant 0 : index
    %1158 = vector.load %arg7[%c5_1064, %c8_1065, %c0_1066, %c0_1067] : memref<6x18x16x16xf32, #tpu.memory_space<vmem>>, vector<1x1x16x16xf32>
    %1159 = vector.shape_cast %1158 : vector<1x1x16x16xf32> to vector<16x16xf32>
    %cst_1068 = arith.constant dense<0.000000e+00> : vector<1x16xf32>
    %1160 = tpu.matmul %1157, %1159, %cst_1068 {dimension_numbers = #tpu.dot_dimension_numbers<[1], [0], [0], [1], [0, 0, 1, 1], [], []>} : vector<1x16xf32>, vector<16x16xf32>, vector<1x16xf32> -> vector<1x16xf32>
    %1161 = arith.addf %1153, %1160 : vector<1x16xf32>
    %c5_1069 = arith.constant 5 : index
    %c0_1070 = arith.constant 0 : index
    %c0_1071 = arith.constant 0 : index
    %1162 = vector.load %arg8[%c5_1069, %c0_1070, %c0_1071] : memref<6x2x16xf32, #tpu.memory_space<vmem>>, vector<1x1x16xf32>
    %1163 = vector.shape_cast %1162 : vector<1x1x16xf32> to vector<16xf32>
    %1164 = vector.shape_cast %1163 : vector<16xf32> to vector<1x16xf32>
    %1165 = arith.addf %1161, %1164 : vector<1x16xf32>
    %cst_1072 = arith.constant 0.000000e+00 : f32
    %1166 = vector.broadcast %cst_1072 : f32 to vector<1x16xf32>
    %1167 = arith.maximumf %1165, %1166 : vector<1x16xf32>
    %c5_1073 = arith.constant 5 : index
    %c0_1074 = arith.constant 0 : index
    %c0_1075 = arith.constant 0 : index
    %c0_1076 = arith.constant 0 : index
    %1168 = vector.load %arg9[%c5_1073, %c0_1074, %c0_1075, %c0_1076] : memref<6x2x16x32xf32, #tpu.memory_space<vmem>>, vector<1x1x16x32xf32>
    %1169 = vector.shape_cast %1168 : vector<1x1x16x32xf32> to vector<16x32xf32>
    %cst_1077 = arith.constant dense<0.000000e+00> : vector<1x32xf32>
    %1170 = tpu.matmul %1167, %1169, %cst_1077 {dimension_numbers = #tpu.dot_dimension_numbers<[1], [0], [0], [1], [0, 0, 1, 1], [], []>} : vector<1x16xf32>, vector<16x32xf32>, vector<1x32xf32> -> vector<1x32xf32>
    %c5_1078 = arith.constant 5 : index
    %c0_1079 = arith.constant 0 : index
    %c0_1080 = arith.constant 0 : index
    %1171 = vector.load %arg10[%c5_1078, %c0_1079, %c0_1080] : memref<6x2x32xf32, #tpu.memory_space<vmem>>, vector<1x1x32xf32>
    %1172 = vector.shape_cast %1171 : vector<1x1x32xf32> to vector<32xf32>
    %1173 = vector.shape_cast %1172 : vector<32xf32> to vector<1x32xf32>
    %1174 = arith.addf %1170, %1173 : vector<1x32xf32>
    %c20 = arith.constant 20 : index
    %1175 = memref.load %arg22[%c20] : memref<24xf32, #tpu.memory_space<smem>>
    %1176 = vector.broadcast %1175 : f32 to vector<9x32xf32>
    %1177 = arith.mulf %1176, %1068 : vector<9x32xf32>
    %1178 = vector.broadcast %1174 : vector<1x32xf32> to vector<9x32xf32>
    %1179 = arith.addf %1178, %1177 : vector<9x32xf32>
    %c5_1081 = arith.constant 5 : index
    %c1_1082 = arith.constant 1 : index
    %c0_1083 = arith.constant 0 : index
    %c0_1084 = arith.constant 0 : index
    %1180 = vector.load %arg4[%c5_1081, %c1_1082, %c0_1083, %c0_1084] : memref<6x2x2x32xf32, #tpu.memory_space<vmem>>, vector<1x1x1x32xf32>
    %1181 = vector.shape_cast %1180 : vector<1x1x1x32xf32> to vector<32xf32>
    %1182 = vector.shape_cast %1181 : vector<32xf32> to vector<1x32xf32>
    %1183 = vector.broadcast %1182 : vector<1x32xf32> to vector<9x32xf32>
    %1184 = arith.mulf %1179, %1183 : vector<9x32xf32>
    %c5_1085 = arith.constant 5 : index
    %c1_1086 = arith.constant 1 : index
    %c1_1087 = arith.constant 1 : index
    %c0_1088 = arith.constant 0 : index
    %1185 = vector.load %arg4[%c5_1085, %c1_1086, %c1_1087, %c0_1088] : memref<6x2x2x32xf32, #tpu.memory_space<vmem>>, vector<1x1x1x32xf32>
    %1186 = vector.shape_cast %1185 : vector<1x1x1x32xf32> to vector<32xf32>
    %1187 = vector.shape_cast %1186 : vector<32xf32> to vector<1x32xf32>
    %1188 = vector.broadcast %1187 : vector<1x32xf32> to vector<9x32xf32>
    %1189 = arith.addf %1184, %1188 : vector<9x32xf32>
    %cst_1089 = arith.constant 0.000000e+00 : f32
    %1190 = vector.broadcast %cst_1089 : f32 to vector<9x32xf32>
    %1191 = arith.maximumf %1189, %1190 : vector<9x32xf32>
    %c5_1090 = arith.constant 5 : index
    %c1_1091 = arith.constant 1 : index
    %c0_1092 = arith.constant 0 : index
    %c0_1093 = arith.constant 0 : index
    %1192 = vector.load %arg5[%c5_1090, %c1_1091, %c0_1092, %c0_1093] : memref<6x2x32x16xf32, #tpu.memory_space<vmem>>, vector<1x1x32x16xf32>
    %1193 = vector.shape_cast %1192 : vector<1x1x32x16xf32> to vector<32x16xf32>
    %cst_1094 = arith.constant dense<0.000000e+00> : vector<9x16xf32>
    %1194 = tpu.matmul %1191, %1193, %cst_1094 {dimension_numbers = #tpu.dot_dimension_numbers<[1], [0], [0], [1], [0, 0, 1, 1], [], []>} : vector<9x32xf32>, vector<32x16xf32>, vector<9x16xf32> -> vector<9x16xf32>
    %c5_1095 = arith.constant 5 : index
    %c1_1096 = arith.constant 1 : index
    %c0_1097 = arith.constant 0 : index
    %1195 = vector.load %arg6[%c5_1095, %c1_1096, %c0_1097] : memref<6x2x16xf32, #tpu.memory_space<vmem>>, vector<1x1x16xf32>
    %1196 = vector.shape_cast %1195 : vector<1x1x16xf32> to vector<16xf32>
    %1197 = vector.shape_cast %1196 : vector<16xf32> to vector<1x16xf32>
    %1198 = vector.broadcast %1197 : vector<1x16xf32> to vector<9x16xf32>
    %1199 = arith.addf %1194, %1198 : vector<9x16xf32>
    %cst_1098 = arith.constant 0.000000e+00 : f32
    %1200 = vector.broadcast %cst_1098 : f32 to vector<9x16xf32>
    %1201 = arith.maximumf %1199, %1200 : vector<9x16xf32>
    %c0_1099 = arith.constant 0 : index
    %c0_1100 = arith.constant 0 : index
    %c0_1101 = arith.constant 0 : index
    %1202 = vector.load %arg3[%c0_1099, %c0_1100, %c0_1101] : memref<9x9x9xf32, #tpu.memory_space<vmem>>, vector<1x9x9xf32>
    %1203 = vector.shape_cast %1202 : vector<1x9x9xf32> to vector<9x9xf32>
    %1204 = vector.extract_strided_slice %1203 {offsets = [0, 0], sizes = [1, 9], strides = [1, 1]} : vector<9x9xf32> to vector<1x9xf32>
    %cst_1102 = arith.constant dense<0.000000e+00> : vector<1x16xf32>
    %1205 = tpu.matmul %1204, %1201, %cst_1102 {dimension_numbers = #tpu.dot_dimension_numbers<[1], [0], [0], [1], [0, 0, 1, 1], [], []>} : vector<1x9xf32>, vector<9x16xf32>, vector<1x16xf32> -> vector<1x16xf32>
    %c5_1103 = arith.constant 5 : index
    %c9_1104 = arith.constant 9 : index
    %c0_1105 = arith.constant 0 : index
    %c0_1106 = arith.constant 0 : index
    %1206 = vector.load %arg7[%c5_1103, %c9_1104, %c0_1105, %c0_1106] : memref<6x18x16x16xf32, #tpu.memory_space<vmem>>, vector<1x1x16x16xf32>
    %1207 = vector.shape_cast %1206 : vector<1x1x16x16xf32> to vector<16x16xf32>
    %cst_1107 = arith.constant dense<0.000000e+00> : vector<1x16xf32>
    %1208 = tpu.matmul %1205, %1207, %cst_1107 {dimension_numbers = #tpu.dot_dimension_numbers<[1], [0], [0], [1], [0, 0, 1, 1], [], []>} : vector<1x16xf32>, vector<16x16xf32>, vector<1x16xf32> -> vector<1x16xf32>
    %c1_1108 = arith.constant 1 : index
    %c0_1109 = arith.constant 0 : index
    %c0_1110 = arith.constant 0 : index
    %1209 = vector.load %arg3[%c1_1108, %c0_1109, %c0_1110] : memref<9x9x9xf32, #tpu.memory_space<vmem>>, vector<1x9x9xf32>
    %1210 = vector.shape_cast %1209 : vector<1x9x9xf32> to vector<9x9xf32>
    %1211 = vector.extract_strided_slice %1210 {offsets = [0, 0], sizes = [1, 9], strides = [1, 1]} : vector<9x9xf32> to vector<1x9xf32>
    %cst_1111 = arith.constant dense<0.000000e+00> : vector<1x16xf32>
    %1212 = tpu.matmul %1211, %1201, %cst_1111 {dimension_numbers = #tpu.dot_dimension_numbers<[1], [0], [0], [1], [0, 0, 1, 1], [], []>} : vector<1x9xf32>, vector<9x16xf32>, vector<1x16xf32> -> vector<1x16xf32>
    %c5_1112 = arith.constant 5 : index
    %c10_1113 = arith.constant 10 : index
    %c0_1114 = arith.constant 0 : index
    %c0_1115 = arith.constant 0 : index
    %1213 = vector.load %arg7[%c5_1112, %c10_1113, %c0_1114, %c0_1115] : memref<6x18x16x16xf32, #tpu.memory_space<vmem>>, vector<1x1x16x16xf32>
    %1214 = vector.shape_cast %1213 : vector<1x1x16x16xf32> to vector<16x16xf32>
    %cst_1116 = arith.constant dense<0.000000e+00> : vector<1x16xf32>
    %1215 = tpu.matmul %1212, %1214, %cst_1116 {dimension_numbers = #tpu.dot_dimension_numbers<[1], [0], [0], [1], [0, 0, 1, 1], [], []>} : vector<1x16xf32>, vector<16x16xf32>, vector<1x16xf32> -> vector<1x16xf32>
    %1216 = arith.addf %1208, %1215 : vector<1x16xf32>
    %c2_1117 = arith.constant 2 : index
    %c0_1118 = arith.constant 0 : index
    %c0_1119 = arith.constant 0 : index
    %1217 = vector.load %arg3[%c2_1117, %c0_1118, %c0_1119] : memref<9x9x9xf32, #tpu.memory_space<vmem>>, vector<1x9x9xf32>
    %1218 = vector.shape_cast %1217 : vector<1x9x9xf32> to vector<9x9xf32>
    %1219 = vector.extract_strided_slice %1218 {offsets = [0, 0], sizes = [1, 9], strides = [1, 1]} : vector<9x9xf32> to vector<1x9xf32>
    %cst_1120 = arith.constant dense<0.000000e+00> : vector<1x16xf32>
    %1220 = tpu.matmul %1219, %1201, %cst_1120 {dimension_numbers = #tpu.dot_dimension_numbers<[1], [0], [0], [1], [0, 0, 1, 1], [], []>} : vector<1x9xf32>, vector<9x16xf32>, vector<1x16xf32> -> vector<1x16xf32>
    %c5_1121 = arith.constant 5 : index
    %c11_1122 = arith.constant 11 : index
    %c0_1123 = arith.constant 0 : index
    %c0_1124 = arith.constant 0 : index
    %1221 = vector.load %arg7[%c5_1121, %c11_1122, %c0_1123, %c0_1124] : memref<6x18x16x16xf32, #tpu.memory_space<vmem>>, vector<1x1x16x16xf32>
    %1222 = vector.shape_cast %1221 : vector<1x1x16x16xf32> to vector<16x16xf32>
    %cst_1125 = arith.constant dense<0.000000e+00> : vector<1x16xf32>
    %1223 = tpu.matmul %1220, %1222, %cst_1125 {dimension_numbers = #tpu.dot_dimension_numbers<[1], [0], [0], [1], [0, 0, 1, 1], [], []>} : vector<1x16xf32>, vector<16x16xf32>, vector<1x16xf32> -> vector<1x16xf32>
    %1224 = arith.addf %1216, %1223 : vector<1x16xf32>
    %c3_1126 = arith.constant 3 : index
    %c0_1127 = arith.constant 0 : index
    %c0_1128 = arith.constant 0 : index
    %1225 = vector.load %arg3[%c3_1126, %c0_1127, %c0_1128] : memref<9x9x9xf32, #tpu.memory_space<vmem>>, vector<1x9x9xf32>
    %1226 = vector.shape_cast %1225 : vector<1x9x9xf32> to vector<9x9xf32>
    %1227 = vector.extract_strided_slice %1226 {offsets = [0, 0], sizes = [1, 9], strides = [1, 1]} : vector<9x9xf32> to vector<1x9xf32>
    %cst_1129 = arith.constant dense<0.000000e+00> : vector<1x16xf32>
    %1228 = tpu.matmul %1227, %1201, %cst_1129 {dimension_numbers = #tpu.dot_dimension_numbers<[1], [0], [0], [1], [0, 0, 1, 1], [], []>} : vector<1x9xf32>, vector<9x16xf32>, vector<1x16xf32> -> vector<1x16xf32>
    %c5_1130 = arith.constant 5 : index
    %c12_1131 = arith.constant 12 : index
    %c0_1132 = arith.constant 0 : index
    %c0_1133 = arith.constant 0 : index
    %1229 = vector.load %arg7[%c5_1130, %c12_1131, %c0_1132, %c0_1133] : memref<6x18x16x16xf32, #tpu.memory_space<vmem>>, vector<1x1x16x16xf32>
    %1230 = vector.shape_cast %1229 : vector<1x1x16x16xf32> to vector<16x16xf32>
    %cst_1134 = arith.constant dense<0.000000e+00> : vector<1x16xf32>
    %1231 = tpu.matmul %1228, %1230, %cst_1134 {dimension_numbers = #tpu.dot_dimension_numbers<[1], [0], [0], [1], [0, 0, 1, 1], [], []>} : vector<1x16xf32>, vector<16x16xf32>, vector<1x16xf32> -> vector<1x16xf32>
    %1232 = arith.addf %1224, %1231 : vector<1x16xf32>
    %c4_1135 = arith.constant 4 : index
    %c0_1136 = arith.constant 0 : index
    %c0_1137 = arith.constant 0 : index
    %1233 = vector.load %arg3[%c4_1135, %c0_1136, %c0_1137] : memref<9x9x9xf32, #tpu.memory_space<vmem>>, vector<1x9x9xf32>
    %1234 = vector.shape_cast %1233 : vector<1x9x9xf32> to vector<9x9xf32>
    %1235 = vector.extract_strided_slice %1234 {offsets = [0, 0], sizes = [1, 9], strides = [1, 1]} : vector<9x9xf32> to vector<1x9xf32>
    %cst_1138 = arith.constant dense<0.000000e+00> : vector<1x16xf32>
    %1236 = tpu.matmul %1235, %1201, %cst_1138 {dimension_numbers = #tpu.dot_dimension_numbers<[1], [0], [0], [1], [0, 0, 1, 1], [], []>} : vector<1x9xf32>, vector<9x16xf32>, vector<1x16xf32> -> vector<1x16xf32>
    %c5_1139 = arith.constant 5 : index
    %c13_1140 = arith.constant 13 : index
    %c0_1141 = arith.constant 0 : index
    %c0_1142 = arith.constant 0 : index
    %1237 = vector.load %arg7[%c5_1139, %c13_1140, %c0_1141, %c0_1142] : memref<6x18x16x16xf32, #tpu.memory_space<vmem>>, vector<1x1x16x16xf32>
    %1238 = vector.shape_cast %1237 : vector<1x1x16x16xf32> to vector<16x16xf32>
    %cst_1143 = arith.constant dense<0.000000e+00> : vector<1x16xf32>
    %1239 = tpu.matmul %1236, %1238, %cst_1143 {dimension_numbers = #tpu.dot_dimension_numbers<[1], [0], [0], [1], [0, 0, 1, 1], [], []>} : vector<1x16xf32>, vector<16x16xf32>, vector<1x16xf32> -> vector<1x16xf32>
    %1240 = arith.addf %1232, %1239 : vector<1x16xf32>
    %c5_1144 = arith.constant 5 : index
    %c0_1145 = arith.constant 0 : index
    %c0_1146 = arith.constant 0 : index
    %1241 = vector.load %arg3[%c5_1144, %c0_1145, %c0_1146] : memref<9x9x9xf32, #tpu.memory_space<vmem>>, vector<1x9x9xf32>
    %1242 = vector.shape_cast %1241 : vector<1x9x9xf32> to vector<9x9xf32>
    %1243 = vector.extract_strided_slice %1242 {offsets = [0, 0], sizes = [1, 9], strides = [1, 1]} : vector<9x9xf32> to vector<1x9xf32>
    %cst_1147 = arith.constant dense<0.000000e+00> : vector<1x16xf32>
    %1244 = tpu.matmul %1243, %1201, %cst_1147 {dimension_numbers = #tpu.dot_dimension_numbers<[1], [0], [0], [1], [0, 0, 1, 1], [], []>} : vector<1x9xf32>, vector<9x16xf32>, vector<1x16xf32> -> vector<1x16xf32>
    %c5_1148 = arith.constant 5 : index
    %c14_1149 = arith.constant 14 : index
    %c0_1150 = arith.constant 0 : index
    %c0_1151 = arith.constant 0 : index
    %1245 = vector.load %arg7[%c5_1148, %c14_1149, %c0_1150, %c0_1151] : memref<6x18x16x16xf32, #tpu.memory_space<vmem>>, vector<1x1x16x16xf32>
    %1246 = vector.shape_cast %1245 : vector<1x1x16x16xf32> to vector<16x16xf32>
    %cst_1152 = arith.constant dense<0.000000e+00> : vector<1x16xf32>
    %1247 = tpu.matmul %1244, %1246, %cst_1152 {dimension_numbers = #tpu.dot_dimension_numbers<[1], [0], [0], [1], [0, 0, 1, 1], [], []>} : vector<1x16xf32>, vector<16x16xf32>, vector<1x16xf32> -> vector<1x16xf32>
    %1248 = arith.addf %1240, %1247 : vector<1x16xf32>
    %c6_1153 = arith.constant 6 : index
    %c0_1154 = arith.constant 0 : index
    %c0_1155 = arith.constant 0 : index
    %1249 = vector.load %arg3[%c6_1153, %c0_1154, %c0_1155] : memref<9x9x9xf32, #tpu.memory_space<vmem>>, vector<1x9x9xf32>
    %1250 = vector.shape_cast %1249 : vector<1x9x9xf32> to vector<9x9xf32>
    %1251 = vector.extract_strided_slice %1250 {offsets = [0, 0], sizes = [1, 9], strides = [1, 1]} : vector<9x9xf32> to vector<1x9xf32>
    %cst_1156 = arith.constant dense<0.000000e+00> : vector<1x16xf32>
    %1252 = tpu.matmul %1251, %1201, %cst_1156 {dimension_numbers = #tpu.dot_dimension_numbers<[1], [0], [0], [1], [0, 0, 1, 1], [], []>} : vector<1x9xf32>, vector<9x16xf32>, vector<1x16xf32> -> vector<1x16xf32>
    %c5_1157 = arith.constant 5 : index
    %c15_1158 = arith.constant 15 : index
    %c0_1159 = arith.constant 0 : index
    %c0_1160 = arith.constant 0 : index
    %1253 = vector.load %arg7[%c5_1157, %c15_1158, %c0_1159, %c0_1160] : memref<6x18x16x16xf32, #tpu.memory_space<vmem>>, vector<1x1x16x16xf32>
    %1254 = vector.shape_cast %1253 : vector<1x1x16x16xf32> to vector<16x16xf32>
    %cst_1161 = arith.constant dense<0.000000e+00> : vector<1x16xf32>
    %1255 = tpu.matmul %1252, %1254, %cst_1161 {dimension_numbers = #tpu.dot_dimension_numbers<[1], [0], [0], [1], [0, 0, 1, 1], [], []>} : vector<1x16xf32>, vector<16x16xf32>, vector<1x16xf32> -> vector<1x16xf32>
    %1256 = arith.addf %1248, %1255 : vector<1x16xf32>
    %c7_1162 = arith.constant 7 : index
    %c0_1163 = arith.constant 0 : index
    %c0_1164 = arith.constant 0 : index
    %1257 = vector.load %arg3[%c7_1162, %c0_1163, %c0_1164] : memref<9x9x9xf32, #tpu.memory_space<vmem>>, vector<1x9x9xf32>
    %1258 = vector.shape_cast %1257 : vector<1x9x9xf32> to vector<9x9xf32>
    %1259 = vector.extract_strided_slice %1258 {offsets = [0, 0], sizes = [1, 9], strides = [1, 1]} : vector<9x9xf32> to vector<1x9xf32>
    %cst_1165 = arith.constant dense<0.000000e+00> : vector<1x16xf32>
    %1260 = tpu.matmul %1259, %1201, %cst_1165 {dimension_numbers = #tpu.dot_dimension_numbers<[1], [0], [0], [1], [0, 0, 1, 1], [], []>} : vector<1x9xf32>, vector<9x16xf32>, vector<1x16xf32> -> vector<1x16xf32>
    %c5_1166 = arith.constant 5 : index
    %c16_1167 = arith.constant 16 : index
    %c0_1168 = arith.constant 0 : index
    %c0_1169 = arith.constant 0 : index
    %1261 = vector.load %arg7[%c5_1166, %c16_1167, %c0_1168, %c0_1169] : memref<6x18x16x16xf32, #tpu.memory_space<vmem>>, vector<1x1x16x16xf32>
    %1262 = vector.shape_cast %1261 : vector<1x1x16x16xf32> to vector<16x16xf32>
    %cst_1170 = arith.constant dense<0.000000e+00> : vector<1x16xf32>
    %1263 = tpu.matmul %1260, %1262, %cst_1170 {dimension_numbers = #tpu.dot_dimension_numbers<[1], [0], [0], [1], [0, 0, 1, 1], [], []>} : vector<1x16xf32>, vector<16x16xf32>, vector<1x16xf32> -> vector<1x16xf32>
    %1264 = arith.addf %1256, %1263 : vector<1x16xf32>
    %c8_1171 = arith.constant 8 : index
    %c0_1172 = arith.constant 0 : index
    %c0_1173 = arith.constant 0 : index
    %1265 = vector.load %arg3[%c8_1171, %c0_1172, %c0_1173] : memref<9x9x9xf32, #tpu.memory_space<vmem>>, vector<1x9x9xf32>
    %1266 = vector.shape_cast %1265 : vector<1x9x9xf32> to vector<9x9xf32>
    %1267 = vector.extract_strided_slice %1266 {offsets = [0, 0], sizes = [1, 9], strides = [1, 1]} : vector<9x9xf32> to vector<1x9xf32>
    %cst_1174 = arith.constant dense<0.000000e+00> : vector<1x16xf32>
    %1268 = tpu.matmul %1267, %1201, %cst_1174 {dimension_numbers = #tpu.dot_dimension_numbers<[1], [0], [0], [1], [0, 0, 1, 1], [], []>} : vector<1x9xf32>, vector<9x16xf32>, vector<1x16xf32> -> vector<1x16xf32>
    %c5_1175 = arith.constant 5 : index
    %c17_1176 = arith.constant 17 : index
    %c0_1177 = arith.constant 0 : index
    %c0_1178 = arith.constant 0 : index
    %1269 = vector.load %arg7[%c5_1175, %c17_1176, %c0_1177, %c0_1178] : memref<6x18x16x16xf32, #tpu.memory_space<vmem>>, vector<1x1x16x16xf32>
    %1270 = vector.shape_cast %1269 : vector<1x1x16x16xf32> to vector<16x16xf32>
    %cst_1179 = arith.constant dense<0.000000e+00> : vector<1x16xf32>
    %1271 = tpu.matmul %1268, %1270, %cst_1179 {dimension_numbers = #tpu.dot_dimension_numbers<[1], [0], [0], [1], [0, 0, 1, 1], [], []>} : vector<1x16xf32>, vector<16x16xf32>, vector<1x16xf32> -> vector<1x16xf32>
    %1272 = arith.addf %1264, %1271 : vector<1x16xf32>
    %c5_1180 = arith.constant 5 : index
    %c1_1181 = arith.constant 1 : index
    %c0_1182 = arith.constant 0 : index
    %1273 = vector.load %arg8[%c5_1180, %c1_1181, %c0_1182] : memref<6x2x16xf32, #tpu.memory_space<vmem>>, vector<1x1x16xf32>
    %1274 = vector.shape_cast %1273 : vector<1x1x16xf32> to vector<16xf32>
    %1275 = vector.shape_cast %1274 : vector<16xf32> to vector<1x16xf32>
    %1276 = arith.addf %1272, %1275 : vector<1x16xf32>
    %cst_1183 = arith.constant 0.000000e+00 : f32
    %1277 = vector.broadcast %cst_1183 : f32 to vector<1x16xf32>
    %1278 = arith.maximumf %1276, %1277 : vector<1x16xf32>
    %c5_1184 = arith.constant 5 : index
    %c1_1185 = arith.constant 1 : index
    %c0_1186 = arith.constant 0 : index
    %c0_1187 = arith.constant 0 : index
    %1279 = vector.load %arg9[%c5_1184, %c1_1185, %c0_1186, %c0_1187] : memref<6x2x16x32xf32, #tpu.memory_space<vmem>>, vector<1x1x16x32xf32>
    %1280 = vector.shape_cast %1279 : vector<1x1x16x32xf32> to vector<16x32xf32>
    %cst_1188 = arith.constant dense<0.000000e+00> : vector<1x32xf32>
    %1281 = tpu.matmul %1278, %1280, %cst_1188 {dimension_numbers = #tpu.dot_dimension_numbers<[1], [0], [0], [1], [0, 0, 1, 1], [], []>} : vector<1x16xf32>, vector<16x32xf32>, vector<1x32xf32> -> vector<1x32xf32>
    %c5_1189 = arith.constant 5 : index
    %c1_1190 = arith.constant 1 : index
    %c0_1191 = arith.constant 0 : index
    %1282 = vector.load %arg10[%c5_1189, %c1_1190, %c0_1191] : memref<6x2x32xf32, #tpu.memory_space<vmem>>, vector<1x1x32xf32>
    %1283 = vector.shape_cast %1282 : vector<1x1x32xf32> to vector<32xf32>
    %1284 = vector.shape_cast %1283 : vector<32xf32> to vector<1x32xf32>
    %1285 = arith.addf %1281, %1284 : vector<1x32xf32>
    %c21 = arith.constant 21 : index
    %1286 = memref.load %arg22[%c21] : memref<24xf32, #tpu.memory_space<smem>>
    %1287 = vector.broadcast %1286 : f32 to vector<9x32xf32>
    %1288 = arith.mulf %1287, %1179 : vector<9x32xf32>
    %1289 = vector.broadcast %1285 : vector<1x32xf32> to vector<9x32xf32>
    %1290 = arith.addf %1289, %1288 : vector<9x32xf32>
    %c5_1192 = arith.constant 5 : index
    %c0_1193 = arith.constant 0 : index
    %c0_1194 = arith.constant 0 : index
    %1291 = vector.load %arg11[%c5_1192, %c0_1193, %c0_1194] : memref<6x64x32xf32, #tpu.memory_space<vmem>>, vector<1x64x32xf32>
    %1292 = vector.shape_cast %1291 : vector<1x64x32xf32> to vector<64x32xf32>
    %1293 = vector.extract_strided_slice %1292 {offsets = [0, 0], sizes = [32, 32], strides = [1, 1]} : vector<64x32xf32> to vector<32x32xf32>
    %cst_1195 = arith.constant dense<0.000000e+00> : vector<9x32xf32>
    %1294 = tpu.matmul %1290, %1293, %cst_1195 {dimension_numbers = #tpu.dot_dimension_numbers<[1], [0], [0], [1], [0, 0, 1, 1], [], []>} : vector<9x32xf32>, vector<32x32xf32>, vector<9x32xf32> -> vector<9x32xf32>
    %1295 = vector.extract_strided_slice %1292 {offsets = [32, 0], sizes = [32, 32], strides = [1, 1]} : vector<64x32xf32> to vector<32x32xf32>
    %cst_1196 = arith.constant dense<0.000000e+00> : vector<9x32xf32>
    %1296 = tpu.matmul %1179, %1295, %cst_1196 {dimension_numbers = #tpu.dot_dimension_numbers<[1], [0], [0], [1], [0, 0, 1, 1], [], []>} : vector<9x32xf32>, vector<32x32xf32>, vector<9x32xf32> -> vector<9x32xf32>
    %1297 = arith.addf %1294, %1296 : vector<9x32xf32>
    %cst_1197 = arith.constant 0.000000e+00 : f32
    %1298 = vector.broadcast %cst_1197 : f32 to vector<9x32xf32>
    %1299 = arith.maximumf %1297, %1298 : vector<9x32xf32>
    %c5_1198 = arith.constant 5 : index
    %c0_1199 = arith.constant 0 : index
    %c0_1200 = arith.constant 0 : index
    %1300 = vector.load %arg13[%c5_1198, %c0_1199, %c0_1200] : memref<6x32x2xf32, #tpu.memory_space<vmem>>, vector<1x32x2xf32>
    %1301 = vector.shape_cast %1300 : vector<1x32x2xf32> to vector<32x2xf32>
    %c5_1201 = arith.constant 5 : index
    %c0_1202 = arith.constant 0 : index
    %1302 = vector.load %arg14[%c5_1201, %c0_1202] : memref<6x2xf32, #tpu.memory_space<vmem>>, vector<1x2xf32>
    %1303 = vector.shape_cast %1302 : vector<1x2xf32> to vector<2xf32>
    %c5_1203 = arith.constant 5 : index
    %c0_1204 = arith.constant 0 : index
    %c0_1205 = arith.constant 0 : index
    %1304 = vector.load %arg15[%c5_1203, %c0_1204, %c0_1205] : memref<6x2x32xf32, #tpu.memory_space<vmem>>, vector<1x2x32xf32>
    %1305 = vector.shape_cast %1304 : vector<1x2x32xf32> to vector<2x32xf32>
    %c5_1206 = arith.constant 5 : index
    %c0_1207 = arith.constant 0 : index
    %1306 = vector.load %arg16[%c5_1206, %c0_1207] : memref<6x32xf32, #tpu.memory_space<vmem>>, vector<1x32xf32>
    %1307 = vector.shape_cast %1306 : vector<1x32xf32> to vector<32xf32>
    %cst_1208 = arith.constant dense<0.000000e+00> : vector<32xf32>
    %1308 = vector.multi_reduction <add>, %1299, %cst_1208 [0] : vector<9x32xf32> to vector<32xf32>
    %1309 = vector.shape_cast %1308 : vector<32xf32> to vector<1x32xf32>
    %cst_1209 = arith.constant 0.111111112 : f32
    %1310 = vector.broadcast %cst_1209 : f32 to vector<1x32xf32>
    %1311 = arith.mulf %1309, %1310 : vector<1x32xf32>
    %cst_1210 = arith.constant dense<0.000000e+00> : vector<1x2xf32>
    %1312 = tpu.matmul %1311, %1301, %cst_1210 {dimension_numbers = #tpu.dot_dimension_numbers<[1], [0], [0], [1], [0, 0, 1, 1], [], []>} : vector<1x32xf32>, vector<32x2xf32>, vector<1x2xf32> -> vector<1x2xf32>
    %1313 = vector.shape_cast %1303 : vector<2xf32> to vector<1x2xf32>
    %1314 = arith.addf %1312, %1313 : vector<1x2xf32>
    %cst_1211 = arith.constant 0.000000e+00 : f32
    %1315 = vector.broadcast %cst_1211 : f32 to vector<1x2xf32>
    %1316 = arith.maximumf %1314, %1315 : vector<1x2xf32>
    %cst_1212 = arith.constant dense<0.000000e+00> : vector<1x32xf32>
    %1317 = tpu.matmul %1316, %1305, %cst_1212 {dimension_numbers = #tpu.dot_dimension_numbers<[1], [0], [0], [1], [0, 0, 1, 1], [], []>} : vector<1x2xf32>, vector<2x32xf32>, vector<1x32xf32> -> vector<1x32xf32>
    %1318 = vector.shape_cast %1307 : vector<32xf32> to vector<1x32xf32>
    %1319 = arith.addf %1317, %1318 : vector<1x32xf32>
    %1320 = arith.negf %1319 : vector<1x32xf32>
    %1321 = math.exp %1320 : vector<1x32xf32>
    %cst_1213 = arith.constant 1.000000e+00 : f32
    %1322 = vector.broadcast %cst_1213 : f32 to vector<1x32xf32>
    %1323 = arith.addf %1322, %1321 : vector<1x32xf32>
    %1324 = arith.divf %1322, %1323 : vector<1x32xf32>
    %1325 = vector.broadcast %1324 : vector<1x32xf32> to vector<9x32xf32>
    %1326 = arith.mulf %1299, %1325 : vector<9x32xf32>
    %c0_1214 = arith.constant 0 : index
    %c0_1215 = arith.constant 0 : index
    %c0_1216 = arith.constant 0 : index
    %1327 = vector.load %arg3[%c0_1214, %c0_1215, %c0_1216] : memref<9x9x9xf32, #tpu.memory_space<vmem>>, vector<1x9x9xf32>
    %1328 = vector.shape_cast %1327 : vector<1x9x9xf32> to vector<9x9xf32>
    %cst_1217 = arith.constant dense<0.000000e+00> : vector<9x32xf32>
    %1329 = tpu.matmul %1328, %1326, %cst_1217 {dimension_numbers = #tpu.dot_dimension_numbers<[1], [0], [0], [1], [0, 0, 1, 1], [], []>} : vector<9x9xf32>, vector<9x32xf32>, vector<9x32xf32> -> vector<9x32xf32>
    %c5_1218 = arith.constant 5 : index
    %c0_1219 = arith.constant 0 : index
    %c0_1220 = arith.constant 0 : index
    %c0_1221 = arith.constant 0 : index
    %1330 = vector.load %arg12[%c5_1218, %c0_1219, %c0_1220, %c0_1221] : memref<6x9x32x32xf32, #tpu.memory_space<vmem>>, vector<1x1x32x32xf32>
    %1331 = vector.shape_cast %1330 : vector<1x1x32x32xf32> to vector<32x32xf32>
    %cst_1222 = arith.constant dense<0.000000e+00> : vector<9x32xf32>
    %1332 = tpu.matmul %1329, %1331, %cst_1222 {dimension_numbers = #tpu.dot_dimension_numbers<[1], [0], [0], [1], [0, 0, 1, 1], [], []>} : vector<9x32xf32>, vector<32x32xf32>, vector<9x32xf32> -> vector<9x32xf32>
    %c1_1223 = arith.constant 1 : index
    %c0_1224 = arith.constant 0 : index
    %c0_1225 = arith.constant 0 : index
    %1333 = vector.load %arg3[%c1_1223, %c0_1224, %c0_1225] : memref<9x9x9xf32, #tpu.memory_space<vmem>>, vector<1x9x9xf32>
    %1334 = vector.shape_cast %1333 : vector<1x9x9xf32> to vector<9x9xf32>
    %cst_1226 = arith.constant dense<0.000000e+00> : vector<9x32xf32>
    %1335 = tpu.matmul %1334, %1326, %cst_1226 {dimension_numbers = #tpu.dot_dimension_numbers<[1], [0], [0], [1], [0, 0, 1, 1], [], []>} : vector<9x9xf32>, vector<9x32xf32>, vector<9x32xf32> -> vector<9x32xf32>
    %c5_1227 = arith.constant 5 : index
    %c1_1228 = arith.constant 1 : index
    %c0_1229 = arith.constant 0 : index
    %c0_1230 = arith.constant 0 : index
    %1336 = vector.load %arg12[%c5_1227, %c1_1228, %c0_1229, %c0_1230] : memref<6x9x32x32xf32, #tpu.memory_space<vmem>>, vector<1x1x32x32xf32>
    %1337 = vector.shape_cast %1336 : vector<1x1x32x32xf32> to vector<32x32xf32>
    %cst_1231 = arith.constant dense<0.000000e+00> : vector<9x32xf32>
    %1338 = tpu.matmul %1335, %1337, %cst_1231 {dimension_numbers = #tpu.dot_dimension_numbers<[1], [0], [0], [1], [0, 0, 1, 1], [], []>} : vector<9x32xf32>, vector<32x32xf32>, vector<9x32xf32> -> vector<9x32xf32>
    %1339 = arith.addf %1332, %1338 : vector<9x32xf32>
    %c2_1232 = arith.constant 2 : index
    %c0_1233 = arith.constant 0 : index
    %c0_1234 = arith.constant 0 : index
    %1340 = vector.load %arg3[%c2_1232, %c0_1233, %c0_1234] : memref<9x9x9xf32, #tpu.memory_space<vmem>>, vector<1x9x9xf32>
    %1341 = vector.shape_cast %1340 : vector<1x9x9xf32> to vector<9x9xf32>
    %cst_1235 = arith.constant dense<0.000000e+00> : vector<9x32xf32>
    %1342 = tpu.matmul %1341, %1326, %cst_1235 {dimension_numbers = #tpu.dot_dimension_numbers<[1], [0], [0], [1], [0, 0, 1, 1], [], []>} : vector<9x9xf32>, vector<9x32xf32>, vector<9x32xf32> -> vector<9x32xf32>
    %c5_1236 = arith.constant 5 : index
    %c2_1237 = arith.constant 2 : index
    %c0_1238 = arith.constant 0 : index
    %c0_1239 = arith.constant 0 : index
    %1343 = vector.load %arg12[%c5_1236, %c2_1237, %c0_1238, %c0_1239] : memref<6x9x32x32xf32, #tpu.memory_space<vmem>>, vector<1x1x32x32xf32>
    %1344 = vector.shape_cast %1343 : vector<1x1x32x32xf32> to vector<32x32xf32>
    %cst_1240 = arith.constant dense<0.000000e+00> : vector<9x32xf32>
    %1345 = tpu.matmul %1342, %1344, %cst_1240 {dimension_numbers = #tpu.dot_dimension_numbers<[1], [0], [0], [1], [0, 0, 1, 1], [], []>} : vector<9x32xf32>, vector<32x32xf32>, vector<9x32xf32> -> vector<9x32xf32>
    %1346 = arith.addf %1339, %1345 : vector<9x32xf32>
    %c3_1241 = arith.constant 3 : index
    %c0_1242 = arith.constant 0 : index
    %c0_1243 = arith.constant 0 : index
    %1347 = vector.load %arg3[%c3_1241, %c0_1242, %c0_1243] : memref<9x9x9xf32, #tpu.memory_space<vmem>>, vector<1x9x9xf32>
    %1348 = vector.shape_cast %1347 : vector<1x9x9xf32> to vector<9x9xf32>
    %cst_1244 = arith.constant dense<0.000000e+00> : vector<9x32xf32>
    %1349 = tpu.matmul %1348, %1326, %cst_1244 {dimension_numbers = #tpu.dot_dimension_numbers<[1], [0], [0], [1], [0, 0, 1, 1], [], []>} : vector<9x9xf32>, vector<9x32xf32>, vector<9x32xf32> -> vector<9x32xf32>
    %c5_1245 = arith.constant 5 : index
    %c3_1246 = arith.constant 3 : index
    %c0_1247 = arith.constant 0 : index
    %c0_1248 = arith.constant 0 : index
    %1350 = vector.load %arg12[%c5_1245, %c3_1246, %c0_1247, %c0_1248] : memref<6x9x32x32xf32, #tpu.memory_space<vmem>>, vector<1x1x32x32xf32>
    %1351 = vector.shape_cast %1350 : vector<1x1x32x32xf32> to vector<32x32xf32>
    %cst_1249 = arith.constant dense<0.000000e+00> : vector<9x32xf32>
    %1352 = tpu.matmul %1349, %1351, %cst_1249 {dimension_numbers = #tpu.dot_dimension_numbers<[1], [0], [0], [1], [0, 0, 1, 1], [], []>} : vector<9x32xf32>, vector<32x32xf32>, vector<9x32xf32> -> vector<9x32xf32>
    %1353 = arith.addf %1346, %1352 : vector<9x32xf32>
    %c4_1250 = arith.constant 4 : index
    %c0_1251 = arith.constant 0 : index
    %c0_1252 = arith.constant 0 : index
    %1354 = vector.load %arg3[%c4_1250, %c0_1251, %c0_1252] : memref<9x9x9xf32, #tpu.memory_space<vmem>>, vector<1x9x9xf32>
    %1355 = vector.shape_cast %1354 : vector<1x9x9xf32> to vector<9x9xf32>
    %cst_1253 = arith.constant dense<0.000000e+00> : vector<9x32xf32>
    %1356 = tpu.matmul %1355, %1326, %cst_1253 {dimension_numbers = #tpu.dot_dimension_numbers<[1], [0], [0], [1], [0, 0, 1, 1], [], []>} : vector<9x9xf32>, vector<9x32xf32>, vector<9x32xf32> -> vector<9x32xf32>
    %c5_1254 = arith.constant 5 : index
    %c4_1255 = arith.constant 4 : index
    %c0_1256 = arith.constant 0 : index
    %c0_1257 = arith.constant 0 : index
    %1357 = vector.load %arg12[%c5_1254, %c4_1255, %c0_1256, %c0_1257] : memref<6x9x32x32xf32, #tpu.memory_space<vmem>>, vector<1x1x32x32xf32>
    %1358 = vector.shape_cast %1357 : vector<1x1x32x32xf32> to vector<32x32xf32>
    %cst_1258 = arith.constant dense<0.000000e+00> : vector<9x32xf32>
    %1359 = tpu.matmul %1356, %1358, %cst_1258 {dimension_numbers = #tpu.dot_dimension_numbers<[1], [0], [0], [1], [0, 0, 1, 1], [], []>} : vector<9x32xf32>, vector<32x32xf32>, vector<9x32xf32> -> vector<9x32xf32>
    %1360 = arith.addf %1353, %1359 : vector<9x32xf32>
    %c5_1259 = arith.constant 5 : index
    %c0_1260 = arith.constant 0 : index
    %c0_1261 = arith.constant 0 : index
    %1361 = vector.load %arg3[%c5_1259, %c0_1260, %c0_1261] : memref<9x9x9xf32, #tpu.memory_space<vmem>>, vector<1x9x9xf32>
    %1362 = vector.shape_cast %1361 : vector<1x9x9xf32> to vector<9x9xf32>
    %cst_1262 = arith.constant dense<0.000000e+00> : vector<9x32xf32>
    %1363 = tpu.matmul %1362, %1326, %cst_1262 {dimension_numbers = #tpu.dot_dimension_numbers<[1], [0], [0], [1], [0, 0, 1, 1], [], []>} : vector<9x9xf32>, vector<9x32xf32>, vector<9x32xf32> -> vector<9x32xf32>
    %c5_1263 = arith.constant 5 : index
    %c5_1264 = arith.constant 5 : index
    %c0_1265 = arith.constant 0 : index
    %c0_1266 = arith.constant 0 : index
    %1364 = vector.load %arg12[%c5_1263, %c5_1264, %c0_1265, %c0_1266] : memref<6x9x32x32xf32, #tpu.memory_space<vmem>>, vector<1x1x32x32xf32>
    %1365 = vector.shape_cast %1364 : vector<1x1x32x32xf32> to vector<32x32xf32>
    %cst_1267 = arith.constant dense<0.000000e+00> : vector<9x32xf32>
    %1366 = tpu.matmul %1363, %1365, %cst_1267 {dimension_numbers = #tpu.dot_dimension_numbers<[1], [0], [0], [1], [0, 0, 1, 1], [], []>} : vector<9x32xf32>, vector<32x32xf32>, vector<9x32xf32> -> vector<9x32xf32>
    %1367 = arith.addf %1360, %1366 : vector<9x32xf32>
    %c6_1268 = arith.constant 6 : index
    %c0_1269 = arith.constant 0 : index
    %c0_1270 = arith.constant 0 : index
    %1368 = vector.load %arg3[%c6_1268, %c0_1269, %c0_1270] : memref<9x9x9xf32, #tpu.memory_space<vmem>>, vector<1x9x9xf32>
    %1369 = vector.shape_cast %1368 : vector<1x9x9xf32> to vector<9x9xf32>
    %cst_1271 = arith.constant dense<0.000000e+00> : vector<9x32xf32>
    %1370 = tpu.matmul %1369, %1326, %cst_1271 {dimension_numbers = #tpu.dot_dimension_numbers<[1], [0], [0], [1], [0, 0, 1, 1], [], []>} : vector<9x9xf32>, vector<9x32xf32>, vector<9x32xf32> -> vector<9x32xf32>
    %c5_1272 = arith.constant 5 : index
    %c6_1273 = arith.constant 6 : index
    %c0_1274 = arith.constant 0 : index
    %c0_1275 = arith.constant 0 : index
    %1371 = vector.load %arg12[%c5_1272, %c6_1273, %c0_1274, %c0_1275] : memref<6x9x32x32xf32, #tpu.memory_space<vmem>>, vector<1x1x32x32xf32>
    %1372 = vector.shape_cast %1371 : vector<1x1x32x32xf32> to vector<32x32xf32>
    %cst_1276 = arith.constant dense<0.000000e+00> : vector<9x32xf32>
    %1373 = tpu.matmul %1370, %1372, %cst_1276 {dimension_numbers = #tpu.dot_dimension_numbers<[1], [0], [0], [1], [0, 0, 1, 1], [], []>} : vector<9x32xf32>, vector<32x32xf32>, vector<9x32xf32> -> vector<9x32xf32>
    %1374 = arith.addf %1367, %1373 : vector<9x32xf32>
    %c7_1277 = arith.constant 7 : index
    %c0_1278 = arith.constant 0 : index
    %c0_1279 = arith.constant 0 : index
    %1375 = vector.load %arg3[%c7_1277, %c0_1278, %c0_1279] : memref<9x9x9xf32, #tpu.memory_space<vmem>>, vector<1x9x9xf32>
    %1376 = vector.shape_cast %1375 : vector<1x9x9xf32> to vector<9x9xf32>
    %cst_1280 = arith.constant dense<0.000000e+00> : vector<9x32xf32>
    %1377 = tpu.matmul %1376, %1326, %cst_1280 {dimension_numbers = #tpu.dot_dimension_numbers<[1], [0], [0], [1], [0, 0, 1, 1], [], []>} : vector<9x9xf32>, vector<9x32xf32>, vector<9x32xf32> -> vector<9x32xf32>
    %c5_1281 = arith.constant 5 : index
    %c7_1282 = arith.constant 7 : index
    %c0_1283 = arith.constant 0 : index
    %c0_1284 = arith.constant 0 : index
    %1378 = vector.load %arg12[%c5_1281, %c7_1282, %c0_1283, %c0_1284] : memref<6x9x32x32xf32, #tpu.memory_space<vmem>>, vector<1x1x32x32xf32>
    %1379 = vector.shape_cast %1378 : vector<1x1x32x32xf32> to vector<32x32xf32>
    %cst_1285 = arith.constant dense<0.000000e+00> : vector<9x32xf32>
    %1380 = tpu.matmul %1377, %1379, %cst_1285 {dimension_numbers = #tpu.dot_dimension_numbers<[1], [0], [0], [1], [0, 0, 1, 1], [], []>} : vector<9x32xf32>, vector<32x32xf32>, vector<9x32xf32> -> vector<9x32xf32>
    %1381 = arith.addf %1374, %1380 : vector<9x32xf32>
    %c8_1286 = arith.constant 8 : index
    %c0_1287 = arith.constant 0 : index
    %c0_1288 = arith.constant 0 : index
    %1382 = vector.load %arg3[%c8_1286, %c0_1287, %c0_1288] : memref<9x9x9xf32, #tpu.memory_space<vmem>>, vector<1x9x9xf32>
    %1383 = vector.shape_cast %1382 : vector<1x9x9xf32> to vector<9x9xf32>
    %cst_1289 = arith.constant dense<0.000000e+00> : vector<9x32xf32>
    %1384 = tpu.matmul %1383, %1326, %cst_1289 {dimension_numbers = #tpu.dot_dimension_numbers<[1], [0], [0], [1], [0, 0, 1, 1], [], []>} : vector<9x9xf32>, vector<9x32xf32>, vector<9x32xf32> -> vector<9x32xf32>
    %c5_1290 = arith.constant 5 : index
    %c8_1291 = arith.constant 8 : index
    %c0_1292 = arith.constant 0 : index
    %c0_1293 = arith.constant 0 : index
    %1385 = vector.load %arg12[%c5_1290, %c8_1291, %c0_1292, %c0_1293] : memref<6x9x32x32xf32, #tpu.memory_space<vmem>>, vector<1x1x32x32xf32>
    %1386 = vector.shape_cast %1385 : vector<1x1x32x32xf32> to vector<32x32xf32>
    %cst_1294 = arith.constant dense<0.000000e+00> : vector<9x32xf32>
    %1387 = tpu.matmul %1384, %1386, %cst_1294 {dimension_numbers = #tpu.dot_dimension_numbers<[1], [0], [0], [1], [0, 0, 1, 1], [], []>} : vector<9x32xf32>, vector<32x32xf32>, vector<9x32xf32> -> vector<9x32xf32>
    %1388 = arith.addf %1381, %1387 : vector<9x32xf32>
    %cst_1295 = arith.constant 0.000000e+00 : f32
    %1389 = vector.broadcast %cst_1295 : f32 to vector<9x32xf32>
    %1390 = arith.maximumf %1388, %1389 : vector<9x32xf32>
    %c22 = arith.constant 22 : index
    %1391 = memref.load %arg22[%c22] : memref<24xf32, #tpu.memory_space<smem>>
    %1392 = vector.broadcast %1391 : f32 to vector<9x32xf32>
    %1393 = arith.mulf %1392, %1068 : vector<9x32xf32>
    %c23 = arith.constant 23 : index
    %1394 = memref.load %arg22[%c23] : memref<24xf32, #tpu.memory_space<smem>>
    %1395 = vector.broadcast %1394 : f32 to vector<9x32xf32>
    %1396 = arith.mulf %1395, %1390 : vector<9x32xf32>
    %1397 = arith.addf %1393, %1396 : vector<9x32xf32>
    %1398 = arith.addf %1397, %1 : vector<9x32xf32>
    %c0_1296 = arith.constant 0 : index
    %c0_1297 = arith.constant 0 : index
    %c0_1298 = arith.constant 0 : index
    %1399 = vector.load %arg23[%c0_1296, %c0_1297, %c0_1298] : memref<1x9x32xf32, #tpu.memory_space<vmem>>, vector<1x9x32xf32>
    %1400 = vector.shape_cast %1399 : vector<1x9x32xf32> to vector<9x32xf32>
    %1401 = vector.shape_cast %1398 : vector<9x32xf32> to vector<1x9x32xf32>
    tpu.vector_store %arg23[%c0_1296, %c0_1297, %c0_1298], %1401 {strides = array<i32>} : memref<1x9x32xf32, #tpu.memory_space<vmem>>, vector<1x9x32xf32>,
    return
  }
  func.func @transform_0(%arg0: i32) -> (i32, i32, i32) {
    %c0_i32 = arith.constant 0 : i32
    %c0_i32_0 = arith.constant 0 : i32
    %c0_i32_1 = arith.constant 0 : i32
    return %arg0, %c0_i32, %c0_i32_0 : i32, i32, i32
  }
  func.func @transform_1(%arg0: i32) -> (i32, i32) {
    %c0_i32 = arith.constant 0 : i32
    %c0_i32_0 = arith.constant 0 : i32
    %c0_i32_1 = arith.constant 0 : i32
    return %c0_i32, %c0_i32_0 : i32, i32
  }
  func.func @transform_2(%arg0: i32) -> (i32, i32, i32) {
    %c0_i32 = arith.constant 0 : i32
    %c0_i32_0 = arith.constant 0 : i32
    %c0_i32_1 = arith.constant 0 : i32
    %c0_i32_2 = arith.constant 0 : i32
    return %c0_i32, %c0_i32_0, %c0_i32_1 : i32, i32, i32
  }
  func.func @transform_3(%arg0: i32) -> (i32, i32, i32, i32) {
    %c0_i32 = arith.constant 0 : i32
    %c0_i32_0 = arith.constant 0 : i32
    %c0_i32_1 = arith.constant 0 : i32
    %c0_i32_2 = arith.constant 0 : i32
    %c0_i32_3 = arith.constant 0 : i32
    return %c0_i32, %c0_i32_0, %c0_i32_1, %c0_i32_2 : i32, i32, i32, i32
  }
  func.func @transform_4(%arg0: i32) -> (i32, i32, i32, i32) {
    %c0_i32 = arith.constant 0 : i32
    %c0_i32_0 = arith.constant 0 : i32
    %c0_i32_1 = arith.constant 0 : i32
    %c0_i32_2 = arith.constant 0 : i32
    %c0_i32_3 = arith.constant 0 : i32
    return %c0_i32, %c0_i32_0, %c0_i32_1, %c0_i32_2 : i32, i32, i32, i32
  }
  func.func @transform_5(%arg0: i32) -> (i32, i32, i32) {
    %c0_i32 = arith.constant 0 : i32
    %c0_i32_0 = arith.constant 0 : i32
    %c0_i32_1 = arith.constant 0 : i32
    %c0_i32_2 = arith.constant 0 : i32
    return %c0_i32, %c0_i32_0, %c0_i32_1 : i32, i32, i32
  }
  func.func @transform_6(%arg0: i32) -> (i32, i32, i32, i32) {
    %c0_i32 = arith.constant 0 : i32
    %c0_i32_0 = arith.constant 0 : i32
    %c0_i32_1 = arith.constant 0 : i32
    %c0_i32_2 = arith.constant 0 : i32
    %c0_i32_3 = arith.constant 0 : i32
    return %c0_i32, %c0_i32_0, %c0_i32_1, %c0_i32_2 : i32, i32, i32, i32
  }
  func.func @transform_7(%arg0: i32) -> (i32, i32, i32) {
    %c0_i32 = arith.constant 0 : i32
    %c0_i32_0 = arith.constant 0 : i32
    %c0_i32_1 = arith.constant 0 : i32
    %c0_i32_2 = arith.constant 0 : i32
    return %c0_i32, %c0_i32_0, %c0_i32_1 : i32, i32, i32
  }
  func.func @transform_8(%arg0: i32) -> (i32, i32, i32, i32) {
    %c0_i32 = arith.constant 0 : i32
    %c0_i32_0 = arith.constant 0 : i32
    %c0_i32_1 = arith.constant 0 : i32
    %c0_i32_2 = arith.constant 0 : i32
    %c0_i32_3 = arith.constant 0 : i32
    return %c0_i32, %c0_i32_0, %c0_i32_1, %c0_i32_2 : i32, i32, i32, i32
  }
  func.func @transform_9(%arg0: i32) -> (i32, i32, i32) {
    %c0_i32 = arith.constant 0 : i32
    %c0_i32_0 = arith.constant 0 : i32
    %c0_i32_1 = arith.constant 0 : i32
    %c0_i32_2 = arith.constant 0 : i32
    return %c0_i32, %c0_i32_0, %c0_i32_1 : i32, i32, i32
  }
  func.func @transform_10(%arg0: i32) -> (i32, i32, i32) {
    %c0_i32 = arith.constant 0 : i32
    %c0_i32_0 = arith.constant 0 : i32
    %c0_i32_1 = arith.constant 0 : i32
    %c0_i32_2 = arith.constant 0 : i32
    return %c0_i32, %c0_i32_0, %c0_i32_1 : i32, i32, i32
  }
  func.func @transform_11(%arg0: i32) -> (i32, i32, i32, i32) {
    %c0_i32 = arith.constant 0 : i32
    %c0_i32_0 = arith.constant 0 : i32
    %c0_i32_1 = arith.constant 0 : i32
    %c0_i32_2 = arith.constant 0 : i32
    %c0_i32_3 = arith.constant 0 : i32
    return %c0_i32, %c0_i32_0, %c0_i32_1, %c0_i32_2 : i32, i32, i32, i32
  }
  func.func @transform_12(%arg0: i32) -> (i32, i32, i32) {
    %c0_i32 = arith.constant 0 : i32
    %c0_i32_0 = arith.constant 0 : i32
    %c0_i32_1 = arith.constant 0 : i32
    %c0_i32_2 = arith.constant 0 : i32
    return %c0_i32, %c0_i32_0, %c0_i32_1 : i32, i32, i32
  }
  func.func @transform_13(%arg0: i32) -> (i32, i32) {
    %c0_i32 = arith.constant 0 : i32
    %c0_i32_0 = arith.constant 0 : i32
    %c0_i32_1 = arith.constant 0 : i32
    return %c0_i32, %c0_i32_0 : i32, i32
  }
  func.func @transform_14(%arg0: i32) -> (i32, i32, i32) {
    %c0_i32 = arith.constant 0 : i32
    %c0_i32_0 = arith.constant 0 : i32
    %c0_i32_1 = arith.constant 0 : i32
    %c0_i32_2 = arith.constant 0 : i32
    return %c0_i32, %c0_i32_0, %c0_i32_1 : i32, i32, i32
  }
  func.func @transform_15(%arg0: i32) -> (i32, i32) {
    %c0_i32 = arith.constant 0 : i32
    %c0_i32_0 = arith.constant 0 : i32
    %c0_i32_1 = arith.constant 0 : i32
    return %c0_i32, %c0_i32_0 : i32, i32
  }
  func.func @transform_16(%arg0: i32) -> (i32, i32) {
    %c0_i32 = arith.constant 0 : i32
    %c0_i32_0 = arith.constant 0 : i32
    %c0_i32_1 = arith.constant 0 : i32
    return %c0_i32, %c0_i32_0 : i32, i32
  }
  func.func @transform_17(%arg0: i32) -> (i32, i32) {
    %c0_i32 = arith.constant 0 : i32
    %c0_i32_0 = arith.constant 0 : i32
    %c0_i32_1 = arith.constant 0 : i32
    return %c0_i32, %c0_i32_0 : i32, i32
  }
  func.func @transform_18(%arg0: i32) -> (i32, i32) {
    %c0_i32 = arith.constant 0 : i32
    %c0_i32_0 = arith.constant 0 : i32
    %c0_i32_1 = arith.constant 0 : i32
    return %c0_i32, %c0_i32_0 : i32, i32
  }
  func.func @transform_19(%arg0: i32) -> (i32, i32) {
    %c0_i32 = arith.constant 0 : i32
    %c0_i32_0 = arith.constant 0 : i32
    %c0_i32_1 = arith.constant 0 : i32
    return %c0_i32, %c0_i32_0 : i32, i32
  }
  func.func @transform_20(%arg0: i32) -> (i32, i32) {
    %c0_i32 = arith.constant 0 : i32
    %c0_i32_0 = arith.constant 0 : i32
    %c0_i32_1 = arith.constant 0 : i32
    return %c0_i32, %c0_i32_0 : i32, i32
  }
  func.func @transform_21(%arg0: i32) -> i32 {
    %c0_i32 = arith.constant 0 : i32
    %c0_i32_0 = arith.constant 0 : i32
    return %c0_i32 : i32
  }
  func.func @transform_22(%arg0: i32) -> (i32, i32, i32) {
    %c0_i32 = arith.constant 0 : i32
    %c0_i32_0 = arith.constant 0 : i32
    %c0_i32_1 = arith.constant 0 : i32
    return %arg0, %c0_i32, %c0_i32_0 : i32, i32, i32
  }
}

</mosaic_0001>

<bundles_post_ra>
// kernel: ahm_forward.1
= control target key start
LH: loop header
LB: loop body
LE: loop exit
PB: predicated region body
PF: predicated region fallthrough
CT: control target
= control target key end

     0   :  { %s26474_s0 = inlined_call_operand.vmem [shape: f32[2,9,32], index: 0, kind: input, shape index: {}]   ;;  %s26475_s1 = inlined_call_operand.vmem [shape: f32[1,9], index: 1, kind: input, shape index: {}]   ;;  %s26476_s2 = inlined_call_operand.vmem [shape: f32[9,9,9], index: 2, kind: input, shape index: {}]   ;;  %s26477_s3 = inlined_call_operand.vmem [shape: f32[6,2,2,32], index: 3, kind: input, shape index: {}]   ;;  %s26478_s4 = inlined_call_operand.vmem [shape: f32[6,2,32,16], index: 4, kind: input, shape index: {}]   ;;  %s26479_s5 = inlined_call_operand.vmem [shape: f32[6,2,16], index: 5, kind: input, shape index: {}]   ;;  %s26480_s6 = inlined_call_operand.vmem [shape: f32[6,18,16,16], index: 6, kind: input, shape index: {}]   ;;  %s26481_s7 = inlined_call_operand.vmem [shape: f32[6,2,16], index: 7, kind: input, shape index: {}]   ;;  %s26482_s8 = inlined_call_operand.vmem [shape: f32[6,2,16,32], index: 8, kind: input, shape index: {}]   ;;  %s26483_s9 = inlined_call_operand.vmem [shape: f32[6,2,32], index: 9, kind: input, shape index: {}]   ;;  %s26484_s10 = inlined_call_operand.vmem [shape: f32[6,64,32], index: 10, kind: input, shape index: {}]   ;;  %s26485_s11 = inlined_call_operand.vmem [shape: f32[6,9,32,32], index: 11, kind: input, shape index: {}]   ;;  %s26486_s12 = inlined_call_operand.vmem [shape: f32[6,32,2], index: 12, kind: input, shape index: {}]   ;;  %s26487_s13 = inlined_call_operand.vmem [shape: f32[6,2], index: 13, kind: input, shape index: {}]   ;;  %s26488_s14 = inlined_call_operand.vmem [shape: f32[6,2,32], index: 14, kind: input, shape index: {}]   ;;  %s26489_s15 = inlined_call_operand.vmem [shape: f32[6,32], index: 15, kind: input, shape index: {}]   ;;  %s26490_s16 = inlined_call_operand.vmem [shape: f32[64,32], index: 16, kind: input, shape index: {}]   ;;  %s26491_s17 = inlined_call_operand.vmem [shape: f32[32,2], index: 17, kind: input, shape index: {}]   ;;  %s26492_s18 = inlined_call_operand.vmem [shape: f32[1,2], index: 18, kind: input, shape index: {}]   ;;  %s26493_s19 = inlined_call_operand.vmem [shape: f32[2,32], index: 19, kind: input, shape index: {}]   ;;  %s26494_s20 = inlined_call_operand.vmem [shape: f32[1,32], index: 20, kind: input, shape index: {}]   ;;  %s26495_s21 = inlined_call_operand.vmem [shape: f32[24], index: 21, kind: input, shape index: {}]   ;;  %s26496_s22 = inlined_call_operand.vmem [shape: f32[2,9,32], index: 22, kind: output, shape index: {}]  }
   0x1   :  { %26504 = sst [smem:[#allocation6_spill]] %s26474_s0 }
   0x2   :  { %26505 = sst [smem:[#allocation7_spill]] %s26475_s1 }
   0x3   :  { %26506 = sst [smem:[#allocation8_spill]] %s26476_s2 }
   0x4   :  { %26507 = sst [smem:[#allocation9_spill]] %s26477_s3 }
   0x5   :  { %26508 = sst [smem:[#allocation10_spill]] %s26478_s4 }
   0x6   :  { %26509 = sst [smem:[#allocation11_spill]] %s26479_s5 }
   0x7   :  { %26510 = sst [smem:[#allocation12_spill]] %s26480_s6 }
   0x8   :  { %26511 = sst [smem:[#allocation13_spill]] %s26495_s21 }
   0x9   :  { %26512 = sst [smem:[#allocation14_spill]] %s26496_s22 }
   0xa   :  { %27 = vsyncpa [#allocation3], 0  ;;  %s23528_s3 = smov 0  }
   0xb LB: > { %26513 = sst [smem:[#allocation5_spill]] %s23406_s3  ;;  %s23534_s28 = sadd.s32 4294967295, %s23406_s3   ;;  %s23406_s3 = sphi %s23528_s3, %s33_s3  }
   0xc   : > { %p18636_p0 = scmp.ge.s32.totalorder %s23406_s3, 1  ;;  %p531_p1 = scmp.lt.s32.totalorder %s23406_s3, 3 }
   0xd   : > { %s26514_s21 = sld [smem:[#allocation13_spill]]  ;;  %p23298_p3 = scmp.eq.s32.totalorder %s23534_s28, 0 }
   0xe   : > { %p23541_p2 = pnand %p18636_p0, %p531_p1 }
  0x10   : > { %p23294_p4 = pneg %p23541_p2 }
  0x12   : > { %p23295_p5 = pnand %p23298_p3, %p23294_p4 }
  0x13   : > { %s604_s4 = sshll.u32 %s26514_s21, 4  ;;  %s605_s4 = int_to_ptr.vmem [resolvable:$true] %s604_s4 }
  0x14   : > { %s23381_s23 = scalar_lea.vmem %s605_s4, 16  ;;  %p23383_p7 = pneg %p23295_p5 }
  0x15   : > { %p23382_p6 = scmp.ne.s32.totalorder %s605_s4, %s23381_s23  ;;  %p23389_p10 = scmp.lt.s32.totalorder %s605_s4, %s605_s4 }
  0x16   : > { %p23390_p11 = scmp.lt.s32.totalorder %s23381_s23, %s23381_s23 }
  0x17   : > { %p23384_p8 = pnand %p23383_p7, %p23382_p6 }
  0x18   : > { %p23391_p12 = por %p23390_p11, %p23389_p10 }
  0x19   : > { %p23385_p9 = pneg %p23384_p8 }
  0x1b   : > { %p23392_p13 = pnand %p23391_p12, %p23385_p9 }
  0x1d   : > { %23395 = shalt.err (!%p23392_p13)
}
  0x1e   : > { %s23408_s1 = smov [#allocation2]   ;;  %625 = sbr.rel (%p23541_p2) target bundleno = 17012 (0x4274), region = 108 }
  0x1f   : > { %23297 = dma.vmem_to_smem (!%p23295_p5), %s605_s4, 16, %s23408_s1, [#allocation3]  }
  0x25   : > { %23401 = dma.done.wait (%p23298_p3), [#allocation3], 16  }
  0x26   : > { %23403 = vsyncadd (%p23298_p3), [#allocation3], 4294967280 }
  0x27   : > { %631 = sfence }
  0x28   : > { %s26516_s6 = sld [smem:[#allocation10_spill]]  ;;  %p688_p0 = scmp.lt.s32.totalorder %s23534_s28, 1  ;;  %vm725_vm0 = vcmask 261120   ;;  %v23409_v16 = vmov 0.0|0.0   ;;  %vm23410_vm1 = vmmov 0   ;;  %v23411_v17 = vmov 0.0  }
  0x29   : > { %s26517_s1 = sld [smem:[#allocation9_spill]]  ;;  %s26518_s25 = sld [smem:[#allocation6_spill]]  ;;  %22196 = vmatprep.subr.bf16.mxu0 %v23409_v16  ;;  %20411 = vmatprep.mubr.msk.f32.mxu0 %vm23410_vm1, %v23411_v17  ;;  %vm815_vm2 = vcmask 1040384   ;;  %vm23412_vm3 = vmmov 1   ;;  %vm811_vm5 = vcmask 72704   ;;  %vm970_vm6 = vcmask 130048  }
  0x2a   : > { %s26529_s28 = smov (!%p688_p0, %s23534_s28), 1  ;;  %s26519_s0 = sld [smem:[#allocation11_spill]]  ;;  %vm23605_vm4 = vmpackc.low %vm815_vm2, %vm23412_vm3  ;;  %vm3981_vm7 = vcmask 253952   ;;  %vm4069_vm8 = vcmask 1041408   ;;  %vm4065_vm9 = vcmask 15360   ;;  %v19428_v25 = vld [vmem:[%s26485_s11 + $0x5b0] sm:$0xff] }
  0x2b   : > { %s26502_s4 = sshll.u32 %s26529_s28, 4  ;;  %s26522_s24 = sld [smem:[#allocation8_spill]] }
  0x2c   : > { %s26523_s30 = sld [smem:[#allocation12_spill]]  ;;  %s2267_s23 = sld [smem:[#allocation2]] }
  0x2d   : > { %s18855_s5 = sld [smem:[#allocation2 + $0x2]]  ;;  %s18856_s21 = sld [smem:[#allocation2 + $0x3]] }
  0x2e   : > { %v716_v0 = vld [vmem:[%s26516_s6] sm:$0xff]  ;;  %v717_v1 = vld [vmem:[%s26516_s6 + $0x8] sm:$0xff]  ;;  %v718_v2 = vld [vmem:[%s26516_s6 + $0x10] sm:$0xff]  ;;  %s26524_s3 = sld [smem:[#allocation7_spill]]  ;;  %s18952_s2 = sld [smem:[#allocation2 + $0x9]] }
  0x2f   : > { %v22174_v3 = vpack.c.bf16 %v717_v1, %v716_v0  ;;  %v719_v4 = vld [vmem:[%s26516_s6 + $0x18] sm:$0xff]  ;;  %v18645_v6 = vld [vmem:[%s26517_s1] ss:$0 sm:$0xff]  ;;  %s23581_s26 = scalar_lea.vmem %s26518_s25, %s26502_s4  ;;  %v18646_v9 = vld [vmem:[%s26517_s1 + $0x1] ss:$0 sm:$0xff]  ;;  %s18769_s4 = sld [smem:[#allocation2 + $0x1]] }
  0x30   : > { %v22178_v5 = vpack.c.bf16 %v719_v4, %v718_v2  ;;  %v23584_v7 = vld [vmem:[%s23581_s26] sm:$0xff]  ;;  %v23587_v8 = vld [vmem:[%s23581_s26 + $0x8] sm:$0x1]  ;;  %s18935_s27 = sld [smem:[#allocation2 + $0x8]]  ;;  %s19012_s25 = sld [smem:[#allocation2 + $0xd]] }
  0x31   : > { %22175 = vmatprep.subr.bf16.mxu1 %v22174_v3  ;;  %v705_v10 = vmul.f32 %v18645_v6, %v23584_v7  ;;  %v706_v11 = vmul.f32 %v18645_v6, %v23587_v8  ;;  %v18647_v18 = vld [vmem:[%s26519_s0] ss:$0 sm:$0xff]  ;;  %v23636_v29 = vld [vmem:[%s26522_s24 + $0x10] sm:$0xff]  ;;  %s19401_s22 = sld [smem:[#allocation2 + $0x15]]  ;;  %s19505_s29 = sld [smem:[#allocation2 + $0x17]] }
  0x32   : > { %22177 = vmatpush3.bf16.msra.mxu1 %v22174_v3  ;;  %v23616_v27 = vld [vmem:[%s26522_s24] sm:$0xff]  ;;  %v23641_v30 = vld [vmem:[%s26522_s24 + $0x30] sm:$0xff]  ;;  %v18657_v37 = vld [vmem:[%s26523_s30 + $0x18] sm:$0xff] }
  0x33   : > { %22179 = vmatprep.subr.bf16.mxu1 %v22178_v5  ;;  %v712_v12 = vadd.f32 %v18646_v9, %v705_v10  ;;  %v713_v13 = vadd.f32 %v18646_v9, %v706_v11  ;;  %v23621_v28 = vld [vmem:[%s26522_s24 + $0x20] sm:$0xff]  ;;  %v23674_v32 = vld [vmem:[%s26522_s24 + $0x50] sm:$0xff]  ;;  %v890_v40 = vld [vmem:[%s26523_s30 + $0x8] sm:$0xff] }
  0x34   : > { %v23660_v31 = vld [vmem:[%s26522_s24 + $0x40] sm:$0xff]  ;;  %v23698_v34 = vld [vmem:[%s26522_s24 + $0x70] sm:$0xff]  ;;  %v18665_v47 = vld [vmem:[%s26523_s30 + $0x28] sm:$0xff] }
  0x35   : > { %v714_v14 = vmax.f32 %v712_v12, 0.0  ;;  %v715_v15 = vmax.f32 %v713_v13, 0.0  ;;  %v23686_v33 = vld [vmem:[%s26522_s24 + $0x60] sm:$0xff]  ;;  %v18656_v36 = vld [vmem:[%s26523_s30 + $0x10] sm:$0xff]  ;;  %v18672_v54 = vld [vmem:[%s26523_s30 + $0x38] sm:$0xff] }
  0x36   : > { %22181 = vmatpush3.bf16.msra.mxu1 %v22178_v5  ;;  %v23710_v35 = vld [vmem:[%s26522_s24 + $0x80] sm:$0xff]  ;;  %v22191_v38 = vpack.c.bf16 %v18657_v37, %v18656_v36  ;;  %v18671_v53 = vld [vmem:[%s26523_s30 + $0x30] sm:$0xff]  ;;  %v18679_v59 = vld [vmem:[%s26523_s30 + $0x48] sm:$0xff] }
  0x37   : > { %20376 = vmatprep.mubr.msk.f32.mxu1 %vm725_vm0, %v714_v14  ;;  %22182 = vmatprep.subr.bf16.mxu1 %v23409_v16  ;;  %v889_v39 = vld [vmem:[%s26523_s30] sm:$0xff]  ;;  %v22208_v57 = vpack.c.bf16 %v18672_v54, %v18671_v53  ;;  %v18685_v63 = vld [vmem:[%s26523_s30 + $0x50] sm:$0xff]  ;;  %v18686_v0 = vld [vmem:[%s26523_s30 + $0x58] sm:$0xff] }
  0x38   : > { %v22194_v45 = vpack.c.bf16 %v890_v40, %v889_v39  ;;  %v18664_v46 = vld [vmem:[%s26523_s30 + $0x20] sm:$0xff]  ;;  %v22222_v3 = vpack.c.bf16 %v18686_v0, %v18685_v63  ;;  %v18693_v5 = vld [vmem:[%s26523_s30 + $0x68] sm:$0xff]  ;;  %v18699_v11 = vld [vmem:[%s26523_s30 + $0x70] sm:$0xff] }
  0x39   : > { %20377 = vmatmul.mubr.msk.f32.vlgmr.msra.gmra.mrb[0].mxu1 %vm725_vm0, %v715_v15  ;;  %v22201_v52 = vpack.c.bf16 %v18665_v47, %v18664_v46  ;;  %v18678_v58 = vld [vmem:[%s26523_s30 + $0x40] sm:$0xff]  ;;  %v18700_v12 = vld [vmem:[%s26523_s30 + $0x78] sm:$0xff]  ;;  %v18715_v0 = vld [vmem:[%s26516_s6 + $0x28] sm:$0xff] }
  0x3a   : > { %20383 = vmatprep.mubr.msk.f32.mxu1 %vm23410_vm1, %v23411_v17  ;;  %v22215_v62 = vpack.c.bf16 %v18679_v59, %v18678_v58  ;;  %v18692_v4 = vld [vmem:[%s26523_s30 + $0x60] sm:$0xff]  ;;  %v22236_v15 = vpack.c.bf16 %v18700_v12, %v18699_v11 }
  0x3b   : > { %v22229_v10 = vpack.c.bf16 %v18693_v5, %v18692_v4  ;;  %v2188_v58 = vld [vmem:[%s26481_s7] sm:$0x1]  ;;  %v2271_v5 = vlaneseq }
  0x3c   : > { %v18714_v63 = vld [vmem:[%s26516_s6 + $0x20] sm:$0xff] }
 0x10c   : > { %v20378_v19 = vpop.f32.mrb[0].mxu1 }
 0x10d   : > { %v804_v20 = vadd.f32 %v20378_v19, %v18647_v18  ;;  %v798_v21 = vpop.f32.mrb[1].mxu1  ;;  %v18707_v19 = vld [vmem:[%s26523_s30 + $0x88] sm:$0xff] }
 0x10e   : > { %v799_v22 = vadd.f32 %v18647_v18, %v798_v21  ;;  %v18706_v18 = vld [vmem:[%s26523_s30 + $0x80] sm:$0xff] }
 0x10f   : > { %v808_v23 = vmax.f32 %v804_v20, 0.0  ;;  %v22243_v20 = vpack.c.bf16 %v18707_v19, %v18706_v18  ;;  %v2191_v21 = vld [vmem:[%s26482_s8] sm:$0xff] }
 0x110   : > { %v807_v24 = vmax.f32 %v799_v22, 0.0  ;;  %v2192_v22 = vld [vmem:[%s26482_s8 + $0x8] sm:$0xff] }
 0x112   : > { %v22183_v26 = vpack.c.bf16 %v808_v23, %v807_v24  ;;  %v22246_v23 = vpack.c.bf16 %v2192_v22, %v2191_v21 }
 0x114   : > { %22185 = vmatpush3.bf16.msk.msra.mxu1 %vm23605_vm4, %v22183_v26  ;;  %22199 = vmatpush3.bf16.msk.msra.mxu0 %vm23605_vm4, %v22183_v26 }
 0x115   : > { %22186 = vmatprep.subr.bf16.mxu1 %v23409_v16  ;;  %22203 = vmatprep.subr.bf16.mxu0 %v23409_v16 }
 0x117   : > { %20384 = vmatmul.mubr.msk.f32.vlgmr.msra.gmra.mrb[2].mxu1 %vm811_vm5, %v23616_v27  ;;  %20412 = vmatmul.mubr.msk.f32.vlgmr.msra.gmra.mrb[0].mxu0 %vm811_vm5, %v23621_v28 }
 0x118   : > { %22189 = vmatpush3.bf16.msk.msra.mxu1 %vm23605_vm4, %v22183_v26  ;;  %22206 = vmatpush3.bf16.msk.msra.mxu0 %vm23605_vm4, %v22183_v26 }
 0x119   : > { %20390 = vmatprep.mubr.msk.f32.mxu1 %vm23410_vm1, %v23411_v17  ;;  %20425 = vmatprep.mubr.msk.f32.mxu0 %vm23410_vm1, %v23411_v17 }
 0x11a   : > { %22210 = vmatprep.subr.bf16.mxu0 %v23409_v16  ;;  %22190 = vmatprep.subr.bf16.mxu1 %v23409_v16 }
 0x11b   : > { %20391 = vmatmul.mubr.msk.f32.vlgmr.msra.gmra.mrb[4].mxu1 %vm811_vm5, %v23636_v29  ;;  %20426 = vmatmul.mubr.msk.f32.vlgmr.msra.gmra.mrb[2].mxu0 %vm811_vm5, %v23641_v30 }
 0x11c   : > { %22213 = vmatpush3.bf16.msk.msra.mxu0 %vm23605_vm4, %v22183_v26  ;;  %20439 = vmatprep.mubr.msk.f32.mxu0 %vm23410_vm1, %v23411_v17 }
 0x11d   : > { %22217 = vmatprep.subr.bf16.mxu0 %v23409_v16  ;;  %20397 = vmatprep.mubr.msk.f32.mxu1 %vm23410_vm1, %v23411_v17 }
 0x11e   : > { %22192 = vmatpush3.bf16.msra.mxu1 %v22191_v38 }
 0x11f   : > { %20440 = vmatmul.mubr.msk.f32.vlgmr.msra.gmra.mrb[4].mxu0 %vm811_vm5, %v23660_v31  ;;  %22193 = vmatprep.subr.bf16.mxu1 %v23409_v16 }
 0x120   : > { %22220 = vmatpush3.bf16.msk.msra.mxu0 %vm23605_vm4, %v22183_v26  ;;  %20453 = vmatprep.mubr.msk.f32.mxu0 %vm23410_vm1, %v23411_v17 }
 0x121   : > { %22224 = vmatprep.subr.bf16.mxu0 %v23409_v16 }
 0x123   : > { %20454 = vmatmul.mubr.msk.f32.vlgmr.msra.gmra.mrb[6].mxu0 %vm811_vm5, %v23674_v32 }
 0x124   : > { %22227 = vmatpush3.bf16.msk.msra.mxu0 %vm23605_vm4, %v22183_v26  ;;  %20467 = vmatprep.mubr.msk.f32.mxu0 %vm23410_vm1, %v23411_v17 }
 0x125   : > { %22231 = vmatprep.subr.bf16.mxu0 %v23409_v16 }
 0x127   : > { %20468 = vmatmul.mubr.msk.f32.vlgmr.msra.gmra.mrb[8].mxu0 %vm811_vm5, %v23686_v33 }
 0x128   : > { %22234 = vmatpush3.bf16.msk.msra.mxu0 %vm23605_vm4, %v22183_v26  ;;  %20481 = vmatprep.mubr.msk.f32.mxu0 %vm23410_vm1, %v23411_v17 }
 0x129   : > { %22238 = vmatprep.subr.bf16.mxu0 %v23409_v16 }
 0x12b   : > { %20482 = vmatmul.mubr.msk.f32.vlgmr.msra.gmra.mrb[10].mxu0 %vm811_vm5, %v23698_v34 }
 0x12c   : > { %22241 = vmatpush3.bf16.msk.msra.mxu0 %vm23605_vm4, %v22183_v26  ;;  %20495 = vmatprep.mubr.msk.f32.mxu0 %vm23410_vm1, %v23411_v17 }
 0x12d   : > { %22245 = vmatprep.subr.bf16.mxu0 %v23409_v16 }
 0x12f   : > { %20496 = vmatmul.mubr.msk.f32.vlgmr.msra.gmra.mrb[12].mxu0 %vm811_vm5, %v23710_v35 }
 0x130   : > { %20509 = vmatprep.mubr.msk.f32.mxu0 %vm23410_vm1, %v23411_v17  ;;  %22247 = vmatpush3.bf16.msra.mxu0 %v22246_v23  ;;  %v18713_v23 = vld [vmem:[%s26517_s1 + $0x3] ss:$0 sm:$0xff] }
 0x131   : > { %22256 = vmatprep.subr.bf16.mxu0 %v23409_v16 }
 0x1ea   : > { %v885_v41 = vpop.f32.mrb[2].mxu1  ;;  %v1189_v42 = vpop.f32.mrb[0].mxu0 }
 0x1eb   : > { %v20385_v43 = vpop.f32.mrb[3].mxu1  ;;  %v20413_v44 = vpop.f32.mrb[1].mxu0 }
 0x1ee   : > { %v963_v48 = vpop.f32.mrb[4].mxu1  ;;  %v1342_v49 = vpop.f32.mrb[2].mxu0 }
 0x1ef   : > { %v20392_v50 = vpop.f32.mrb[5].mxu1  ;;  %20398 = vmatmul.mubr.msk.f32.vlgmr.msra.gmra.mrb[6].mxu1 %vm970_vm6, %v963_v48  ;;  %v20427_v51 = vpop.f32.mrb[3].mxu0 }
 0x1f0   : > { %22195 = vmatpush3.bf16.msra.mxu1 %v22194_v45  ;;  %20404 = vmatprep.mubr.msk.f32.mxu1 %vm23410_vm1, %v23411_v17 }
 0x1f1   : > { %22200 = vmatprep.subr.bf16.mxu1 %v23409_v16 }
 0x1f2   : > { %v1495_v55 = vpop.f32.mrb[4].mxu0 }
 0x1f3   : > { %20405 = vmatmul.mubr.msk.f32.vlgmr.msra.gmra.mrb[8].mxu1 %vm970_vm6, %v885_v41  ;;  %v20441_v56 = vpop.f32.mrb[5].mxu0 }
 0x1f4   : > { %22202 = vmatpush3.bf16.msra.mxu1 %v22201_v52  ;;  %20418 = vmatprep.mubr.msk.f32.mxu1 %vm23410_vm1, %v23411_v17 }
 0x1f5   : > { %22207 = vmatprep.subr.bf16.mxu1 %v23409_v16 }
 0x1f6   : > { %v1648_v60 = vpop.f32.mrb[6].mxu0 }
 0x1f7   : > { %20419 = vmatmul.mubr.msk.f32.vlgmr.msra.gmra.mrb[10].mxu1 %vm970_vm6, %v1189_v42  ;;  %v20455_v61 = vpop.f32.mrb[7].mxu0 }
 0x1f8   : > { %22209 = vmatpush3.bf16.msra.mxu1 %v22208_v57  ;;  %20432 = vmatprep.mubr.msk.f32.mxu1 %vm23410_vm1, %v23411_v17 }
 0x1f9   : > { %22214 = vmatprep.subr.bf16.mxu1 %v23409_v16 }
 0x1fa   : > { %v1801_v1 = vpop.f32.mrb[8].mxu0 }
 0x1fb   : > { %20433 = vmatmul.mubr.msk.f32.vlgmr.msra.gmra.mrb[12].mxu1 %vm970_vm6, %v1342_v49  ;;  %v20469_v2 = vpop.f32.mrb[9].mxu0 }
 0x1fc   : > { %22216 = vmatpush3.bf16.msra.mxu1 %v22215_v62  ;;  %20446 = vmatprep.mubr.msk.f32.mxu1 %vm23410_vm1, %v23411_v17  ;;  %v18716_v2 = vld [vmem:[%s26516_s6 + $0x30] sm:$0xff] }
 0x1fd   : > { %22221 = vmatprep.subr.bf16.mxu1 %v23409_v16 }
 0x1fe   : > { %v1954_v6 = vpop.f32.mrb[10].mxu0 }
 0x1ff   : > { %20447 = vmatmul.mubr.msk.f32.vlgmr.msra.gmra.mrb[14].mxu1 %vm970_vm6, %v1495_v55  ;;  %v20483_v9 = vpop.f32.mrb[11].mxu0 }
 0x200   : > { %22223 = vmatpush3.bf16.msra.mxu1 %v22222_v3  ;;  %20460 = vmatprep.mubr.msk.f32.mxu1 %vm23410_vm1, %v23411_v17  ;;  %v18717_v3 = vld [vmem:[%s26516_s6 + $0x38] sm:$0xff]  ;;  %v2193_v9 = vld [vmem:[%s26483_s9] sm:$0x1] }
 0x201   : > { %22228 = vmatprep.subr.bf16.mxu1 %v23409_v16  ;;  %v22252_v4 = vpack.c.bf16 %v18717_v3, %v18716_v2  ;;  %v18743_v3 = vld [vmem:[%s26523_s30 + $0xd0] sm:$0xff] }
 0x202   : > { %v2107_v13 = vpop.f32.mrb[12].mxu0 }
 0x203   : > { %20461 = vmatmul.mubr.msk.f32.vlgmr.msra.gmra.mrb[16].mxu1 %vm970_vm6, %v1648_v60  ;;  %v20497_v14 = vpop.f32.mrb[13].mxu0 }
 0x204   : > { %22230 = vmatpush3.bf16.msra.mxu1 %v22229_v10  ;;  %20474 = vmatprep.mubr.msk.f32.mxu1 %vm23410_vm1, %v23411_v17  ;;  %v2268_v10 = vstv %s2267_s23  ;;  %s26525_s23 = sshll.u32 %s26529_s28, 4 }
 0x205   : > { %22235 = vmatprep.subr.bf16.mxu1 %v23409_v16  ;;  %v2269_v14 = vmul.f32 %v2268_v10, %v23584_v7 }
 0x207   : > { %20475 = vmatmul.mubr.msk.f32.vlgmr.msra.gmra.mrb[18].mxu1 %vm970_vm6, %v1801_v1  ;;  %v22248_v1 = vpack.c.bf16 %v18715_v0, %v18714_v63 }
 0x208   : > { %22237 = vmatpush3.bf16.msra.mxu1 %v22236_v15  ;;  %20488 = vmatprep.mubr.msk.f32.mxu1 %vm23410_vm1, %v23411_v17  ;;  %v2270_v15 = vmul.f32 %v2268_v10, %v23587_v8  ;;  %v18748_v10 = vld [vmem:[%s26523_s30 + $0xe0] sm:$0xff] }
 0x209   : > { %22242 = vmatprep.subr.bf16.mxu1 %v23409_v16 }
 0x20b   : > { %20489 = vmatmul.mubr.msk.f32.vlgmr.msra.gmra.mrb[20].mxu1 %vm970_vm6, %v1954_v6  ;;  %v2272_v6 = vshrl.u32 %v2271_v5, 7 }
 0x20c   : > { %22244 = vmatpush3.bf16.msra.mxu1 %v22243_v20  ;;  %20502 = vmatprep.mubr.msk.f32.mxu1 %vm23410_vm1, %v23411_v17  ;;  %v18711_v20 = vld [vmem:[%s26517_s1 + $0x2] ss:$0 sm:$0xff] }
 0x20d   : > { %22249 = vmatprep.subr.bf16.mxu1 %v22248_v1  ;;  %v23833_v11 = vsub.s32 0, %v2272_v6 }
 0x20f   : > { %20503 = vmatmul.mubr.msk.f32.vlgmr.msra.gmra.mrb[22].mxu1 %vm970_vm6, %v2107_v13 }
 0x210   : > { %22251 = vmatpush3.bf16.msra.mxu1 %v22248_v1 }
 0x211   : > { %22253 = vmatprep.subr.bf16.mxu1 %v22252_v4 }
 0x214   : > { %22255 = vmatpush3.bf16.msra.mxu1 %v22252_v4  ;;  %v18744_v4 = vld [vmem:[%s26523_s30 + $0xd8] sm:$0xff] }
 0x215   : > { %22264 = vmatprep.subr.bf16.mxu1 %v23409_v16 }
 0x2c2   : > { %v1040_v24 = vpop.f32.mrb[6].mxu1 }
 0x2c3   : > { %v20399_v26 = vpop.f32.mrb[7].mxu1 }
 0x2c6   : > { %v1113_v36 = vpop.f32.mrb[8].mxu1 }
 0x2c7   : > { %v1114_v37 = vadd.f32 %v1113_v36, %v1040_v24  ;;  %v20406_v38 = vpop.f32.mrb[9].mxu1 }
 0x2c8   : > { %v18718_v38 = vld [vmem:[%s26519_s0 + $0x1] ss:$0 sm:$0xff] }
 0x2ca   : > { %v1265_v39 = vpop.f32.mrb[10].mxu1 }
 0x2cb   : > { %v1269_v40 = vadd.f32 %v1265_v39, %v1114_v37  ;;  %v20420_v41 = vpop.f32.mrb[11].mxu1 }
 0x2ce   : > { %v1418_v42 = vpop.f32.mrb[12].mxu1 }
 0x2cf   : > { %v1422_v43 = vadd.f32 %v1418_v42, %v1269_v40  ;;  %v20434_v44 = vpop.f32.mrb[13].mxu1 }
 0x2d2   : > { %v1571_v45 = vpop.f32.mrb[14].mxu1 }
 0x2d3   : > { %v1575_v46 = vadd.f32 %v1571_v45, %v1422_v43  ;;  %v20448_v47 = vpop.f32.mrb[15].mxu1 }
 0x2d4   : > { %v18724_v47 = vld [vmem:[%s26523_s30 + $0x98] sm:$0xff] }
 0x2d6   : > { %v1724_v48 = vpop.f32.mrb[16].mxu1 }
 0x2d7   : > { %v1728_v49 = vadd.f32 %v1724_v48, %v1575_v46  ;;  %v20462_v50 = vpop.f32.mrb[17].mxu1  ;;  %v18723_v46 = vld [vmem:[%s26523_s30 + $0x90] sm:$0xff] }
 0x2d8   : > { %v22268_v48 = vpack.c.bf16 %v18724_v47, %v18723_v46  ;;  %v18728_v50 = vld [vmem:[%s26523_s30 + $0xa8] sm:$0xff]  ;;  %v18766_v47 = vld [vmem:[%s26482_s8 + $0x10] sm:$0xff] }
 0x2da   : > { %v1877_v51 = vpop.f32.mrb[18].mxu1 }
 0x2db   : > { %v1881_v52 = vadd.f32 %v1877_v51, %v1728_v49  ;;  %v20476_v53 = vpop.f32.mrb[19].mxu1  ;;  %v18727_v49 = vld [vmem:[%s26523_s30 + $0xa0] sm:$0xff] }
 0x2dc   : > { %v22265_v51 = vpack.c.bf16 %v18728_v50, %v18727_v49  ;;  %v3805_v50 = vld [vmem:[%s26484_s10 + $0x20] sm:$0xff] }
 0x2de   : > { %v2030_v54 = vpop.f32.mrb[20].mxu1 }
 0x2df   : > { %v2034_v55 = vadd.f32 %v2030_v54, %v1881_v52  ;;  %v20490_v56 = vpop.f32.mrb[21].mxu1 }
 0x2e0   : > { %v18733_v56 = vld [vmem:[%s26523_s30 + $0xb0] sm:$0xff] }
 0x2e2   : > { %v2183_v57 = vpop.f32.mrb[22].mxu1 }
 0x2e3   : > { %v2187_v59 = vadd.f32 %v2183_v57, %v2034_v55  ;;  %v20504_v60 = vpop.f32.mrb[23].mxu1  ;;  %v18734_v57 = vld [vmem:[%s26523_s30 + $0xb8] sm:$0xff] }
 0x2e5   : > { %v2189_v61 = vadd.f32 %v2188_v58, %v2187_v59  ;;  %v22275_v58 = vpack.c.bf16 %v18734_v57, %v18733_v56 }
 0x2e7   : > { %v2190_v62 = vmax.f32 %v2189_v61, 0.0  ;;  %v18738_v61 = vld [vmem:[%s26523_s30 + $0xc0] sm:$0xff] }
 0x2e9   : > { %20510 = vmatmul.mubr.msk.f32.vlgmr.msra.gmra.mrb[14].mxu0 %vm970_vm6, %v2190_v62  ;;  %v18739_v62 = vld [vmem:[%s26523_s30 + $0xc8] sm:$0xff] }
 0x2ea   : > { %20527 = vmatprep.mubr.msk.f32.mxu0 %vm23410_vm1, %v23411_v17  ;;  %v22282_v2 = vpack.c.bf16 %v18739_v62, %v18738_v61 }
 0x3bc   : > { %v2263_v12 = vpop.f32.mrb[14].mxu0 }
 0x3bd   : > { %v2264_v13 = vadd.f32 %v2263_v12, %v2193_v9  ;;  %v20511_v18 = vpop.f32.mrb[15].mxu0  ;;  %v22289_v9 = vpack.c.bf16 %v18744_v4, %v18743_v3  ;;  %v18749_v12 = vld [vmem:[%s26523_s30 + $0xe8] sm:$0xff] }
 0x3be   : > { %v18753_v18 = vld [vmem:[%s26523_s30 + $0xf0] sm:$0xff] }
 0x3bf   : > { %v2274_v19 = vrot.slane %v2264_v13, %v23833_v11 }
 0x3c1   : > { %v23841_v21 = vadd.f32 %v2274_v19, %v2269_v14  ;;  %v23843_v22 = vadd.f32 %v2274_v19, %v2270_v15  ;;  %v22296_v15 = vpack.c.bf16 %v18749_v12, %v18748_v10  ;;  %v18754_v19 = vld [vmem:[%s26523_s30 + $0xf8] sm:$0xff] }
 0x3c3   : > { %v2283_v24 = vmul.f32 %v18711_v20, %v23841_v21  ;;  %v2284_v7 = vmul.f32 %v18711_v20, %v23843_v22 }
 0x3c5   : > { %v2290_v8 = vadd.f32 %v18713_v23, %v2283_v24  ;;  %v2291_v26 = vadd.f32 %v18713_v23, %v2284_v7  ;;  %v22303_v24 = vpack.c.bf16 %v18754_v19, %v18753_v18  ;;  %v18758_v7 = vld [vmem:[%s26523_s30 + $0x100] sm:$0xff] }
 0x3c7   : > { %v2292_v36 = vmax.f32 %v2290_v8, 0.0  ;;  %v2293_v37 = vmax.f32 %v2291_v26, 0.0  ;;  %v18759_v8 = vld [vmem:[%s26523_s30 + $0x108] sm:$0xff] }
 0x3c9   : > { %20520 = vmatprep.mubr.msk.f32.mxu1 %vm725_vm0, %v2292_v36 }
 0x3ca   : > { %20521 = vmatmul.mubr.msk.f32.vlgmr.msra.gmra.mrb[24].mxu1 %vm725_vm0, %v2293_v37  ;;  %v22310_v37 = vpack.c.bf16 %v18759_v8, %v18758_v7  ;;  %v3803_v8 = vld [vmem:[%s26484_s10 + $0x10] sm:$0xff] }
 0x3cb   : > { %20541 = vmatprep.mubr.msk.f32.mxu1 %vm23410_vm1, %v23411_v17  ;;  %22266 = vmatpush3.bf16.msra.mxu1 %v22265_v51  ;;  %v3806_v51 = vld [vmem:[%s26484_s10 + $0x28] sm:$0xff] }
 0x3cc   : > { %22270 = vmatprep.subr.bf16.mxu1 %v23409_v16 }
 0x49d   : > { %v20522_v39 = vpop.f32.mrb[24].mxu1 }
 0x49e   : > { %v2382_v40 = vadd.f32 %v20522_v39, %v18718_v38  ;;  %v2376_v41 = vpop.f32.mrb[25].mxu1  ;;  %v18764_v39 = vld [vmem:[%s26523_s30 + $0x118] sm:$0xff] }
 0x49f   : > { %v2377_v42 = vadd.f32 %v18718_v38, %v2376_v41  ;;  %v18763_v38 = vld [vmem:[%s26523_s30 + $0x110] sm:$0xff] }
 0x4a0   : > { %v2386_v43 = vmax.f32 %v2382_v40, 0.0 }
 0x4a1   : > { %v2385_v44 = vmax.f32 %v2377_v42, 0.0  ;;  %v22317_v42 = vpack.c.bf16 %v18764_v39, %v18763_v38  ;;  %v3792_v39 = vstv %s18769_s4  ;;  %s19338_s4 = sld [smem:[#allocation2 + $0x14]] }
 0x4a3   : > { %v22257_v45 = vpack.c.bf16 %v2386_v43, %v2385_v44 }
 0x4a5   : > { %22259 = vmatpush3.bf16.msk.msra.mxu0 %vm23605_vm4, %v22257_v45 }
 0x4a6   : > { %22260 = vmatprep.subr.bf16.mxu0 %v23409_v16 }
 0x4a8   : > { %20528 = vmatmul.mubr.msk.f32.vlgmr.msra.gmra.mrb[16].mxu0 %vm811_vm5, %v23616_v27 }
 0x4a9   : > { %22263 = vmatpush3.bf16.msk.msra.mxu0 %vm23605_vm4, %v22257_v45  ;;  %20534 = vmatprep.mubr.msk.f32.mxu0 %vm23410_vm1, %v23411_v17 }
 0x4aa   : > { %22267 = vmatprep.subr.bf16.mxu0 %v23409_v16 }
 0x4ac   : > { %20535 = vmatmul.mubr.msk.f32.vlgmr.msra.gmra.mrb[18].mxu0 %vm811_vm5, %v23636_v29 }
 0x4ad   : > { %22269 = vmatpush3.bf16.msra.mxu0 %v22268_v48  ;;  %20548 = vmatprep.mubr.msk.f32.mxu0 %vm23410_vm1, %v23411_v17  ;;  %v18767_v48 = vld [vmem:[%s26482_s8 + $0x18] sm:$0xff] }
 0x4ae   : > { %22274 = vmatprep.subr.bf16.mxu0 %v23409_v16  ;;  %v22320_v49 = vpack.c.bf16 %v18767_v48, %v18766_v47 }
 0x57b   : > { %v2456_v52 = vpop.f32.mrb[16].mxu0 }
 0x57c   : > { %v20529_v53 = vpop.f32.mrb[17].mxu0  ;;  %20549 = vmatmul.mubr.msk.f32.vlgmr.msra.gmra.mrb[20].mxu0 %vm970_vm6, %v2456_v52  ;;  %v22322_v52 = vpack.c.bf16 %v3806_v51, %v3805_v50  ;;  %v3975_v50 = vld [vmem:[%s26486_s12 + $0x10] sm:$0xff] }
 0x57d   : > { %20562 = vmatprep.mubr.msk.f32.mxu0 %vm23410_vm1, %v23411_v17  ;;  %22276 = vmatpush3.bf16.msra.mxu0 %v22275_v58 }
 0x57e   : > { %22281 = vmatprep.subr.bf16.mxu0 %v23409_v16 }
 0x57f   : > { %v2529_v54 = vpop.f32.mrb[18].mxu0 }
 0x580   : > { %v20536_v55 = vpop.f32.mrb[19].mxu0  ;;  %20542 = vmatmul.mubr.msk.f32.vlgmr.msra.gmra.mrb[26].mxu1 %vm970_vm6, %v2529_v54 }
 0x581   : > { %22273 = vmatpush3.bf16.msk.msra.mxu1 %vm23605_vm4, %v22257_v45  ;;  %20555 = vmatprep.mubr.msk.f32.mxu1 %vm23410_vm1, %v23411_v17 }
 0x582   : > { %22277 = vmatprep.subr.bf16.mxu1 %v23409_v16 }
 0x584   : > { %20556 = vmatmul.mubr.msk.f32.vlgmr.msra.gmra.mrb[28].mxu1 %vm811_vm5, %v23621_v28 }
 0x585   : > { %22280 = vmatpush3.bf16.msk.msra.mxu1 %vm23605_vm4, %v22257_v45  ;;  %20569 = vmatprep.mubr.msk.f32.mxu1 %vm23410_vm1, %v23411_v17 }
 0x586   : > { %22284 = vmatprep.subr.bf16.mxu1 %v23409_v16 }
 0x588   : > { %20570 = vmatmul.mubr.msk.f32.vlgmr.msra.gmra.mrb[30].mxu1 %vm811_vm5, %v23641_v30 }
 0x589   : > { %22287 = vmatpush3.bf16.msk.msra.mxu1 %vm23605_vm4, %v22257_v45  ;;  %20583 = vmatprep.mubr.msk.f32.mxu1 %vm23410_vm1, %v23411_v17 }
 0x58a   : > { %22291 = vmatprep.subr.bf16.mxu1 %v23409_v16 }
 0x58c   : > { %20584 = vmatmul.mubr.msk.f32.vlgmr.msra.gmra.mrb[32].mxu1 %vm811_vm5, %v23660_v31 }
 0x58d   : > { %22294 = vmatpush3.bf16.msk.msra.mxu1 %vm23605_vm4, %v22257_v45  ;;  %20597 = vmatprep.mubr.msk.f32.mxu1 %vm23410_vm1, %v23411_v17 }
 0x58e   : > { %22298 = vmatprep.subr.bf16.mxu1 %v23409_v16 }
 0x590   : > { %20598 = vmatmul.mubr.msk.f32.vlgmr.msra.gmra.mrb[34].mxu1 %vm811_vm5, %v23674_v32 }
 0x591   : > { %22301 = vmatpush3.bf16.msk.msra.mxu1 %vm23605_vm4, %v22257_v45  ;;  %20611 = vmatprep.mubr.msk.f32.mxu1 %vm23410_vm1, %v23411_v17 }
 0x592   : > { %22305 = vmatprep.subr.bf16.mxu1 %v23409_v16 }
 0x594   : > { %20612 = vmatmul.mubr.msk.f32.vlgmr.msra.gmra.mrb[36].mxu1 %vm811_vm5, %v23686_v33 }
 0x595   : > { %22308 = vmatpush3.bf16.msk.msra.mxu1 %vm23605_vm4, %v22257_v45  ;;  %20625 = vmatprep.mubr.msk.f32.mxu1 %vm23410_vm1, %v23411_v17 }
 0x596   : > { %22312 = vmatprep.subr.bf16.mxu1 %v23409_v16 }
 0x598   : > { %20626 = vmatmul.mubr.msk.f32.vlgmr.msra.gmra.mrb[38].mxu1 %vm811_vm5, %v23698_v34 }
 0x599   : > { %22315 = vmatpush3.bf16.msk.msra.mxu1 %vm23605_vm4, %v22257_v45  ;;  %20639 = vmatprep.mubr.msk.f32.mxu1 %vm23410_vm1, %v23411_v17 }
 0x59a   : > { %22319 = vmatprep.subr.bf16.mxu1 %v23409_v16 }
 0x59c   : > { %20640 = vmatmul.mubr.msk.f32.vlgmr.msra.gmra.mrb[40].mxu1 %vm811_vm5, %v23710_v35 }
 0x59d   : > { %20653 = vmatprep.mubr.msk.f32.mxu1 %vm23410_vm1, %v23411_v17  ;;  %22321 = vmatpush3.bf16.msra.mxu1 %v22320_v49  ;;  %v3973_v49 = vld [vmem:[%s26486_s12] sm:$0xff] }
 0x59e   : > { %22323 = vmatprep.subr.bf16.mxu1 %v22322_v52 }
 0x64f   : > { %v2678_v59 = vpop.f32.mrb[20].mxu0 }
 0x650   : > { %v20550_v60 = vpop.f32.mrb[21].mxu0 }
 0x653   : > { %v2605_v63 = vpop.f32.mrb[26].mxu1 }
 0x654   : > { %v23953_v0 = vadd.f32 %v2678_v59, %v2605_v63  ;;  %v20543_v1 = vpop.f32.mrb[27].mxu1 }
 0x657   : > { %v2748_v5 = vpop.f32.mrb[28].mxu1 }
 0x658   : > { %v20557_v6 = vpop.f32.mrb[29].mxu1  ;;  %20563 = vmatmul.mubr.msk.f32.vlgmr.msra.gmra.mrb[22].mxu0 %vm970_vm6, %v2748_v5 }
 0x659   : > { %22283 = vmatpush3.bf16.msra.mxu0 %v22282_v2  ;;  %20576 = vmatprep.mubr.msk.f32.mxu0 %vm23410_vm1, %v23411_v17 }
 0x65a   : > { %22288 = vmatprep.subr.bf16.mxu0 %v23409_v16 }
 0x65b   : > { %v2895_v13 = vpop.f32.mrb[30].mxu1 }
 0x65c   : > { %v20571_v14 = vpop.f32.mrb[31].mxu1  ;;  %20577 = vmatmul.mubr.msk.f32.vlgmr.msra.gmra.mrb[24].mxu0 %vm970_vm6, %v2895_v13 }
 0x65d   : > { %22290 = vmatpush3.bf16.msra.mxu0 %v22289_v9  ;;  %20590 = vmatprep.mubr.msk.f32.mxu0 %vm23410_vm1, %v23411_v17  ;;  %v3807_v14 = vld [vmem:[%s26484_s10 + $0x30] sm:$0xff] }
 0x65e   : > { %22295 = vmatprep.subr.bf16.mxu0 %v23409_v16 }
 0x65f   : > { %v3042_v20 = vpop.f32.mrb[32].mxu1 }
 0x660   : > { %v20585_v23 = vpop.f32.mrb[33].mxu1  ;;  %20591 = vmatmul.mubr.msk.f32.vlgmr.msra.gmra.mrb[26].mxu0 %vm970_vm6, %v3042_v20 }
 0x661   : > { %22297 = vmatpush3.bf16.msra.mxu0 %v22296_v15  ;;  %20604 = vmatprep.mubr.msk.f32.mxu0 %vm23410_vm1, %v23411_v17  ;;  %v3808_v15 = vld [vmem:[%s26484_s10 + $0x38] sm:$0xff]  ;;  %v3801_v23 = vld [vmem:[%s26484_s10] sm:$0xff] }
 0x662   : > { %22302 = vmatprep.subr.bf16.mxu0 %v23409_v16  ;;  %v22326_v20 = vpack.c.bf16 %v3808_v15, %v3807_v14 }
 0x663   : > { %v3189_v26 = vpop.f32.mrb[34].mxu1 }
 0x664   : > { %v20599_v36 = vpop.f32.mrb[35].mxu1  ;;  %20605 = vmatmul.mubr.msk.f32.vlgmr.msra.gmra.mrb[28].mxu0 %vm970_vm6, %v3189_v26  ;;  %v3804_v26 = vld [vmem:[%s26484_s10 + $0x18] sm:$0xff] }
 0x665   : > { %22304 = vmatpush3.bf16.msra.mxu0 %v22303_v24  ;;  %20618 = vmatprep.mubr.msk.f32.mxu0 %vm23410_vm1, %v23411_v17  ;;  %v3802_v24 = vld [vmem:[%s26484_s10 + $0x8] sm:$0xff]  ;;  %v22334_v36 = vpack.c.bf16 %v3804_v26, %v3803_v8  ;;  %v18784_v8 = vld [vmem:[%s26485_s11 + $0x20] sm:$0xff] }
 0x666   : > { %22309 = vmatprep.subr.bf16.mxu0 %v23409_v16  ;;  %v22330_v7 = vpack.c.bf16 %v3802_v24, %v3801_v23 }
 0x667   : > { %v3336_v40 = vpop.f32.mrb[36].mxu1 }
 0x668   : > { %v20613_v41 = vpop.f32.mrb[37].mxu1  ;;  %20619 = vmatmul.mubr.msk.f32.vlgmr.msra.gmra.mrb[30].mxu0 %vm970_vm6, %v3336_v40 }
 0x669   : > { %22311 = vmatpush3.bf16.msra.mxu0 %v22310_v37  ;;  %20632 = vmatprep.mubr.msk.f32.mxu0 %vm23410_vm1, %v23411_v17  ;;  %v3717_v37 = vld [vmem:[%s26483_s9 + $0x1] sm:$0x1] }
 0x66a   : > { %22316 = vmatprep.subr.bf16.mxu0 %v23409_v16 }
 0x66b   : > { %v3483_v43 = vpop.f32.mrb[38].mxu1 }
 0x66c   : > { %v20627_v44 = vpop.f32.mrb[39].mxu1  ;;  %20633 = vmatmul.mubr.msk.f32.vlgmr.msra.gmra.mrb[32].mxu0 %vm970_vm6, %v3483_v43  ;;  %v3794_v43 = vmul.f32 %v3792_v39, %v23843_v22 }
 0x66d   : > { %22318 = vmatpush3.bf16.msra.mxu0 %v22317_v42  ;;  %20646 = vmatprep.mubr.msk.f32.mxu0 %vm23410_vm1, %v23411_v17  ;;  %v3793_v42 = vmul.f32 %v3792_v39, %v23841_v21  ;;  %v18786_v39 = vld [vmem:[%s26485_s11 + $0x30] sm:$0xff] }
 0x66e   : > { %22331 = vmatprep.subr.bf16.mxu0 %v22330_v7 }
 0x66f   : > { %v3630_v45 = vpop.f32.mrb[40].mxu1 }
 0x670   : > { %v20641_v46 = vpop.f32.mrb[41].mxu1  ;;  %20647 = vmatmul.mubr.msk.f32.vlgmr.msra.gmra.mrb[34].mxu0 %vm970_vm6, %v3630_v45 }
 0x671   : > { %22333 = vmatpush3.bf16.msra.mxu0 %v22330_v7 }
 0x672   : > { %22335 = vmatprep.subr.bf16.mxu0 %v22334_v36 }
 0x675   : > { %22337 = vmatpush3.bf16.msra.mxu0 %v22334_v36 }
 0x72b   : > { %v2824_v53 = vpop.f32.mrb[22].mxu0 }
 0x72c   : > { %v2828_v54 = vadd.f32 %v2824_v53, %v23953_v0  ;;  %v20564_v55 = vpop.f32.mrb[23].mxu0  ;;  %v3711_v0 = vld [vmem:[%s26481_s7 + $0x1] sm:$0x1] }
 0x72f   : > { %v2971_v56 = vpop.f32.mrb[24].mxu0 }
 0x730   : > { %v2975_v57 = vadd.f32 %v2971_v56, %v2828_v54  ;;  %v20578_v58 = vpop.f32.mrb[25].mxu0 }
 0x733   : > { %v3118_v59 = vpop.f32.mrb[26].mxu0 }
 0x734   : > { %v3122_v60 = vadd.f32 %v3118_v59, %v2975_v57  ;;  %v20592_v61 = vpop.f32.mrb[27].mxu0 }
 0x737   : > { %v3265_v62 = vpop.f32.mrb[28].mxu0 }
 0x738   : > { %v3269_v63 = vadd.f32 %v3265_v62, %v3122_v60  ;;  %v20606_v1 = vpop.f32.mrb[29].mxu0 }
 0x73b   : > { %v3412_v2 = vpop.f32.mrb[30].mxu0 }
 0x73c   : > { %v3416_v3 = vadd.f32 %v3412_v2, %v3269_v63  ;;  %v20620_v4 = vpop.f32.mrb[31].mxu0 }
 0x73f   : > { %v3559_v5 = vpop.f32.mrb[32].mxu0 }
 0x740   : > { %v3563_v6 = vadd.f32 %v3559_v5, %v3416_v3  ;;  %v20634_v9 = vpop.f32.mrb[33].mxu0  ;;  %v3978_v5 = vld [vmem:[%s26488_s14] sm:$0x3] }
 0x743   : > { %v3706_v10 = vpop.f32.mrb[34].mxu0 }
 0x744   : > { %v3710_v12 = vadd.f32 %v3706_v10, %v3563_v6  ;;  %v20648_v13 = vpop.f32.mrb[35].mxu0  ;;  %v3977_v6 = vld [vmem:[%s26487_s13] sm:$0x1] }
 0x745   : > { %v3979_v13 = vld [vmem:[%s26489_s15] sm:$0x1] }
 0x746   : > { %v3712_v18 = vadd.f32 %v3711_v0, %v3710_v12 }
 0x748   : > { %v3713_v19 = vmax.f32 %v3712_v18, 0.0 }
 0x74a   : > { %20654 = vmatmul.mubr.msk.f32.vlgmr.msra.gmra.mrb[42].mxu1 %vm970_vm6, %v3713_v19 }
 0x74b   : > { %22325 = vmatpush3.bf16.msra.mxu1 %v22322_v52  ;;  %20664 = vmatprep.mubr.msk.f32.mxu1 %vm725_vm0, %v23841_v21  ;;  %v3974_v21 = vld [vmem:[%s26486_s12 + $0x8] sm:$0xff] }
 0x74c   : > { %22327 = vmatprep.subr.bf16.mxu1 %v22326_v20 }
 0x74f   : > { %22329 = vmatpush3.bf16.msra.mxu1 %v22326_v20 }
 0x750   : > { %22338 = vmatprep.subr.bf16.mxu1 %v23409_v16 }
 0x752   : > { %20665 = vmatmul.mubr.msk.f32.vlgmr.msra.gmra.mrb[44].mxu1 %vm725_vm0, %v23843_v22  ;;  %v22339_v22 = vpack.c.bf16 %v3974_v21, %v3973_v49 }
 0x753   : > { %20686 = vmatprep.mubr.msk.f32.mxu1 %vm23410_vm1, %v23411_v17 }
 0x754   : > { %22340 = vmatpush3.bf16.msra.mxu1 %v22339_v22 }
 0x755   : > { %22341 = vmatprep.subr.bf16.mxu1 %v23409_v16 }
 0x81d   : > { %v3787_v38 = vpop.f32.mrb[42].mxu1 }
 0x81e   : > { %v3788_v40 = vadd.f32 %v3787_v38, %v3717_v37  ;;  %v20655_v41 = vpop.f32.mrb[43].mxu1 }
 0x81f   : > { %v18653_v41 = vld [vmem:[%s26522_s24 + $0x18] sm:$0x1] }
 0x820   : > { %v3798_v44 = vrot.slane %v3788_v40, %v23833_v11  ;;  %v18787_v40 = vld [vmem:[%s26485_s11 + $0x38] sm:$0xff] }
 0x822   : > { %v3799_v45 = vadd.f32 %v3798_v44, %v3793_v42  ;;  %v3800_v46 = vadd.f32 %v3798_v44, %v3794_v43  ;;  %v810_v42 = vld [vmem:[%s26522_s24 + $0x8] sm:$0x1]  ;;  %v22360_v43 = vpack.c.bf16 %v18787_v40, %v18786_v39  ;;  %v18831_v39 = vld [vmem:[%s26485_s11 + $0xc0] sm:$0xff] }
 0x823   : > { %v18661_v44 = vld [vmem:[%s26522_s24 + $0x28] sm:$0x1] }
 0x824   : > { %20675 = vmatprep.mubr.msk.f32.mxu0 %vm725_vm0, %v3799_v45  ;;  %v18682_v45 = vld [vmem:[%s26522_s24 + $0x58] sm:$0x1]  ;;  %v18832_v40 = vld [vmem:[%s26485_s11 + $0xc8] sm:$0xff] }
 0x825   : > { %v20666_v47 = vpop.f32.mrb[44].mxu1  ;;  %20676 = vmatmul.mubr.msk.f32.vlgmr.msra.gmra.mrb[36].mxu0 %vm725_vm0, %v3800_v46  ;;  %v4237_v46 = vld [vmem:[%s26485_s11 + $0x8] sm:$0xff] }
 0x826   : > { %v3881_v48 = vpop.f32.mrb[45].mxu1  ;;  %20705 = vmatprep.mubr.msk.f32.mxu0 %vm811_vm5, %v23636_v29  ;;  %v3976_v29 = vld [vmem:[%s26486_s12 + $0x18] sm:$0xff] }
 0x827   : > { %v22342_v51 = vpack.c.bf16 %v3976_v29, %v3975_v50 }
 0x829   : > { %22343 = vmatpush3.bf16.msra.mxu1 %v22342_v51  ;;  %v18795_v51 = vld [vmem:[%s26485_s11 + $0x40] sm:$0xff] }
 0x82a   : > { %20689 = vmatprep.subr.mxu1 %v23411_v17 }
 0x8f8   : > { %v20677_v52 = vpop.f32.mrb[36].mxu0 }
 0x8f9   : > { %v3968_v53 = vadd.f32 %v20677_v52, %v20666_v47  ;;  %v3962_v54 = vpop.f32.mrb[37].mxu0  ;;  %v4238_v47 = vld [vmem:[%s26485_s11 + $0x10] sm:$0xff]  ;;  %v18796_v52 = vld [vmem:[%s26485_s11 + $0x48] sm:$0xff] }
 0x8fa   : > { %v3963_v55 = vadd.f32 %v3962_v54, %v3881_v48  ;;  %v4239_v48 = vld [vmem:[%s26485_s11 + $0x18] sm:$0xff]  ;;  %v22378_v54 = vpack.c.bf16 %v18796_v52, %v18795_v51  ;;  %v23341_v51 = vld [vmem:[%s23581_s26 + $0x8] sm:$0x1] }
 0x8fb   : > { %v3972_v56 = vmax.f32 %v3968_v53, 0.0  ;;  %v22368_v50 = vpack.c.bf16 %v4239_v48, %v4238_v47  ;;  %v18851_v47 = vld [vmem:[%s26485_s11 + $0x110] sm:$0xff]  ;;  %v18852_v48 = vld [vmem:[%s26485_s11 + $0x118] sm:$0xff] }
 0x8fc   : > { %v3971_v57 = vmax.f32 %v3963_v55, 0.0 }
 0x8fd   : > { %v3982_v58 = vsel %vm3981_vm7, %v3972_v56, 0.0 }
 0x8fe   : > { %v3980_v59 = vsel %vm725_vm0, %v3971_v57, 0.0 }
 0x8ff   : > { %v3983_v60 = vadd.f32 %v3982_v58, %v3980_v59 }
 0x901   : > { %v3984_v61 = vrot.slane %v3983_v60, 4 }
 0x903   : > { %v3985_v62 = vadd.f32 %v3984_v61, %v3983_v60  ;;  %v18804_v61 = vld [vmem:[%s26485_s11 + $0x60] sm:$0xff] }
 0x905   : > { %v3986_v63 = vrot.slane %v3985_v62, 2 }
 0x907   : > { %v3987_v1 = vadd.f32 %v3986_v63, %v3985_v62  ;;  %v18805_v62 = vld [vmem:[%s26485_s11 + $0x68] sm:$0xff] }
 0x909   : > { %v3988_v2 = vrot.slane %v3987_v1, 1 }
 0x90b   : > { %v3989_v3 = vadd.f32 %v3988_v2, %v3987_v1  ;;  %v22392_v1 = vpack.c.bf16 %v18805_v62, %v18804_v61  ;;  %v5659_v62 = vld [vmem:[%s26524_s3] sm:$0x1]  ;;  %s18977_s3 = sld [smem:[#allocation2 + $0xa]] }
 0x90d   : > { %v3990_v4 = vmul.f32 0.11111111, %v3989_v3  ;;  %v18806_v3 = vld [vmem:[%s26485_s11 + $0x70] sm:$0xff] }
 0x90f   : > { %20687 = vmatmul.mubr.msk.f32.vlgmr.msra.gmra.mrb[46].mxu1 %vm725_vm0, %v3990_v4  ;;  %v18807_v4 = vld [vmem:[%s26485_s11 + $0x78] sm:$0xff] }
 0x910   : > { %20691 = vmatprep.mubr.msk.f32.mxu1 %vm23410_vm1, %v23411_v17  ;;  %20690 = vmatpush3.msk.msra.mxu1 %vm4069_vm8, %v3978_v5 }
 0x9e2   : > { %v4060_v9 = vpop.f32.mrb[46].mxu1 }
 0x9e3   : > { %v4061_v10 = vadd.f32 %v4060_v9, %v3977_v6  ;;  %v20688_v0 = vpop.f32.mrb[47].mxu1  ;;  %v22396_v6 = vpack.c.bf16 %v18807_v4, %v18806_v3  ;;  %v18863_v3 = vld [vmem:[%s26516_s6 + $0x50] sm:$0xff]  ;;  %v18864_v4 = vld [vmem:[%s26516_s6 + $0x58] sm:$0xff] }
 0x9e4   : > { %v18814_v0 = vld [vmem:[%s26485_s11 + $0x88] sm:$0xff] }
 0x9e5   : > { %v4064_v12 = vmax.f32 %v4061_v10, 0.0  ;;  %v18813_v10 = vld [vmem:[%s26485_s11 + $0x80] sm:$0xff] }
 0x9e7   : > { %20692 = vmatmul.mubr.msk.f32.vlgmr.msra.gmra.mrb[48].mxu1 %vm4065_vm9, %v4064_v12 }
 0x9e8   : > { %20698 = vmatprep.mubr.msk.f32.mxu1 %vm811_vm5, %v23616_v27  ;;  %v18785_v27 = vld [vmem:[%s26485_s11 + $0x28] sm:$0xff] }
 0x9e9   : > { %v22356_v38 = vpack.c.bf16 %v18785_v27, %v18784_v8 }
 0xaba   : > { %v4139_v14 = vpop.f32.mrb[48].mxu1 }
 0xabb   : > { %v4140_v15 = vadd.f32 %v4139_v14, %v3979_v13  ;;  %v20693_v18 = vpop.f32.mrb[49].mxu1  ;;  %v22406_v13 = vpack.c.bf16 %v18814_v0, %v18813_v10  ;;  %v18860_v10 = vld [vmem:[%s26517_s1 + $0x5] sm:$0x1] }
 0xabc   : > { %v18816_v18 = vld [vmem:[%s26485_s11 + $0x98] sm:$0xff] }
 0xabd   : > { %v18777_v19 = vmul.f32 -1.442695, %v4140_v15  ;;  %v18815_v15 = vld [vmem:[%s26485_s11 + $0x90] sm:$0xff] }
 0xabf   : > { %23313 = vpow2.f32 %v18777_v19 }
 0xac9   : > { %v23314_v20 = vpop.eup %23313 }
 0xaca   : > { %v4146_v23 = vadd.f32 1.0, %v23314_v20  ;;  %v22410_v20 = vpack.c.bf16 %v18816_v18, %v18815_v15  ;;  %v18867_v15 = vld [vmem:[%s26523_s30 + $0x160] sm:$0xff]  ;;  %v18868_v18 = vld [vmem:[%s26523_s30 + $0x168] sm:$0xff] }
 0xacc   : > { %23315 = vrcp.f32 %v4146_v23 }
 0xad6   : > { %v23316_v24 = vpop.eup %23315 }
 0xad7   : > { %v4152_v7 = vrot.slane %v23316_v24, %v23833_v11  ;;  %v18822_v24 = vld [vmem:[%s26485_s11 + $0xa0] sm:$0xff] }
 0xad9   : > { %v4153_v26 = vmul.f32 %v4152_v7, %v3971_v57  ;;  %v4154_v36 = vmul.f32 %v4152_v7, %v3972_v56  ;;  %v18797_v56 = vld [vmem:[%s26485_s11 + $0x50] sm:$0xff]  ;;  %v18798_v57 = vld [vmem:[%s26485_s11 + $0x58] sm:$0xff]  ;;  %v18823_v7 = vld [vmem:[%s26485_s11 + $0xa8] sm:$0xff] }
 0xada   : > { %v22382_v59 = vpack.c.bf16 %v18798_v57, %v18797_v56  ;;  %v22420_v27 = vpack.c.bf16 %v18823_v7, %v18822_v24 }
 0xadb   : > { %v22344_v37 = vpack.c.bf16 %v4154_v36, %v4153_v26  ;;  %v18824_v36 = vld [vmem:[%s26485_s11 + $0xb0] sm:$0xff] }
 0xadd   : > { %22346 = vmatprep.subr.msk.bf16.mxu1 %vm23605_vm4, %v22344_v37  ;;  %22352 = vmatprep.subr.msk.bf16.mxu0 %vm23605_vm4, %v22344_v37 }
 0xade   : > { %22349 = vmatpush3.bf16.msk.msra.mxu1 %vm23605_vm4, %v22344_v37  ;;  %22355 = vmatpush3.bf16.msk.msra.mxu0 %vm23605_vm4, %v22344_v37 }
 0xadf   : > { %22374 = vmatprep.subr.msk.bf16.mxu0 %vm23605_vm4, %v22344_v37  ;;  %22357 = vmatprep.subr.bf16.mxu1 %v22356_v38 }
 0xae1   : > { %20706 = vmatmul.mubr.msk.f32.vlgmr.msra.gmra.mrb[38].mxu0 %vm811_vm5, %v18653_v41  ;;  %20699 = vmatmul.mubr.msk.f32.vlgmr.msra.gmra.mrb[50].mxu1 %vm811_vm5, %v810_v42  ;;  %v22434_v41 = vpack.c.bf16 %v18832_v40, %v18831_v39  ;;  %v18833_v42 = vld [vmem:[%s26485_s11 + $0xd0] sm:$0xff] }
 0xae2   : > { %22377 = vmatpush3.bf16.msk.msra.mxu0 %vm23605_vm4, %v22344_v37  ;;  %20734 = vmatprep.mubr.msk.f32.mxu0 %vm811_vm5, %v23621_v28  ;;  %v18668_v28 = vld [vmem:[%s26522_s24 + $0x38] sm:$0x1] }
 0xae3   : > { %22388 = vmatprep.subr.msk.bf16.mxu0 %vm23605_vm4, %v22344_v37  ;;  %22359 = vmatpush3.bf16.msra.mxu1 %v22356_v38 }
 0xae4   : > { %22361 = vmatprep.subr.bf16.mxu1 %v22360_v43 }
 0xae5   : > { %20735 = vmatmul.mubr.msk.f32.vlgmr.msra.gmra.mrb[40].mxu0 %vm811_vm5, %v18661_v44 }
 0xae6   : > { %22391 = vmatpush3.bf16.msk.msra.mxu0 %vm23605_vm4, %v22344_v37  ;;  %20752 = vmatprep.mubr.msk.f32.mxu0 %vm811_vm5, %v23641_v30  ;;  %v18675_v30 = vld [vmem:[%s26522_s24 + $0x48] sm:$0x1] }
 0xae7   : > { %22402 = vmatprep.subr.msk.bf16.mxu0 %vm23605_vm4, %v22344_v37  ;;  %22363 = vmatpush3.bf16.msra.mxu1 %v22360_v43  ;;  %v18834_v43 = vld [vmem:[%s26485_s11 + $0xd8] sm:$0xff] }
 0xae8   : > { %v22438_v44 = vpack.c.bf16 %v18834_v43, %v18833_v42  ;;  %v18878_v42 = vld [vmem:[%s26516_s6 + $0x60] sm:$0xff]  ;;  %v18879_v43 = vld [vmem:[%s26516_s6 + $0x68] sm:$0xff] }
 0xae9   : > { %20753 = vmatmul.mubr.msk.f32.vlgmr.msra.gmra.mrb[42].mxu0 %vm811_vm5, %v18668_v28  ;;  %v18840_v28 = vld [vmem:[%s26485_s11 + $0xe0] sm:$0xff] }
 0xaea   : > { %22405 = vmatpush3.bf16.msk.msra.mxu0 %vm23605_vm4, %v22344_v37  ;;  %20770 = vmatprep.mubr.msk.f32.mxu0 %vm811_vm5, %v23660_v31  ;;  %v18689_v31 = vld [vmem:[%s26522_s24 + $0x68] sm:$0x1] }
 0xaeb   : > { %22416 = vmatprep.subr.msk.bf16.mxu0 %vm23605_vm4, %v22344_v37 }
 0xaed   : > { %20771 = vmatmul.mubr.msk.f32.vlgmr.msra.gmra.mrb[44].mxu0 %vm811_vm5, %v18675_v30  ;;  %v18841_v30 = vld [vmem:[%s26485_s11 + $0xe8] sm:$0xff] }
 0xaee   : > { %22419 = vmatpush3.bf16.msk.msra.mxu0 %vm23605_vm4, %v22344_v37  ;;  %20788 = vmatprep.mubr.msk.f32.mxu0 %vm811_vm5, %v23674_v32  ;;  %v18696_v32 = vld [vmem:[%s26522_s24 + $0x78] sm:$0x1] }
 0xaef   : > { %22430 = vmatprep.subr.msk.bf16.mxu0 %vm23605_vm4, %v22344_v37 }
 0xaf1   : > { %20789 = vmatmul.mubr.msk.f32.vlgmr.msra.gmra.mrb[46].mxu0 %vm811_vm5, %v18682_v45  ;;  %v22448_v45 = vpack.c.bf16 %v18841_v30, %v18840_v28  ;;  %v18880_v28 = vld [vmem:[%s26516_s6 + $0x70] sm:$0xff]  ;;  %v18881_v30 = vld [vmem:[%s26516_s6 + $0x78] sm:$0xff] }
 0xaf2   : > { %22433 = vmatpush3.bf16.msk.msra.mxu0 %vm23605_vm4, %v22344_v37  ;;  %20806 = vmatprep.mubr.msk.f32.mxu0 %vm811_vm5, %v23686_v33  ;;  %v18703_v33 = vld [vmem:[%s26522_s24 + $0x88] sm:$0x1] }
 0xaf3   : > { %22444 = vmatprep.subr.msk.bf16.mxu0 %vm23605_vm4, %v22344_v37 }
 0xaf5   : > { %20807 = vmatmul.mubr.msk.f32.vlgmr.msra.gmra.mrb[48].mxu0 %vm811_vm5, %v18689_v31  ;;  %v18842_v31 = vld [vmem:[%s26485_s11 + $0xf0] sm:$0xff] }
 0xaf6   : > { %22447 = vmatpush3.bf16.msk.msra.mxu0 %vm23605_vm4, %v22344_v37  ;;  %20824 = vmatprep.mubr.msk.f32.mxu0 %vm811_vm5, %v23698_v34  ;;  %v4236_v34 = vld [vmem:[%s26485_s11] sm:$0xff] }
 0xaf7   : > { %22458 = vmatprep.subr.msk.bf16.mxu0 %vm23605_vm4, %v22344_v37 }
 0xaf9   : > { %20825 = vmatmul.mubr.msk.f32.vlgmr.msra.gmra.mrb[50].mxu0 %vm811_vm5, %v18696_v32  ;;  %v18843_v32 = vld [vmem:[%s26485_s11 + $0xf8] sm:$0xff] }
 0xafa   : > { %22461 = vmatpush3.bf16.msk.msra.mxu0 %vm23605_vm4, %v22344_v37  ;;  %20842 = vmatprep.mubr.msk.f32.mxu0 %vm811_vm5, %v23710_v35  ;;  %v22364_v35 = vpack.c.bf16 %v4237_v46, %v4236_v34  ;;  %v18825_v37 = vld [vmem:[%s26485_s11 + $0xb8] sm:$0xff]  ;;  %v18849_v34 = vld [vmem:[%s26485_s11 + $0x100] sm:$0xff]  ;;  %v18850_v46 = vld [vmem:[%s26485_s11 + $0x108] sm:$0xff] }
 0xafb   : > { %22470 = vmatprep.subr.bf16.mxu0 %v23409_v16  ;;  %v22424_v38 = vpack.c.bf16 %v18825_v37, %v18824_v36  ;;  %v18869_v37 = vld [vmem:[%s26481_s7 + $0x2] sm:$0x1] }
 0xafc   : > { %22365 = vmatprep.subr.bf16.mxu1 %v22364_v35 }
 0xafd   : > { %20843 = vmatmul.mubr.msk.f32.vlgmr.msra.gmra.mrb[52].mxu0 %vm811_vm5, %v18703_v33  ;;  %v22452_v33 = vpack.c.bf16 %v18843_v32, %v18842_v31  ;;  %v18873_v31 = vld [vmem:[%s26483_s9 + $0x2] sm:$0x1] }
 0xafe   : > { %20860 = vmatprep.mubr.msk.f32.mxu0 %vm23410_vm1, %v23411_v17 }
 0xbb4   : > { %v20707_v49 = vpop.f32.mrb[38].mxu0  ;;  %v20700_v21 = vpop.f32.mrb[50].mxu1 }
 0xbb5   : > { %v4309_v22 = vpop.f32.mrb[39].mxu0  ;;  %v4227_v29 = vpop.f32.mrb[51].mxu1 }
 0xbb6   : > { %20716 = vmatprep.mubr.msk.f32.mxu1 %vm725_vm0, %v4309_v22 }
 0xbb7   : > { %20717 = vmatmul.mubr.msk.f32.vlgmr.msra.gmra.mrb[52].mxu1 %vm725_vm0, %v20707_v49  ;;  %v22466_v49 = vpack.c.bf16 %v18852_v48, %v18851_v47  ;;  %v18876_v47 = vld [vmem:[%s26517_s1 + $0x6] sm:$0x1] }
 0xbb8   : > { %22367 = vmatpush3.bf16.msra.mxu1 %v22364_v35  ;;  %20727 = vmatprep.mubr.msk.f32.mxu1 %vm725_vm0, %v4227_v29  ;;  %v20736_v53 = vpop.f32.mrb[40].mxu0  ;;  %v22462_v35 = vpack.c.bf16 %v18850_v46, %v18849_v34 }
 0xbb9   : > { %22369 = vmatprep.subr.bf16.mxu1 %v22368_v50  ;;  %v4554_v55 = vpop.f32.mrb[41].mxu0 }
 0xbbc   : > { %22371 = vmatpush3.bf16.msra.mxu1 %v22368_v50  ;;  %v20754_v58 = vpop.f32.mrb[42].mxu0  ;;  %v5654_v50 = vstv %s18856_s21  ;;  %s18875_s21 = sld [smem:[#allocation2 + $0x4]] }
 0xbbd   : > { %22379 = vmatprep.subr.bf16.mxu1 %v22378_v54  ;;  %v4720_v60 = vpop.f32.mrb[43].mxu0 }
 0xbbf   : > { %20728 = vmatmul.mubr.msk.f32.vlgmr.msra.gmra.mrb[52].mxu1 %vm725_vm0, %v20700_v21  ;;  %v5650_v21 = vstv %s18855_s5  ;;  %s18917_s5 = sld [smem:[#allocation2 + $0x6]] }
 0xbc0   : > { %22381 = vmatpush3.bf16.msra.mxu1 %v22378_v54  ;;  %20745 = vmatprep.mubr.msk.f32.mxu1 %vm725_vm0, %v4554_v55  ;;  %v20772_v63 = vpop.f32.mrb[44].mxu0  ;;  %v5652_v52 = vmul.f32 %v23341_v51, %v5650_v21  ;;  %v23342_v55 = vld [vmem:[%s23581_s26] sm:$0xff]  ;;  %v18885_v51 = vld [vmem:[%s26523_s30 + $0x1f8] sm:$0xff] }
 0xbc1   : > { %22383 = vmatprep.subr.bf16.mxu1 %v22382_v59  ;;  %v4886_v2 = vpop.f32.mrb[45].mxu0  ;;  %v5651_v56 = vmul.f32 %v23342_v55, %v5650_v21 }
 0xbc2   : > { %v5987_v32 = vstv %s18875_s21  ;;  %s18892_s21 = sld [smem:[#allocation2 + $0x5]] }
 0xbc4   : > { %22385 = vmatpush3.bf16.msra.mxu1 %v22382_v59  ;;  %v20790_v5 = vpop.f32.mrb[46].mxu0 }
 0xbc5   : > { %22393 = vmatprep.subr.bf16.mxu1 %v22392_v1  ;;  %v5052_v9 = vpop.f32.mrb[47].mxu0 }
 0xbc7   : > { %20746 = vmatmul.mubr.msk.f32.vlgmr.msra.gmra.mrb[52].mxu1 %vm725_vm0, %v20736_v53 }
 0xbc8   : > { %22395 = vmatpush3.bf16.msra.mxu1 %v22392_v1  ;;  %20763 = vmatprep.mubr.msk.f32.mxu1 %vm725_vm0, %v4720_v60  ;;  %v20808_v12 = vpop.f32.mrb[48].mxu0  ;;  %v18862_v1 = vld [vmem:[%s26516_s6 + $0x48] sm:$0xff] }
 0xbc9   : > { %22397 = vmatprep.subr.bf16.mxu1 %v22396_v6  ;;  %v5218_v14 = vpop.f32.mrb[49].mxu0 }
 0xbcc   : > { %22399 = vmatpush3.bf16.msra.mxu1 %v22396_v6  ;;  %v20826_v19 = vpop.f32.mrb[50].mxu0  ;;  %v18859_v6 = vld [vmem:[%s26517_s1 + $0x4] sm:$0x1] }
 0xbcd   : > { %22407 = vmatprep.subr.bf16.mxu1 %v22406_v13  ;;  %v5384_v23 = vpop.f32.mrb[51].mxu0 }
 0xbcf   : > { %20764 = vmatmul.mubr.msk.f32.vlgmr.msra.gmra.mrb[52].mxu1 %vm725_vm0, %v20754_v58 }
 0xbd0   : > { %22409 = vmatpush3.bf16.msra.mxu1 %v22406_v13  ;;  %20781 = vmatprep.mubr.msk.f32.mxu1 %vm725_vm0, %v4886_v2  ;;  %v20844_v8 = vpop.f32.mrb[52].mxu0 }
 0xbd1   : > { %22411 = vmatprep.subr.bf16.mxu1 %v22410_v20  ;;  %v5550_v26 = vpop.f32.mrb[53].mxu0 }
 0xbd4   : > { %22413 = vmatpush3.bf16.msra.mxu1 %v22410_v20  ;;  %v18865_v20 = vld [vmem:[%s26519_s0 + $0x2] sm:$0x1] }
 0xbd5   : > { %22421 = vmatprep.subr.bf16.mxu1 %v22420_v27 }
 0xbd7   : > { %20782 = vmatmul.mubr.msk.f32.vlgmr.msra.gmra.mrb[52].mxu1 %vm725_vm0, %v20772_v63  ;;  %v18861_v63 = vld [vmem:[%s26516_s6 + $0x40] sm:$0xff] }
 0xbd8   : > { %22423 = vmatpush3.bf16.msra.mxu1 %v22420_v27  ;;  %20799 = vmatprep.mubr.msk.f32.mxu1 %vm725_vm0, %v5052_v9  ;;  %v22475_v2 = vpack.c.bf16 %v18862_v1, %v18861_v63  ;;  %v18871_v27 = vld [vmem:[%s26482_s8 + $0x20] sm:$0xff] }
 0xbd9   : > { %22425 = vmatprep.subr.bf16.mxu1 %v22424_v38  ;;  %v18886_v63 = vld [vmem:[%s26481_s7 + $0x3] sm:$0x1] }
 0xbda   : > { %v18897_v1 = vld [vmem:[%s26484_s10 + $0x60] sm:$0xff] }
 0xbdc   : > { %22427 = vmatpush3.bf16.msra.mxu1 %v22424_v38 }
 0xbdd   : > { %22435 = vmatprep.subr.bf16.mxu1 %v22434_v41 }
 0xbdf   : > { %20800 = vmatmul.mubr.msk.f32.vlgmr.msra.gmra.mrb[52].mxu1 %vm725_vm0, %v20790_v5  ;;  %v22478_v5 = vpack.c.bf16 %v18864_v4, %v18863_v3 }
 0xbe0   : > { %22437 = vmatpush3.bf16.msra.mxu1 %v22434_v41  ;;  %20817 = vmatprep.mubr.msk.f32.mxu1 %vm725_vm0, %v5218_v14 }
 0xbe1   : > { %22439 = vmatprep.subr.bf16.mxu1 %v22438_v44 }
 0xbe4   : > { %22441 = vmatpush3.bf16.msra.mxu1 %v22438_v44  ;;  %v22487_v44 = vpack.c.bf16 %v18879_v43, %v18878_v42  ;;  %v18906_v42 = vld [vmem:[%s26486_s12 + $0x38] sm:$0xff] }
 0xbe5   : > { %22449 = vmatprep.subr.bf16.mxu1 %v22448_v45 }
 0xbe7   : > { %20818 = vmatmul.mubr.msk.f32.vlgmr.msra.gmra.mrb[52].mxu1 %vm725_vm0, %v20808_v12 }
 0xbe8   : > { %22451 = vmatpush3.bf16.msra.mxu1 %v22448_v45  ;;  %20835 = vmatprep.mubr.msk.f32.mxu1 %vm725_vm0, %v5384_v23  ;;  %v22490_v45 = vpack.c.bf16 %v18881_v30, %v18880_v28 }
 0xbe9   : > { %22453 = vmatprep.subr.bf16.mxu1 %v22452_v33 }
 0xbec   : > { %22455 = vmatpush3.bf16.msra.mxu1 %v22452_v33 }
 0xbed   : > { %22463 = vmatprep.subr.bf16.mxu1 %v22462_v35 }
 0xbef   : > { %20836 = vmatmul.mubr.msk.f32.vlgmr.msra.gmra.mrb[52].mxu1 %vm725_vm0, %v20826_v19  ;;  %v22481_v19 = vpack.c.bf16 %v18868_v18, %v18867_v15  ;;  %v18894_v15 = vld [vmem:[%s26484_s10 + $0x48] sm:$0xff] }
 0xbf0   : > { %22465 = vmatpush3.bf16.msra.mxu1 %v22462_v35  ;;  %20853 = vmatprep.mubr.msk.f32.mxu1 %vm725_vm0, %v5550_v26  ;;  %v18872_v26 = vld [vmem:[%s26482_s8 + $0x28] sm:$0xff] }
 0xbf1   : > { %22467 = vmatprep.subr.bf16.mxu1 %v22466_v49  ;;  %v22484_v36 = vpack.c.bf16 %v18872_v26, %v18871_v27  ;;  %v18890_v27 = vld [vmem:[%s26483_s9 + $0x3] sm:$0x1]  ;;  %v6232_v26 = vstv %s18892_s21  ;;  %s18918_s21 = sld [smem:[#allocation2 + $0x7]] }
 0xbf4   : > { %22469 = vmatpush3.bf16.msra.mxu1 %v22466_v49  ;;  %v18877_v49 = vld [vmem:[%s26517_s1 + $0x7] sm:$0x1] }
 0xbf5   : > { %22510 = vmatprep.subr.bf16.mxu1 %v23409_v16 }
 0xbf7   : > { %20854 = vmatmul.mubr.msk.f32.vlgmr.msra.gmra.mrb[52].mxu1 %vm725_vm0, %v20844_v8 }
 0xbf8   : > { %20943 = vmatprep.mubr.msk.f32.mxu1 %vm23410_vm1, %v23411_v17 }
 0xcca   : > { %v20855_v22 = vpop.f32.mrb[52].mxu1 }
 0xccb   : > { %v5648_v29 = vmax.f32 %v20855_v22, 0.0  ;;  %v5636_v53 = vpop.f32.mrb[53].mxu1 }
 0xccc   : > { %v5647_v54 = vmax.f32 %v5636_v53, 0.0  ;;  %v18882_v53 = vld [vmem:[%s26519_s0 + $0x3] sm:$0x1] }
 0xccd   : > { %v5656_v57 = vmul.f32 %v5654_v50, %v5648_v29  ;;  %v18884_v29 = vld [vmem:[%s26523_s30 + $0x1f0] sm:$0xff] }
 0xcce   : > { %v5655_v58 = vmul.f32 %v5654_v50, %v5647_v54 }
 0xccf   : > { %v24314_v59 = vadd.f32 %v5656_v57, %v5652_v52  ;;  %v22493_v52 = vpack.c.bf16 %v18885_v51, %v18884_v29 }
 0xcd0   : > { %v24316_v60 = vadd.f32 %v5655_v58, %v5651_v56  ;;  %v18888_v58 = vld [vmem:[%s26482_s8 + $0x30] sm:$0xff] }
 0xcd2   : > { %v22471_v61 = vpack.c.bf16 %v24314_v59, %v24316_v60 }
 0xcd4   : > { %22473 = vmatpush3.bf16.msk.msra.mxu0 %vm23605_vm4, %v22471_v61  ;;  %v18889_v61 = vld [vmem:[%s26482_s8 + $0x38] sm:$0xff] }
 0xcd5   : > { %22474 = vmatprep.subr.bf16.mxu0 %v23409_v16 }
 0xcd7   : > { %20861 = vmatmul.mubr.msk.f32.vlgmr.msra.gmra.mrb[54].mxu0 %vm811_vm5, %v5659_v62  ;;  %v22496_v62 = vpack.c.bf16 %v18889_v61, %v18888_v58  ;;  %v18921_v58 = vld [vmem:[%s26516_s6 + $0x80] sm:$0xff]  ;;  %v18922_v61 = vld [vmem:[%s26516_s6 + $0x88] sm:$0xff] }
 0xcd8   : > { %20871 = vmatprep.mubr.msk.f32.mxu0 %vm23410_vm1, %v23411_v17  ;;  %22476 = vmatpush3.bf16.msra.mxu0 %v22475_v2  ;;  %v18898_v2 = vld [vmem:[%s26484_s10 + $0x68] sm:$0xff] }
 0xcd9   : > { %22477 = vmatprep.subr.bf16.mxu0 %v23409_v16 }
 0xcdc   : > { %22479 = vmatpush3.bf16.msra.mxu0 %v22478_v5 }
 0xcdd   : > { %22480 = vmatprep.subr.bf16.mxu0 %v23409_v16 }
 0xdaa   : > { %v24346_v9 = vpop.f32.mrb[54].mxu0 }
 0xdab   : > { %v5744_v0 = vmul.f32 %v18859_v6, %v24346_v9  ;;  %v20862_v12 = vpop.f32.mrb[55].mxu0  ;;  %v5988_v46 = vmul.f32 %v5987_v32, %v24346_v9  ;;  %v22499_v6 = vpack.c.bf16 %v18898_v2, %v18897_v1  ;;  %v18924_v1 = vld [vmem:[%s26516_s6 + $0x98] sm:$0xff] }
 0xdac   : > { %v18900_v12 = vld [vmem:[%s26484_s10 + $0x78] sm:$0xff] }
 0xdad   : > { %v5746_v13 = vadd.f32 %v18860_v10, %v5744_v0  ;;  %v18899_v0 = vld [vmem:[%s26484_s10 + $0x70] sm:$0xff] }
 0xdaf   : > { %v5747_v14 = vmax.f32 %v5746_v13, 0.0  ;;  %v22502_v13 = vpack.c.bf16 %v18900_v12, %v18899_v0 }
 0xdb1   : > { %20872 = vmatmul.mubr.msk.f32.vlgmr.msra.gmra.mrb[56].mxu0 %vm725_vm0, %v5747_v14  ;;  %v18893_v14 = vld [vmem:[%s26484_s10 + $0x40] sm:$0xff] }
 0xdb2   : > { %20878 = vmatprep.mubr.msk.f32.mxu0 %vm23410_vm1, %v23411_v17  ;;  %22482 = vmatpush3.bf16.msra.mxu0 %v22481_v19  ;;  %v22505_v18 = vpack.c.bf16 %v18894_v15, %v18893_v14  ;;  %v18895_v19 = vld [vmem:[%s26484_s10 + $0x50] sm:$0xff]  ;;  %v18920_v15 = vld [vmem:[%s26517_s1 + $0x9] sm:$0x1] }
 0xdb3   : > { %22483 = vmatprep.subr.bf16.mxu0 %v23409_v16 }
 0xe84   : > { %v5824_v23 = vpop.f32.mrb[56].mxu0 }
 0xe85   : > { %v5825_v24 = vadd.f32 %v18865_v20, %v5824_v23  ;;  %v20873_v7 = vpop.f32.mrb[57].mxu0  ;;  %v18896_v20 = vld [vmem:[%s26484_s10 + $0x58] sm:$0xff] }
 0xe86   : > { %v22508_v23 = vpack.c.bf16 %v18896_v20, %v18895_v19  ;;  %v18904_v7 = vld [vmem:[%s26486_s12 + $0x28] sm:$0xff] }
 0xe87   : > { %v5828_v8 = vmax.f32 %v5825_v24, 0.0  ;;  %v18903_v24 = vld [vmem:[%s26486_s12 + $0x20] sm:$0xff] }
 0xe89   : > { %20879 = vmatmul.mubr.msk.f32.vlgmr.msra.gmra.mrb[58].mxu0 %vm970_vm6, %v5828_v8  ;;  %v22511_v8 = vpack.c.bf16 %v18904_v7, %v18903_v24  ;;  %v18928_v24 = vld [vmem:[%s26523_s30 + $0x288] sm:$0xff] }
 0xe8a   : > { %20885 = vmatprep.mubr.msk.f32.mxu0 %vm23410_vm1, %v23411_v17  ;;  %22485 = vmatpush3.bf16.msra.mxu0 %v22484_v36 }
 0xe8b   : > { %22486 = vmatprep.subr.bf16.mxu0 %v23409_v16  ;;  %22512 = vmatpush3.bf16.msra.mxu1 %v22511_v8  ;;  %v18925_v8 = vld [vmem:[%s26519_s0 + $0x4] sm:$0x1] }
 0xe8c   : > { %22513 = vmatprep.subr.bf16.mxu1 %v23409_v16 }
 0xf5c   : > { %v5903_v38 = vpop.f32.mrb[58].mxu0 }
 0xf5d   : > { %v5904_v39 = vadd.f32 %v18869_v37, %v5903_v38  ;;  %v20880_v40 = vpop.f32.mrb[59].mxu0 }
 0xf5f   : > { %v5907_v41 = vmax.f32 %v5904_v39, 0.0 }
 0xf61   : > { %20886 = vmatmul.mubr.msk.f32.vlgmr.msra.gmra.mrb[60].mxu0 %vm970_vm6, %v5907_v41  ;;  %v18905_v41 = vld [vmem:[%s26486_s12 + $0x30] sm:$0xff] }
 0xf62   : > { %20896 = vmatprep.mubr.msk.f32.mxu0 %vm23410_vm1, %v23411_v17  ;;  %22488 = vmatpush3.bf16.msra.mxu0 %v22487_v44  ;;  %v22514_v43 = vpack.c.bf16 %v18906_v42, %v18905_v41  ;;  %v18929_v41 = vld [vmem:[%s26481_s7 + $0x4] sm:$0x1] }
 0xf63   : > { %22489 = vmatprep.subr.bf16.mxu0 %v23409_v16 }
 0xf64   : > { %22515 = vmatpush3.bf16.msra.mxu1 %v22514_v43 }
 0xf65   : > { %20946 = vmatprep.subr.mxu1 %v23411_v17 }
 0xf66   : > { %22491 = vmatpush3.bf16.msra.mxu0 %v22490_v45  ;;  %v18907_v45 = vld [vmem:[%s26488_s14 + $0x2] sm:$0x3] }
 0xf67   : > { %22492 = vmatprep.subr.bf16.mxu0 %v23409_v16 }
0x1034   : > { %v5982_v33 = vpop.f32.mrb[60].mxu0 }
0x1035   : > { %v5983_v34 = vadd.f32 %v18873_v31, %v5982_v33  ;;  %v20887_v35 = vpop.f32.mrb[61].mxu0  ;;  %v6396_v31 = vld [vmem:[%s26487_s13 + $0x1] sm:$0x1] }
0x1036   : > { %v18912_v35 = vld [vmem:[%s26485_s11 + $0x1a0] sm:$0xff] }
0x1037   : > { %v24402_v48 = vadd.f32 %v5988_v46, %v5983_v34 }
0x1039   : > { %v5992_v21 = vmul.f32 %v18876_v47, %v24402_v48  ;;  %v6233_v38 = vmul.f32 %v6232_v26, %v24402_v48  ;;  %v18913_v47 = vld [vmem:[%s26485_s11 + $0x1a8] sm:$0xff] }
0x103b   : > { %v5994_v22 = vadd.f32 %v18877_v49, %v5992_v21  ;;  %v22517_v49 = vpack.c.bf16 %v18913_v47, %v18912_v35  ;;  %v18915_v21 = vld [vmem:[%s26485_s11 + $0x1b8] sm:$0xff]  ;;  %v6889_v35 = vstv %s18935_s27  ;;  %s19504_s27 = sld [smem:[#allocation2 + $0x16]] }
0x103d   : > { %v5995_v50 = vmax.f32 %v5994_v22, 0.0 }
0x103f   : > { %20897 = vmatmul.mubr.msk.f32.vlgmr.msra.gmra.mrb[62].mxu0 %vm725_vm0, %v5995_v50  ;;  %v6399_v50 = vld [vmem:[%s26489_s15 + $0x1] sm:$0x1] }
0x1040   : > { %20903 = vmatprep.mubr.msk.f32.mxu0 %vm23410_vm1, %v23411_v17  ;;  %22494 = vmatpush3.bf16.msra.mxu0 %v22493_v52 }
0x1041   : > { %22495 = vmatprep.subr.bf16.mxu0 %v23409_v16 }
0x1112   : > { %v6071_v54 = vpop.f32.mrb[62].mxu0 }
0x1113   : > { %v6072_v55 = vadd.f32 %v18882_v53, %v6071_v54  ;;  %v20898_v56 = vpop.f32.mrb[63].mxu0 }
0x1115   : > { %v6075_v57 = vmax.f32 %v6072_v55, 0.0 }
0x1117   : > { %20904 = vmatmul.mubr.msk.f32.vlgmr.msra.gmra.mrb[64].mxu0 %vm970_vm6, %v6075_v57 }
0x1118   : > { %20910 = vmatprep.mubr.msk.f32.mxu0 %vm23410_vm1, %v23411_v17  ;;  %22497 = vmatpush3.bf16.msra.mxu0 %v22496_v62  ;;  %v22523_v62 = vpack.c.bf16 %v18922_v61, %v18921_v58  ;;  %v18960_v58 = vld [vmem:[%s26484_s10 + $0xb8] sm:$0xff] }
0x1119   : > { %22498 = vmatprep.subr.bf16.mxu0 %v23409_v16 }
0x11ea   : > { %v6149_v3 = vpop.f32.mrb[64].mxu0 }
0x11eb   : > { %v6150_v4 = vadd.f32 %v18886_v63, %v6149_v3  ;;  %v20905_v5 = vpop.f32.mrb[65].mxu0  ;;  %v18923_v63 = vld [vmem:[%s26516_s6 + $0x90] sm:$0xff]  ;;  %v6638_v3 = vstv %s18917_s5  ;;  %s18995_s5 = sld [smem:[#allocation2 + $0xc]] }
0x11ec   : > { %v22526_v2 = vpack.c.bf16 %v18924_v1, %v18923_v63  ;;  %v6641_v5 = vstv %s18918_s21  ;;  %v6639_v0 = vmul.f32 %v6638_v3, %v24346_v9  ;;  %v18945_v63 = vld [vmem:[%s26523_s30 + $0x318] sm:$0xff]  ;;  %s19038_s21 = sld [smem:[#allocation2 + $0xf]] }
0x11ed   : > { %v6153_v10 = vmax.f32 %v6150_v4, 0.0 }
0x11ef   : > { %20911 = vmatmul.mubr.msk.f32.vlgmr.msra.gmra.mrb[66].mxu0 %vm970_vm6, %v6153_v10 }
0x11f0   : > { %22500 = vmatpush3.bf16.msra.mxu0 %v22499_v6  ;;  %20921 = vmatprep.mubr.msk.f32.mxu0 %vm23410_vm1, %v23411_v17 }
0x11f1   : > { %22501 = vmatprep.subr.bf16.mxu0 %v23409_v16 }
0x11f4   : > { %22503 = vmatpush3.bf16.msra.mxu0 %v22502_v13  ;;  %v18919_v13 = vld [vmem:[%s26517_s1 + $0x8] sm:$0x1] }
0x11f5   : > { %22504 = vmatprep.subr.bf16.mxu0 %v23409_v16 }
0x11f7   : > { %20922 = vmatmul.mubr.msk.f32.vlgmr.msra.gmra.mrb[68].mxu0 %vm725_vm0, %v24402_v48  ;;  %v18914_v48 = vld [vmem:[%s26485_s11 + $0x1b0] sm:$0xff] }
0x11f8   : > { %22506 = vmatpush3.bf16.msra.mxu0 %v22505_v18  ;;  %20932 = vmatprep.mubr.msk.f32.mxu0 %vm23410_vm1, %v23411_v17  ;;  %v22520_v22 = vpack.c.bf16 %v18915_v21, %v18914_v48 }
0x11f9   : > { %22507 = vmatprep.subr.bf16.mxu0 %v23409_v16 }
0x11fc   : > { %22509 = vmatpush3.bf16.msra.mxu0 %v22508_v23  ;;  %v18927_v23 = vld [vmem:[%s26523_s30 + $0x280] sm:$0xff] }
0x11fd   : > { %22516 = vmatprep.subr.bf16.mxu0 %v23409_v16  ;;  %v22529_v7 = vpack.c.bf16 %v18928_v24, %v18927_v23 }
0x12c2   : > { %v6227_v36 = vpop.f32.mrb[66].mxu0 }
0x12c3   : > { %v6228_v37 = vadd.f32 %v18890_v27, %v6227_v36  ;;  %v20912_v39 = vpop.f32.mrb[67].mxu0 }
0x12c4   : > { %v18932_v39 = vld [vmem:[%s26482_s8 + $0x48] sm:$0xff] }
0x12c5   : > { %v6234_v40 = vadd.f32 %v6233_v38, %v6228_v37  ;;  %v18931_v38 = vld [vmem:[%s26482_s8 + $0x40] sm:$0xff] }
0x12c7   : > { %20933 = vmatmul.mubr.msk.f32.vlgmr.msra.gmra.mrb[68].mxu0 %vm725_vm0, %v6234_v40  ;;  %v22532_v40 = vpack.c.bf16 %v18932_v39, %v18931_v38  ;;  %v18950_v39 = vld [vmem:[%s26483_s9 + $0x5] sm:$0x1] }
0x12c8   : > { %20959 = vmatprep.mubr.msk.f32.mxu0 %vm23410_vm1, %v23411_v17  ;;  %22518 = vmatpush3.bf16.msra.mxu0 %v22517_v49 }
0x12c9   : > { %22519 = vmatprep.subr.bf16.mxu0 %v23409_v16 }
0x12cc   : > { %22521 = vmatpush3.bf16.msra.mxu0 %v22520_v22  ;;  %v18936_v22 = vld [vmem:[%s26517_s1 + $0xa] sm:$0x1] }
0x12cd   : > { %22528 = vmatprep.subr.bf16.mxu0 %v23409_v16 }
0x139a   : > { %v6386_v44 = vpop.f32.mrb[68].mxu0 }
0x139b   : > { %v6390_v28 = vmax.f32 %v6386_v44, 0.0  ;;  %v20934_v30 = vpop.f32.mrb[69].mxu0 }
0x139c   : > { %v18938_v30 = vld [vmem:[%s26516_s6 + $0xa0] sm:$0xff] }
0x139d   : > { %20944 = vmatmul.mubr.msk.f32.vlgmr.msra.gmra.mrb[54].mxu1 %vm725_vm0, %v6390_v28 }
0x139e   : > { %20948 = vmatprep.mubr.msk.f32.mxu1 %vm23410_vm1, %v23411_v17  ;;  %20947 = vmatpush3.msk.msra.mxu1 %vm4069_vm8, %v18907_v45  ;;  %v18939_v45 = vld [vmem:[%s26516_s6 + $0xa8] sm:$0xff] }
0x139f   : > { %22522 = vmatprep.subr.bf16.mxu1 %v23409_v16 }
0x1470   : > { %v6470_v32 = vpop.f32.mrb[54].mxu1 }
0x1471   : > { %v6471_v33 = vadd.f32 %v6470_v32, %v6396_v31  ;;  %v20945_v34 = vpop.f32.mrb[55].mxu1  ;;  %v22535_v31 = vpack.c.bf16 %v18939_v45, %v18938_v30  ;;  %v18940_v32 = vld [vmem:[%s26516_s6 + $0xb0] sm:$0xff]  ;;  %v18966_v45 = vld [vmem:[%s26486_s12 + $0x58] sm:$0xff] }
0x1472   : > { %v18965_v30 = vld [vmem:[%s26486_s12 + $0x50] sm:$0xff] }
0x1473   : > { %v6474_v46 = vmax.f32 %v6471_v33, 0.0  ;;  %v18941_v33 = vld [vmem:[%s26516_s6 + $0xb8] sm:$0xff] }
0x1474   : > { %v22538_v34 = vpack.c.bf16 %v18941_v33, %v18940_v32 }
0x1475   : > { %20949 = vmatmul.mubr.msk.f32.vlgmr.msra.gmra.mrb[56].mxu1 %vm4065_vm9, %v6474_v46  ;;  %v18933_v46 = vld [vmem:[%s26483_s9 + $0x4] sm:$0x1] }
0x1476   : > { %20970 = vmatprep.mubr.msk.f32.mxu1 %vm23410_vm1, %v23411_v17  ;;  %22524 = vmatpush3.bf16.msra.mxu1 %v22523_v62  ;;  %v18944_v62 = vld [vmem:[%s26523_s30 + $0x310] sm:$0xff] }
0x1477   : > { %22525 = vmatprep.subr.bf16.mxu1 %v23409_v16  ;;  %v22541_v1 = vpack.c.bf16 %v18945_v63, %v18944_v62 }
0x147a   : > { %22527 = vmatpush3.bf16.msra.mxu1 %v22526_v2  ;;  %v18942_v2 = vld [vmem:[%s26519_s0 + $0x5] sm:$0x1] }
0x147b   : > { %22531 = vmatprep.subr.bf16.mxu1 %v23409_v16 }
0x1548   : > { %v6547_v29 = vpop.f32.mrb[56].mxu1 }
0x1549   : > { %v6548_v51 = vadd.f32 %v6547_v29, %v6399_v50  ;;  %v20950_v52 = vpop.f32.mrb[57].mxu1  ;;  %v18937_v29 = vld [vmem:[%s26517_s1 + $0xb] sm:$0x1] }
0x154a   : > { %v18957_v52 = vld [vmem:[%s26484_s10 + $0xa0] sm:$0xff] }
0x154b   : > { %v18911_v53 = vmul.f32 -1.442695, %v6548_v51 }
0x154d   : > { %23317 = vpow2.f32 %v18911_v53  ;;  %v18958_v53 = vld [vmem:[%s26484_s10 + $0xa8] sm:$0xff] }
0x1557   : > { %v23318_v54 = vpop.eup %23317 }
0x1558   : > { %v6554_v55 = vadd.f32 1.0, %v23318_v54 }
0x155a   : > { %23319 = vrcp.f32 %v6554_v55  ;;  %v22547_v55 = vpack.c.bf16 %v18958_v53, %v18957_v52  ;;  %v18975_v52 = vld [vmem:[%s26485_s11 + $0x2d8] sm:$0xff] }
0x1564   : > { %v23320_v56 = vpop.eup %23319 }
0x1565   : > { %v6557_v57 = vmul.f32 %v23320_v56, %v6390_v28 }
0x1567   : > { %20960 = vmatmul.mubr.msk.f32.vlgmr.msra.gmra.mrb[70].mxu0 %vm725_vm0, %v6557_v57  ;;  %v18959_v57 = vld [vmem:[%s26484_s10 + $0xb0] sm:$0xff] }
0x1568   : > { %20977 = vmatprep.mubr.msk.f32.mxu0 %vm23410_vm1, %v23411_v17  ;;  %22530 = vmatpush3.bf16.msra.mxu0 %v22529_v7  ;;  %v22550_v61 = vpack.c.bf16 %v18960_v58, %v18959_v57 }
0x1569   : > { %22534 = vmatprep.subr.bf16.mxu0 %v23409_v16 }
0x163a   : > { %v6632_v4 = vpop.f32.mrb[70].mxu0 }
0x163b   : > { %v6636_v6 = vmax.f32 %v6632_v4, 0.0  ;;  %v20961_v10 = vpop.f32.mrb[71].mxu0 }
0x163c   : > { %v18948_v10 = vld [vmem:[%s26482_s8 + $0x50] sm:$0xff] }
0x163d   : > { %v6642_v12 = vmul.f32 %v6641_v5, %v6636_v6 }
0x163f   : > { %v24542_v14 = vadd.f32 %v6642_v12, %v6639_v0  ;;  %v18949_v0 = vld [vmem:[%s26482_s8 + $0x58] sm:$0xff] }
0x1640   : > { %v22544_v12 = vpack.c.bf16 %v18949_v0, %v18948_v10 }
0x1641   : > { %v6646_v18 = vmul.f32 %v18919_v13, %v24542_v14  ;;  %v6890_v49 = vmul.f32 %v6889_v35, %v24542_v14  ;;  %v18953_v13 = vld [vmem:[%s26484_s10 + $0x80] sm:$0xff] }
0x1642   : > { %v7298_v35 = vld [vmem:[%s26487_s13 + $0x2] sm:$0x1] }
0x1643   : > { %v6648_v19 = vadd.f32 %v18920_v15, %v6646_v18  ;;  %v18954_v15 = vld [vmem:[%s26484_s10 + $0x88] sm:$0xff] }
0x1644   : > { %v22553_v18 = vpack.c.bf16 %v18954_v15, %v18953_v13 }
0x1645   : > { %v6649_v20 = vmax.f32 %v6648_v19, 0.0  ;;  %v18946_v19 = vld [vmem:[%s26481_s7 + $0x5] sm:$0x1] }
0x1647   : > { %20971 = vmatmul.mubr.msk.f32.vlgmr.msra.gmra.mrb[58].mxu1 %vm725_vm0, %v6649_v20 }
0x1648   : > { %20984 = vmatprep.mubr.msk.f32.mxu1 %vm23410_vm1, %v23411_v17  ;;  %22533 = vmatpush3.bf16.msra.mxu1 %v22532_v40  ;;  %v7134_v40 = vstv %s18952_s2  ;;  %s18978_s2 = sld [smem:[#allocation2 + $0xb]] }
0x1649   : > { %22540 = vmatprep.subr.bf16.mxu1 %v23409_v16 }
0x164e   : > { %v7543_v13 = vstv %s18978_s2  ;;  %s19268_s2 = sld [smem:[#allocation2 + $0x13]] }
0x171a   : > { %v6726_v27 = vpop.f32.mrb[58].mxu1 }
0x171b   : > { %v6727_v26 = vadd.f32 %v18925_v8, %v6726_v27  ;;  %v20972_v36 = vpop.f32.mrb[59].mxu1  ;;  %v18955_v8 = vld [vmem:[%s26484_s10 + $0x90] sm:$0xff]  ;;  %v18956_v27 = vld [vmem:[%s26484_s10 + $0x98] sm:$0xff] }
0x171c   : > { %v18963_v36 = vld [vmem:[%s26486_s12 + $0x40] sm:$0xff] }
0x171d   : > { %v6730_v37 = vmax.f32 %v6727_v26, 0.0  ;;  %v22556_v26 = vpack.c.bf16 %v18956_v27, %v18955_v8 }
0x171f   : > { %20978 = vmatmul.mubr.msk.f32.vlgmr.msra.gmra.mrb[72].mxu0 %vm970_vm6, %v6730_v37  ;;  %v18964_v37 = vld [vmem:[%s26486_s12 + $0x48] sm:$0xff] }
0x1720   : > { %20995 = vmatprep.mubr.msk.f32.mxu0 %vm23410_vm1, %v23411_v17  ;;  %22536 = vmatpush3.bf16.msra.mxu0 %v22535_v31  ;;  %v22559_v38 = vpack.c.bf16 %v18964_v37, %v18963_v36  ;;  %v22562_v31 = vpack.c.bf16 %v18966_v45, %v18965_v30  ;;  %v18988_v36 = vld [vmem:[%s26523_s30 + $0x3a8] sm:$0xff]  ;;  %v18989_v30 = vld [vmem:[%s26481_s7 + $0x6] sm:$0x1] }
0x1721   : > { %22537 = vmatprep.subr.bf16.mxu0 %v23409_v16 }
0x1724   : > { %22539 = vmatpush3.bf16.msra.mxu0 %v22538_v34 }
0x1725   : > { %22546 = vmatprep.subr.bf16.mxu0 %v23409_v16 }
0x17f2   : > { %v6805_v42 = vpop.f32.mrb[72].mxu0 }
0x17f3   : > { %v6806_v43 = vadd.f32 %v18929_v41, %v6805_v42  ;;  %v20979_v44 = vpop.f32.mrb[73].mxu0 }
0x17f5   : > { %v6809_v28 = vmax.f32 %v6806_v43, 0.0 }
0x17f7   : > { %20985 = vmatmul.mubr.msk.f32.vlgmr.msra.gmra.mrb[60].mxu1 %vm970_vm6, %v6809_v28 }
0x17f8   : > { %21002 = vmatprep.mubr.msk.f32.mxu1 %vm23410_vm1, %v23411_v17  ;;  %22542 = vmatpush3.bf16.msra.mxu1 %v22541_v1 }
0x17f9   : > { %22543 = vmatprep.subr.bf16.mxu1 %v23409_v16 }
0x18ca   : > { %v6884_v47 = vpop.f32.mrb[60].mxu1 }
0x18cb   : > { %v6885_v48 = vadd.f32 %v18933_v46, %v6884_v47  ;;  %v20986_v21 = vpop.f32.mrb[61].mxu1  ;;  %v18967_v46 = vld [vmem:[%s26488_s14 + $0x4] sm:$0x3] }
0x18cd   : > { %v24598_v50 = vadd.f32 %v6890_v49, %v6885_v48 }
0x18cf   : > { %v6894_v51 = vmul.f32 %v18936_v22, %v24598_v50  ;;  %v7135_v43 = vmul.f32 %v7134_v40, %v24598_v50  ;;  %v18972_v22 = vld [vmem:[%s26485_s11 + $0x2c0] sm:$0xff] }
0x18d1   : > { %v6896_v54 = vadd.f32 %v18937_v29, %v6894_v51  ;;  %v18974_v29 = vld [vmem:[%s26485_s11 + $0x2d0] sm:$0xff] }
0x18d2   : > { %v22568_v53 = vpack.c.bf16 %v18975_v52, %v18974_v29 }
0x18d3   : > { %v6897_v56 = vmax.f32 %v6896_v54, 0.0  ;;  %v7301_v54 = vld [vmem:[%s26489_s15 + $0x2] sm:$0x1] }
0x18d5   : > { %20996 = vmatmul.mubr.msk.f32.vlgmr.msra.gmra.mrb[74].mxu0 %vm725_vm0, %v6897_v56 }
0x18d6   : > { %22548 = vmatpush3.bf16.msra.mxu0 %v22547_v55  ;;  %21020 = vmatprep.mubr.msk.f32.mxu0 %vm23410_vm1, %v23411_v17 }
0x18d7   : > { %22549 = vmatprep.subr.bf16.mxu0 %v23409_v16 }
0x18da   : > { %22551 = vmatpush3.bf16.msra.mxu0 %v22550_v61 }
0x18db   : > { %22552 = vmatprep.subr.bf16.mxu0 %v23409_v16 }
0x18dd   : > { %21021 = vmatmul.mubr.msk.f32.vlgmr.msra.gmra.mrb[76].mxu0 %vm725_vm0, %v24598_v50  ;;  %v18973_v50 = vld [vmem:[%s26485_s11 + $0x2c8] sm:$0xff] }
0x18de   : > { %21031 = vmatprep.mubr.msk.f32.mxu0 %vm23410_vm1, %v23411_v17  ;;  %22554 = vmatpush3.bf16.msra.mxu0 %v22553_v18  ;;  %v22565_v51 = vpack.c.bf16 %v18973_v50, %v18972_v22  ;;  %v7791_v22 = vstv %s18995_s5  ;;  %s19037_s5 = sld [smem:[#allocation2 + $0xe]] }
0x18df   : > { %22555 = vmatprep.subr.bf16.mxu0 %v23409_v16 }
0x18e2   : > { %22557 = vmatpush3.bf16.msra.mxu0 %v22556_v26 }
0x18e3   : > { %22570 = vmatprep.subr.bf16.mxu0 %v23409_v16 }
0x19a8   : > { %v6973_v3 = vpop.f32.mrb[74].mxu0 }
0x19a9   : > { %v6974_v4 = vadd.f32 %v18942_v2, %v6973_v3  ;;  %v20997_v5 = vpop.f32.mrb[75].mxu0  ;;  %v18981_v2 = vld [vmem:[%s26516_s6 + $0xc0] sm:$0xff]  ;;  %v18982_v3 = vld [vmem:[%s26516_s6 + $0xc8] sm:$0xff] }
0x19aa   : > { %v18983_v5 = vld [vmem:[%s26516_s6 + $0xd0] sm:$0xff] }
0x19ab   : > { %v6977_v6 = vmax.f32 %v6974_v4, 0.0  ;;  %v22571_v4 = vpack.c.bf16 %v18982_v3, %v18981_v2  ;;  %v19020_v2 = vld [vmem:[%s26484_s10 + $0xf8] sm:$0xff] }
0x19ad   : > { %21003 = vmatmul.mubr.msk.f32.vlgmr.msra.gmra.mrb[62].mxu1 %vm970_vm6, %v6977_v6  ;;  %v18984_v6 = vld [vmem:[%s26516_s6 + $0xd8] sm:$0xff] }
0x19ae   : > { %21009 = vmatprep.mubr.msk.f32.mxu1 %vm23410_vm1, %v23411_v17  ;;  %22545 = vmatpush3.bf16.msra.mxu1 %v22544_v12  ;;  %v22574_v10 = vpack.c.bf16 %v18984_v6, %v18983_v5  ;;  %v7540_v12 = vstv %s18977_s3  ;;  %v19005_v5 = vld [vmem:[%s26523_s30 + $0x438] sm:$0xff] }
0x19af   : > { %22558 = vmatprep.subr.bf16.mxu1 %v23409_v16 }
0x1a80   : > { %v7051_v20 = vpop.f32.mrb[62].mxu1 }
0x1a81   : > { %v7052_v23 = vadd.f32 %v18946_v19, %v7051_v20  ;;  %v21004_v24 = vpop.f32.mrb[63].mxu1  ;;  %v7541_v19 = vmul.f32 %v7540_v12, %v24542_v14  ;;  %v18987_v14 = vld [vmem:[%s26523_s30 + $0x3a0] sm:$0xff] }
0x1a82   : > { %v22577_v37 = vpack.c.bf16 %v18988_v36, %v18987_v14 }
0x1a83   : > { %v7055_v7 = vmax.f32 %v7052_v23, 0.0  ;;  %v18979_v23 = vld [vmem:[%s26517_s1 + $0xc] sm:$0x1] }
0x1a85   : > { %21010 = vmatmul.mubr.msk.f32.vlgmr.msra.gmra.mrb[64].mxu1 %vm970_vm6, %v7055_v7  ;;  %v18980_v7 = vld [vmem:[%s26517_s1 + $0xd] sm:$0x1] }
0x1a86   : > { %21042 = vmatprep.mubr.msk.f32.mxu1 %vm23410_vm1, %v23411_v17  ;;  %22560 = vmatpush3.bf16.msra.mxu1 %v22559_v38  ;;  %v18985_v38 = vld [vmem:[%s26519_s0 + $0x6] sm:$0x1] }
0x1a87   : > { %22561 = vmatprep.subr.bf16.mxu1 %v23409_v16 }
0x1a8a   : > { %22563 = vmatpush3.bf16.msra.mxu1 %v22562_v31 }
0x1a8b   : > { %21045 = vmatprep.subr.mxu1 %v23411_v17 }
0x1b58   : > { %v7129_v41 = vpop.f32.mrb[64].mxu1 }
0x1b59   : > { %v7130_v42 = vadd.f32 %v18950_v39, %v7129_v41  ;;  %v21011_v44 = vpop.f32.mrb[65].mxu1 }
0x1b5a   : > { %v18992_v44 = vld [vmem:[%s26482_s8 + $0x68] sm:$0xff] }
0x1b5b   : > { %v7136_v28 = vadd.f32 %v7135_v43, %v7130_v42  ;;  %v18991_v43 = vld [vmem:[%s26482_s8 + $0x60] sm:$0xff] }
0x1b5d   : > { %21032 = vmatmul.mubr.msk.f32.vlgmr.msra.gmra.mrb[76].mxu0 %vm725_vm0, %v7136_v28  ;;  %v22580_v28 = vpack.c.bf16 %v18992_v44, %v18991_v43  ;;  %v19023_v44 = vld [vmem:[%s26486_s12 + $0x60] sm:$0xff] }
0x1b5e   : > { %21069 = vmatprep.mubr.msk.f32.mxu0 %vm23410_vm1, %v23411_v17  ;;  %22572 = vmatpush3.bf16.msra.mxu0 %v22571_v4  ;;  %v19004_v4 = vld [vmem:[%s26523_s30 + $0x430] sm:$0xff] }
0x1b5f   : > { %22573 = vmatprep.subr.bf16.mxu0 %v23409_v16  ;;  %v22589_v6 = vpack.c.bf16 %v19005_v5, %v19004_v4 }
0x1b62   : > { %22575 = vmatpush3.bf16.msra.mxu0 %v22574_v10  ;;  %v19002_v10 = vld [vmem:[%s26519_s0 + $0x7] sm:$0x1] }
0x1b63   : > { %22579 = vmatprep.subr.bf16.mxu0 %v23409_v16 }
0x1c30   : > { %v7288_v32 = vpop.f32.mrb[76].mxu0 }
0x1c31   : > { %v7292_v33 = vmax.f32 %v7288_v32, 0.0  ;;  %v21033_v34 = vpop.f32.mrb[77].mxu0 }
0x1c32   : > { %v18998_v34 = vld [vmem:[%s26516_s6 + $0xe0] sm:$0xff] }
0x1c33   : > { %21043 = vmatmul.mubr.msk.f32.vlgmr.msra.gmra.mrb[66].mxu1 %vm725_vm0, %v7292_v33 }
0x1c34   : > { %21047 = vmatprep.mubr.msk.f32.mxu1 %vm23410_vm1, %v23411_v17  ;;  %21046 = vmatpush3.msk.msra.mxu1 %vm4069_vm8, %v18967_v46  ;;  %v18999_v46 = vld [vmem:[%s26516_s6 + $0xe8] sm:$0xff] }
0x1c35   : > { %22564 = vmatprep.subr.bf16.mxu1 %v23409_v16 }
0x1d06   : > { %v7372_v47 = vpop.f32.mrb[66].mxu1 }
0x1d07   : > { %v7373_v48 = vadd.f32 %v7372_v47, %v7298_v35  ;;  %v21044_v49 = vpop.f32.mrb[67].mxu1  ;;  %v22583_v35 = vpack.c.bf16 %v18999_v46, %v18998_v34  ;;  %v19000_v47 = vld [vmem:[%s26516_s6 + $0xf0] sm:$0xff]  ;;  %v19010_v46 = vld [vmem:[%s26483_s9 + $0x7] sm:$0x1] }
0x1d08   : > { %v19042_v34 = vld [vmem:[%s26517_s1 + $0x11] ss:$0 sm:$0xff] }
0x1d09   : > { %v7376_v21 = vmax.f32 %v7373_v48, 0.0  ;;  %v19001_v48 = vld [vmem:[%s26516_s6 + $0xf8] sm:$0xff] }
0x1d0a   : > { %v22586_v49 = vpack.c.bf16 %v19001_v48, %v19000_v47  ;;  %v19045_v48 = vld [vmem:[%s26516_s6 + $0x110] sm:$0xff] }
0x1d0b   : > { %21048 = vmatmul.mubr.msk.f32.vlgmr.msra.gmra.mrb[68].mxu1 %vm4065_vm9, %v7376_v21  ;;  %v18993_v21 = vld [vmem:[%s26483_s9 + $0x6] sm:$0x1] }
0x1d0c   : > { %21058 = vmatprep.mubr.msk.f32.mxu1 %vm23410_vm1, %v23411_v17  ;;  %22566 = vmatpush3.bf16.msra.mxu1 %v22565_v51 }
0x1d0d   : > { %22567 = vmatprep.subr.bf16.mxu1 %v23409_v16 }
0x1d10   : > { %22569 = vmatpush3.bf16.msra.mxu1 %v22568_v53  ;;  %v18996_v53 = vld [vmem:[%s26517_s1 + $0xe] sm:$0x1] }
0x1d11   : > { %22576 = vmatprep.subr.bf16.mxu1 %v23409_v16 }
0x1dde   : > { %v7449_v55 = vpop.f32.mrb[68].mxu1 }
0x1ddf   : > { %v7450_v56 = vadd.f32 %v7449_v55, %v7301_v54  ;;  %v21049_v57 = vpop.f32.mrb[69].mxu1  ;;  %v18997_v55 = vld [vmem:[%s26517_s1 + $0xf] sm:$0x1] }
0x1de0   : > { %v19017_v57 = vld [vmem:[%s26484_s10 + $0xe0] sm:$0xff] }
0x1de1   : > { %v18971_v58 = vmul.f32 -1.442695, %v7450_v56 }
0x1de3   : > { %23321 = vpow2.f32 %v18971_v58  ;;  %v19018_v58 = vld [vmem:[%s26484_s10 + $0xe8] sm:$0xff] }
0x1ded   : > { %v23322_v61 = vpop.eup %23321 }
0x1dee   : > { %v7456_v62 = vadd.f32 1.0, %v23322_v61 }
0x1df0   : > { %23323 = vrcp.f32 %v7456_v62  ;;  %v22595_v62 = vpack.c.bf16 %v19018_v58, %v19017_v57 }
0x1dfa   : > { %v23324_v63 = vpop.eup %23323 }
0x1dfb   : > { %v7459_v1 = vmul.f32 %v23324_v63, %v7292_v33 }
0x1dfd   : > { %21059 = vmatmul.mubr.msk.f32.vlgmr.msra.gmra.mrb[70].mxu1 %vm725_vm0, %v7459_v1  ;;  %v19019_v1 = vld [vmem:[%s26484_s10 + $0xf0] sm:$0xff] }
0x1dfe   : > { %21076 = vmatprep.mubr.msk.f32.mxu1 %vm23410_vm1, %v23411_v17  ;;  %22578 = vmatpush3.bf16.msra.mxu1 %v22577_v37  ;;  %v22598_v3 = vpack.c.bf16 %v19020_v2, %v19019_v1 }
0x1dff   : > { %22582 = vmatprep.subr.bf16.mxu1 %v23409_v16 }
0x1ed0   : > { %v7534_v0 = vpop.f32.mrb[70].mxu1 }
0x1ed1   : > { %v7538_v15 = vmax.f32 %v7534_v0, 0.0  ;;  %v21060_v18 = vpop.f32.mrb[71].mxu1 }
0x1ed2   : > { %v19008_v18 = vld [vmem:[%s26482_s8 + $0x70] sm:$0xff] }
0x1ed3   : > { %v7544_v20 = vmul.f32 %v7543_v13, %v7538_v15 }
0x1ed5   : > { %v24738_v24 = vadd.f32 %v7544_v20, %v7541_v19  ;;  %v19009_v19 = vld [vmem:[%s26482_s8 + $0x78] sm:$0xff] }
0x1ed6   : > { %v22592_v20 = vpack.c.bf16 %v19009_v19, %v19008_v18 }
0x1ed7   : > { %v7548_v8 = vmul.f32 %v18979_v23, %v24738_v24  ;;  %v7792_v51 = vmul.f32 %v7791_v22, %v24738_v24  ;;  %v19013_v23 = vld [vmem:[%s26484_s10 + $0xc0] sm:$0xff] }
0x1ed9   : > { %v7550_v27 = vadd.f32 %v18980_v7, %v7548_v8  ;;  %v19014_v7 = vld [vmem:[%s26484_s10 + $0xc8] sm:$0xff] }
0x1eda   : > { %v22601_v8 = vpack.c.bf16 %v19014_v7, %v19013_v23  ;;  %v19032_v23 = vld [vmem:[%s26485_s11 + $0x3e0] sm:$0xff]  ;;  %v19033_v7 = vld [vmem:[%s26485_s11 + $0x3e8] sm:$0xff] }
0x1edb   : > { %v7551_v26 = vmax.f32 %v7550_v27, 0.0  ;;  %v19006_v27 = vld [vmem:[%s26481_s7 + $0x7] sm:$0x1] }
0x1edd   : > { %21070 = vmatmul.mubr.msk.f32.vlgmr.msra.gmra.mrb[78].mxu0 %vm725_vm0, %v7551_v26 }
0x1ede   : > { %21083 = vmatprep.mubr.msk.f32.mxu0 %vm23410_vm1, %v23411_v17  ;;  %22581 = vmatpush3.bf16.msra.mxu0 %v22580_v28  ;;  %v19024_v28 = vld [vmem:[%s26486_s12 + $0x68] sm:$0xff] }
0x1edf   : > { %22588 = vmatprep.subr.bf16.mxu0 %v23409_v16 }
0x1fb0   : > { %v7628_v39 = vpop.f32.mrb[78].mxu0 }
0x1fb1   : > { %v7629_v40 = vadd.f32 %v18985_v38, %v7628_v39  ;;  %v21071_v41 = vpop.f32.mrb[79].mxu0  ;;  %v19015_v38 = vld [vmem:[%s26484_s10 + $0xd0] sm:$0xff]  ;;  %v19016_v39 = vld [vmem:[%s26484_s10 + $0xd8] sm:$0xff] }
0x1fb2   : > { %v19043_v41 = vld [vmem:[%s26516_s6 + $0x100] sm:$0xff] }
0x1fb3   : > { %v7632_v42 = vmax.f32 %v7629_v40, 0.0  ;;  %v22604_v40 = vpack.c.bf16 %v19016_v39, %v19015_v38  ;;  %v8203_v38 = vld [vmem:[%s26489_s15 + $0x3] sm:$0x1] }
0x1fb5   : > { %21077 = vmatmul.mubr.msk.f32.vlgmr.msra.gmra.mrb[72].mxu1 %vm970_vm6, %v7632_v42  ;;  %v19044_v42 = vld [vmem:[%s26516_s6 + $0x108] sm:$0xff] }
0x1fb6   : > { %21094 = vmatprep.mubr.msk.f32.mxu1 %vm23410_vm1, %v23411_v17  ;;  %22584 = vmatpush3.bf16.msra.mxu1 %v22583_v35  ;;  %v22618_v43 = vpack.c.bf16 %v19044_v42, %v19043_v41  ;;  %v8036_v35 = vstv %s19012_s25  ;;  %s19101_s25 = sld [smem:[#allocation2 + $0x10]] }
0x1fb7   : > { %22585 = vmatprep.subr.bf16.mxu1 %v23409_v16 }
0x1fba   : > { %22587 = vmatpush3.bf16.msra.mxu1 %v22586_v49  ;;  %v19046_v49 = vld [vmem:[%s26516_s6 + $0x118] sm:$0xff] }
0x1fbb   : > { %22594 = vmatprep.subr.bf16.mxu1 %v23409_v16 }
0x2088   : > { %v7707_v45 = vpop.f32.mrb[72].mxu1 }
0x2089   : > { %v7708_v31 = vadd.f32 %v18989_v30, %v7707_v45  ;;  %v21078_v32 = vpop.f32.mrb[73].mxu1  ;;  %v22607_v30 = vpack.c.bf16 %v19024_v28, %v19023_v44  ;;  %v5739_v45 = vrot.slane %v24346_v9, %v23833_v11 }
0x208a   : > { %v19040_v32 = vld [vmem:[%s26517_s1 + $0x10] ss:$0 sm:$0xff] }
0x208b   : > { %v7711_v33 = vmax.f32 %v7708_v31, 0.0  ;;  %v24876_v31 = vsub.f32 %v24316_v60, %v5739_v45  ;;  %v24889_v9 = vsub.f32 %v24314_v59, %v5739_v45  ;;  %v19057_v45 = vld [vmem:[%s26523_s30 + $0x490] sm:$0xff] }
0x208d   : > { %21084 = vmatmul.mubr.msk.f32.vlgmr.msra.gmra.mrb[80].mxu0 %vm970_vm6, %v7711_v33  ;;  %v8454_v33 = vmul.f32 %v19040_v32, %v24876_v31 }
0x208e   : > { %21101 = vmatprep.mubr.msk.f32.mxu0 %vm23410_vm1, %v23411_v17  ;;  %22590 = vmatpush3.bf16.msra.mxu0 %v22589_v6 }
0x208f   : > { %22591 = vmatprep.subr.bf16.mxu0 %v23409_v16  ;;  %v8461_v47 = vadd.f32 %v19042_v34, %v8454_v33 }
0x2091   : > { %v8463_v59 = vmax.f32 %v8461_v47, 0.0  ;;  %v25033_v47 = vld [vmem:[%s26522_s24 + $0x50] sm:$0xff] }
0x2160   : > { %v7786_v50 = vpop.f32.mrb[80].mxu0 }
0x2161   : > { %v7787_v29 = vadd.f32 %v18993_v21, %v7786_v50  ;;  %v21085_v52 = vpop.f32.mrb[81].mxu0 }
0x2162   : > { %v22622_v52 = vpack.c.bf16 %v19046_v49, %v19045_v48  ;;  %v25046_v48 = vld [vmem:[%s26522_s24 + $0x60] sm:$0xff]  ;;  %v25059_v49 = vld [vmem:[%s26522_s24 + $0x70] sm:$0xff] }
0x2163   : > { %v24794_v54 = vadd.f32 %v7792_v51, %v7787_v29  ;;  %v8455_v51 = vmul.f32 %v19040_v32, %v24889_v9  ;;  %v19058_v32 = vld [vmem:[%s26523_s30 + $0x498] sm:$0xff] }
0x2164   : > { %v22635_v33 = vpack.c.bf16 %v19058_v32, %v19057_v45 }
0x2165   : > { %v7796_v56 = vmul.f32 %v18996_v53, %v24794_v54  ;;  %v8037_v22 = vmul.f32 %v8036_v35, %v24794_v54  ;;  %v8462_v53 = vadd.f32 %v19042_v34, %v8455_v51  ;;  %v24977_v34 = vld [vmem:[%s26522_s24] sm:$0xff]  ;;  %v25007_v35 = vld [vmem:[%s26522_s24 + $0x30] sm:$0xff] }
0x2166   : > { %v19063_v51 = vld [vmem:[%s26523_s30 + $0x4a0] sm:$0xff] }
0x2167   : > { %v7798_v61 = vadd.f32 %v18997_v55, %v7796_v56  ;;  %v8464_v55 = vmax.f32 %v8462_v53, 0.0  ;;  %v19026_v56 = vld [vmem:[%s26486_s12 + $0x78] sm:$0xff]  ;;  %v8442_v53 = vstv %s19037_s5 }
0x2169   : > { %v7799_v63 = vmax.f32 %v7798_v61, 0.0 }
0x216b   : > { %21095 = vmatmul.mubr.msk.f32.vlgmr.msra.gmra.mrb[74].mxu1 %vm725_vm0, %v7799_v63  ;;  %v19048_v63 = vld [vmem:[%s26519_s0 + $0x8] ss:$0 sm:$0xff] }
0x216c   : > { %22596 = vmatpush3.bf16.msra.mxu1 %v22595_v62  ;;  %21119 = vmatprep.mubr.msk.f32.mxu1 %vm23410_vm1, %v23411_v17 }
0x216d   : > { %22597 = vmatprep.subr.bf16.mxu1 %v23409_v16 }
0x2170   : > { %22599 = vmatpush3.bf16.msra.mxu1 %v22598_v3 }
0x2171   : > { %22600 = vmatprep.subr.bf16.mxu1 %v23409_v16 }
0x2173   : > { %21120 = vmatmul.mubr.msk.f32.vlgmr.msra.gmra.mrb[76].mxu1 %vm725_vm0, %v24794_v54  ;;  %v19025_v54 = vld [vmem:[%s26486_s12 + $0x70] sm:$0xff] }
0x2174   : > { %21130 = vmatprep.mubr.msk.f32.mxu1 %vm23410_vm1, %v23411_v17  ;;  %22602 = vmatpush3.bf16.msra.mxu1 %v22601_v8  ;;  %v22610_v57 = vpack.c.bf16 %v19026_v56, %v19025_v54  ;;  %v19034_v8 = vld [vmem:[%s26485_s11 + $0x3f0] sm:$0xff] }
0x2175   : > { %22603 = vmatprep.subr.bf16.mxu1 %v23409_v16 }
0x2178   : > { %22605 = vmatpush3.bf16.msra.mxu1 %v22604_v40 }
0x2179   : > { %22619 = vmatprep.subr.bf16.mxu1 %v22618_v43 }
0x223e   : > { %v7875_v0 = vpop.f32.mrb[74].mxu1 }
0x223f   : > { %v7876_v12 = vadd.f32 %v19002_v10, %v7875_v0  ;;  %v21096_v13 = vpop.f32.mrb[75].mxu1  ;;  %v24927_v0 = vld [vmem:[%s26522_s24 + $0x10] sm:$0xff] }
0x2240   : > { %v8200_v13 = vld [vmem:[%s26487_s13 + $0x3] sm:$0x1] }
0x2241   : > { %v7879_v15 = vmax.f32 %v7876_v12, 0.0  ;;  %v19027_v12 = vld [vmem:[%s26488_s14 + $0x6] sm:$0x3] }
0x2243   : > { %21102 = vmatmul.mubr.msk.f32.vlgmr.msra.gmra.mrb[82].mxu0 %vm970_vm6, %v7879_v15 }
0x2244   : > { %21108 = vmatprep.mubr.msk.f32.mxu0 %vm23410_vm1, %v23411_v17  ;;  %22593 = vmatpush3.bf16.msra.mxu0 %v22592_v20 }
0x2245   : > { %22606 = vmatprep.subr.bf16.mxu0 %v23409_v16 }
0x2316   : > { %v7953_v26 = vpop.f32.mrb[82].mxu0 }
0x2317   : > { %v7954_v14 = vadd.f32 %v19006_v27, %v7953_v26  ;;  %v21103_v36 = vpop.f32.mrb[83].mxu0  ;;  %v22613_v27 = vpack.c.bf16 %v19033_v7, %v19032_v23  ;;  %v19035_v26 = vld [vmem:[%s26485_s11 + $0x3f8] sm:$0xff] }
0x2319   : > { %v7957_v37 = vmax.f32 %v7954_v14, 0.0  ;;  %v22616_v14 = vpack.c.bf16 %v19035_v26, %v19034_v8  ;;  %v19083_v8 = vld [vmem:[%s26523_s30 + $0x4e0] sm:$0xff] }
0x231b   : > { %21109 = vmatmul.mubr.msk.f32.vlgmr.msra.gmra.mrb[84].mxu0 %vm970_vm6, %v7957_v37 }
0x231c   : > { %21141 = vmatprep.mubr.msk.f32.mxu0 %vm23410_vm1, %v23411_v17  ;;  %22608 = vmatpush3.bf16.msra.mxu0 %v22607_v30 }
0x231d   : > { %22609 = vmatprep.subr.bf16.mxu0 %v23409_v16 }
0x2320   : > { %22611 = vmatpush3.bf16.msra.mxu0 %v22610_v57 }
0x2321   : > { %21144 = vmatprep.subr.mxu0 %v23411_v17 }
0x23ee   : > { %v8031_v60 = vpop.f32.mrb[84].mxu0 }
0x23ef   : > { %v8032_v21 = vadd.f32 %v19010_v46, %v8031_v60  ;;  %v21110_v50 = vpop.f32.mrb[85].mxu0  ;;  %v24994_v46 = vld [vmem:[%s26522_s24 + $0x20] sm:$0xff] }
0x23f0   : > { %v25020_v60 = vld [vmem:[%s26522_s24 + $0x40] sm:$0xff]  ;;  %v19054_v50 = vld [vmem:[%s26523_s30 + $0x488] sm:$0xff] }
0x23f1   : > { %v8038_v29 = vadd.f32 %v8037_v22, %v8032_v21  ;;  %v25072_v21 = vld [vmem:[%s26522_s24 + $0x80] sm:$0xff] }
0x23f2   : > { %v19053_v22 = vld [vmem:[%s26523_s30 + $0x480] sm:$0xff] }
0x23f3   : > { %21131 = vmatmul.mubr.msk.f32.vlgmr.msra.gmra.mrb[76].mxu1 %vm725_vm0, %v8038_v29  ;;  %v22638_v29 = vpack.c.bf16 %v19054_v50, %v19053_v22  ;;  %v19097_v50 = vld [vmem:[%s26482_s8 + $0x80] sm:$0xff] }
0x23f4   : > { %22621 = vmatpush3.bf16.msra.mxu1 %v22618_v43  ;;  %21168 = vmatprep.mubr.msk.f32.mxu1 %vm725_vm0, %v8463_v59 }
0x23f5   : > { %22623 = vmatprep.subr.bf16.mxu1 %v22622_v52 }
0x23f8   : > { %22625 = vmatpush3.bf16.msra.mxu1 %v22622_v52  ;;  %v19064_v52 = vld [vmem:[%s26523_s30 + $0x4a8] sm:$0xff] }
0x23f9   : > { %22630 = vmatprep.subr.bf16.mxu1 %v23409_v16  ;;  %v22645_v57 = vpack.c.bf16 %v19064_v52, %v19063_v51 }
0x23fb   : > { %21169 = vmatmul.mubr.msk.f32.vlgmr.msra.gmra.mrb[78].mxu1 %vm725_vm0, %v8464_v55  ;;  %v8445_v55 = vstv %s19038_s21  ;;  %s19164_s21 = sld [smem:[#allocation2 + $0x11]] }
0x23fc   : > { %21182 = vmatprep.mubr.msk.f32.mxu1 %vm23410_vm1, %v23411_v17 }
0x24c6   : > { %v8190_v58 = vpop.f32.mrb[76].mxu1 }
0x24c7   : > { %v8194_v61 = vmax.f32 %v8190_v58, 0.0  ;;  %v21132_v62 = vpop.f32.mrb[77].mxu1  ;;  %v8443_v58 = vmul.f32 %v8442_v53, %v24738_v24  ;;  %v19069_v24 = vld [vmem:[%s26523_s30 + $0x4b8] sm:$0xff] }
0x24c9   : > { %21142 = vmatmul.mubr.msk.f32.vlgmr.msra.gmra.mrb[86].mxu0 %vm725_vm0, %v8194_v61 }
0x24ca   : > { %21146 = vmatprep.mubr.msk.f32.mxu0 %vm23410_vm1, %v23411_v17  ;;  %21145 = vmatpush3.msk.msra.mxu0 %vm4069_vm8, %v19027_v12 }
0x24cb   : > { %22612 = vmatprep.subr.bf16.mxu0 %v23409_v16 }
0x24ce   : > { %v21170_v1 = vpop.f32.mrb[78].mxu1 }
0x24cf   : > { %v8554_v2 = vadd.f32 %v21170_v1, %v19048_v63  ;;  %v8548_v3 = vpop.f32.mrb[79].mxu1 }
0x24d0   : > { %v8549_v4 = vadd.f32 %v19048_v63, %v8548_v3 }
0x24d1   : > { %v8558_v5 = vmax.f32 %v8554_v2, 0.0  ;;  %v19068_v2 = vld [vmem:[%s26523_s30 + $0x4b0] sm:$0xff] }
0x24d2   : > { %v8557_v6 = vmax.f32 %v8549_v4, 0.0 }
0x24d4   : > { %v24918_v10 = vpack.c.bf16 %v8558_v5, %v8557_v6  ;;  %v22652_v5 = vpack.c.bf16 %v19069_v24, %v19068_v2  ;;  %v19073_v6 = vld [vmem:[%s26523_s30 + $0x4c0] sm:$0xff] }
0x24d6   : > { %22633 = vmatpush3.bf16.msk.msra.mxu1 %vm23605_vm4, %v24918_v10 }
0x24d7   : > { %22637 = vmatprep.subr.bf16.mxu1 %v23409_v16 }
0x24d9   : > { %21183 = vmatmul.mubr.msk.f32.vlgmr.msra.gmra.mrb[80].mxu1 %vm811_vm5, %v24927_v0 }
0x24da   : > { %21196 = vmatprep.mubr.msk.f32.mxu1 %vm23410_vm1, %v23411_v17  ;;  %22639 = vmatpush3.bf16.msra.mxu1 %v22638_v29  ;;  %v19098_v29 = vld [vmem:[%s26482_s8 + $0x88] sm:$0xff] }
0x24db   : > { %22644 = vmatprep.subr.bf16.mxu1 %v23409_v16  ;;  %v22690_v51 = vpack.c.bf16 %v19098_v29, %v19097_v50 }
0x259c   : > { %v8274_v15 = vpop.f32.mrb[86].mxu0 }
0x259d   : > { %v8275_v18 = vadd.f32 %v8274_v15, %v8200_v13  ;;  %v21143_v19 = vpop.f32.mrb[87].mxu0 }
0x259e   : > { %v19079_v19 = vld [vmem:[%s26523_s30 + $0x4d8] sm:$0xff] }
0x259f   : > { %v8278_v20 = vmax.f32 %v8275_v18, 0.0  ;;  %v19078_v18 = vld [vmem:[%s26523_s30 + $0x4d0] sm:$0xff] }
0x25a0   : > { %v22666_v7 = vpack.c.bf16 %v19079_v19, %v19078_v18  ;;  %v19096_v19 = vld [vmem:[%s26481_s7 + $0x8] sm:$0x1] }
0x25a1   : > { %21147 = vmatmul.mubr.msk.f32.vlgmr.msra.gmra.mrb[88].mxu0 %vm4065_vm9, %v8278_v20 }
0x25a2   : > { %21157 = vmatprep.mubr.msk.f32.mxu0 %vm23410_vm1, %v23411_v17  ;;  %22614 = vmatpush3.bf16.msra.mxu0 %v22613_v27  ;;  %v19084_v27 = vld [vmem:[%s26523_s30 + $0x4e8] sm:$0xff] }
0x25a3   : > { %22615 = vmatprep.subr.bf16.mxu0 %v23409_v16 }
0x25a6   : > { %22617 = vmatpush3.bf16.msra.mxu0 %v22616_v14 }
0x25a7   : > { %22626 = vmatprep.subr.bf16.mxu0 %v23409_v16 }
0x25ac   : > { %v8701_v36 = vpop.f32.mrb[80].mxu1 }
0x25ad   : > { %v21184_v37 = vpop.f32.mrb[81].mxu1 }
0x25ae   : > { %v19088_v37 = vld [vmem:[%s26523_s30 + $0x4f0] sm:$0xff] }
0x2674   : > { %v8351_v39 = vpop.f32.mrb[88].mxu0 }
0x2675   : > { %v8352_v40 = vadd.f32 %v8351_v39, %v8203_v38  ;;  %v21148_v41 = vpop.f32.mrb[89].mxu0  ;;  %v19089_v38 = vld [vmem:[%s26523_s30 + $0x4f8] sm:$0xff] }
0x2676   : > { %v22680_v41 = vpack.c.bf16 %v19089_v38, %v19088_v37  ;;  %v19109_v37 = vld [vmem:[%s26516_s6 + $0x138] sm:$0xff] }
0x2677   : > { %v19031_v42 = vmul.f32 -1.442695, %v8352_v40 }
0x2679   : > { %23325 = vpow2.f32 %v19031_v42  ;;  %v19093_v42 = vld [vmem:[%s26523_s30 + $0x500] sm:$0xff] }
0x2683   : > { %v23326_v43 = vpop.eup %23325 }
0x2684   : > { %v8358_v44 = vadd.f32 1.0, %v23326_v43  ;;  %v19094_v43 = vld [vmem:[%s26523_s30 + $0x508] sm:$0xff] }
0x2686   : > { %23327 = vrcp.f32 %v8358_v44 }
0x2690   : > { %v23328_v28 = vpop.eup %23327 }
0x2691   : > { %v8361_v30 = vmul.f32 %v23328_v28, %v8194_v61 }
0x2693   : > { %21158 = vmatmul.mubr.msk.f32.vlgmr.msra.gmra.mrb[90].mxu0 %vm725_vm0, %v8361_v30  ;;  %v22687_v30 = vpack.c.bf16 %v19094_v43, %v19093_v42 }
0x2694   : > { %22629 = vmatpush3.bf16.msk.msra.mxu0 %vm23605_vm4, %v24918_v10  ;;  %21175 = vmatprep.mubr.msk.f32.mxu0 %vm23410_vm1, %v23411_v17 }
0x2695   : > { %22634 = vmatprep.subr.bf16.mxu0 %v23409_v16 }
0x2697   : > { %21176 = vmatmul.mubr.msk.f32.vlgmr.msra.gmra.mrb[92].mxu0 %vm811_vm5, %v24977_v34 }
0x2698   : > { %22636 = vmatpush3.bf16.msra.mxu0 %v22635_v33  ;;  %21189 = vmatprep.mubr.msk.f32.mxu0 %vm23410_vm1, %v23411_v17 }
0x2699   : > { %22640 = vmatprep.subr.bf16.mxu0 %v23409_v16 }
0x269b   : > { %21190 = vmatmul.mubr.msk.f32.vlgmr.msra.gmra.mrb[94].mxu0 %vm970_vm6, %v8701_v36  ;;  %v22673_v36 = vpack.c.bf16 %v19084_v27, %v19083_v8  ;;  %v19106_v27 = vld [vmem:[%s26516_s6 + $0x120] sm:$0xff] }
0x269c   : > { %22643 = vmatpush3.bf16.msk.msra.mxu0 %vm23605_vm4, %v24918_v10  ;;  %21203 = vmatprep.mubr.msk.f32.mxu0 %vm23410_vm1, %v23411_v17 }
0x269d   : > { %22647 = vmatprep.subr.bf16.mxu0 %v23409_v16 }
0x269f   : > { %21204 = vmatmul.mubr.msk.f32.vlgmr.msra.gmra.mrb[96].mxu0 %vm811_vm5, %v24994_v46 }
0x26a0   : > { %22650 = vmatpush3.bf16.msk.msra.mxu0 %vm23605_vm4, %v24918_v10  ;;  %21217 = vmatprep.mubr.msk.f32.mxu0 %vm23410_vm1, %v23411_v17 }
0x26a1   : > { %22654 = vmatprep.subr.bf16.mxu0 %v23409_v16 }
0x26a3   : > { %21218 = vmatmul.mubr.msk.f32.vlgmr.msra.gmra.mrb[98].mxu0 %vm811_vm5, %v25007_v35 }
0x26a4   : > { %22657 = vmatpush3.bf16.msk.msra.mxu0 %vm23605_vm4, %v24918_v10  ;;  %21231 = vmatprep.mubr.msk.f32.mxu0 %vm23410_vm1, %v23411_v17 }
0x26a5   : > { %22661 = vmatprep.subr.bf16.mxu0 %v23409_v16 }
0x26a7   : > { %21232 = vmatmul.mubr.msk.f32.vlgmr.msra.gmra.mrb[100].mxu0 %vm811_vm5, %v25020_v60 }
0x26a8   : > { %22664 = vmatpush3.bf16.msk.msra.mxu0 %vm23605_vm4, %v24918_v10  ;;  %21245 = vmatprep.mubr.msk.f32.mxu0 %vm23410_vm1, %v23411_v17 }
0x26a9   : > { %22668 = vmatprep.subr.bf16.mxu0 %v23409_v16 }
0x26ab   : > { %21246 = vmatmul.mubr.msk.f32.vlgmr.msra.gmra.mrb[102].mxu0 %vm811_vm5, %v25033_v47 }
0x26ac   : > { %22671 = vmatpush3.bf16.msk.msra.mxu0 %vm23605_vm4, %v24918_v10  ;;  %21259 = vmatprep.mubr.msk.f32.mxu0 %vm23410_vm1, %v23411_v17 }
0x26ad   : > { %22675 = vmatprep.subr.bf16.mxu0 %v23409_v16 }
0x26af   : > { %21260 = vmatmul.mubr.msk.f32.vlgmr.msra.gmra.mrb[104].mxu0 %vm811_vm5, %v25046_v48 }
0x26b0   : > { %22678 = vmatpush3.bf16.msk.msra.mxu0 %vm23605_vm4, %v24918_v10  ;;  %21273 = vmatprep.mubr.msk.f32.mxu0 %vm23410_vm1, %v23411_v17 }
0x26b1   : > { %22682 = vmatprep.subr.bf16.mxu0 %v23409_v16 }
0x26b3   : > { %21274 = vmatmul.mubr.msk.f32.vlgmr.msra.gmra.mrb[106].mxu0 %vm811_vm5, %v25059_v49 }
0x26b4   : > { %22685 = vmatpush3.bf16.msk.msra.mxu0 %vm23605_vm4, %v24918_v10  ;;  %21287 = vmatprep.mubr.msk.f32.mxu0 %vm23410_vm1, %v23411_v17  ;;  %v19074_v10 = vld [vmem:[%s26523_s30 + $0x4c8] sm:$0xff] }
0x26b5   : > { %22689 = vmatprep.subr.bf16.mxu0 %v23409_v16  ;;  %v22659_v15 = vpack.c.bf16 %v19074_v10, %v19073_v6 }
0x26b7   : > { %21288 = vmatmul.mubr.msk.f32.vlgmr.msra.gmra.mrb[108].mxu0 %vm811_vm5, %v25072_v21 }
0x26b8   : > { %21301 = vmatprep.mubr.msk.f32.mxu0 %vm23410_vm1, %v23411_v17  ;;  %22691 = vmatpush3.bf16.msra.mxu0 %v22690_v51 }
0x26b9   : > { %22700 = vmatprep.subr.bf16.mxu0 %v23409_v16 }
0x2766   : > { %v8436_v59 = vpop.f32.mrb[90].mxu0 }
0x2767   : > { %v8440_v54 = vmax.f32 %v8436_v59, 0.0  ;;  %v21159_v56 = vpop.f32.mrb[91].mxu0 }
0x2769   : > { %v8446_v61 = vmul.f32 %v8445_v55, %v8440_v54 }
0x276a   : > { %v8628_v62 = vpop.f32.mrb[92].mxu0 }
0x276b   : > { %v25092_v63 = vadd.f32 %v8446_v61, %v8443_v58  ;;  %v21177_v1 = vpop.f32.mrb[93].mxu0  ;;  %21197 = vmatmul.mubr.msk.f32.vlgmr.msra.gmra.mrb[82].mxu1 %vm970_vm6, %v8628_v62 }
0x276c   : > { %22646 = vmatpush3.bf16.msra.mxu1 %v22645_v57  ;;  %21210 = vmatprep.mubr.msk.f32.mxu1 %vm23410_vm1, %v23411_v17 }
0x276d   : > { %22651 = vmatprep.subr.bf16.mxu1 %v23409_v16 }
0x276e   : > { %v8777_v3 = vpop.f32.mrb[94].mxu0 }
0x276f   : > { %v21191_v4 = vpop.f32.mrb[95].mxu0 }
0x2772   : > { %v8920_v12 = vpop.f32.mrb[96].mxu0 }
0x2773   : > { %v21205_v13 = vpop.f32.mrb[97].mxu0  ;;  %21211 = vmatmul.mubr.msk.f32.vlgmr.msra.gmra.mrb[84].mxu1 %vm970_vm6, %v8920_v12 }
0x2774   : > { %22653 = vmatpush3.bf16.msra.mxu1 %v22652_v5  ;;  %21224 = vmatprep.mubr.msk.f32.mxu1 %vm23410_vm1, %v23411_v17 }
0x2775   : > { %22658 = vmatprep.subr.bf16.mxu1 %v23409_v16 }
0x2776   : > { %v9067_v20 = vpop.f32.mrb[98].mxu0 }
0x2777   : > { %v21219_v23 = vpop.f32.mrb[99].mxu0  ;;  %21225 = vmatmul.mubr.msk.f32.vlgmr.msra.gmra.mrb[86].mxu1 %vm970_vm6, %v9067_v20 }
0x2778   : > { %22660 = vmatpush3.bf16.msra.mxu1 %v22659_v15  ;;  %21238 = vmatprep.mubr.msk.f32.mxu1 %vm23410_vm1, %v23411_v17 }
0x2779   : > { %22665 = vmatprep.subr.bf16.mxu1 %v23409_v16 }
0x277a   : > { %v9214_v26 = vpop.f32.mrb[100].mxu0 }
0x277b   : > { %v21233_v14 = vpop.f32.mrb[101].mxu0  ;;  %21239 = vmatmul.mubr.msk.f32.vlgmr.msra.gmra.mrb[88].mxu1 %vm970_vm6, %v9214_v26  ;;  %v19107_v26 = vld [vmem:[%s26516_s6 + $0x128] sm:$0xff] }
0x277c   : > { %22667 = vmatpush3.bf16.msra.mxu1 %v22666_v7  ;;  %21252 = vmatprep.mubr.msk.f32.mxu1 %vm23410_vm1, %v23411_v17  ;;  %v22692_v14 = vpack.c.bf16 %v19107_v26, %v19106_v27  ;;  %v19132_v27 = vld [vmem:[%s26523_s30 + $0x548] sm:$0xff] }
0x277d   : > { %22672 = vmatprep.subr.bf16.mxu1 %v23409_v16 }
0x277e   : > { %v9361_v39 = vpop.f32.mrb[102].mxu0 }
0x277f   : > { %v21247_v40 = vpop.f32.mrb[103].mxu0  ;;  %21253 = vmatmul.mubr.msk.f32.vlgmr.msra.gmra.mrb[90].mxu1 %vm970_vm6, %v9361_v39  ;;  %v19099_v39 = vld [vmem:[%s26483_s9 + $0x8] sm:$0x1] }
0x2780   : > { %22674 = vmatpush3.bf16.msra.mxu1 %v22673_v36  ;;  %21266 = vmatprep.mubr.msk.f32.mxu1 %vm23410_vm1, %v23411_v17  ;;  %v19108_v36 = vld [vmem:[%s26516_s6 + $0x130] sm:$0xff] }
0x2781   : > { %22679 = vmatprep.subr.bf16.mxu1 %v23409_v16  ;;  %v22696_v38 = vpack.c.bf16 %v19109_v37, %v19108_v36 }
0x2782   : > { %v9508_v44 = vpop.f32.mrb[104].mxu0 }
0x2783   : > { %v21261_v28 = vpop.f32.mrb[105].mxu0  ;;  %21267 = vmatmul.mubr.msk.f32.vlgmr.msra.gmra.mrb[92].mxu1 %vm970_vm6, %v9508_v44 }
0x2784   : > { %22681 = vmatpush3.bf16.msra.mxu1 %v22680_v41  ;;  %21280 = vmatprep.mubr.msk.f32.mxu1 %vm23410_vm1, %v23411_v17  ;;  %v9966_v41 = vstv %s19101_s25  ;;  %s19267_s25 = sld [smem:[#allocation2 + $0x12]] }
0x2785   : > { %22686 = vmatprep.subr.bf16.mxu1 %v23409_v16  ;;  %v9967_v44 = vmul.f32 %v9966_v41, %v24876_v31  ;;  %v9968_v28 = vmul.f32 %v9966_v41, %v24889_v9 }
0x2786   : > { %v9655_v45 = vpop.f32.mrb[106].mxu0 }
0x2787   : > { %v21275_v32 = vpop.f32.mrb[107].mxu0  ;;  %21281 = vmatmul.mubr.msk.f32.vlgmr.msra.gmra.mrb[94].mxu1 %vm970_vm6, %v9655_v45  ;;  %v19103_v45 = vld [vmem:[%s26517_s1 + $0x12] ss:$0 sm:$0xff] }
0x2788   : > { %22688 = vmatpush3.bf16.msra.mxu1 %v22687_v30  ;;  %21294 = vmatprep.mubr.msk.f32.mxu1 %vm23410_vm1, %v23411_v17 }
0x2789   : > { %22693 = vmatprep.subr.bf16.mxu1 %v22692_v14 }
0x278a   : > { %v9802_v33 = vpop.f32.mrb[108].mxu0 }
0x278b   : > { %v21289_v22 = vpop.f32.mrb[109].mxu0  ;;  %21295 = vmatmul.mubr.msk.f32.vlgmr.msra.gmra.mrb[96].mxu1 %vm970_vm6, %v9802_v33 }
0x278c   : > { %22695 = vmatpush3.bf16.msra.mxu1 %v22692_v14  ;;  %v19105_v22 = vld [vmem:[%s26517_s1 + $0x13] ss:$0 sm:$0xff] }
0x278d   : > { %22697 = vmatprep.subr.bf16.mxu1 %v22696_v38 }
0x2790   : > { %22699 = vmatpush3.bf16.msra.mxu1 %v22696_v38  ;;  %v19136_v38 = vld [vmem:[%s26523_s30 + $0x550] sm:$0xff] }
0x2791   : > { %22708 = vmatprep.subr.bf16.mxu1 %v23409_v16 }
0x283e   : > { %v8850_v52 = vpop.f32.mrb[82].mxu1 }
0x283f   : > { %v8851_v59 = vadd.f32 %v8850_v52, %v8777_v3  ;;  %v21198_v53 = vpop.f32.mrb[83].mxu1 }
0x2846   : > { %v8996_v55 = vpop.f32.mrb[84].mxu1 }
0x2847   : > { %v9000_v54 = vadd.f32 %v8996_v55, %v8851_v59  ;;  %v21212_v56 = vpop.f32.mrb[85].mxu1  ;;  %v19111_v55 = vld [vmem:[%s26519_s0 + $0x9] ss:$0 sm:$0xff] }
0x284a   : > { %v9143_v57 = vpop.f32.mrb[86].mxu1 }
0x284b   : > { %v9147_v58 = vadd.f32 %v9143_v57, %v9000_v54  ;;  %v21226_v61 = vpop.f32.mrb[87].mxu1 }
0x284e   : > { %v9290_v62 = vpop.f32.mrb[88].mxu1 }
0x284f   : > { %v9294_v1 = vadd.f32 %v9290_v62, %v9147_v58  ;;  %v21240_v2 = vpop.f32.mrb[89].mxu1 }
0x2850   : > { %v19116_v2 = vld [vmem:[%s26523_s30 + $0x510] sm:$0xff] }
0x2852   : > { %v9437_v24 = vpop.f32.mrb[90].mxu1 }
0x2853   : > { %v9441_v4 = vadd.f32 %v9437_v24, %v9294_v1  ;;  %v21254_v5 = vpop.f32.mrb[91].mxu1  ;;  %v19117_v24 = vld [vmem:[%s26523_s30 + $0x518] sm:$0xff] }
0x2854   : > { %v19120_v5 = vld [vmem:[%s26523_s30 + $0x520] sm:$0xff] }
0x2856   : > { %v9584_v6 = vpop.f32.mrb[92].mxu1 }
0x2857   : > { %v9588_v10 = vadd.f32 %v9584_v6, %v9441_v4  ;;  %v21268_v12 = vpop.f32.mrb[93].mxu1  ;;  %v22712_v4 = vpack.c.bf16 %v19117_v24, %v19116_v2  ;;  %v19121_v6 = vld [vmem:[%s26523_s30 + $0x528] sm:$0xff] }
0x285a   : > { %v9731_v13 = vpop.f32.mrb[94].mxu1 }
0x285b   : > { %v9735_v15 = vadd.f32 %v9731_v13, %v9588_v10  ;;  %v21282_v18 = vpop.f32.mrb[95].mxu1  ;;  %v22709_v10 = vpack.c.bf16 %v19121_v6, %v19120_v5  ;;  %v19171_v6 = vld [vmem:[%s26484_s10 + $0x130] sm:$0xff] }
0x285e   : > { %v9878_v3 = vpop.f32.mrb[96].mxu1 }
0x285f   : > { %v9882_v20 = vadd.f32 %v9878_v3, %v9735_v15  ;;  %v21296_v23 = vpop.f32.mrb[97].mxu1  ;;  %v19126_v3 = vld [vmem:[%s26523_s30 + $0x530] sm:$0xff] }
0x2861   : > { %v9885_v7 = vadd.f32 %v19096_v19, %v9882_v20  ;;  %v19127_v19 = vld [vmem:[%s26523_s30 + $0x538] sm:$0xff] }
0x2862   : > { %v22719_v20 = vpack.c.bf16 %v19127_v19, %v19126_v3  ;;  %v19160_v3 = vld [vmem:[%s26482_s8 + $0x90] sm:$0xff]  ;;  %v19161_v19 = vld [vmem:[%s26482_s8 + $0x98] sm:$0xff] }
0x2863   : > { %v9886_v8 = vmax.f32 %v9885_v7, 0.0 }
0x2865   : > { %21302 = vmatmul.mubr.msk.f32.vlgmr.msra.gmra.mrb[110].mxu0 %vm970_vm6, %v9886_v8  ;;  %v19131_v8 = vld [vmem:[%s26523_s30 + $0x540] sm:$0xff] }
0x2866   : > { %21319 = vmatprep.mubr.msk.f32.mxu0 %vm23410_vm1, %v23411_v17  ;;  %v22726_v37 = vpack.c.bf16 %v19132_v27, %v19131_v8 }
0x2938   : > { %v9961_v40 = vpop.f32.mrb[110].mxu0 }
0x2939   : > { %v9962_v42 = vadd.f32 %v19099_v39, %v9961_v40  ;;  %v21303_v43 = vpop.f32.mrb[111].mxu0  ;;  %v19137_v39 = vld [vmem:[%s26523_s30 + $0x558] sm:$0xff] }
0x293a   : > { %v19141_v43 = vld [vmem:[%s26523_s30 + $0x560] sm:$0xff] }
0x293b   : > { %v9972_v30 = vrot.slane %v9962_v42, %v23833_v11  ;;  %v22733_v42 = vpack.c.bf16 %v19137_v39, %v19136_v38 }
0x293d   : > { %v25193_v32 = vadd.f32 %v9972_v30, %v9967_v44  ;;  %v25195_v33 = vadd.f32 %v9972_v30, %v9968_v28  ;;  %v19142_v44 = vld [vmem:[%s26523_s30 + $0x568] sm:$0xff] }
0x293f   : > { %v9981_v50 = vmul.f32 %v19103_v45, %v25193_v32  ;;  %v9982_v29 = vmul.f32 %v19103_v45, %v25195_v33  ;;  %v22740_v45 = vpack.c.bf16 %v19142_v44, %v19141_v43 }
0x2941   : > { %v9988_v51 = vadd.f32 %v19105_v22, %v9981_v50  ;;  %v9989_v52 = vadd.f32 %v19105_v22, %v9982_v29  ;;  %v19146_v22 = vld [vmem:[%s26523_s30 + $0x570] sm:$0xff]  ;;  %v19147_v50 = vld [vmem:[%s26523_s30 + $0x578] sm:$0xff] }
0x2943   : > { %v9990_v59 = vmax.f32 %v9988_v51, 0.0  ;;  %v9991_v53 = vmax.f32 %v9989_v52, 0.0  ;;  %v22747_v52 = vpack.c.bf16 %v19147_v50, %v19146_v22 }
0x2945   : > { %21312 = vmatprep.mubr.msk.f32.mxu1 %vm725_vm0, %v9990_v59  ;;  %v19151_v59 = vld [vmem:[%s26523_s30 + $0x580] sm:$0xff] }
0x2946   : > { %21313 = vmatmul.mubr.msk.f32.vlgmr.msra.gmra.mrb[98].mxu1 %vm725_vm0, %v9991_v53  ;;  %v19152_v53 = vld [vmem:[%s26523_s30 + $0x588] sm:$0xff] }
0x2947   : > { %21333 = vmatprep.mubr.msk.f32.mxu1 %vm23410_vm1, %v23411_v17  ;;  %22710 = vmatpush3.bf16.msra.mxu1 %v22709_v10  ;;  %v19172_v10 = vld [vmem:[%s26484_s10 + $0x138] sm:$0xff] }
0x2948   : > { %22714 = vmatprep.subr.bf16.mxu1 %v23409_v16 }
0x2a19   : > { %v21314_v54 = vpop.f32.mrb[98].mxu1 }
0x2a1a   : > { %v10080_v56 = vadd.f32 %v21314_v54, %v19111_v55  ;;  %v10074_v57 = vpop.f32.mrb[99].mxu1 }
0x2a1b   : > { %v10075_v58 = vadd.f32 %v19111_v55, %v10074_v57  ;;  %v19156_v57 = vld [vmem:[%s26523_s30 + $0x590] sm:$0xff] }
0x2a1c   : > { %v10084_v61 = vmax.f32 %v10080_v56, 0.0  ;;  %v22754_v56 = vpack.c.bf16 %v19152_v53, %v19151_v59  ;;  %v19165_v53 = vld [vmem:[%s26484_s10 + $0x100] sm:$0xff] }
0x2a1d   : > { %v10083_v62 = vmax.f32 %v10075_v58, 0.0  ;;  %v19157_v58 = vld [vmem:[%s26523_s30 + $0x598] sm:$0xff] }
0x2a1e   : > { %v22761_v24 = vpack.c.bf16 %v19157_v58, %v19156_v57  ;;  %v19168_v57 = vld [vmem:[%s26484_s10 + $0x118] sm:$0xff] }
0x2a1f   : > { %v22701_v1 = vpack.c.bf16 %v10084_v61, %v10083_v62  ;;  %v19169_v62 = vld [vmem:[%s26484_s10 + $0x120] sm:$0xff] }
0x2a21   : > { %22703 = vmatpush3.bf16.msk.msra.mxu0 %vm23605_vm4, %v22701_v1 }
0x2a22   : > { %22704 = vmatprep.subr.bf16.mxu0 %v23409_v16 }
0x2a24   : > { %21320 = vmatmul.mubr.msk.f32.vlgmr.msra.gmra.mrb[112].mxu0 %vm811_vm5, %v24977_v34 }
0x2a25   : > { %22707 = vmatpush3.bf16.msk.msra.mxu0 %vm23605_vm4, %v22701_v1  ;;  %21326 = vmatprep.mubr.msk.f32.mxu0 %vm23410_vm1, %v23411_v17 }
0x2a26   : > { %22711 = vmatprep.subr.bf16.mxu0 %v23409_v16 }
0x2a28   : > { %21327 = vmatmul.mubr.msk.f32.vlgmr.msra.gmra.mrb[114].mxu0 %vm811_vm5, %v24927_v0 }
0x2a29   : > { %22713 = vmatpush3.bf16.msra.mxu0 %v22712_v4  ;;  %21340 = vmatprep.mubr.msk.f32.mxu0 %vm23410_vm1, %v23411_v17 }
0x2a2a   : > { %22718 = vmatprep.subr.bf16.mxu0 %v23409_v16 }
0x2af7   : > { %v10154_v12 = vpop.f32.mrb[112].mxu0 }
0x2af8   : > { %v21321_v13 = vpop.f32.mrb[113].mxu0  ;;  %21341 = vmatmul.mubr.msk.f32.vlgmr.msra.gmra.mrb[116].mxu0 %vm970_vm6, %v10154_v12 }
0x2af9   : > { %21354 = vmatprep.mubr.msk.f32.mxu0 %vm23410_vm1, %v23411_v17  ;;  %22720 = vmatpush3.bf16.msra.mxu0 %v22719_v20  ;;  %v22770_v13 = vpack.c.bf16 %v19172_v10, %v19171_v6  ;;  %v22764_v20 = vpack.c.bf16 %v19161_v19, %v19160_v3 }
0x2afa   : > { %22725 = vmatprep.subr.bf16.mxu0 %v23409_v16 }
0x2afb   : > { %v10227_v15 = vpop.f32.mrb[114].mxu0 }
0x2afc   : > { %v21328_v18 = vpop.f32.mrb[115].mxu0  ;;  %21334 = vmatmul.mubr.msk.f32.vlgmr.msra.gmra.mrb[100].mxu1 %vm970_vm6, %v10227_v15 }
0x2afd   : > { %22717 = vmatpush3.bf16.msk.msra.mxu1 %vm23605_vm4, %v22701_v1  ;;  %21347 = vmatprep.mubr.msk.f32.mxu1 %vm23410_vm1, %v23411_v17 }
0x2afe   : > { %22721 = vmatprep.subr.bf16.mxu1 %v23409_v16 }
0x2b00   : > { %21348 = vmatmul.mubr.msk.f32.vlgmr.msra.gmra.mrb[102].mxu1 %vm811_vm5, %v24994_v46 }
0x2b01   : > { %22724 = vmatpush3.bf16.msk.msra.mxu1 %vm23605_vm4, %v22701_v1  ;;  %21361 = vmatprep.mubr.msk.f32.mxu1 %vm23410_vm1, %v23411_v17 }
0x2b02   : > { %22728 = vmatprep.subr.bf16.mxu1 %v23409_v16 }
0x2b04   : > { %21362 = vmatmul.mubr.msk.f32.vlgmr.msra.gmra.mrb[104].mxu1 %vm811_vm5, %v25007_v35 }
0x2b05   : > { %22731 = vmatpush3.bf16.msk.msra.mxu1 %vm23605_vm4, %v22701_v1  ;;  %21375 = vmatprep.mubr.msk.f32.mxu1 %vm23410_vm1, %v23411_v17 }
0x2b06   : > { %22735 = vmatprep.subr.bf16.mxu1 %v23409_v16 }
0x2b08   : > { %21376 = vmatmul.mubr.msk.f32.vlgmr.msra.gmra.mrb[106].mxu1 %vm811_vm5, %v25020_v60 }
0x2b09   : > { %22738 = vmatpush3.bf16.msk.msra.mxu1 %vm23605_vm4, %v22701_v1  ;;  %21389 = vmatprep.mubr.msk.f32.mxu1 %vm23410_vm1, %v23411_v17 }
0x2b0a   : > { %22742 = vmatprep.subr.bf16.mxu1 %v23409_v16 }
0x2b0c   : > { %21390 = vmatmul.mubr.msk.f32.vlgmr.msra.gmra.mrb[108].mxu1 %vm811_vm5, %v25033_v47 }
0x2b0d   : > { %22745 = vmatpush3.bf16.msk.msra.mxu1 %vm23605_vm4, %v22701_v1  ;;  %21403 = vmatprep.mubr.msk.f32.mxu1 %vm23410_vm1, %v23411_v17 }
0x2b0e   : > { %22749 = vmatprep.subr.bf16.mxu1 %v23409_v16 }
0x2b10   : > { %21404 = vmatmul.mubr.msk.f32.vlgmr.msra.gmra.mrb[110].mxu1 %vm811_vm5, %v25046_v48 }
0x2b11   : > { %22752 = vmatpush3.bf16.msk.msra.mxu1 %vm23605_vm4, %v22701_v1  ;;  %21417 = vmatprep.mubr.msk.f32.mxu1 %vm23410_vm1, %v23411_v17 }
0x2b12   : > { %22756 = vmatprep.subr.bf16.mxu1 %v23409_v16 }
0x2b14   : > { %21418 = vmatmul.mubr.msk.f32.vlgmr.msra.gmra.mrb[112].mxu1 %vm811_vm5, %v25059_v49 }
0x2b15   : > { %22759 = vmatpush3.bf16.msk.msra.mxu1 %vm23605_vm4, %v22701_v1  ;;  %21431 = vmatprep.mubr.msk.f32.mxu1 %vm23410_vm1, %v23411_v17  ;;  %v19170_v1 = vld [vmem:[%s26484_s10 + $0x128] sm:$0xff] }
0x2b16   : > { %22763 = vmatprep.subr.bf16.mxu1 %v23409_v16  ;;  %v22766_v4 = vpack.c.bf16 %v19170_v1, %v19169_v62  ;;  %v11490_v1 = vstv %s19164_s21  ;;  %s26526_s21 = sld [smem:[#allocation14_spill]] }
0x2b18   : > { %21432 = vmatmul.mubr.msk.f32.vlgmr.msra.gmra.mrb[114].mxu1 %vm811_vm5, %v25072_v21 }
0x2b19   : > { %21445 = vmatprep.mubr.msk.f32.mxu1 %vm23410_vm1, %v23411_v17  ;;  %22765 = vmatpush3.bf16.msra.mxu1 %v22764_v20 }
0x2b1a   : > { %22782 = vmatprep.subr.bf16.mxu1 %v23409_v16 }
0x2bcb   : > { %v10376_v23 = vpop.f32.mrb[116].mxu0 }
0x2bcc   : > { %v21342_v7 = vpop.f32.mrb[117].mxu0 }
0x2bcf   : > { %v10303_v26 = vpop.f32.mrb[100].mxu1 }
0x2bd0   : > { %v25305_v14 = vadd.f32 %v10376_v23, %v10303_v26  ;;  %v21335_v36 = vpop.f32.mrb[101].mxu1 }
0x2bd3   : > { %v10446_v40 = vpop.f32.mrb[102].mxu1 }
0x2bd4   : > { %v21349_v41 = vpop.f32.mrb[103].mxu1  ;;  %21355 = vmatmul.mubr.msk.f32.vlgmr.msra.gmra.mrb[118].mxu0 %vm970_vm6, %v10446_v40 }
0x2bd5   : > { %22727 = vmatpush3.bf16.msra.mxu0 %v22726_v37  ;;  %21368 = vmatprep.mubr.msk.f32.mxu0 %vm23410_vm1, %v23411_v17 }
0x2bd6   : > { %22732 = vmatprep.subr.bf16.mxu0 %v23409_v16 }
0x2bd7   : > { %v10593_v28 = vpop.f32.mrb[104].mxu1 }
0x2bd8   : > { %v21363_v30 = vpop.f32.mrb[105].mxu1  ;;  %21369 = vmatmul.mubr.msk.f32.vlgmr.msra.gmra.mrb[120].mxu0 %vm970_vm6, %v10593_v28 }
0x2bd9   : > { %22734 = vmatpush3.bf16.msra.mxu0 %v22733_v42  ;;  %21382 = vmatprep.mubr.msk.f32.mxu0 %vm23410_vm1, %v23411_v17 }
0x2bda   : > { %22739 = vmatprep.subr.bf16.mxu0 %v23409_v16 }
0x2bdb   : > { %v10740_v29 = vpop.f32.mrb[106].mxu1 }
0x2bdc   : > { %v21377_v51 = vpop.f32.mrb[107].mxu1  ;;  %21383 = vmatmul.mubr.msk.f32.vlgmr.msra.gmra.mrb[122].mxu0 %vm970_vm6, %v10740_v29 }
0x2bdd   : > { %22741 = vmatpush3.bf16.msra.mxu0 %v22740_v45  ;;  %21396 = vmatprep.mubr.msk.f32.mxu0 %vm23410_vm1, %v23411_v17 }
0x2bde   : > { %22746 = vmatprep.subr.bf16.mxu0 %v23409_v16 }
0x2bdf   : > { %v10887_v55 = vpop.f32.mrb[108].mxu1 }
0x2be0   : > { %v21391_v54 = vpop.f32.mrb[109].mxu1  ;;  %21397 = vmatmul.mubr.msk.f32.vlgmr.msra.gmra.mrb[124].mxu0 %vm970_vm6, %v10887_v55  ;;  %v19166_v55 = vld [vmem:[%s26484_s10 + $0x108] sm:$0xff] }
0x2be1   : > { %22748 = vmatpush3.bf16.msra.mxu0 %v22747_v52  ;;  %21410 = vmatprep.mubr.msk.f32.mxu0 %vm23410_vm1, %v23411_v17  ;;  %v22774_v54 = vpack.c.bf16 %v19166_v55, %v19165_v53 }
0x2be2   : > { %22753 = vmatprep.subr.bf16.mxu0 %v23409_v16 }
0x2be3   : > { %v11034_v61 = vpop.f32.mrb[110].mxu1 }
0x2be4   : > { %v21405_v2 = vpop.f32.mrb[111].mxu1  ;;  %21411 = vmatmul.mubr.msk.f32.vlgmr.msra.gmra.mrb[126].mxu0 %vm970_vm6, %v11034_v61  ;;  %v19162_v61 = vld [vmem:[%s26483_s9 + $0x9] sm:$0x1] }
0x2be5   : > { %22755 = vmatpush3.bf16.msra.mxu0 %v22754_v56  ;;  %21424 = vmatprep.mubr.msk.f32.mxu0 %vm23410_vm1, %v23411_v17  ;;  %v19167_v56 = vld [vmem:[%s26484_s10 + $0x110] sm:$0xff] }
0x2be6   : > { %22760 = vmatprep.subr.bf16.mxu0 %v23409_v16  ;;  %v22778_v58 = vpack.c.bf16 %v19168_v57, %v19167_v56 }
0x2be7   : > { %v11181_v5 = vpop.f32.mrb[112].mxu1 }
0x2be8   : > { %v21419_v12 = vpop.f32.mrb[113].mxu1  ;;  %21425 = vmatmul.mubr.msk.f32.vlgmr.msra.gmra.mrb[128].mxu0 %vm970_vm6, %v11181_v5  ;;  %v11492_v5 = vmul.f32 %v11490_v1, %v25195_v33 }
0x2be9   : > { %22762 = vmatpush3.bf16.msra.mxu0 %v22761_v24  ;;  %21438 = vmatprep.mubr.msk.f32.mxu0 %vm23410_vm1, %v23411_v17 }
0x2bea   : > { %22767 = vmatprep.subr.bf16.mxu0 %v22766_v4 }
0x2beb   : > { %v11328_v15 = vpop.f32.mrb[114].mxu1 }
0x2bec   : > { %v21433_v18 = vpop.f32.mrb[115].mxu1  ;;  %21439 = vmatmul.mubr.msk.f32.vlgmr.msra.gmra.mrb[130].mxu0 %vm970_vm6, %v11328_v15  ;;  %v19179_v15 = vld [vmem:[%s26486_s12 + $0x90] sm:$0xff] }
0x2bed   : > { %22769 = vmatpush3.bf16.msra.mxu0 %v22766_v4  ;;  %21456 = vmatprep.mubr.msk.f32.mxu0 %vm725_vm0, %v25193_v32  ;;  %v11491_v4 = vmul.f32 %v11490_v1, %v25193_v32  ;;  %v19178_v32 = vld [vmem:[%s26486_s12 + $0x88] sm:$0xff]  ;;  %v19199_v1 = vld [vmem:[%s26485_s11 + $0x4b8] sm:$0xff] }
0x2bee   : > { %22771 = vmatprep.subr.bf16.mxu0 %v22770_v13 }
0x2bf1   : > { %22773 = vmatpush3.bf16.msra.mxu0 %v22770_v13  ;;  %v19177_v13 = vld [vmem:[%s26486_s12 + $0x80] sm:$0xff] }
0x2bf2   : > { %22775 = vmatprep.subr.bf16.mxu0 %v22774_v54 }
0x2bf4   : > { %21457 = vmatmul.mubr.msk.f32.vlgmr.msra.gmra.mrb[132].mxu0 %vm725_vm0, %v25195_v33  ;;  %v22783_v33 = vpack.c.bf16 %v19178_v32, %v19177_v13  ;;  %v13334_v13 = vld [vmem:[%s26490_s16 + $0x18] sm:$0xff]  ;;  %v23360_v32 = vld [vmem:[%s26522_s24 + $0x88] sm:$0x1] }
0x2bf5   : > { %22777 = vmatpush3.bf16.msra.mxu0 %v22774_v54  ;;  %v19196_v54 = vld [vmem:[%s26485_s11 + $0x4a0] sm:$0xff] }
0x2bf6   : > { %22779 = vmatprep.subr.bf16.mxu0 %v22778_v58 }
0x2bf9   : > { %22781 = vmatpush3.bf16.msra.mxu0 %v22778_v58 }
0x2ca7   : > { %v10522_v23 = vpop.f32.mrb[118].mxu0 }
0x2ca8   : > { %v10526_v7 = vadd.f32 %v10522_v23, %v25305_v14  ;;  %v21356_v8 = vpop.f32.mrb[119].mxu0  ;;  %v19159_v14 = vld [vmem:[%s26481_s7 + $0x9] sm:$0x1] }
0x2cab   : > { %v10669_v27 = vpop.f32.mrb[120].mxu0 }
0x2cac   : > { %v10673_v26 = vadd.f32 %v10669_v27, %v10526_v7  ;;  %v21370_v36 = vpop.f32.mrb[121].mxu0 }
0x2caf   : > { %v10816_v37 = vpop.f32.mrb[122].mxu0 }
0x2cb0   : > { %v10820_v38 = vadd.f32 %v10816_v37, %v10673_v26  ;;  %v21384_v39 = vpop.f32.mrb[123].mxu0 }
0x2cb3   : > { %v10963_v40 = vpop.f32.mrb[124].mxu0 }
0x2cb4   : > { %v10967_v41 = vadd.f32 %v10963_v40, %v10820_v38  ;;  %v21398_v42 = vpop.f32.mrb[125].mxu0 }
0x2cb5   : > { %v19181_v42 = vld [vmem:[%s26488_s14 + $0x8] sm:$0x3] }
0x2cb7   : > { %v11110_v43 = vpop.f32.mrb[126].mxu0 }
0x2cb8   : > { %v11114_v44 = vadd.f32 %v11110_v43, %v10967_v41  ;;  %v21412_v28 = vpop.f32.mrb[127].mxu0  ;;  %v11677_v43 = vld [vmem:[%s26487_s13 + $0x4] sm:$0x1] }
0x2cbb   : > { %v11257_v30 = vpop.f32.mrb[128].mxu0 }
0x2cbc   : > { %v11261_v45 = vadd.f32 %v11257_v30, %v11114_v44  ;;  %v21426_v22 = vpop.f32.mrb[129].mxu0 }
0x2cbd   : > { %v11680_v22 = vld [vmem:[%s26489_s15 + $0x4] sm:$0x1] }
0x2cbf   : > { %v11404_v50 = vpop.f32.mrb[130].mxu0 }
0x2cc0   : > { %v11408_v29 = vadd.f32 %v11404_v50, %v11261_v45  ;;  %v21440_v51 = vpop.f32.mrb[131].mxu0 }
0x2cc2   : > { %v11410_v52 = vadd.f32 %v19159_v14, %v11408_v29 }
0x2cc4   : > { %v11411_v59 = vmax.f32 %v11410_v52, 0.0 }
0x2cc6   : > { %21446 = vmatmul.mubr.msk.f32.vlgmr.msra.gmra.mrb[116].mxu1 %vm970_vm6, %v11411_v59 }
0x2cc7   : > { %21478 = vmatprep.mubr.msk.f32.mxu1 %vm23410_vm1, %v23411_v17  ;;  %22784 = vmatpush3.bf16.msra.mxu1 %v22783_v33 }
0x2cc8   : > { %22785 = vmatprep.subr.bf16.mxu1 %v23409_v16 }
0x2d99   : > { %v11485_v62 = vpop.f32.mrb[116].mxu1 }
0x2d9a   : > { %v11486_v2 = vadd.f32 %v19162_v61, %v11485_v62  ;;  %v21447_v24 = vpop.f32.mrb[117].mxu1  ;;  %v19198_v62 = vld [vmem:[%s26485_s11 + $0x4b0] sm:$0xff] }
0x2d9b   : > { %v23352_v24 = vld [vmem:[%s26522_s24 + $0x18] sm:$0x1] }
0x2d9c   : > { %v11496_v6 = vrot.slane %v11486_v2, %v23833_v11  ;;  %v22804_v2 = vpack.c.bf16 %v19199_v1, %v19198_v62  ;;  %v19234_v62 = vld [vmem:[%s26485_s11 + $0x520] sm:$0xff]  ;;  %v19235_v1 = vld [vmem:[%s26485_s11 + $0x528] sm:$0xff] }
0x2d9e   : > { %v11497_v10 = vadd.f32 %v11496_v6, %v11491_v4  ;;  %v11498_v12 = vadd.f32 %v11496_v6, %v11492_v5  ;;  %v23353_v4 = vld [vmem:[%s26522_s24 + $0x8] sm:$0x1] }
0x2d9f   : > { %v23354_v5 = vld [vmem:[%s26522_s24 + $0x28] sm:$0x1] }
0x2da0   : > { %21467 = vmatprep.mubr.msk.f32.mxu0 %vm725_vm0, %v11497_v10  ;;  %v13332_v6 = vld [vmem:[%s26490_s16 + $0x8] sm:$0xff]  ;;  %v23359_v10 = vld [vmem:[%s26522_s24 + $0x78] sm:$0x1] }
0x2da1   : > { %21468 = vmatmul.mubr.msk.f32.vlgmr.msra.gmra.mrb[132].mxu0 %vm725_vm0, %v11498_v12  ;;  %v13333_v12 = vld [vmem:[%s26490_s16 + $0x10] sm:$0xff] }
0x2da2   : > { %21497 = vmatprep.mubr.msk.f32.mxu0 %vm811_vm5, %v24927_v0  ;;  %v19180_v0 = vld [vmem:[%s26486_s12 + $0x98] sm:$0xff]  ;;  %v22918_v33 = vpack.c.bf16 %v13334_v13, %v13333_v12 }
0x2da3   : > { %v22786_v18 = vpack.c.bf16 %v19180_v0, %v19179_v15  ;;  %v19190_v15 = vld [vmem:[%s26485_s11 + $0x488] sm:$0xff]  ;;  %v19246_v12 = vld [vmem:[%s26485_s11 + $0x558] sm:$0xff] }
0x2da5   : > { %22787 = vmatpush3.bf16.msra.mxu1 %v22786_v18  ;;  %v19191_v18 = vld [vmem:[%s26485_s11 + $0x490] sm:$0xff] }
0x2da6   : > { %21481 = vmatprep.subr.mxu1 %v23411_v17 }
0x2e74   : > { %v21469_v3 = vpop.f32.mrb[132].mxu0 }
0x2e75   : > { %v11671_v19 = vmax.f32 %v21469_v3, 0.0  ;;  %v11661_v20 = vpop.f32.mrb[133].mxu0  ;;  %v19192_v3 = vld [vmem:[%s26485_s11 + $0x498] sm:$0xff] }
0x2e76   : > { %v11670_v23 = vmax.f32 %v11661_v20, 0.0 }
0x2e77   : > { %v11682_v7 = vsel %vm3981_vm7, %v11671_v19, 0.0 }
0x2e78   : > { %v11681_v8 = vsel %vm725_vm0, %v11670_v23, 0.0 }
0x2e79   : > { %v11683_v27 = vadd.f32 %v11682_v7, %v11681_v8  ;;  %v19207_v8 = vld [vmem:[%s26485_s11 + $0x4c0] sm:$0xff] }
0x2e7b   : > { %v11684_v26 = vrot.slane %v11683_v27, 4 }
0x2e7d   : > { %v11685_v36 = vadd.f32 %v11684_v26, %v11683_v27  ;;  %v19208_v27 = vld [vmem:[%s26485_s11 + $0x4c8] sm:$0xff] }
0x2e7f   : > { %v11686_v37 = vrot.slane %v11685_v36, 2 }
0x2e81   : > { %v11687_v38 = vadd.f32 %v11686_v37, %v11685_v36  ;;  %v22822_v36 = vpack.c.bf16 %v19208_v27, %v19207_v8  ;;  %v13335_v8 = vld [vmem:[%s26490_s16 + $0x20] sm:$0xff]  ;;  %v13336_v27 = vld [vmem:[%s26490_s16 + $0x28] sm:$0xff] }
0x2e83   : > { %v11688_v39 = vrot.slane %v11687_v38, 1 }
0x2e85   : > { %v11689_v40 = vadd.f32 %v11688_v39, %v11687_v38  ;;  %v19209_v38 = vld [vmem:[%s26485_s11 + $0x4d0] sm:$0xff]  ;;  %v19210_v39 = vld [vmem:[%s26485_s11 + $0x4d8] sm:$0xff] }
0x2e87   : > { %v11690_v41 = vmul.f32 0.11111111, %v11689_v40 }
0x2e89   : > { %21479 = vmatmul.mubr.msk.f32.vlgmr.msra.gmra.mrb[118].mxu1 %vm725_vm0, %v11690_v41  ;;  %v22826_v41 = vpack.c.bf16 %v19210_v39, %v19209_v38 }
0x2e8a   : > { %21483 = vmatprep.mubr.msk.f32.mxu1 %vm23410_vm1, %v23411_v17  ;;  %21482 = vmatpush3.msk.msra.mxu1 %vm4069_vm8, %v19181_v42 }
0x2f5c   : > { %v11760_v44 = vpop.f32.mrb[118].mxu1 }
0x2f5d   : > { %v11761_v28 = vadd.f32 %v11760_v44, %v11677_v43  ;;  %v21480_v30 = vpop.f32.mrb[119].mxu1  ;;  %v19216_v43 = vld [vmem:[%s26485_s11 + $0x4e0] sm:$0xff]  ;;  %v19217_v44 = vld [vmem:[%s26485_s11 + $0x4e8] sm:$0xff] }
0x2f5e   : > { %v22836_v30 = vpack.c.bf16 %v19217_v44, %v19216_v43 }
0x2f5f   : > { %v11764_v45 = vmax.f32 %v11761_v28, 0.0 }
0x2f61   : > { %21484 = vmatmul.mubr.msk.f32.vlgmr.msra.gmra.mrb[120].mxu1 %vm4065_vm9, %v11764_v45 }
0x2f62   : > { %21490 = vmatprep.mubr.msk.f32.mxu1 %vm811_vm5, %v24977_v34  ;;  %v19197_v34 = vld [vmem:[%s26485_s11 + $0x4a8] sm:$0xff] }
0x2f63   : > { %v22800_v61 = vpack.c.bf16 %v19197_v34, %v19196_v54  ;;  %v19227_v34 = vld [vmem:[%s26485_s11 + $0x510] sm:$0xff] }
0x3034   : > { %v11837_v50 = vpop.f32.mrb[120].mxu1 }
0x3035   : > { %v11838_v14 = vadd.f32 %v11837_v50, %v11680_v22  ;;  %v21485_v29 = vpop.f32.mrb[121].mxu1  ;;  %v19218_v22 = vld [vmem:[%s26485_s11 + $0x4f0] sm:$0xff]  ;;  %v19219_v50 = vld [vmem:[%s26485_s11 + $0x4f8] sm:$0xff] }
0x3036   : > { %v22840_v29 = vpack.c.bf16 %v19219_v50, %v19218_v22 }
0x3037   : > { %v19185_v51 = vmul.f32 -1.442695, %v11838_v14 }
0x3039   : > { %23329 = vpow2.f32 %v19185_v51 }
0x3043   : > { %v23330_v52 = vpop.eup %23329 }
0x3044   : > { %v11844_v59 = vadd.f32 1.0, %v23330_v52  ;;  %v19225_v52 = vld [vmem:[%s26485_s11 + $0x500] sm:$0xff] }
0x3046   : > { %23331 = vrcp.f32 %v11844_v59  ;;  %v19226_v59 = vld [vmem:[%s26485_s11 + $0x508] sm:$0xff] }
0x3050   : > { %v23332_v53 = vpop.eup %23331 }
0x3051   : > { %v11850_v55 = vrot.slane %v23332_v53, %v23833_v11 }
0x3053   : > { %v11851_v56 = vmul.f32 %v11850_v55, %v11670_v23  ;;  %v11852_v57 = vmul.f32 %v11850_v55, %v11671_v19  ;;  %v22812_v23 = vpack.c.bf16 %v19192_v3, %v19191_v18  ;;  %v22850_v55 = vpack.c.bf16 %v19226_v59, %v19225_v52  ;;  %v19261_v3 = vld [vmem:[%s26485_s11 + $0x580] sm:$0xff]  ;;  %v13504_v52 = vld [vmem:[%s26491_s17 + $0x18] sm:$0xff] }
0x3055   : > { %v22788_v58 = vpack.c.bf16 %v11852_v57, %v11851_v56  ;;  %v19228_v56 = vld [vmem:[%s26485_s11 + $0x518] sm:$0xff] }
0x3057   : > { %22790 = vmatprep.subr.msk.bf16.mxu1 %vm23605_vm4, %v22788_v58  ;;  %22796 = vmatprep.subr.msk.bf16.mxu0 %vm23605_vm4, %v22788_v58 }
0x3058   : > { %22793 = vmatpush3.bf16.msk.msra.mxu1 %vm23605_vm4, %v22788_v58  ;;  %22799 = vmatpush3.bf16.msk.msra.mxu0 %vm23605_vm4, %v22788_v58 }
0x3059   : > { %22818 = vmatprep.subr.msk.bf16.mxu0 %vm23605_vm4, %v22788_v58  ;;  %22801 = vmatprep.subr.bf16.mxu1 %v22800_v61 }
0x305b   : > { %21498 = vmatmul.mubr.msk.f32.vlgmr.msra.gmra.mrb[134].mxu0 %vm811_vm5, %v23352_v24  ;;  %21491 = vmatmul.mubr.msk.f32.vlgmr.msra.gmra.mrb[122].mxu1 %vm811_vm5, %v23353_v4  ;;  %v22864_v24 = vpack.c.bf16 %v19235_v1, %v19234_v62 }
0x305c   : > { %22821 = vmatpush3.bf16.msk.msra.mxu0 %vm23605_vm4, %v22788_v58  ;;  %21526 = vmatprep.mubr.msk.f32.mxu0 %vm811_vm5, %v24994_v46  ;;  %v23355_v46 = vld [vmem:[%s26522_s24 + $0x38] sm:$0x1] }
0x305d   : > { %22832 = vmatprep.subr.msk.bf16.mxu0 %vm23605_vm4, %v22788_v58  ;;  %22803 = vmatpush3.bf16.msra.mxu1 %v22800_v61 }
0x305e   : > { %22805 = vmatprep.subr.bf16.mxu1 %v22804_v2 }
0x305f   : > { %21527 = vmatmul.mubr.msk.f32.vlgmr.msra.gmra.mrb[136].mxu0 %vm811_vm5, %v23354_v5  ;;  %v19236_v5 = vld [vmem:[%s26485_s11 + $0x530] sm:$0xff] }
0x3060   : > { %22835 = vmatpush3.bf16.msk.msra.mxu0 %vm23605_vm4, %v22788_v58  ;;  %21544 = vmatprep.mubr.msk.f32.mxu0 %vm811_vm5, %v25007_v35  ;;  %v23356_v35 = vld [vmem:[%s26522_s24 + $0x48] sm:$0x1] }
0x3061   : > { %22846 = vmatprep.subr.msk.bf16.mxu0 %vm23605_vm4, %v22788_v58  ;;  %22807 = vmatpush3.bf16.msra.mxu1 %v22804_v2 }
0x3063   : > { %21545 = vmatmul.mubr.msk.f32.vlgmr.msra.gmra.mrb[138].mxu0 %vm811_vm5, %v23355_v46  ;;  %v19237_v46 = vld [vmem:[%s26485_s11 + $0x538] sm:$0xff] }
0x3064   : > { %22849 = vmatpush3.bf16.msk.msra.mxu0 %vm23605_vm4, %v22788_v58  ;;  %21562 = vmatprep.mubr.msk.f32.mxu0 %vm811_vm5, %v25020_v60  ;;  %v23357_v60 = vld [vmem:[%s26522_s24 + $0x58] sm:$0x1] }
0x3065   : > { %22860 = vmatprep.subr.msk.bf16.mxu0 %vm23605_vm4, %v22788_v58 }
0x3067   : > { %21563 = vmatmul.mubr.msk.f32.vlgmr.msra.gmra.mrb[140].mxu0 %vm811_vm5, %v23356_v35  ;;  %v22868_v35 = vpack.c.bf16 %v19237_v46, %v19236_v5 }
0x3068   : > { %22863 = vmatpush3.bf16.msk.msra.mxu0 %vm23605_vm4, %v22788_v58  ;;  %21580 = vmatprep.mubr.msk.f32.mxu0 %vm811_vm5, %v25033_v47  ;;  %v23358_v47 = vld [vmem:[%s26522_s24 + $0x68] sm:$0x1] }
0x3069   : > { %22874 = vmatprep.subr.msk.bf16.mxu0 %vm23605_vm4, %v22788_v58 }
0x306b   : > { %21581 = vmatmul.mubr.msk.f32.vlgmr.msra.gmra.mrb[142].mxu0 %vm811_vm5, %v23357_v60  ;;  %v19243_v60 = vld [vmem:[%s26485_s11 + $0x540] sm:$0xff] }
0x306c   : > { %22877 = vmatpush3.bf16.msk.msra.mxu0 %vm23605_vm4, %v22788_v58  ;;  %21598 = vmatprep.mubr.msk.f32.mxu0 %vm811_vm5, %v25046_v48  ;;  %v13331_v48 = vld [vmem:[%s26490_s16] sm:$0xff] }
0x306d   : > { %22888 = vmatprep.subr.msk.bf16.mxu0 %vm23605_vm4, %v22788_v58 }
0x306f   : > { %21599 = vmatmul.mubr.msk.f32.vlgmr.msra.gmra.mrb[144].mxu0 %vm811_vm5, %v23358_v47  ;;  %v19244_v47 = vld [vmem:[%s26485_s11 + $0x548] sm:$0xff] }
0x3070   : > { %22891 = vmatpush3.bf16.msk.msra.mxu0 %vm23605_vm4, %v22788_v58  ;;  %21616 = vmatprep.mubr.msk.f32.mxu0 %vm811_vm5, %v25059_v49  ;;  %v22915_v49 = vpack.c.bf16 %v13332_v6, %v13331_v48 }
0x3071   : > { %22902 = vmatprep.subr.msk.bf16.mxu0 %vm23605_vm4, %v22788_v58 }
0x3073   : > { %21617 = vmatmul.mubr.msk.f32.vlgmr.msra.gmra.mrb[146].mxu0 %vm811_vm5, %v23359_v10  ;;  %v22878_v10 = vpack.c.bf16 %v19244_v47, %v19243_v60  ;;  %v13506_v47 = vld [vmem:[%s26493_s19] sm:$0x3] }
0x3074   : > { %22905 = vmatpush3.bf16.msk.msra.mxu0 %vm23605_vm4, %v22788_v58  ;;  %21634 = vmatprep.mubr.msk.f32.mxu0 %vm811_vm5, %v25072_v21  ;;  %v19189_v21 = vld [vmem:[%s26485_s11 + $0x480] sm:$0xff]  ;;  %v22854_v58 = vpack.c.bf16 %v19228_v56, %v19227_v34 }
0x3075   : > { %22914 = vmatprep.subr.bf16.mxu0 %v23409_v16  ;;  %v22808_v0 = vpack.c.bf16 %v19190_v15, %v19189_v21  ;;  %v19254_v15 = vld [vmem:[%s26485_s11 + $0x570] sm:$0xff] }
0x3077   : > { %21635 = vmatmul.mubr.msk.f32.vlgmr.msra.gmra.mrb[148].mxu0 %vm811_vm5, %v23360_v32  ;;  %22809 = vmatprep.subr.bf16.mxu1 %v22808_v0  ;;  %v19252_v32 = vld [vmem:[%s26485_s11 + $0x560] sm:$0xff] }
0x3078   : > { %22916 = vmatpush3.bf16.msra.mxu0 %v22915_v49  ;;  %21656 = vmatprep.mubr.msk.f32.mxu0 %vm23410_vm1, %v23411_v17  ;;  %v19245_v49 = vld [vmem:[%s26485_s11 + $0x550] sm:$0xff] }
0x3079   : > { %22917 = vmatprep.subr.bf16.mxu0 %v23409_v16  ;;  %v22882_v13 = vpack.c.bf16 %v19246_v12, %v19245_v49 }
0x307c   : > { %22919 = vmatpush3.bf16.msra.mxu0 %v22918_v33  ;;  %v19253_v33 = vld [vmem:[%s26485_s11 + $0x568] sm:$0xff] }
0x307d   : > { %v22892_v21 = vpack.c.bf16 %v19253_v33, %v19252_v32  ;;  %v19281_v32 = vld [vmem:[%s26516_s6 + $0x148] sm:$0xff]  ;;  %v19282_v33 = vld [vmem:[%s26516_s6 + $0x150] sm:$0xff] }
0x307f   : > { %21657 = vmatmul.mubr.msk.f32.vlgmr.msra.gmra.mrb[150].mxu0 %vm725_vm0, %v25092_v63 }
0x312e   : > { %v21499_v19 = vpop.f32.mrb[134].mxu0  ;;  %v21492_v63 = vpop.f32.mrb[122].mxu1 }
0x312f   : > { %v12002_v20 = vpop.f32.mrb[135].mxu0  ;;  %v11922_v7 = vpop.f32.mrb[123].mxu1 }
0x3130   : > { %21508 = vmatprep.mubr.msk.f32.mxu1 %vm725_vm0, %v12002_v20  ;;  %v19263_v20 = vld [vmem:[%s26485_s11 + $0x590] sm:$0xff] }
0x3131   : > { %21509 = vmatmul.mubr.msk.f32.vlgmr.msra.gmra.mrb[124].mxu1 %vm725_vm0, %v21499_v19  ;;  %v19262_v19 = vld [vmem:[%s26485_s11 + $0x588] sm:$0xff] }
0x3132   : > { %22811 = vmatpush3.bf16.msra.mxu1 %v22808_v0  ;;  %21519 = vmatprep.mubr.msk.f32.mxu1 %vm725_vm0, %v11922_v7  ;;  %v21528_v26 = vpop.f32.mrb[136].mxu0  ;;  %v19255_v0 = vld [vmem:[%s26485_s11 + $0x578] sm:$0xff] }
0x3133   : > { %22813 = vmatprep.subr.bf16.mxu1 %v22812_v23  ;;  %v12244_v37 = vpop.f32.mrb[137].mxu0  ;;  %v22896_v18 = vpack.c.bf16 %v19255_v0, %v19254_v15  ;;  %v19283_v15 = vld [vmem:[%s26516_s6 + $0x158] sm:$0xff] }
0x3134   : > { %v22938_v0 = vpack.c.bf16 %v19283_v15, %v19282_v33  ;;  %v19311_v15 = vld [vmem:[%s26523_s30 + $0x5e8] sm:$0xff] }
0x3136   : > { %22815 = vmatpush3.bf16.msra.mxu1 %v22812_v23  ;;  %v21546_v40 = vpop.f32.mrb[138].mxu0  ;;  %v19264_v23 = vld [vmem:[%s26485_s11 + $0x598] sm:$0xff] }
0x3137   : > { %22823 = vmatprep.subr.bf16.mxu1 %v22822_v36  ;;  %v12407_v42 = vpop.f32.mrb[139].mxu0  ;;  %v22910_v7 = vpack.c.bf16 %v19264_v23, %v19263_v20 }
0x3139   : > { %21520 = vmatmul.mubr.msk.f32.vlgmr.msra.gmra.mrb[124].mxu1 %vm725_vm0, %v21492_v63  ;;  %v22906_v63 = vpack.c.bf16 %v19262_v19, %v19261_v3 }
0x313a   : > { %22825 = vmatpush3.bf16.msra.mxu1 %v22822_v36  ;;  %21537 = vmatprep.mubr.msk.f32.mxu1 %vm725_vm0, %v12244_v37  ;;  %v21564_v28 = vpop.f32.mrb[140].mxu0  ;;  %v13337_v36 = vld [vmem:[%s26490_s16 + $0x30] sm:$0xff]  ;;  %v13338_v37 = vld [vmem:[%s26490_s16 + $0x38] sm:$0xff] }
0x313b   : > { %22827 = vmatprep.subr.bf16.mxu1 %v22826_v41  ;;  %v12570_v45 = vpop.f32.mrb[141].mxu0  ;;  %v22924_v38 = vpack.c.bf16 %v13338_v37, %v13337_v36 }
0x313e   : > { %22829 = vmatpush3.bf16.msra.mxu1 %v22826_v41  ;;  %v21582_v14 = vpop.f32.mrb[142].mxu0  ;;  %v13326_v41 = vstv %s19268_s2 }
0x313f   : > { %22837 = vmatprep.subr.bf16.mxu1 %v22836_v30  ;;  %v12733_v51 = vpop.f32.mrb[143].mxu0 }
0x3141   : > { %21538 = vmatmul.mubr.msk.f32.vlgmr.msra.gmra.mrb[124].mxu1 %vm725_vm0, %v21528_v26  ;;  %v22920_v26 = vpack.c.bf16 %v13336_v27, %v13335_v8 }
0x3142   : > { %22839 = vmatpush3.bf16.msra.mxu1 %v22836_v30  ;;  %21555 = vmatprep.mubr.msk.f32.mxu1 %vm725_vm0, %v12407_v42  ;;  %v21600_v53 = vpop.f32.mrb[144].mxu0 }
0x3143   : > { %22841 = vmatprep.subr.bf16.mxu1 %v22840_v29  ;;  %v12896_v54 = vpop.f32.mrb[145].mxu0  ;;  %22921 = vmatprep.subr.bf16.mxu0 %v22920_v26 }
0x3144   : > { %22923 = vmatpush3.bf16.msra.mxu0 %v22920_v26  ;;  %v19277_v26 = vld [vmem:[%s26517_s1 + $0x14] ss:$0 sm:$0xff] }
0x3145   : > { %22925 = vmatprep.subr.bf16.mxu0 %v22924_v38 }
0x3146   : > { %22843 = vmatpush3.bf16.msra.mxu1 %v22840_v29  ;;  %v21618_v57 = vpop.f32.mrb[146].mxu0  ;;  %v13501_v29 = vld [vmem:[%s26491_s17] sm:$0xff] }
0x3147   : > { %22851 = vmatprep.subr.bf16.mxu1 %v22850_v55  ;;  %v13059_v61 = vpop.f32.mrb[147].mxu0 }
0x3148   : > { %22927 = vmatpush3.bf16.msra.mxu0 %v22924_v38  ;;  %v19279_v38 = vld [vmem:[%s26517_s1 + $0x15] ss:$0 sm:$0xff] }
0x3149   : > { %21556 = vmatmul.mubr.msk.f32.vlgmr.msra.gmra.mrb[124].mxu1 %vm725_vm0, %v21546_v40  ;;  %22928 = vmatprep.subr.bf16.mxu0 %v23409_v16  ;;  %v13322_v40 = vstv %s19267_s25 }
0x314a   : > { %22853 = vmatpush3.bf16.msra.mxu1 %v22850_v55  ;;  %21573 = vmatprep.mubr.msk.f32.mxu1 %vm725_vm0, %v12570_v45  ;;  %v21636_v2 = vpop.f32.mrb[148].mxu0  ;;  %v13323_v45 = vmul.f32 %v13322_v40, %v24876_v31  ;;  %v13503_v31 = vld [vmem:[%s26491_s17 + $0x10] sm:$0xff] }
0x314b   : > { %22855 = vmatprep.subr.bf16.mxu1 %v22854_v58  ;;  %v13222_v4 = vpop.f32.mrb[149].mxu0  ;;  %v22932_v59 = vpack.c.bf16 %v13504_v52, %v13503_v31  ;;  %v19291_v31 = vld [vmem:[%s26523_s30 + $0x5a8] sm:$0xff]  ;;  %v25777_v52 = vld [vmem:[%s26522_s24] sm:$0xff] }
0x314e   : > { %22857 = vmatpush3.bf16.msra.mxu1 %v22854_v58 }
0x314f   : > { %22865 = vmatprep.subr.bf16.mxu1 %v22864_v24 }
0x3151   : > { %21574 = vmatmul.mubr.msk.f32.vlgmr.msra.gmra.mrb[124].mxu1 %vm725_vm0, %v21564_v28  ;;  %v13324_v28 = vmul.f32 %v13322_v40, %v24889_v9  ;;  %v13502_v9 = vld [vmem:[%s26491_s17 + $0x8] sm:$0xff] }
0x3152   : > { %22867 = vmatpush3.bf16.msra.mxu1 %v22864_v24  ;;  %v25638_v48 = vpop.f32.mrb[150].mxu0  ;;  %21591 = vmatprep.mubr.msk.f32.mxu1 %vm725_vm0, %v12733_v51  ;;  %v22929_v51 = vpack.c.bf16 %v13502_v9, %v13501_v29 }
0x3153   : > { %v21658_v6 = vpop.f32.mrb[151].mxu0  ;;  %22869 = vmatprep.subr.bf16.mxu1 %v22868_v35 }
0x3156   : > { %22871 = vmatpush3.bf16.msra.mxu1 %v22868_v35 }
0x3157   : > { %22879 = vmatprep.subr.bf16.mxu1 %v22878_v10 }
0x3159   : > { %21592 = vmatmul.mubr.msk.f32.vlgmr.msra.gmra.mrb[124].mxu1 %vm725_vm0, %v21582_v14 }
0x315a   : > { %22881 = vmatpush3.bf16.msra.mxu1 %v22878_v10  ;;  %21609 = vmatprep.mubr.msk.f32.mxu1 %vm725_vm0, %v12896_v54 }
0x315b   : > { %22883 = vmatprep.subr.bf16.mxu1 %v22882_v13 }
0x315e   : > { %22885 = vmatpush3.bf16.msra.mxu1 %v22882_v13  ;;  %v19280_v13 = vld [vmem:[%s26516_s6 + $0x140] sm:$0xff] }
0x315f   : > { %22893 = vmatprep.subr.bf16.mxu1 %v22892_v21 }
0x3161   : > { %21610 = vmatmul.mubr.msk.f32.vlgmr.msra.gmra.mrb[124].mxu1 %vm725_vm0, %v21600_v53  ;;  %v13496_v53 = vrot.slane %v25638_v48, %v23833_v11  ;;  %v13505_v48 = vld [vmem:[%s26492_s18] sm:$0x1] }
0x3162   : > { %22895 = vmatpush3.bf16.msra.mxu1 %v22892_v21  ;;  %21627 = vmatprep.mubr.msk.f32.mxu1 %vm725_vm0, %v13059_v61  ;;  %v22934_v21 = vpack.c.bf16 %v19281_v32, %v19280_v13 }
0x3163   : > { %22897 = vmatprep.subr.bf16.mxu1 %v22896_v18 }
0x3166   : > { %22899 = vmatpush3.bf16.msra.mxu1 %v22896_v18  ;;  %v13507_v18 = vld [vmem:[%s26494_s20] sm:$0x1] }
0x3167   : > { %22907 = vmatprep.subr.bf16.mxu1 %v22906_v63 }
0x3169   : > { %21628 = vmatmul.mubr.msk.f32.vlgmr.msra.gmra.mrb[124].mxu1 %vm725_vm0, %v21618_v57 }
0x316a   : > { %22909 = vmatpush3.bf16.msra.mxu1 %v22906_v63  ;;  %21645 = vmatprep.mubr.msk.f32.mxu1 %vm725_vm0, %v13222_v4 }
0x316b   : > { %22911 = vmatprep.subr.bf16.mxu1 %v22910_v7 }
0x316e   : > { %22913 = vmatpush3.bf16.msra.mxu1 %v22910_v7 }
0x316f   : > { %22950 = vmatprep.subr.bf16.mxu1 %v23409_v16 }
0x3171   : > { %21646 = vmatmul.mubr.msk.f32.vlgmr.msra.gmra.mrb[124].mxu1 %vm725_vm0, %v21636_v2 }
0x3172   : > { %21715 = vmatprep.mubr.msk.f32.mxu1 %vm23410_vm1, %v23411_v17 }
0x3244   : > { %v21647_v39 = vpop.f32.mrb[124].mxu1 }
0x3245   : > { %v13320_v42 = vmax.f32 %v21647_v39, 0.0  ;;  %v13308_v43 = vpop.f32.mrb[125].mxu1 }
0x3246   : > { %v13319_v44 = vmax.f32 %v13308_v43, 0.0 }
0x3247   : > { %v13328_v30 = vmul.f32 %v13326_v41, %v13320_v42 }
0x3248   : > { %v13327_v22 = vmul.f32 %v13326_v41, %v13319_v44 }
0x3249   : > { %v13330_v50 = vadd.f32 %v13328_v30, %v13324_v28  ;;  %v19285_v28 = vld [vmem:[%s26519_s0 + $0xa] ss:$0 sm:$0xff] }
0x324a   : > { %v13329_v14 = vadd.f32 %v13327_v22, %v13323_v45 }
0x324c   : > { %21667 = vmatprep.mubr.msk.f32.mxu0 %vm725_vm0, %v13329_v14 }
0x324d   : > { %21668 = vmatmul.mubr.msk.f32.vlgmr.msra.gmra.mrb[152].mxu0 %vm725_vm0, %v13330_v50 }
0x324e   : > { %21678 = vmatprep.mubr.msk.f32.mxu0 %vm23410_vm1, %v23411_v17  ;;  %22930 = vmatpush3.bf16.msra.mxu0 %v22929_v51  ;;  %v19290_v51 = vld [vmem:[%s26523_s30 + $0x5a0] sm:$0xff] }
0x324f   : > { %22931 = vmatprep.subr.bf16.mxu0 %v23409_v16 }
0x3252   : > { %22933 = vmatpush3.bf16.msra.mxu0 %v22932_v59  ;;  %v22954_v59 = vpack.c.bf16 %v19291_v31, %v19290_v51  ;;  %v19334_v31 = vld [vmem:[%s26482_s8 + $0xa0] sm:$0xff] }
0x3253   : > { %21681 = vmatprep.subr.mxu0 %v23411_v17 }
0x3320   : > { %v21669_v55 = vpop.f32.mrb[152].mxu0 }
0x3321   : > { %v13498_v54 = vadd.f32 %v21669_v55, %v13496_v53  ;;  %v13484_v34 = vpop.f32.mrb[153].mxu0  ;;  %v19294_v55 = vld [vmem:[%s26523_s30 + $0x5b0] sm:$0xff] }
0x3322   : > { %v13497_v56 = vadd.f32 %v13496_v53, %v13484_v34  ;;  %v25789_v53 = vld [vmem:[%s26522_s24 + $0x10] sm:$0xff] }
0x3323   : > { %v13500_v57 = vmax.f32 %v13498_v54, 0.0  ;;  %v19295_v54 = vld [vmem:[%s26523_s30 + $0x5b8] sm:$0xff] }
0x3324   : > { %v13499_v58 = vmax.f32 %v13497_v56, 0.0  ;;  %v22951_v34 = vpack.c.bf16 %v19295_v54, %v19294_v55 }
0x3325   : > { %v13509_v61 = vsel %vm3981_vm7, %v13500_v57, 0.0 }
0x3326   : > { %v13508_v62 = vsel %vm725_vm0, %v13499_v58, 0.0  ;;  %22952 = vmatpush3.bf16.msra.mxu1 %v22951_v34 }
0x3327   : > { %v13510_v1 = vadd.f32 %v13509_v61, %v13508_v62  ;;  %22956 = vmatprep.subr.bf16.mxu1 %v23409_v16  ;;  %v25815_v62 = vld [vmem:[%s26522_s24 + $0x20] sm:$0xff] }
0x3329   : > { %v13511_v2 = vrot.slane %v13510_v1, 4 }
0x332b   : > { %v13512_v24 = vadd.f32 %v13511_v2, %v13510_v1  ;;  %v25827_v1 = vld [vmem:[%s26522_s24 + $0x30] sm:$0xff]  ;;  %v25839_v2 = vld [vmem:[%s26522_s24 + $0x40] sm:$0xff] }
0x332d   : > { %v13513_v4 = vrot.slane %v13512_v24, 2 }
0x332f   : > { %v13514_v5 = vadd.f32 %v13513_v4, %v13512_v24  ;;  %v25851_v24 = vld [vmem:[%s26522_s24 + $0x50] sm:$0xff]  ;;  %v25863_v4 = vld [vmem:[%s26522_s24 + $0x60] sm:$0xff] }
0x3331   : > { %v13515_v46 = vrot.slane %v13514_v5, 1 }
0x3333   : > { %v13516_v35 = vadd.f32 %v13515_v46, %v13514_v5  ;;  %v25875_v5 = vld [vmem:[%s26522_s24 + $0x70] sm:$0xff]  ;;  %v25887_v46 = vld [vmem:[%s26522_s24 + $0x80] sm:$0xff] }
0x3335   : > { %v13517_v60 = vmul.f32 0.11111111, %v13516_v35  ;;  %v19300_v35 = vld [vmem:[%s26523_s30 + $0x5c0] sm:$0xff] }
0x3337   : > { %21679 = vmatmul.mubr.msk.f32.vlgmr.msra.gmra.mrb[154].mxu0 %vm725_vm0, %v13517_v60  ;;  %v19301_v60 = vld [vmem:[%s26523_s30 + $0x5c8] sm:$0xff] }
0x3338   : > { %21683 = vmatprep.mubr.msk.f32.mxu0 %vm23410_vm1, %v23411_v17  ;;  %21682 = vmatpush3.msk.msra.mxu0 %vm4069_vm8, %v13506_v47  ;;  %v22961_v47 = vpack.c.bf16 %v19301_v60, %v19300_v35 }
0x3339   : > { %22935 = vmatprep.subr.bf16.mxu0 %v22934_v21 }
0x340a   : > { %v13587_v6 = vpop.f32.mrb[154].mxu0 }
0x340b   : > { %v13588_v10 = vadd.f32 %v13587_v6, %v13505_v48  ;;  %v21680_v49 = vpop.f32.mrb[155].mxu0 }
0x340c   : > { %v19306_v49 = vld [vmem:[%s26523_s30 + $0x5d8] sm:$0xff] }
0x340d   : > { %v13591_v12 = vmax.f32 %v13588_v10, 0.0  ;;  %v19305_v10 = vld [vmem:[%s26523_s30 + $0x5d0] sm:$0xff] }
0x340e   : > { %v22968_v33 = vpack.c.bf16 %v19306_v49, %v19305_v10 }
0x340f   : > { %21684 = vmatmul.mubr.msk.f32.vlgmr.msra.gmra.mrb[156].mxu0 %vm4065_vm9, %v13591_v12 }
0x3410   : > { %22937 = vmatpush3.bf16.msra.mxu0 %v22934_v21  ;;  %v19310_v21 = vld [vmem:[%s26523_s30 + $0x5e0] sm:$0xff] }
0x3411   : > { %22939 = vmatprep.subr.bf16.mxu0 %v22938_v0 }
0x3414   : > { %22941 = vmatpush3.bf16.msra.mxu0 %v22938_v0 }
0x3415   : > { %22942 = vmatprep.subr.bf16.mxu0 %v23409_v16 }
0x34e2   : > { %v13664_v3 = vpop.f32.mrb[156].mxu0 }
0x34e3   : > { %v13665_v19 = vadd.f32 %v13664_v3, %v13507_v18  ;;  %v21685_v63 = vpop.f32.mrb[157].mxu0  ;;  %v22975_v3 = vpack.c.bf16 %v19311_v15, %v19310_v21 }
0x34e4   : > { %v19316_v63 = vld [vmem:[%s26523_s30 + $0x5f8] sm:$0xff] }
0x34e5   : > { %v19275_v20 = vmul.f32 -1.442695, %v13665_v19  ;;  %v19315_v19 = vld [vmem:[%s26523_s30 + $0x5f0] sm:$0xff] }
0x34e7   : > { %23333 = vpow2.f32 %v19275_v20 }
0x34f1   : > { %v23334_v23 = vpop.eup %23333 }
0x34f2   : > { %v13671_v7 = vadd.f32 1.0, %v23334_v23 }
0x34f4   : > { %23335 = vrcp.f32 %v13671_v7  ;;  %v22982_v7 = vpack.c.bf16 %v19316_v63, %v19315_v19 }
0x34fe   : > { %v23336_v8 = vpop.eup %23335 }
0x34ff   : > { %v13677_v27 = vrot.slane %v23336_v8, %v23833_v11  ;;  %v19320_v8 = vld [vmem:[%s26523_s30 + $0x600] sm:$0xff] }
0x3501   : > { %v25749_v36 = vmul.f32 %v13677_v27, %v13499_v58  ;;  %v25751_v37 = vmul.f32 %v13677_v27, %v13500_v57  ;;  %v19321_v27 = vld [vmem:[%s26523_s30 + $0x608] sm:$0xff] }
0x3503   : > { %v13686_v39 = vmul.f32 %v19277_v26, %v25749_v36  ;;  %v13687_v40 = vmul.f32 %v19277_v26, %v25751_v37 }
0x3505   : > { %v13693_v41 = vadd.f32 %v19279_v38, %v13686_v39  ;;  %v13694_v42 = vadd.f32 %v19279_v38, %v13687_v40  ;;  %v22989_v39 = vpack.c.bf16 %v19321_v27, %v19320_v8  ;;  %v19325_v40 = vld [vmem:[%s26523_s30 + $0x610] sm:$0xff]  ;;  %v19346_v27 = vld [vmem:[%s26516_s6 + $0x178] sm:$0xff] }
0x3506   : > { %v19345_v8 = vld [vmem:[%s26516_s6 + $0x170] sm:$0xff] }
0x3507   : > { %v13695_v43 = vmax.f32 %v13693_v41, 0.0  ;;  %v13696_v44 = vmax.f32 %v13694_v42, 0.0  ;;  %v19326_v41 = vld [vmem:[%s26523_s30 + $0x618] sm:$0xff] }
0x3509   : > { %21694 = vmatprep.mubr.msk.f32.mxu0 %vm725_vm0, %v13695_v43 }
0x350a   : > { %21695 = vmatmul.mubr.msk.f32.vlgmr.msra.gmra.mrb[158].mxu0 %vm725_vm0, %v13696_v44  ;;  %v22996_v44 = vpack.c.bf16 %v19326_v41, %v19325_v40  ;;  %v15198_v40 = vstv %s19338_s4  ;;  %s697_s4 = scalar_lea.vmem %s26526_s21, %s26525_s23 }
0x350b   : > { %21701 = vmatprep.mubr.msk.f32.mxu0 %vm23410_vm1, %v23411_v17 }
0x35dd   : > { %v21696_v30 = vpop.f32.mrb[158].mxu0 }
0x35de   : > { %v13786_v45 = vadd.f32 %v21696_v30, %v19285_v28  ;;  %v13780_v22 = vpop.f32.mrb[159].mxu0  ;;  %v19331_v30 = vld [vmem:[%s26523_s30 + $0x628] sm:$0xff] }
0x35df   : > { %v13781_v50 = vadd.f32 %v19285_v28, %v13780_v22  ;;  %v19330_v28 = vld [vmem:[%s26523_s30 + $0x620] sm:$0xff] }
0x35e0   : > { %v13790_v14 = vmax.f32 %v13786_v45, 0.0 }
0x35e1   : > { %v13789_v29 = vmax.f32 %v13781_v50, 0.0  ;;  %v23003_v50 = vpack.c.bf16 %v19331_v30, %v19330_v28  ;;  %v19340_v30 = vld [vmem:[%s26517_s1 + $0x16] ss:$0 sm:$0xff] }
0x35e3   : > { %v22943_v9 = vpack.c.bf16 %v13790_v14, %v13789_v29 }
0x35e5   : > { %22945 = vmatpush3.bf16.msk.msra.mxu0 %vm23605_vm4, %v22943_v9 }
0x35e6   : > { %22946 = vmatprep.subr.bf16.mxu0 %v23409_v16 }
0x35e8   : > { %21702 = vmatmul.mubr.msk.f32.vlgmr.msra.gmra.mrb[160].mxu0 %vm811_vm5, %v25777_v52 }
0x35e9   : > { %22949 = vmatpush3.bf16.msk.msra.mxu0 %vm23605_vm4, %v22943_v9  ;;  %21708 = vmatprep.mubr.msk.f32.mxu0 %vm23410_vm1, %v23411_v17 }
0x35ea   : > { %22953 = vmatprep.subr.bf16.mxu0 %v23409_v16 }
0x35ec   : > { %21709 = vmatmul.mubr.msk.f32.vlgmr.msra.gmra.mrb[162].mxu0 %vm811_vm5, %v25789_v53 }
0x35ed   : > { %22955 = vmatpush3.bf16.msra.mxu0 %v22954_v59  ;;  %21722 = vmatprep.mubr.msk.f32.mxu0 %vm23410_vm1, %v23411_v17  ;;  %v19335_v59 = vld [vmem:[%s26482_s8 + $0xa8] sm:$0xff] }
0x35ee   : > { %22960 = vmatprep.subr.bf16.mxu0 %v23409_v16  ;;  %v23006_v55 = vpack.c.bf16 %v19335_v59, %v19334_v31 }
0x36bb   : > { %v13860_v56 = vpop.f32.mrb[160].mxu0 }
0x36bc   : > { %v21703_v57 = vpop.f32.mrb[161].mxu0  ;;  %21723 = vmatmul.mubr.msk.f32.vlgmr.msra.gmra.mrb[164].mxu0 %vm970_vm6, %v13860_v56 }
0x36bd   : > { %21736 = vmatprep.mubr.msk.f32.mxu0 %vm23410_vm1, %v23411_v17  ;;  %22962 = vmatpush3.bf16.msra.mxu0 %v22961_v47 }
0x36be   : > { %22967 = vmatprep.subr.bf16.mxu0 %v23409_v16 }
0x36bf   : > { %v13933_v58 = vpop.f32.mrb[162].mxu0 }
0x36c0   : > { %v21710_v61 = vpop.f32.mrb[163].mxu0  ;;  %21716 = vmatmul.mubr.msk.f32.vlgmr.msra.gmra.mrb[126].mxu1 %vm970_vm6, %v13933_v58 }
0x36c1   : > { %22959 = vmatpush3.bf16.msk.msra.mxu1 %vm23605_vm4, %v22943_v9  ;;  %21729 = vmatprep.mubr.msk.f32.mxu1 %vm23410_vm1, %v23411_v17 }
0x36c2   : > { %22963 = vmatprep.subr.bf16.mxu1 %v23409_v16 }
0x36c4   : > { %21730 = vmatmul.mubr.msk.f32.vlgmr.msra.gmra.mrb[128].mxu1 %vm811_vm5, %v25815_v62 }
0x36c5   : > { %22966 = vmatpush3.bf16.msk.msra.mxu1 %vm23605_vm4, %v22943_v9  ;;  %21743 = vmatprep.mubr.msk.f32.mxu1 %vm23410_vm1, %v23411_v17 }
0x36c6   : > { %22970 = vmatprep.subr.bf16.mxu1 %v23409_v16 }
0x36c8   : > { %21744 = vmatmul.mubr.msk.f32.vlgmr.msra.gmra.mrb[130].mxu1 %vm811_vm5, %v25827_v1 }
0x36c9   : > { %22973 = vmatpush3.bf16.msk.msra.mxu1 %vm23605_vm4, %v22943_v9  ;;  %21757 = vmatprep.mubr.msk.f32.mxu1 %vm23410_vm1, %v23411_v17 }
0x36ca   : > { %22977 = vmatprep.subr.bf16.mxu1 %v23409_v16 }
0x36cc   : > { %21758 = vmatmul.mubr.msk.f32.vlgmr.msra.gmra.mrb[132].mxu1 %vm811_vm5, %v25839_v2 }
0x36cd   : > { %22980 = vmatpush3.bf16.msk.msra.mxu1 %vm23605_vm4, %v22943_v9  ;;  %21771 = vmatprep.mubr.msk.f32.mxu1 %vm23410_vm1, %v23411_v17 }
0x36ce   : > { %22984 = vmatprep.subr.bf16.mxu1 %v23409_v16 }
0x36d0   : > { %21772 = vmatmul.mubr.msk.f32.vlgmr.msra.gmra.mrb[134].mxu1 %vm811_vm5, %v25851_v24 }
0x36d1   : > { %22987 = vmatpush3.bf16.msk.msra.mxu1 %vm23605_vm4, %v22943_v9  ;;  %21785 = vmatprep.mubr.msk.f32.mxu1 %vm23410_vm1, %v23411_v17 }
0x36d2   : > { %22991 = vmatprep.subr.bf16.mxu1 %v23409_v16 }
0x36d4   : > { %21786 = vmatmul.mubr.msk.f32.vlgmr.msra.gmra.mrb[136].mxu1 %vm811_vm5, %v25863_v4 }
0x36d5   : > { %22994 = vmatpush3.bf16.msk.msra.mxu1 %vm23605_vm4, %v22943_v9  ;;  %21799 = vmatprep.mubr.msk.f32.mxu1 %vm23410_vm1, %v23411_v17 }
0x36d6   : > { %22998 = vmatprep.subr.bf16.mxu1 %v23409_v16 }
0x36d8   : > { %21800 = vmatmul.mubr.msk.f32.vlgmr.msra.gmra.mrb[138].mxu1 %vm811_vm5, %v25875_v5 }
0x36d9   : > { %23001 = vmatpush3.bf16.msk.msra.mxu1 %vm23605_vm4, %v22943_v9  ;;  %21813 = vmatprep.mubr.msk.f32.mxu1 %vm23410_vm1, %v23411_v17 }
0x36da   : > { %23005 = vmatprep.subr.bf16.mxu1 %v23409_v16 }
0x36dc   : > { %21814 = vmatmul.mubr.msk.f32.vlgmr.msra.gmra.mrb[140].mxu1 %vm811_vm5, %v25887_v46 }
0x36dd   : > { %21827 = vmatprep.mubr.msk.f32.mxu1 %vm23410_vm1, %v23411_v17  ;;  %23007 = vmatpush3.bf16.msra.mxu1 %v23006_v55  ;;  %v19348_v55 = vld [vmem:[%s26519_s0 + $0xb] ss:$0 sm:$0xff] }
0x36de   : > { %23016 = vmatprep.subr.bf16.mxu1 %v23409_v16 }
0x378f   : > { %v14082_v48 = vpop.f32.mrb[164].mxu0 }
0x3790   : > { %v21724_v6 = vpop.f32.mrb[165].mxu0 }
0x3793   : > { %v14009_v12 = vpop.f32.mrb[126].mxu1 }
0x3794   : > { %v14083_v13 = vadd.f32 %v14082_v48, %v14009_v12  ;;  %v21717_v32 = vpop.f32.mrb[127].mxu1 }
0x3797   : > { %v14152_v0 = vpop.f32.mrb[128].mxu1 }
0x3798   : > { %v21731_v18 = vpop.f32.mrb[129].mxu1  ;;  %21737 = vmatmul.mubr.msk.f32.vlgmr.msra.gmra.mrb[166].mxu0 %vm970_vm6, %v14152_v0 }
0x3799   : > { %22969 = vmatpush3.bf16.msra.mxu0 %v22968_v33  ;;  %21750 = vmatprep.mubr.msk.f32.mxu0 %vm23410_vm1, %v23411_v17 }
0x379a   : > { %22974 = vmatprep.subr.bf16.mxu0 %v23409_v16 }
0x379b   : > { %v14299_v20 = vpop.f32.mrb[130].mxu1 }
0x379c   : > { %v21745_v23 = vpop.f32.mrb[131].mxu1  ;;  %21751 = vmatmul.mubr.msk.f32.vlgmr.msra.gmra.mrb[168].mxu0 %vm970_vm6, %v14299_v20  ;;  %v19343_v20 = vld [vmem:[%s26516_s6 + $0x160] sm:$0xff] }
0x379d   : > { %22976 = vmatpush3.bf16.msra.mxu0 %v22975_v3  ;;  %21764 = vmatprep.mubr.msk.f32.mxu0 %vm23410_vm1, %v23411_v17  ;;  %v19344_v23 = vld [vmem:[%s26516_s6 + $0x168] sm:$0xff] }
0x379e   : > { %22981 = vmatprep.subr.bf16.mxu0 %v23409_v16 }
0x379f   : > { %v14446_v26 = vpop.f32.mrb[132].mxu1 }
0x37a0   : > { %v21759_v38 = vpop.f32.mrb[133].mxu1  ;;  %21765 = vmatmul.mubr.msk.f32.vlgmr.msra.gmra.mrb[170].mxu0 %vm970_vm6, %v14446_v26  ;;  %v23012_v26 = vpack.c.bf16 %v19346_v27, %v19345_v8  ;;  %v19373_v27 = vld [vmem:[%s26523_s30 + $0x670] sm:$0xff] }
0x37a1   : > { %22983 = vmatpush3.bf16.msra.mxu0 %v22982_v7  ;;  %21778 = vmatprep.mubr.msk.f32.mxu0 %vm23410_vm1, %v23411_v17  ;;  %v23008_v7 = vpack.c.bf16 %v19344_v23, %v19343_v20  ;;  %v19336_v38 = vld [vmem:[%s26483_s9 + $0xa] sm:$0x1] }
0x37a2   : > { %22988 = vmatprep.subr.bf16.mxu0 %v23409_v16 }
0x37a3   : > { %v14593_v42 = vpop.f32.mrb[134].mxu1 }
0x37a4   : > { %v21773_v43 = vpop.f32.mrb[135].mxu1  ;;  %21779 = vmatmul.mubr.msk.f32.vlgmr.msra.gmra.mrb[172].mxu0 %vm970_vm6, %v14593_v42 }
0x37a5   : > { %22990 = vmatpush3.bf16.msra.mxu0 %v22989_v39  ;;  %21792 = vmatprep.mubr.msk.f32.mxu0 %vm23410_vm1, %v23411_v17  ;;  %v15199_v43 = vmul.f32 %v15198_v40, %v25749_v36 }
0x37a6   : > { %22995 = vmatprep.subr.bf16.mxu0 %v23409_v16 }
0x37a7   : > { %v14740_v45 = vpop.f32.mrb[136].mxu1 }
0x37a8   : > { %v21787_v22 = vpop.f32.mrb[137].mxu1  ;;  %21793 = vmatmul.mubr.msk.f32.vlgmr.msra.gmra.mrb[174].mxu0 %vm970_vm6, %v14740_v45 }
0x37a9   : > { %22997 = vmatpush3.bf16.msra.mxu0 %v22996_v44  ;;  %21806 = vmatprep.mubr.msk.f32.mxu0 %vm23410_vm1, %v23411_v17  ;;  %v15200_v44 = vmul.f32 %v15198_v40, %v25751_v37 }
0x37aa   : > { %23002 = vmatprep.subr.bf16.mxu0 %v23409_v16 }
0x37ab   : > { %v14887_v14 = vpop.f32.mrb[138].mxu1 }
0x37ac   : > { %v21801_v29 = vpop.f32.mrb[139].mxu1  ;;  %21807 = vmatmul.mubr.msk.f32.vlgmr.msra.gmra.mrb[176].mxu0 %vm970_vm6, %v14887_v14 }
0x37ad   : > { %23004 = vmatpush3.bf16.msra.mxu0 %v23003_v50  ;;  %21820 = vmatprep.mubr.msk.f32.mxu0 %vm23410_vm1, %v23411_v17  ;;  %v19342_v50 = vld [vmem:[%s26517_s1 + $0x17] ss:$0 sm:$0xff] }
0x37ae   : > { %23009 = vmatprep.subr.bf16.mxu0 %v23008_v7 }
0x37af   : > { %v15034_v9 = vpop.f32.mrb[140].mxu1 }
0x37b0   : > { %v21815_v51 = vpop.f32.mrb[141].mxu1  ;;  %21821 = vmatmul.mubr.msk.f32.vlgmr.msra.gmra.mrb[178].mxu0 %vm970_vm6, %v15034_v9 }
0x37b1   : > { %23011 = vmatpush3.bf16.msra.mxu0 %v23008_v7 }
0x37b2   : > { %23013 = vmatprep.subr.bf16.mxu0 %v23012_v26 }
0x37b5   : > { %23015 = vmatpush3.bf16.msra.mxu0 %v23012_v26  ;;  %v19374_v26 = vld [vmem:[%s26523_s30 + $0x678] sm:$0xff] }
0x37b6   : > { %23024 = vmatprep.subr.bf16.mxu0 %v23409_v16  ;;  %v23049_v40 = vpack.c.bf16 %v19374_v26, %v19373_v27 }
0x386b   : > { %v14228_v54 = vpop.f32.mrb[166].mxu0 }
0x386c   : > { %v14232_v34 = vadd.f32 %v14228_v54, %v14083_v13  ;;  %v21738_v56 = vpop.f32.mrb[167].mxu0  ;;  %v19333_v13 = vld [vmem:[%s26481_s7 + $0xa] sm:$0x1] }
0x386f   : > { %v14375_v57 = vpop.f32.mrb[168].mxu0 }
0x3870   : > { %v14379_v58 = vadd.f32 %v14375_v57, %v14232_v34  ;;  %v21752_v61 = vpop.f32.mrb[169].mxu0 }
0x3873   : > { %v14522_v35 = vpop.f32.mrb[170].mxu0 }
0x3874   : > { %v14526_v60 = vadd.f32 %v14522_v35, %v14379_v58  ;;  %v21766_v47 = vpop.f32.mrb[171].mxu0 }
0x3875   : > { %v19354_v47 = vld [vmem:[%s26523_s30 + $0x638] sm:$0xff] }
0x3877   : > { %v14669_v48 = vpop.f32.mrb[172].mxu0 }
0x3878   : > { %v14673_v6 = vadd.f32 %v14669_v48, %v14526_v60  ;;  %v21780_v10 = vpop.f32.mrb[173].mxu0  ;;  %v19353_v60 = vld [vmem:[%s26523_s30 + $0x630] sm:$0xff] }
0x3879   : > { %v23028_v48 = vpack.c.bf16 %v19354_v47, %v19353_v60  ;;  %v19358_v10 = vld [vmem:[%s26523_s30 + $0x648] sm:$0xff] }
0x387b   : > { %v14816_v49 = vpop.f32.mrb[174].mxu0 }
0x387c   : > { %v14820_v12 = vadd.f32 %v14816_v49, %v14673_v6  ;;  %v21794_v32 = vpop.f32.mrb[175].mxu0  ;;  %v19357_v6 = vld [vmem:[%s26523_s30 + $0x640] sm:$0xff] }
0x387d   : > { %v23025_v49 = vpack.c.bf16 %v19358_v10, %v19357_v6  ;;  %v19408_v6 = vld [vmem:[%s26484_s10 + $0x170] sm:$0xff]  ;;  %v19409_v10 = vld [vmem:[%s26484_s10 + $0x178] sm:$0xff] }
0x387f   : > { %v14963_v33 = vpop.f32.mrb[176].mxu0 }
0x3880   : > { %v14967_v21 = vadd.f32 %v14963_v33, %v14820_v12  ;;  %v21808_v15 = vpop.f32.mrb[177].mxu0 }
0x3881   : > { %v19363_v15 = vld [vmem:[%s26523_s30 + $0x650] sm:$0xff] }
0x3883   : > { %v15110_v0 = vpop.f32.mrb[178].mxu0 }
0x3884   : > { %v15114_v18 = vadd.f32 %v15110_v0, %v14967_v21  ;;  %v21822_v3 = vpop.f32.mrb[179].mxu0  ;;  %v19364_v0 = vld [vmem:[%s26523_s30 + $0x658] sm:$0xff] }
0x3886   : > { %v15117_v19 = vadd.f32 %v19333_v13, %v15114_v18  ;;  %v23035_v13 = vpack.c.bf16 %v19364_v0, %v19363_v15  ;;  %v19398_v15 = vld [vmem:[%s26482_s8 + $0xb8] sm:$0xff] }
0x3888   : > { %v15118_v63 = vmax.f32 %v15117_v19, 0.0  ;;  %v19368_v19 = vld [vmem:[%s26523_s30 + $0x660] sm:$0xff] }
0x388a   : > { %21828 = vmatmul.mubr.msk.f32.vlgmr.msra.gmra.mrb[142].mxu1 %vm970_vm6, %v15118_v63  ;;  %v19369_v63 = vld [vmem:[%s26523_s30 + $0x668] sm:$0xff] }
0x388b   : > { %21845 = vmatprep.mubr.msk.f32.mxu1 %vm23410_vm1, %v23411_v17  ;;  %v23042_v8 = vpack.c.bf16 %v19369_v63, %v19368_v19 }
0x395d   : > { %v15193_v39 = vpop.f32.mrb[142].mxu1 }
0x395e   : > { %v15194_v41 = vadd.f32 %v19336_v38, %v15193_v39  ;;  %v21829_v42 = vpop.f32.mrb[143].mxu1 }
0x395f   : > { %v19379_v42 = vld [vmem:[%s26523_s30 + $0x688] sm:$0xff] }
0x3960   : > { %v15204_v28 = vrot.slane %v15194_v41, %v23833_v11  ;;  %v19378_v41 = vld [vmem:[%s26523_s30 + $0x680] sm:$0xff] }
0x3962   : > { %v25995_v45 = vadd.f32 %v15204_v28, %v15199_v43  ;;  %v25997_v22 = vadd.f32 %v15204_v28, %v15200_v44  ;;  %v23056_v28 = vpack.c.bf16 %v19379_v42, %v19378_v41 }
0x3964   : > { %v15213_v14 = vmul.f32 %v19340_v30, %v25995_v45  ;;  %v15214_v29 = vmul.f32 %v19340_v30, %v25997_v22  ;;  %v19383_v30 = vld [vmem:[%s26523_s30 + $0x690] sm:$0xff] }
0x3966   : > { %v15220_v9 = vadd.f32 %v19342_v50, %v15213_v14  ;;  %v15221_v51 = vadd.f32 %v19342_v50, %v15214_v29  ;;  %v19384_v50 = vld [vmem:[%s26523_s30 + $0x698] sm:$0xff] }
0x3968   : > { %v15222_v31 = vmax.f32 %v15220_v9, 0.0  ;;  %v15223_v59 = vmax.f32 %v15221_v51, 0.0  ;;  %v23063_v9 = vpack.c.bf16 %v19384_v50, %v19383_v30  ;;  %v19388_v51 = vld [vmem:[%s26523_s30 + $0x6a0] sm:$0xff] }
0x396a   : > { %21838 = vmatprep.mubr.msk.f32.mxu0 %vm725_vm0, %v15222_v31  ;;  %v19389_v31 = vld [vmem:[%s26523_s30 + $0x6a8] sm:$0xff] }
0x396b   : > { %21839 = vmatmul.mubr.msk.f32.vlgmr.msra.gmra.mrb[180].mxu0 %vm725_vm0, %v15223_v59 }
0x396c   : > { %21859 = vmatprep.mubr.msk.f32.mxu0 %vm23410_vm1, %v23411_v17  ;;  %23026 = vmatpush3.bf16.msra.mxu0 %v23025_v49 }
0x396d   : > { %23030 = vmatprep.subr.bf16.mxu0 %v23409_v16 }
0x3a3e   : > { %v21840_v54 = vpop.f32.mrb[180].mxu0 }
0x3a3f   : > { %v15312_v34 = vadd.f32 %v21840_v54, %v19348_v55  ;;  %v15306_v56 = vpop.f32.mrb[181].mxu0  ;;  %v23070_v54 = vpack.c.bf16 %v19389_v31, %v19388_v51  ;;  %v19402_v51 = vld [vmem:[%s26484_s10 + $0x140] sm:$0xff]  ;;  %v19403_v31 = vld [vmem:[%s26484_s10 + $0x148] sm:$0xff] }
0x3a40   : > { %v15307_v57 = vadd.f32 %v19348_v55, %v15306_v56  ;;  %v19394_v56 = vld [vmem:[%s26523_s30 + $0x6b8] sm:$0xff] }
0x3a41   : > { %v15316_v58 = vmax.f32 %v15312_v34, 0.0  ;;  %v19393_v34 = vld [vmem:[%s26523_s30 + $0x6b0] sm:$0xff] }
0x3a42   : > { %v15315_v61 = vmax.f32 %v15307_v57, 0.0  ;;  %v23077_v60 = vpack.c.bf16 %v19394_v56, %v19393_v34  ;;  %v19399_v56 = vld [vmem:[%s26483_s9 + $0xb] sm:$0x1] }
0x3a44   : > { %v23017_v35 = vpack.c.bf16 %v15316_v58, %v15315_v61  ;;  %v19406_v58 = vld [vmem:[%s26484_s10 + $0x160] sm:$0xff]  ;;  %v19407_v61 = vld [vmem:[%s26484_s10 + $0x168] sm:$0xff] }
0x3a45   : > { %v23082_v47 = vpack.c.bf16 %v19407_v61, %v19406_v58  ;;  %v16722_v58 = vstv %s19401_s22 }
0x3a46   : > { %23019 = vmatpush3.bf16.msk.msra.mxu1 %vm23605_vm4, %v23017_v35 }
0x3a47   : > { %23020 = vmatprep.subr.bf16.mxu1 %v23409_v16 }
0x3a49   : > { %21846 = vmatmul.mubr.msk.f32.vlgmr.msra.gmra.mrb[144].mxu1 %vm811_vm5, %v25777_v52 }
0x3a4a   : > { %23023 = vmatpush3.bf16.msk.msra.mxu1 %vm23605_vm4, %v23017_v35  ;;  %21852 = vmatprep.mubr.msk.f32.mxu1 %vm23410_vm1, %v23411_v17 }
0x3a4b   : > { %23027 = vmatprep.subr.bf16.mxu1 %v23409_v16 }
0x3a4d   : > { %21853 = vmatmul.mubr.msk.f32.vlgmr.msra.gmra.mrb[146].mxu1 %vm811_vm5, %v25789_v53 }
0x3a4e   : > { %23029 = vmatpush3.bf16.msra.mxu1 %v23028_v48  ;;  %21866 = vmatprep.mubr.msk.f32.mxu1 %vm23410_vm1, %v23411_v17 }
0x3a4f   : > { %23034 = vmatprep.subr.bf16.mxu1 %v23409_v16 }
0x3b1c   : > { %v15386_v12 = vpop.f32.mrb[144].mxu1 }
0x3b1d   : > { %v21847_v32 = vpop.f32.mrb[145].mxu1  ;;  %21867 = vmatmul.mubr.msk.f32.vlgmr.msra.gmra.mrb[148].mxu1 %vm970_vm6, %v15386_v12  ;;  %v23086_v12 = vpack.c.bf16 %v19409_v10, %v19408_v6 }
0x3b1e   : > { %21880 = vmatprep.mubr.msk.f32.mxu1 %vm23410_vm1, %v23411_v17  ;;  %23036 = vmatpush3.bf16.msra.mxu1 %v23035_v13 }
0x3b1f   : > { %23041 = vmatprep.subr.bf16.mxu1 %v23409_v16 }
0x3b20   : > { %v15459_v33 = vpop.f32.mrb[146].mxu1 }
0x3b21   : > { %v21854_v21 = vpop.f32.mrb[147].mxu1  ;;  %21860 = vmatmul.mubr.msk.f32.vlgmr.msra.gmra.mrb[182].mxu0 %vm970_vm6, %v15459_v33 }
0x3b22   : > { %23033 = vmatpush3.bf16.msk.msra.mxu0 %vm23605_vm4, %v23017_v35  ;;  %21873 = vmatprep.mubr.msk.f32.mxu0 %vm23410_vm1, %v23411_v17  ;;  %v19397_v21 = vld [vmem:[%s26482_s8 + $0xb0] sm:$0xff] }
0x3b23   : > { %23037 = vmatprep.subr.bf16.mxu0 %v23409_v16  ;;  %v23080_v0 = vpack.c.bf16 %v19398_v15, %v19397_v21 }
0x3b25   : > { %21874 = vmatmul.mubr.msk.f32.vlgmr.msra.gmra.mrb[184].mxu0 %vm811_vm5, %v25815_v62 }
0x3b26   : > { %23040 = vmatpush3.bf16.msk.msra.mxu0 %vm23605_vm4, %v23017_v35  ;;  %21887 = vmatprep.mubr.msk.f32.mxu0 %vm23410_vm1, %v23411_v17 }
0x3b27   : > { %23044 = vmatprep.subr.bf16.mxu0 %v23409_v16 }
0x3b29   : > { %21888 = vmatmul.mubr.msk.f32.vlgmr.msra.gmra.mrb[186].mxu0 %vm811_vm5, %v25827_v1 }
0x3b2a   : > { %23047 = vmatpush3.bf16.msk.msra.mxu0 %vm23605_vm4, %v23017_v35  ;;  %21901 = vmatprep.mubr.msk.f32.mxu0 %vm23410_vm1, %v23411_v17 }
0x3b2b   : > { %23051 = vmatprep.subr.bf16.mxu0 %v23409_v16 }
0x3b2d   : > { %21902 = vmatmul.mubr.msk.f32.vlgmr.msra.gmra.mrb[188].mxu0 %vm811_vm5, %v25839_v2 }
0x3b2e   : > { %23054 = vmatpush3.bf16.msk.msra.mxu0 %vm23605_vm4, %v23017_v35  ;;  %21915 = vmatprep.mubr.msk.f32.mxu0 %vm23410_vm1, %v23411_v17 }
0x3b2f   : > { %23058 = vmatprep.subr.bf16.mxu0 %v23409_v16 }
0x3b31   : > { %21916 = vmatmul.mubr.msk.f32.vlgmr.msra.gmra.mrb[190].mxu0 %vm811_vm5, %v25851_v24 }
0x3b32   : > { %23061 = vmatpush3.bf16.msk.msra.mxu0 %vm23605_vm4, %v23017_v35  ;;  %21929 = vmatprep.mubr.msk.f32.mxu0 %vm23410_vm1, %v23411_v17 }
0x3b33   : > { %23065 = vmatprep.subr.bf16.mxu0 %v23409_v16 }
0x3b35   : > { %21930 = vmatmul.mubr.msk.f32.vlgmr.msra.gmra.mrb[192].mxu0 %vm811_vm5, %v25863_v4 }
0x3b36   : > { %23068 = vmatpush3.bf16.msk.msra.mxu0 %vm23605_vm4, %v23017_v35  ;;  %21943 = vmatprep.mubr.msk.f32.mxu0 %vm23410_vm1, %v23411_v17 }
0x3b37   : > { %23072 = vmatprep.subr.bf16.mxu0 %v23409_v16 }
0x3b39   : > { %21944 = vmatmul.mubr.msk.f32.vlgmr.msra.gmra.mrb[194].mxu0 %vm811_vm5, %v25875_v5 }
0x3b3a   : > { %23075 = vmatpush3.bf16.msk.msra.mxu0 %vm23605_vm4, %v23017_v35  ;;  %21957 = vmatprep.mubr.msk.f32.mxu0 %vm23410_vm1, %v23411_v17 }
0x3b3b   : > { %23079 = vmatprep.subr.bf16.mxu0 %v23409_v16 }
0x3b3d   : > { %21958 = vmatmul.mubr.msk.f32.vlgmr.msra.gmra.mrb[196].mxu0 %vm811_vm5, %v25887_v46 }
0x3b3e   : > { %21971 = vmatprep.mubr.msk.f32.mxu0 %vm23410_vm1, %v23411_v17  ;;  %23081 = vmatpush3.bf16.msra.mxu0 %v23080_v0 }
0x3b3f   : > { %23098 = vmatprep.subr.bf16.mxu0 %v23409_v16 }
0x3bf0   : > { %v15608_v18 = vpop.f32.mrb[148].mxu1 }
0x3bf1   : > { %v21868_v3 = vpop.f32.mrb[149].mxu1 }
0x3bf4   : > { %v15535_v20 = vpop.f32.mrb[182].mxu0 }
0x3bf5   : > { %v26107_v23 = vadd.f32 %v15608_v18, %v15535_v20  ;;  %v21861_v7 = vpop.f32.mrb[183].mxu0 }
0x3bf8   : > { %v15678_v38 = vpop.f32.mrb[184].mxu0 }
0x3bf9   : > { %v21875_v39 = vpop.f32.mrb[185].mxu0  ;;  %21881 = vmatmul.mubr.msk.f32.vlgmr.msra.gmra.mrb[150].mxu1 %vm970_vm6, %v15678_v38 }
0x3bfa   : > { %23043 = vmatpush3.bf16.msra.mxu1 %v23042_v8  ;;  %21894 = vmatprep.mubr.msk.f32.mxu1 %vm23410_vm1, %v23411_v17 }
0x3bfb   : > { %23048 = vmatprep.subr.bf16.mxu1 %v23409_v16 }
0x3bfc   : > { %v15825_v43 = vpop.f32.mrb[186].mxu0 }
0x3bfd   : > { %v21889_v44 = vpop.f32.mrb[187].mxu0  ;;  %21895 = vmatmul.mubr.msk.f32.vlgmr.msra.gmra.mrb[152].mxu1 %vm970_vm6, %v15825_v43 }
0x3bfe   : > { %23050 = vmatpush3.bf16.msra.mxu1 %v23049_v40  ;;  %21908 = vmatprep.mubr.msk.f32.mxu1 %vm23410_vm1, %v23411_v17 }
0x3bff   : > { %23055 = vmatprep.subr.bf16.mxu1 %v23409_v16 }
0x3c00   : > { %v15972_v14 = vpop.f32.mrb[188].mxu0 }
0x3c01   : > { %v21903_v29 = vpop.f32.mrb[189].mxu0  ;;  %21909 = vmatmul.mubr.msk.f32.vlgmr.msra.gmra.mrb[154].mxu1 %vm970_vm6, %v15972_v14 }
0x3c02   : > { %23057 = vmatpush3.bf16.msra.mxu1 %v23056_v28  ;;  %21922 = vmatprep.mubr.msk.f32.mxu1 %vm23410_vm1, %v23411_v17 }
0x3c03   : > { %23062 = vmatprep.subr.bf16.mxu1 %v23409_v16 }
0x3c04   : > { %v16119_v59 = vpop.f32.mrb[190].mxu0 }
0x3c05   : > { %v21917_v55 = vpop.f32.mrb[191].mxu0  ;;  %21923 = vmatmul.mubr.msk.f32.vlgmr.msra.gmra.mrb[156].mxu1 %vm970_vm6, %v16119_v59  ;;  %v23090_v59 = vpack.c.bf16 %v19403_v31, %v19402_v51 }
0x3c06   : > { %23064 = vmatpush3.bf16.msra.mxu1 %v23063_v9  ;;  %21936 = vmatprep.mubr.msk.f32.mxu1 %vm23410_vm1, %v23411_v17  ;;  %v19404_v55 = vld [vmem:[%s26484_s10 + $0x150] sm:$0xff] }
0x3c07   : > { %23069 = vmatprep.subr.bf16.mxu1 %v23409_v16 }
0x3c08   : > { %v16266_v57 = vpop.f32.mrb[192].mxu0 }
0x3c09   : > { %v21931_v35 = vpop.f32.mrb[193].mxu0  ;;  %21937 = vmatmul.mubr.msk.f32.vlgmr.msra.gmra.mrb[158].mxu1 %vm970_vm6, %v16266_v57 }
0x3c0a   : > { %23071 = vmatpush3.bf16.msra.mxu1 %v23070_v54  ;;  %21950 = vmatprep.mubr.msk.f32.mxu1 %vm23410_vm1, %v23411_v17  ;;  %v19405_v54 = vld [vmem:[%s26484_s10 + $0x158] sm:$0xff] }
0x3c0b   : > { %23076 = vmatprep.subr.bf16.mxu1 %v23409_v16  ;;  %v23094_v34 = vpack.c.bf16 %v19405_v54, %v19404_v55  ;;  %v19436_v54 = vld [vmem:[%s26485_s11 + $0x5d8] sm:$0xff] }
0x3c0c   : > { %v16413_v48 = vpop.f32.mrb[194].mxu0 }
0x3c0d   : > { %v21945_v49 = vpop.f32.mrb[195].mxu0  ;;  %21951 = vmatmul.mubr.msk.f32.vlgmr.msra.gmra.mrb[160].mxu1 %vm970_vm6, %v16413_v48 }
0x3c0e   : > { %23078 = vmatpush3.bf16.msra.mxu1 %v23077_v60  ;;  %21964 = vmatprep.mubr.msk.f32.mxu1 %vm23410_vm1, %v23411_v17  ;;  %v16723_v60 = vmul.f32 %v16722_v58, %v25995_v45  ;;  %v19414_v49 = vld [vmem:[%s26486_s12 + $0xa0] sm:$0xff] }
0x3c0f   : > { %23083 = vmatprep.subr.bf16.mxu1 %v23082_v47 }
0x3c10   : > { %v16560_v32 = vpop.f32.mrb[196].mxu0 }
0x3c11   : > { %v21959_v33 = vpop.f32.mrb[197].mxu0  ;;  %21965 = vmatmul.mubr.msk.f32.vlgmr.msra.gmra.mrb[162].mxu1 %vm970_vm6, %v16560_v32 }
0x3c12   : > { %23085 = vmatpush3.bf16.msra.mxu1 %v23082_v47  ;;  %21982 = vmatprep.mubr.msk.f32.mxu1 %vm725_vm0, %v25995_v45  ;;  %v16724_v47 = vmul.f32 %v16722_v58, %v25997_v22  ;;  %v19415_v45 = vld [vmem:[%s26486_s12 + $0xa8] sm:$0xff] }
0x3c13   : > { %23087 = vmatprep.subr.bf16.mxu1 %v23086_v12  ;;  %v23372_v58 = vld [vmem:[%s26522_s24 + $0x28] sm:$0x1] }
0x3c16   : > { %23089 = vmatpush3.bf16.msra.mxu1 %v23086_v12  ;;  %v19416_v12 = vld [vmem:[%s26486_s12 + $0xb0] sm:$0xff] }
0x3c17   : > { %23091 = vmatprep.subr.bf16.mxu1 %v23090_v59 }
0x3c19   : > { %21983 = vmatmul.mubr.msk.f32.vlgmr.msra.gmra.mrb[164].mxu1 %vm725_vm0, %v25997_v22  ;;  %v23099_v22 = vpack.c.bf16 %v19415_v45, %v19414_v49  ;;  %v19444_v45 = vld [vmem:[%s26485_s11 + $0x5e0] sm:$0xff] }
0x3c1a   : > { %23093 = vmatpush3.bf16.msra.mxu1 %v23090_v59 }
0x3c1b   : > { %23095 = vmatprep.subr.bf16.mxu1 %v23094_v34 }
0x3c1e   : > { %23097 = vmatpush3.bf16.msra.mxu1 %v23094_v34 }
0x3ccc   : > { %v15754_v13 = vpop.f32.mrb[150].mxu1 }
0x3ccd   : > { %v15758_v18 = vadd.f32 %v15754_v13, %v26107_v23  ;;  %v21882_v3 = vpop.f32.mrb[151].mxu1  ;;  %v19396_v23 = vld [vmem:[%s26481_s7 + $0xb] sm:$0x1] }
0x3cd0   : > { %v15901_v19 = vpop.f32.mrb[152].mxu1 }
0x3cd1   : > { %v15905_v63 = vadd.f32 %v15901_v19, %v15758_v18  ;;  %v21896_v20 = vpop.f32.mrb[153].mxu1 }
0x3cd4   : > { %v16048_v7 = vpop.f32.mrb[154].mxu1 }
0x3cd5   : > { %v16052_v8 = vadd.f32 %v16048_v7, %v15905_v63  ;;  %v21910_v27 = vpop.f32.mrb[155].mxu1 }
0x3cd8   : > { %v16195_v26 = vpop.f32.mrb[156].mxu1 }
0x3cd9   : > { %v16199_v38 = vadd.f32 %v16195_v26, %v16052_v8  ;;  %v21924_v39 = vpop.f32.mrb[157].mxu1  ;;  %v19418_v26 = vld [vmem:[%s26488_s14 + $0xa] sm:$0x3] }
0x3cdc   : > { %v16342_v40 = vpop.f32.mrb[158].mxu1 }
0x3cdd   : > { %v16346_v41 = vadd.f32 %v16342_v40, %v16199_v38  ;;  %v21938_v42 = vpop.f32.mrb[159].mxu1  ;;  %v16909_v38 = vld [vmem:[%s26487_s13 + $0x5] sm:$0x1] }
0x3ce0   : > { %v16489_v43 = vpop.f32.mrb[160].mxu1 }
0x3ce1   : > { %v16493_v44 = vadd.f32 %v16489_v43, %v16346_v41  ;;  %v21952_v28 = vpop.f32.mrb[161].mxu1 }
0x3ce4   : > { %v16636_v30 = vpop.f32.mrb[162].mxu1 }
0x3ce5   : > { %v16640_v50 = vadd.f32 %v16636_v30, %v16493_v44  ;;  %v21966_v14 = vpop.f32.mrb[163].mxu1 }
0x3ce7   : > { %v16642_v29 = vadd.f32 %v19396_v23, %v16640_v50 }
0x3ce9   : > { %v16643_v9 = vmax.f32 %v16642_v29, 0.0 }
0x3ceb   : > { %21972 = vmatmul.mubr.msk.f32.vlgmr.msra.gmra.mrb[198].mxu0 %vm970_vm6, %v16643_v9  ;;  %v19433_v9 = vld [vmem:[%s26485_s11 + $0x5c0] sm:$0xff] }
0x3cec   : > { %22004 = vmatprep.mubr.msk.f32.mxu0 %vm23410_vm1, %v23411_v17  ;;  %23100 = vmatpush3.bf16.msra.mxu0 %v23099_v22  ;;  %v19445_v22 = vld [vmem:[%s26485_s11 + $0x5e8] sm:$0xff] }
0x3ced   : > { %23101 = vmatprep.subr.bf16.mxu0 %v23409_v16 }
0x3dbe   : > { %v16717_v57 = vpop.f32.mrb[198].mxu0 }
0x3dbf   : > { %v16718_v61 = vadd.f32 %v19399_v56, %v16717_v57  ;;  %v21973_v35 = vpop.f32.mrb[199].mxu0  ;;  %v23370_v56 = vld [vmem:[%s26522_s24 + $0x18] sm:$0x1]  ;;  %v23371_v57 = vld [vmem:[%s26522_s24 + $0x8] sm:$0x1] }
0x3dc0   : > { %v19427_v35 = vld [vmem:[%s26485_s11 + $0x5a8] sm:$0xff] }
0x3dc1   : > { %v16728_v48 = vrot.slane %v16718_v61, %v23833_v11  ;;  %v23378_v61 = vld [vmem:[%s26522_s24 + $0x88] sm:$0x1] }
0x3dc3   : > { %v16729_v6 = vadd.f32 %v16728_v48, %v16723_v60  ;;  %v16730_v10 = vadd.f32 %v16728_v48, %v16724_v47 }
0x3dc5   : > { %21993 = vmatprep.mubr.msk.f32.mxu1 %vm725_vm0, %v16729_v6 }
0x3dc6   : > { %21994 = vmatmul.mubr.msk.f32.vlgmr.msra.gmra.mrb[164].mxu1 %vm725_vm0, %v16730_v10 }
0x3dc7   : > { %22023 = vmatprep.mubr.msk.f32.mxu1 %vm811_vm5, %v25789_v53  ;;  %v19417_v53 = vld [vmem:[%s26486_s12 + $0xb8] sm:$0xff] }
0x3dc8   : > { %v23102_v32 = vpack.c.bf16 %v19417_v53, %v19416_v12  ;;  %v23138_v53 = vpack.c.bf16 %v19445_v22, %v19444_v45 }
0x3dca   : > { %23103 = vmatpush3.bf16.msra.mxu0 %v23102_v32 }
0x3dcb   : > { %22007 = vmatprep.subr.mxu0 %v23411_v17 }
0x3e99   : > { %v21995_v33 = vpop.f32.mrb[164].mxu1 }
0x3e9a   : > { %v16903_v21 = vmax.f32 %v21995_v33, 0.0  ;;  %v16893_v15 = vpop.f32.mrb[165].mxu1  ;;  %v19446_v33 = vld [vmem:[%s26485_s11 + $0x5f0] sm:$0xff] }
0x3e9b   : > { %v16902_v0 = vmax.f32 %v16893_v15, 0.0 }
0x3e9c   : > { %v16914_v13 = vsel %vm3981_vm7, %v16903_v21, 0.0 }
0x3e9d   : > { %v16913_v16 = vsel %vm725_vm0, %v16902_v0, 0.0 }
0x3e9e   : > { %v16915_v18 = vadd.f32 %v16914_v13, %v16913_v16  ;;  %v19453_v16 = vld [vmem:[%s26485_s11 + $0x600] sm:$0xff] }
0x3ea0   : > { %v16916_v3 = vrot.slane %v16915_v18, 4 }
0x3ea2   : > { %v16917_v19 = vadd.f32 %v16916_v3, %v16915_v18  ;;  %v19454_v18 = vld [vmem:[%s26485_s11 + $0x608] sm:$0xff] }
0x3ea4   : > { %v16918_v63 = vrot.slane %v16917_v19, 2 }
0x3ea6   : > { %v16919_v20 = vadd.f32 %v16918_v63, %v16917_v19  ;;  %v23152_v19 = vpack.c.bf16 %v19454_v18, %v19453_v16 }
0x3ea8   : > { %v16920_v7 = vrot.slane %v16919_v20, 1 }
0x3eaa   : > { %v16921_v8 = vadd.f32 %v16920_v7, %v16919_v20  ;;  %v19455_v20 = vld [vmem:[%s26485_s11 + $0x610] sm:$0xff]  ;;  %v19456_v7 = vld [vmem:[%s26485_s11 + $0x618] sm:$0xff] }
0x3eac   : > { %v16922_v27 = vmul.f32 0.11111111, %v16921_v8 }
0x3eae   : > { %22005 = vmatmul.mubr.msk.f32.vlgmr.msra.gmra.mrb[200].mxu0 %vm725_vm0, %v16922_v27  ;;  %v23156_v27 = vpack.c.bf16 %v19456_v7, %v19455_v20 }
0x3eaf   : > { %22009 = vmatprep.mubr.msk.f32.mxu0 %vm23410_vm1, %v23411_v17  ;;  %22008 = vmatpush3.msk.msra.mxu0 %vm4069_vm8, %v19418_v26  ;;  %v16912_v17 = vld [vmem:[%s26489_s15 + $0x5] sm:$0x1] }
0x3f81   : > { %v16992_v39 = vpop.f32.mrb[200].mxu0 }
0x3f82   : > { %v16993_v40 = vadd.f32 %v16992_v39, %v16909_v38  ;;  %v22006_v41 = vpop.f32.mrb[201].mxu0  ;;  %v19462_v38 = vld [vmem:[%s26485_s11 + $0x620] sm:$0xff]  ;;  %v19463_v39 = vld [vmem:[%s26485_s11 + $0x628] sm:$0xff] }
0x3f83   : > { %v23166_v41 = vpack.c.bf16 %v19463_v39, %v19462_v38 }
0x3f84   : > { %v16996_v42 = vmax.f32 %v16993_v40, 0.0 }
0x3f86   : > { %22010 = vmatmul.mubr.msk.f32.vlgmr.msra.gmra.mrb[202].mxu0 %vm4065_vm9, %v16996_v42 }
0x3f87   : > { %22016 = vmatprep.mubr.msk.f32.mxu0 %vm811_vm5, %v25777_v52  ;;  %v19434_v52 = vld [vmem:[%s26485_s11 + $0x5c8] sm:$0xff] }
0x3f88   : > { %v23116_v55 = vpack.c.bf16 %v19434_v52, %v19433_v9  ;;  %v19473_v52 = vld [vmem:[%s26485_s11 + $0x650] sm:$0xff] }
0x4059   : > { %v17069_v43 = vpop.f32.mrb[202].mxu0 }
0x405a   : > { %v17070_v44 = vadd.f32 %v17069_v43, %v16912_v17  ;;  %v22011_v28 = vpop.f32.mrb[203].mxu0  ;;  %v19464_v17 = vld [vmem:[%s26485_s11 + $0x630] sm:$0xff]  ;;  %v19465_v43 = vld [vmem:[%s26485_s11 + $0x638] sm:$0xff] }
0x405b   : > { %v23170_v28 = vpack.c.bf16 %v19465_v43, %v19464_v17 }
0x405c   : > { %v19422_v30 = vmul.f32 -1.442695, %v17070_v44 }
0x405e   : > { %23337 = vpow2.f32 %v19422_v30 }
0x4068   : > { %v23338_v23 = vpop.eup %23337 }
0x4069   : > { %v17076_v50 = vadd.f32 1.0, %v23338_v23  ;;  %v19471_v23 = vld [vmem:[%s26485_s11 + $0x640] sm:$0xff] }
0x406b   : > { %23339 = vrcp.f32 %v17076_v50  ;;  %v19472_v50 = vld [vmem:[%s26485_s11 + $0x648] sm:$0xff] }
0x4075   : > { %v23340_v14 = vpop.eup %23339 }
0x4076   : > { %v17082_v29 = vrot.slane %v23340_v14, %v23833_v11  ;;  %v19435_v11 = vld [vmem:[%s26485_s11 + $0x5d0] sm:$0xff] }
0x4077   : > { %v23120_v34 = vpack.c.bf16 %v19436_v54, %v19435_v11  ;;  %v19482_v54 = vld [vmem:[%s26485_s11 + $0x670] sm:$0xff] }
0x4078   : > { %v17083_v51 = vmul.f32 %v17082_v29, %v16902_v0  ;;  %v17084_v31 = vmul.f32 %v17082_v29, %v16903_v21  ;;  %v19447_v21 = vld [vmem:[%s26485_s11 + $0x5f8] sm:$0xff]  ;;  %v23180_v29 = vpack.c.bf16 %v19472_v50, %v19471_v23 }
0x4079   : > { %v23142_v0 = vpack.c.bf16 %v19447_v21, %v19446_v33  ;;  %v23379_v21 = vld [vmem:[%s23581_s26 + $0x8] sm:$0x1] }
0x407a   : > { %v23104_v59 = vpack.c.bf16 %v17084_v31, %v17083_v51  ;;  %v19474_v51 = vld [vmem:[%s26485_s11 + $0x658] sm:$0xff] }
0x407b   : > { %v23184_v31 = vpack.c.bf16 %v19474_v51, %v19473_v52 }
0x407c   : > { %23106 = vmatprep.subr.msk.bf16.mxu0 %vm23605_vm4, %v23104_v59  ;;  %23112 = vmatprep.subr.msk.bf16.mxu1 %vm23605_vm4, %v23104_v59 }
0x407d   : > { %23109 = vmatpush3.bf16.msk.msra.mxu0 %vm23605_vm4, %v23104_v59  ;;  %23115 = vmatpush3.bf16.msk.msra.mxu1 %vm23605_vm4, %v23104_v59 }
0x407e   : > { %23134 = vmatprep.subr.msk.bf16.mxu1 %vm23605_vm4, %v23104_v59  ;;  %23117 = vmatprep.subr.bf16.mxu0 %v23116_v55 }
0x4080   : > { %22024 = vmatmul.mubr.msk.f32.vlgmr.msra.gmra.mrb[166].mxu1 %vm811_vm5, %v23370_v56  ;;  %22017 = vmatmul.mubr.msk.f32.vlgmr.msra.gmra.mrb[204].mxu0 %vm811_vm5, %v23371_v57  ;;  %v19489_v57 = vld [vmem:[%s26485_s11 + $0x680] sm:$0xff] }
0x4081   : > { %23137 = vmatpush3.bf16.msk.msra.mxu1 %vm23605_vm4, %v23104_v59  ;;  %22052 = vmatprep.mubr.msk.f32.mxu1 %vm811_vm5, %v25815_v62  ;;  %v23373_v62 = vld [vmem:[%s26522_s24 + $0x38] sm:$0x1] }
0x4082   : > { %23148 = vmatprep.subr.msk.bf16.mxu1 %vm23605_vm4, %v23104_v59  ;;  %23119 = vmatpush3.bf16.msra.mxu0 %v23116_v55  ;;  %v19481_v55 = vld [vmem:[%s26485_s11 + $0x668] sm:$0xff] }
0x4083   : > { %23121 = vmatprep.subr.bf16.mxu0 %v23120_v34 }
0x4084   : > { %22053 = vmatmul.mubr.msk.f32.vlgmr.msra.gmra.mrb[168].mxu1 %vm811_vm5, %v23372_v58  ;;  %v19490_v58 = vld [vmem:[%s26485_s11 + $0x688] sm:$0xff] }
0x4085   : > { %23151 = vmatpush3.bf16.msk.msra.mxu1 %vm23605_vm4, %v23104_v59  ;;  %22070 = vmatprep.mubr.msk.f32.mxu1 %vm811_vm5, %v25827_v1  ;;  %v23374_v1 = vld [vmem:[%s26522_s24 + $0x48] sm:$0x1] }
0x4086   : > { %23162 = vmatprep.subr.msk.bf16.mxu1 %vm23605_vm4, %v23104_v59  ;;  %23123 = vmatpush3.bf16.msra.mxu0 %v23120_v34  ;;  %v19483_v34 = vld [vmem:[%s26485_s11 + $0x678] sm:$0xff] }
0x4087   : > { %v23198_v56 = vpack.c.bf16 %v19483_v34, %v19482_v54 }
0x4088   : > { %22071 = vmatmul.mubr.msk.f32.vlgmr.msra.gmra.mrb[170].mxu1 %vm811_vm5, %v23373_v62  ;;  %v23208_v62 = vpack.c.bf16 %v19490_v58, %v19489_v57 }
0x4089   : > { %23165 = vmatpush3.bf16.msk.msra.mxu1 %vm23605_vm4, %v23104_v59  ;;  %22088 = vmatprep.mubr.msk.f32.mxu1 %vm811_vm5, %v25839_v2  ;;  %v23375_v2 = vld [vmem:[%s26522_s24 + $0x58] sm:$0x1] }
0x408a   : > { %23176 = vmatprep.subr.msk.bf16.mxu1 %vm23605_vm4, %v23104_v59 }
0x408c   : > { %22089 = vmatmul.mubr.msk.f32.vlgmr.msra.gmra.mrb[172].mxu1 %vm811_vm5, %v23374_v1  ;;  %v19491_v1 = vld [vmem:[%s26485_s11 + $0x690] sm:$0xff] }
0x408d   : > { %23179 = vmatpush3.bf16.msk.msra.mxu1 %vm23605_vm4, %v23104_v59  ;;  %22106 = vmatprep.mubr.msk.f32.mxu1 %vm811_vm5, %v25851_v24  ;;  %v23376_v24 = vld [vmem:[%s26522_s24 + $0x68] sm:$0x1] }
0x408e   : > { %23190 = vmatprep.subr.msk.bf16.mxu1 %vm23605_vm4, %v23104_v59 }
0x4090   : > { %22107 = vmatmul.mubr.msk.f32.vlgmr.msra.gmra.mrb[174].mxu1 %vm811_vm5, %v23375_v2  ;;  %v19492_v2 = vld [vmem:[%s26485_s11 + $0x698] sm:$0xff] }
0x4091   : > { %23193 = vmatpush3.bf16.msk.msra.mxu1 %vm23605_vm4, %v23104_v59  ;;  %22124 = vmatprep.mubr.msk.f32.mxu1 %vm811_vm5, %v25863_v4  ;;  %v23377_v4 = vld [vmem:[%s26522_s24 + $0x78] sm:$0x1] }
0x4092   : > { %23204 = vmatprep.subr.msk.bf16.mxu1 %vm23605_vm4, %v23104_v59 }
0x4094   : > { %22125 = vmatmul.mubr.msk.f32.vlgmr.msra.gmra.mrb[176].mxu1 %vm811_vm5, %v23376_v24  ;;  %v23212_v24 = vpack.c.bf16 %v19492_v2, %v19491_v1 }
0x4095   : > { %23207 = vmatpush3.bf16.msk.msra.mxu1 %vm23605_vm4, %v23104_v59  ;;  %22142 = vmatprep.mubr.msk.f32.mxu1 %vm811_vm5, %v25875_v5  ;;  %v19426_v5 = vld [vmem:[%s26485_s11 + $0x5a0] sm:$0xff] }
0x4096   : > { %23218 = vmatprep.subr.msk.bf16.mxu1 %vm23605_vm4, %v23104_v59  ;;  %v23124_v60 = vpack.c.bf16 %v19427_v35, %v19426_v5  ;;  %v19500_v35 = vld [vmem:[%s26485_s11 + $0x6b0] sm:$0xff] }
0x4098   : > { %22143 = vmatmul.mubr.msk.f32.vlgmr.msra.gmra.mrb[178].mxu1 %vm811_vm5, %v23377_v4  ;;  %23125 = vmatprep.subr.bf16.mxu0 %v23124_v60  ;;  %v19498_v4 = vld [vmem:[%s26485_s11 + $0x6a0] sm:$0xff] }
0x4099   : > { %23221 = vmatpush3.bf16.msk.msra.mxu1 %vm23605_vm4, %v23104_v59  ;;  %22160 = vmatprep.mubr.msk.f32.mxu1 %vm811_vm5, %v25887_v46  ;;  %v19429_v46 = vld [vmem:[%s26485_s11 + $0x5b8] sm:$0xff]  ;;  %v19480_v59 = vld [vmem:[%s26485_s11 + $0x660] sm:$0xff] }
0x409a   : > { %v23128_v10 = vpack.c.bf16 %v19429_v46, %v19428_v25  ;;  %v23194_v11 = vpack.c.bf16 %v19481_v55, %v19480_v59 }
0x409c   : > { %22161 = vmatmul.mubr.msk.f32.vlgmr.msra.gmra.mrb[180].mxu1 %vm811_vm5, %v23378_v61  ;;  %v19499_v61 = vld [vmem:[%s26485_s11 + $0x6a8] sm:$0xff] }
0x409d   : > { %v23222_v5 = vpack.c.bf16 %v19499_v61, %v19498_v4 }
0x4153   : > { %v22025_v47 = vpop.f32.mrb[166].mxu1  ;;  %v22018_v48 = vpop.f32.mrb[204].mxu0 }
0x4154   : > { %v17234_v6 = vpop.f32.mrb[167].mxu1  ;;  %v17154_v49 = vpop.f32.mrb[205].mxu0 }
0x4155   : > { %22034 = vmatprep.mubr.msk.f32.mxu0 %vm725_vm0, %v17234_v6 }
0x4156   : > { %22035 = vmatmul.mubr.msk.f32.vlgmr.msra.gmra.mrb[206].mxu0 %vm725_vm0, %v22025_v47  ;;  %v18554_v47 = vstv %s19504_s27 }
0x4157   : > { %23127 = vmatpush3.bf16.msra.mxu0 %v23124_v60  ;;  %22045 = vmatprep.mubr.msk.f32.mxu0 %vm725_vm0, %v17154_v49  ;;  %v22054_v12 = vpop.f32.mrb[168].mxu1  ;;  %v19501_v60 = vld [vmem:[%s26485_s11 + $0x6b8] sm:$0xff]  ;;  %v18556_v45 = vmul.f32 %v18554_v47, %v25751_v37 }
0x4158   : > { %23129 = vmatprep.subr.bf16.mxu0 %v23128_v10  ;;  %v17476_v32 = vpop.f32.mrb[169].mxu1  ;;  %v23226_v25 = vpack.c.bf16 %v19501_v60, %v19500_v35 }
0x415b   : > { %23131 = vmatpush3.bf16.msra.mxu0 %v23128_v10  ;;  %v22072_v15 = vpop.f32.mrb[170].mxu1 }
0x415c   : > { %23139 = vmatprep.subr.bf16.mxu0 %v23138_v53  ;;  %v17639_v13 = vpop.f32.mrb[171].mxu1 }
0x415e   : > { %22046 = vmatmul.mubr.msk.f32.vlgmr.msra.gmra.mrb[206].mxu0 %vm725_vm0, %v22018_v48  ;;  %v18558_v48 = vstv %s19505_s29 }
0x415f   : > { %23141 = vmatpush3.bf16.msra.mxu0 %v23138_v53  ;;  %22063 = vmatprep.mubr.msk.f32.mxu0 %vm725_vm0, %v17476_v32  ;;  %v22090_v3 = vpop.f32.mrb[172].mxu1 }
0x4160   : > { %23143 = vmatprep.subr.bf16.mxu0 %v23142_v0  ;;  %v17802_v63 = vpop.f32.mrb[173].mxu1 }
0x4163   : > { %23145 = vmatpush3.bf16.msra.mxu0 %v23142_v0  ;;  %v22108_v8 = vpop.f32.mrb[174].mxu1  ;;  %v23380_v0 = vld [vmem:[%s23581_s26] sm:$0xff] }
0x4164   : > { %23153 = vmatprep.subr.bf16.mxu0 %v23152_v19  ;;  %v17965_v26 = vpop.f32.mrb[175].mxu1 }
0x4166   : > { %22064 = vmatmul.mubr.msk.f32.vlgmr.msra.gmra.mrb[206].mxu0 %vm725_vm0, %v22054_v12  ;;  %v18555_v12 = vmul.f32 %v18554_v47, %v25749_v36 }
0x4167   : > { %23155 = vmatpush3.bf16.msra.mxu0 %v23152_v19  ;;  %22081 = vmatprep.mubr.msk.f32.mxu0 %vm725_vm0, %v17639_v13  ;;  %v22126_v40 = vpop.f32.mrb[176].mxu1 }
0x4168   : > { %23157 = vmatprep.subr.bf16.mxu0 %v23156_v27  ;;  %v18128_v42 = vpop.f32.mrb[177].mxu1 }
0x416b   : > { %23159 = vmatpush3.bf16.msra.mxu0 %v23156_v27  ;;  %v22144_v44 = vpop.f32.mrb[178].mxu1 }
0x416c   : > { %23167 = vmatprep.subr.bf16.mxu0 %v23166_v41  ;;  %v18291_v30 = vpop.f32.mrb[179].mxu1 }
0x416e   : > { %22082 = vmatmul.mubr.msk.f32.vlgmr.msra.gmra.mrb[206].mxu0 %vm725_vm0, %v22072_v15 }
0x416f   : > { %23169 = vmatpush3.bf16.msra.mxu0 %v23166_v41  ;;  %22099 = vmatprep.mubr.msk.f32.mxu0 %vm725_vm0, %v17802_v63  ;;  %v22162_v14 = vpop.f32.mrb[180].mxu1 }
0x4170   : > { %23171 = vmatprep.subr.bf16.mxu0 %v23170_v28  ;;  %v18454_v9 = vpop.f32.mrb[181].mxu1 }
0x4173   : > { %23173 = vmatpush3.bf16.msra.mxu0 %v23170_v28 }
0x4174   : > { %23181 = vmatprep.subr.bf16.mxu0 %v23180_v29 }
0x4176   : > { %22100 = vmatmul.mubr.msk.f32.vlgmr.msra.gmra.mrb[206].mxu0 %vm725_vm0, %v22090_v3 }
0x4177   : > { %23183 = vmatpush3.bf16.msra.mxu0 %v23180_v29  ;;  %22117 = vmatprep.mubr.msk.f32.mxu0 %vm725_vm0, %v17965_v26 }
0x4178   : > { %23185 = vmatprep.subr.bf16.mxu0 %v23184_v31 }
0x417b   : > { %23187 = vmatpush3.bf16.msra.mxu0 %v23184_v31 }
0x417c   : > { %23195 = vmatprep.subr.bf16.mxu0 %v23194_v11 }
0x417e   : > { %22118 = vmatmul.mubr.msk.f32.vlgmr.msra.gmra.mrb[206].mxu0 %vm725_vm0, %v22108_v8 }
0x417f   : > { %23197 = vmatpush3.bf16.msra.mxu0 %v23194_v11  ;;  %22135 = vmatprep.mubr.msk.f32.mxu0 %vm725_vm0, %v18128_v42 }
0x4180   : > { %23199 = vmatprep.subr.bf16.mxu0 %v23198_v56 }
0x4183   : > { %23201 = vmatpush3.bf16.msra.mxu0 %v23198_v56 }
0x4184   : > { %23209 = vmatprep.subr.bf16.mxu0 %v23208_v62 }
0x4186   : > { %22136 = vmatmul.mubr.msk.f32.vlgmr.msra.gmra.mrb[206].mxu0 %vm725_vm0, %v22126_v40 }
0x4187   : > { %23211 = vmatpush3.bf16.msra.mxu0 %v23208_v62  ;;  %22153 = vmatprep.mubr.msk.f32.mxu0 %vm725_vm0, %v18291_v30 }
0x4188   : > { %23213 = vmatprep.subr.bf16.mxu0 %v23212_v24 }
0x418b   : > { %23215 = vmatpush3.bf16.msra.mxu0 %v23212_v24 }
0x418c   : > { %23223 = vmatprep.subr.bf16.mxu0 %v23222_v5 }
0x418e   : > { %22154 = vmatmul.mubr.msk.f32.vlgmr.msra.gmra.mrb[206].mxu0 %vm725_vm0, %v22144_v44 }
0x418f   : > { %23225 = vmatpush3.bf16.msra.mxu0 %v23222_v5  ;;  %22171 = vmatprep.mubr.msk.f32.mxu0 %vm725_vm0, %v18454_v9 }
0x4190   : > { %23227 = vmatprep.subr.bf16.mxu0 %v23226_v25 }
0x4193   : > { %23229 = vmatpush3.bf16.msra.mxu0 %v23226_v25 }
0x4196   : > { %22172 = vmatmul.mubr.msk.f32.vlgmr.msra.gmra.mrb[206].mxu0 %vm725_vm0, %v22162_v14 }
0x4269   : > { %v22173_v46 = vpop.f32.mrb[206].mxu0 }
0x426a   : > { %v18552_v6 = vmax.f32 %v22173_v46, 0.0  ;;  %v18540_v10 = vpop.f32.mrb[207].mxu0 }
0x426b   : > { %v18551_v49 = vmax.f32 %v18540_v10, 0.0 }
0x426c   : > { %v18560_v22 = vmul.f32 %v18558_v48, %v18552_v6 }
0x426d   : > { %v18559_v53 = vmul.f32 %v18558_v48, %v18551_v49 }
0x426e   : > { %v18562_v32 = vadd.f32 %v18560_v22, %v18556_v45 }
0x426f   : > { %v18561_v33 = vadd.f32 %v18559_v53, %v18555_v12 }
0x4270   : > { %v18564_v15 = vadd.f32 %v23379_v21, %v18562_v32 }
0x4271   : > { %v18563_v13 = vadd.f32 %v23380_v0, %v18561_v33 }
0x4272   : > { %18566 = vst.msk [vmem:[%s697_s4 + $0x8] sm:$0x1] %vm3981_vm7, %v18564_v15 }
0x4273   : > { %18565 = vst.msk [vmem:[%s697_s4] sm:$0xff] %vm725_vm0, %v18563_v13 }
0x4274 PF: > { %s26527_s3 = sld [smem:[#allocation5_spill]] }
0x427a   : > { %s33_s3 = sadd.s32 1, %s26527_s3  }
0x427b   : > { %p30_p1 = scmp.ge.s32.totalorder %s33_s3, 4  }
0x427d   :  { %32 = sbr.rel (!%p30_p1) target bundleno = 11 (0xb), region = 302 }
0x4284   :  { %18588 = vsyncpa [#allocation3], 1 }
0x4285   :  { %18590 = vsyncpa [#allocation3 + $0x1], 1 }

</bundles_post_ra>
